<compile_context>
chip_gen: v7x
topology: tpu7x:2x2x1
jax: 0.10.0
libtpu: 0.0.40
codegen_flags: <defaults>
</compile_context>

<pallas_src>
import functools

import numpy as np
import jax
import jax.numpy as jnp
from jax.experimental import pallas as pl
from jax.experimental.pallas import tpu as pltpu


ENC_C1 = 16          # block-1 output channels
ENC_C2 = 32          # block-2 (final) output channels


# ----------------------------------------------------------------------------
# Kernel 1: fused encoder (both conv blocks).
# Activation layout (H, W, N, C): spatial dims are major, image index N is the
# sublane dim, channels are the lane dim, so conv taps / pooling are pure
# major-dim slices + reshapes.
#   block 1: im2col'd input (lanes = 9 taps x 3 ch = 27) -> ONE K=27 matmul
#            -> bias -> ReLU -> 2x2 maxpool -> zero-halo VMEM scratch.
#   block 2: 9-tap conv (K = 16 real channels, bf16 operands) -> bias -> ReLU
#            -> 2x2 maxpool -> bf16 store.
# ----------------------------------------------------------------------------
def _encoder_kernel(x0_ref, w0_ref, b0_ref, w1_ref, b1_ref, o_ref, pad1_ref):
    h, w, ni, k0 = x0_ref.shape
    ho, wo = h // 2, w // 2
    c1 = w0_ref.shape[1]
    c2 = w1_ref.shape[2]

    # ---- block 1: conv3x3(same) as a single K=27 matmul --------------------
    # f32 reshape is sublane-aligned (ni == 8); one down-cast feeds the MXU.
    x0 = x0_ref[...].reshape(h * w * ni, k0).astype(jnp.bfloat16)
    y0 = jnp.dot(x0, w0_ref[...], preferred_element_type=jnp.float32)
    y0 = jnp.maximum(y0 + b0_ref[...], 0.0)
    y0 = y0.reshape(ho, 2, wo, 2, ni, c1)
    y0 = jnp.max(jnp.max(y0, axis=3), axis=1)            # (ho, wo, ni, c1)

    # zero halo for block 2's 'same' padding (VMEM scratch; interior is fully
    # overwritten every grid step, so this stays correct under megacore).
    pad1_ref[...] = jnp.zeros_like(pad1_ref)
    pad1_ref[1:ho + 1, 1:wo + 1, :, :] = y0

    # ---- block 2: 9-tap conv + bias + ReLU + 2x2 maxpool --------------------
    h1, w1 = ho, wo
    ho2, wo2 = h1 // 2, w1 // 2
    acc = jnp.zeros((h1 * w1 * ni, c2), jnp.float32)     # 64 KB -> stays in vregs
    for kh in range(3):
        for kw in range(3):
            xt = pad1_ref[kh:kh + h1, kw:kw + w1, :, :].reshape(h1 * w1 * ni, c1)
            acc = acc + jnp.dot(xt.astype(jnp.bfloat16), w1_ref[kh * 3 + kw],
                                preferred_element_type=jnp.float32)
    y1 = jnp.maximum(acc + b1_ref[...], 0.0)
    y1 = y1.reshape(ho2, 2, wo2, 2, ni, c2)
    y1 = jnp.max(jnp.max(y1, axis=3), axis=1)            # (ho2, wo2, ni, c2)
    o_ref[...] = y1.astype(o_ref.dtype)


def encoder_apply(x_nchw, w0, b0, w1, b1):
    n, c, h, w = x_nchw.shape
    assert n % 8 == 0, "image count must be a multiple of 8 (sublane tiling)"
    assert h % 4 == 0 and w % 4 == 0, "two 2x2 maxpools need H, W % 4 == 0"
    # Host im2col: (N,3,H,W) -> (H,W,N,3) -> pad -> 9 shifted taps on lanes.
    xp = jnp.pad(jnp.transpose(x_nchw, (2, 3, 0, 1)),
                 ((1, 1), (1, 1), (0, 0), (0, 0)))
    taps = [xp[kh:kh + h, kw:kw + w] for kh in range(3) for kw in range(3)]
    x0 = jnp.concatenate(taps, axis=-1).astype(jnp.float32)   # (H, W, N, 27)

    # >= 2 grid steps over images keeps both v7x TensorCores busy; the image
    # block stays sublane-aligned (multiple of 8).
    ni = 8 if (n % 8 == 0 and n > 8) else n
    ho2, wo2 = h // 4, w // 4
    return pl.pallas_call(
        _encoder_kernel,
        out_shape=jax.ShapeDtypeStruct((ho2, wo2, n, ENC_C2), jnp.bfloat16),
        grid=(n // ni,),
        in_specs=[
            pl.BlockSpec((h, w, ni, x0.shape[-1]), lambda i: (0, 0, i, 0)),
            pl.BlockSpec((9 * c, ENC_C1), lambda i: (0, 0)),
            pl.BlockSpec((1, ENC_C1), lambda i: (0, 0)),
            pl.BlockSpec((9, ENC_C1, ENC_C2), lambda i: (0, 0, 0)),
            pl.BlockSpec((1, ENC_C2), lambda i: (0, 0)),
        ],
        out_specs=pl.BlockSpec((ho2, wo2, ni, ENC_C2), lambda i: (0, 0, i, 0)),
        scratch_shapes=[
            pltpu.VMEM((h // 2 + 2, w // 2 + 2, ni, ENC_C1), jnp.float32)],
        compiler_params=pltpu.CompilerParams(
            dimension_semantics=("parallel",)),
    )(x0, w0, b0, w1, b1)


# ----------------------------------------------------------------------------
# Kernel 2: fused metric head, one grid step per episode ("parallel").
#   pyramid pooling (bf16 MXU matmul against the pooling matrix P),
#   channel-mean centering, class-prototype averaging (scalar weights from
#   SMEM), L2-normalisation and cosine logits; one output store per episode.
# ----------------------------------------------------------------------------
def _head_kernel(avg_ref, sup_ref, qry_ref, p_ref, o_ref, *, center):
    e = pl.program_id(0)
    _, s, c, hw = sup_ref.shape
    q = qry_ref.shape[1]
    n_way = o_ref.shape[2]
    lp = p_ref.shape[1]

    # (s, c, hw) -> (s*c, hw): aligned major+sublane merge (c % 16 == 0).
    sup = sup_ref[0].reshape(s * c, hw)
    qry = qry_ref[0].reshape(q * c, hw)
    p = p_ref[...]
    ys = jnp.dot(sup, p, preferred_element_type=jnp.float32).reshape(s, c, lp)
    yq = jnp.dot(qry, p, preferred_element_type=jnp.float32).reshape(q, c, lp)
    if center:                                  # subtract per-position channel mean
        ys = ys - jnp.mean(ys, axis=1, keepdims=True)
        yq = yq - jnp.mean(yq, axis=1, keepdims=True)

    qn = yq * jax.lax.rsqrt(
        jnp.sum(jnp.sum(yq * yq, axis=2, keepdims=True), axis=1, keepdims=True)
        + 1e-8)

    col = jax.lax.broadcasted_iota(jnp.int32, (q, n_way), 1)
    logits = jnp.zeros((q, n_way), jnp.float32)
    for k in range(n_way):                      # classes (static, tiny)
        proto = jnp.zeros((c, lp), jnp.float32)
        for i in range(s):                      # class-mean prototype
            proto = proto + avg_ref[e * n_way + k, i] * ys[i]
        pn = proto * jax.lax.rsqrt(
            jnp.sum(jnp.sum(proto * proto, axis=1, keepdims=True),
                    axis=0, keepdims=True) + 1e-8)
        sim = jnp.sum(jnp.sum(qn * pn[None, :, :], axis=2),
                      axis=1, keepdims=True)    # (q, 1) cosine
        logits = logits + jnp.where(col == k, sim, 0.0)
    o_ref[0] = logits


def cosine_pyramid_query(sup_f, qry_f, pool_mat, avg_mat, *, center):
    b, s, c, hw = sup_f.shape
    q = qry_f.shape[1]
    n_way = avg_mat.shape[0] // b
    lp = pool_mat.shape[1]
    return pl.pallas_call(
        functools.partial(_head_kernel, center=center),
        out_shape=jax.ShapeDtypeStruct((b, q, n_way), jnp.float32),
        grid=(b,),
        in_specs=[
            pl.BlockSpec(memory_space=pltpu.MemorySpace.SMEM),   # (b*n_way, s)
            pl.BlockSpec((1, s, c, hw), lambda e: (e, 0, 0, 0)),
            pl.BlockSpec((1, q, c, hw), lambda e: (e, 0, 0, 0)),
            pl.BlockSpec((hw, lp), lambda e: (0, 0)),
        ],
        out_specs=pl.BlockSpec((1, q, n_way), lambda e: (e, 0, 0)),
        compiler_params=pltpu.CompilerParams(
            dimension_semantics=("parallel",)),
    )(avg_mat, sup_f, qry_f, pool_mat)


# ----------------------------------------------------------------------------
# Host-side glue: parameter prep, pooling matrix, forward pass.
# ----------------------------------------------------------------------------
def init_encoder_params(key):
    # Conv-4-style (2 blocks): 3->16->32, BN as per-channel scale/bias.
    k = jax.random.split(key, 6)
    w_a = jax.random.normal(k[0], (ENC_C1, 3, 3, 3), jnp.float32) * 0.1
    s_a = 1.0 + 0.05 * jax.random.normal(k[1], (ENC_C1,), jnp.float32)
    b_a = 0.05 * jax.random.normal(k[2], (ENC_C1,), jnp.float32)
    w_b = jax.random.normal(k[3], (ENC_C2, ENC_C1, 3, 3), jnp.float32) * 0.1
    s_b = 1.0 + 0.05 * jax.random.normal(k[4], (ENC_C2,), jnp.float32)
    b_b = 0.05 * jax.random.normal(k[5], (ENC_C2,), jnp.float32)
    return (w_a, s_a, b_a), (w_b, s_b, b_b)


def prepare_encoder_params(raw_params):
    """Fold BN scale into the conv weights.  Block 1 is laid out for the
    im2col matmul as (9 taps * 3 ch, C1); block 2 as 9 taps of (C1, C2).
    No 128-lane zero padding: channels stay at their real widths."""
    (w_a, s_a, b_a), (w_b, s_b, b_b) = raw_params
    w0 = jnp.transpose(w_a * s_a[:, None, None, None], (2, 3, 1, 0))
    w0 = w0.reshape(9 * w_a.shape[1], ENC_C1)
    w1 = jnp.transpose(w_b * s_b[:, None, None, None], (2, 3, 1, 0))
    w1 = w1.reshape(9, ENC_C1, ENC_C2)
    return (w0.astype(jnp.bfloat16),
            b_a.reshape(1, ENC_C1).astype(jnp.float32),
            w1.astype(jnp.bfloat16),
            b_b.reshape(1, ENC_C2).astype(jnp.float32))


def build_pyramid_matrix(fh, fw, pyramid_list):
    # Columns reproduce torch: [adaptive_avg_pool2d(size) for size in list] + identity.
    cols = []
    for size in pyramid_list:
        for oi in range(size):
            r0, r1 = (oi * fh) // size, -(-((oi + 1) * fh) // size)
            for oj in range(size):
                c0, c1 = (oj * fw) // size, -(-((oj + 1) * fw) // size)
                col = np.zeros((fh * fw,), np.float32)
                inv = 1.0 / ((r1 - r0) * (c1 - c0))
                for r in range(r0, r1):
                    for cc in range(c0, c1):
                        col[r * fw + cc] = inv
                cols.append(col)
    pool_cols = np.stack(cols, axis=1) if cols else np.zeros((fh * fw, 0), np.float32)
    full = np.concatenate([pool_cols, np.eye(fh * fw, dtype=np.float32)], axis=1)
    return jnp.asarray(full)                      # (fh*fw, L)


def fsl_query_forward(support_x, support_y, query_x, query_y,
                      enc_params, pyramid_list, n_way):
    # TODO(synk): query_y is only consumed by the training loss in the original
    # repo; the inference hot path returns logits and ignores it.
    b, s, c, h, w = support_x.shape
    q = query_x.shape[1]
    w0, b0, w1, b1 = enc_params
    x_all = jnp.concatenate([support_x.reshape(-1, c, h, w),
                             query_x.reshape(-1, c, h, w)], axis=0)
    feat = encoder_apply(x_all, w0, b0, w1, b1)   # (fh, fw, N, C2) bf16
    fh, fw, n_img, c2 = feat.shape
    hw = fh * fw

    # Small relayout to the head layout (N, C, HW); un-padded bf16 (~16 KB),
    # fused with the support/query split into one tiny XLA op.
    # TODO(synk): could be folded into the encoder epilogue with a minor-dims
    # transpose; kept on the host for lowering robustness.
    f_flat = jnp.transpose(feat, (2, 3, 0, 1)).reshape(n_img, c2, hw)
    sup_f = f_flat[:b * s].reshape(b, s, c2, hw)
    qry_f = f_flat[b * s:].reshape(b, q, c2, hw)

    if pyramid_list:
        pool_mat = build_pyramid_matrix(fh, fw, pyramid_list)   # (HW, L)
        center = True
    else:
        pool_mat = jnp.eye(hw, dtype=jnp.float32)
        center = False
    pool_mat = pool_mat.astype(jnp.bfloat16)      # averaging weights + identity

    # class-averaging weights (b*n_way, s): onehot / per-class count.
    onehot = jax.nn.one_hot(support_y, n_way, dtype=jnp.float32)  # (b, s, n_way)
    counts = jnp.maximum(onehot.sum(axis=1), 1.0)                 # (b, n_way)
    avg_mat = (jnp.swapaxes(onehot, 1, 2) / counts[:, :, None]).reshape(
        b * n_way, s)

    return cosine_pyramid_query(sup_f, qry_f, pool_mat, avg_mat, center=center)


# ----------------------------------------------------------------------------
if __name__ == "__main__":
    key = jax.random.PRNGKey(0)
    k_enc, k_sx, k_qx = jax.random.split(key, 3)

    b, s, q = 2, 4, 4          # 2 episodes, 2-way 2-shot, 4 queries
    c, h, w = 3, 16, 16
    n_way = 2
    pyramid_list = [1, 2]

    raw_params = init_encoder_params(k_enc)
    enc_params = prepare_encoder_params(raw_params)
    support_x = jax.random.normal(k_sx, (b, s, c, h, w), jnp.float32)
    query_x = jax.random.normal(k_qx, (b, q, c, h, w), jnp.float32)
    support_y = jnp.array([[0, 0, 1, 1], [0, 1, 0, 1]], jnp.int32)
    query_y = jnp.array([[0, 1, 0, 1], [1, 0, 1, 0]], jnp.int32)

    logits = fsl_query_forward(support_x, support_y, query_x, query_y,
                               enc_params, pyramid_list, n_way)
    logits = jax.block_until_ready(logits)
    assert logits.shape == (b, q, n_way)
    assert bool(jnp.all(jnp.isfinite(logits)))
    print("KERNEL_OK")
</pallas_src>

<mosaic_0001>
module attributes {stable_mosaic.version = 11 : i64} {
  func.func @_encoder_kernel(%arg0: i32, %arg1: memref<16x16x8x27xf32, #tpu.memory_space<vmem>>, %arg2: memref<27x16xbf16, #tpu.memory_space<vmem>>, %arg3: memref<1x16xf32, #tpu.memory_space<vmem>>, %arg4: memref<9x16x32xbf16, #tpu.memory_space<vmem>>, %arg5: memref<1x32xf32, #tpu.memory_space<vmem>>, %arg6: memref<4x4x8x32xbf16, #tpu.memory_space<vmem>>, %arg7: memref<10x10x8x16xf32, #tpu.memory_space<vmem>>) attributes {dimension_semantics = [#tpu.dimension_semantics<parallel>], iteration_bounds = array<i64: 2>, scalar_prefetch = 0 : i64, scratch_operands = 1 : i64, tpu.core_type = #tpu.core_type<tc>, window_params = [{transform_indices = @transform_0, window_bounds = array<i64: 16, 16, 8, 27>}, {pipeline_mode = #tpu.pipeline_mode<synchronous>, transform_indices = @transform_1, window_bounds = array<i64: 27, 16>}, {pipeline_mode = #tpu.pipeline_mode<synchronous>, transform_indices = @transform_2, window_bounds = array<i64: 1, 16>}, {pipeline_mode = #tpu.pipeline_mode<synchronous>, transform_indices = @transform_3, window_bounds = array<i64: 9, 16, 32>}, {pipeline_mode = #tpu.pipeline_mode<synchronous>, transform_indices = @transform_4, window_bounds = array<i64: 1, 32>}, {transform_indices = @transform_5, window_bounds = array<i64: 4, 4, 8, 32>}]} {
    %c0 = arith.constant 0 : index
    %c0_0 = arith.constant 0 : index
    %c0_1 = arith.constant 0 : index
    %c0_2 = arith.constant 0 : index
    %0 = vector.load %arg1[%c0, %c0_0, %c0_1, %c0_2] : memref<16x16x8x27xf32, #tpu.memory_space<vmem>>, vector<16x16x8x27xf32>
    %1 = vector.shape_cast %0 : vector<16x16x8x27xf32> to vector<2048x27xf32>
    %2 = arith.truncf %1 : vector<2048x27xf32> to vector<2048x27xbf16>
    %c0_3 = arith.constant 0 : index
    %c0_4 = arith.constant 0 : index
    %3 = vector.load %arg2[%c0_3, %c0_4] : memref<27x16xbf16, #tpu.memory_space<vmem>>, vector<27x16xbf16>
    %cst = arith.constant dense<0.000000e+00> : vector<2048x16xf32>
    %4 = tpu.matmul %2, %3, %cst {dimension_numbers = #tpu.dot_dimension_numbers<[1], [0], [0], [1], [0, 0, 1, 1], [], []>} : vector<2048x27xbf16>, vector<27x16xbf16>, vector<2048x16xf32> -> vector<2048x16xf32>
    %c0_5 = arith.constant 0 : index
    %c0_6 = arith.constant 0 : index
    %5 = vector.load %arg3[%c0_5, %c0_6] : memref<1x16xf32, #tpu.memory_space<vmem>>, vector<1x16xf32>
    %6 = vector.broadcast %5 : vector<1x16xf32> to vector<2048x16xf32>
    %7 = arith.addf %4, %6 : vector<2048x16xf32>
    %cst_7 = arith.constant 0.000000e+00 : f32
    %8 = vector.broadcast %cst_7 : f32 to vector<2048x16xf32>
    %9 = arith.maximumf %7, %8 : vector<2048x16xf32>
    %10 = vector.shape_cast %9 : vector<2048x16xf32> to vector<8x2x8x2x8x16xf32>
    %cst_8 = arith.constant dense<0xFF800000> : vector<8x2x8x8x16xf32>
    %11 = vector.multi_reduction <maximumf>, %10, %cst_8 [3] : vector<8x2x8x2x8x16xf32> to vector<8x2x8x8x16xf32>
    %cst_9 = arith.constant dense<0xFF800000> : vector<8x8x8x16xf32>
    %12 = vector.multi_reduction <maximumf>, %11, %cst_9 [1] : vector<8x2x8x8x16xf32> to vector<8x8x8x16xf32>
    %cst_10 = arith.constant 0.000000e+00 : f32
    %13 = vector.broadcast %cst_10 : f32 to vector<10x10x8x16xf32>
    %c0_11 = arith.constant 0 : index
    %c0_12 = arith.constant 0 : index
    %c0_13 = arith.constant 0 : index
    %c0_14 = arith.constant 0 : index
    %14 = vector.load %arg7[%c0_11, %c0_12, %c0_13, %c0_14] : memref<10x10x8x16xf32, #tpu.memory_space<vmem>>, vector<10x10x8x16xf32>
    tpu.vector_store %arg7[%c0_11, %c0_12, %c0_13, %c0_14], %13 {strides = array<i32>} : memref<10x10x8x16xf32, #tpu.memory_space<vmem>>, vector<10x10x8x16xf32>,
    %c1 = arith.constant 1 : index
    %c1_15 = arith.constant 1 : index
    %c0_16 = arith.constant 0 : index
    %c0_17 = arith.constant 0 : index
    %15 = vector.load %arg7[%c1, %c1_15, %c0_16, %c0_17] : memref<10x10x8x16xf32, #tpu.memory_space<vmem>>, vector<8x8x8x16xf32>
    tpu.vector_store %arg7[%c1, %c1_15, %c0_16, %c0_17], %12 {strides = array<i32>} : memref<10x10x8x16xf32, #tpu.memory_space<vmem>>, vector<8x8x8x16xf32>,
    %cst_18 = arith.constant 0.000000e+00 : f32
    %16 = vector.broadcast %cst_18 : f32 to vector<512x32xf32>
    %c0_19 = arith.constant 0 : index
    %c0_20 = arith.constant 0 : index
    %c0_21 = arith.constant 0 : index
    %c0_22 = arith.constant 0 : index
    %17 = vector.load %arg7[%c0_19, %c0_20, %c0_21, %c0_22] : memref<10x10x8x16xf32, #tpu.memory_space<vmem>>, vector<8x8x8x16xf32>
    %18 = vector.shape_cast %17 : vector<8x8x8x16xf32> to vector<512x16xf32>
    %19 = arith.truncf %18 : vector<512x16xf32> to vector<512x16xbf16>
    %c0_23 = arith.constant 0 : index
    %c0_24 = arith.constant 0 : index
    %c0_25 = arith.constant 0 : index
    %20 = vector.load %arg4[%c0_23, %c0_24, %c0_25] : memref<9x16x32xbf16, #tpu.memory_space<vmem>>, vector<1x16x32xbf16>
    %21 = vector.shape_cast %20 : vector<1x16x32xbf16> to vector<16x32xbf16>
    %cst_26 = arith.constant dense<0.000000e+00> : vector<512x32xf32>
    %22 = tpu.matmul %19, %21, %cst_26 {dimension_numbers = #tpu.dot_dimension_numbers<[1], [0], [0], [1], [0, 0, 1, 1], [], []>} : vector<512x16xbf16>, vector<16x32xbf16>, vector<512x32xf32> -> vector<512x32xf32>
    %23 = arith.addf %16, %22 : vector<512x32xf32>
    %c0_27 = arith.constant 0 : index
    %c1_28 = arith.constant 1 : index
    %c0_29 = arith.constant 0 : index
    %c0_30 = arith.constant 0 : index
    %24 = vector.load %arg7[%c0_27, %c1_28, %c0_29, %c0_30] : memref<10x10x8x16xf32, #tpu.memory_space<vmem>>, vector<8x8x8x16xf32>
    %25 = vector.shape_cast %24 : vector<8x8x8x16xf32> to vector<512x16xf32>
    %26 = arith.truncf %25 : vector<512x16xf32> to vector<512x16xbf16>
    %c1_31 = arith.constant 1 : index
    %c0_32 = arith.constant 0 : index
    %c0_33 = arith.constant 0 : index
    %27 = vector.load %arg4[%c1_31, %c0_32, %c0_33] : memref<9x16x32xbf16, #tpu.memory_space<vmem>>, vector<1x16x32xbf16>
    %28 = vector.shape_cast %27 : vector<1x16x32xbf16> to vector<16x32xbf16>
    %cst_34 = arith.constant dense<0.000000e+00> : vector<512x32xf32>
    %29 = tpu.matmul %26, %28, %cst_34 {dimension_numbers = #tpu.dot_dimension_numbers<[1], [0], [0], [1], [0, 0, 1, 1], [], []>} : vector<512x16xbf16>, vector<16x32xbf16>, vector<512x32xf32> -> vector<512x32xf32>
    %30 = arith.addf %23, %29 : vector<512x32xf32>
    %c0_35 = arith.constant 0 : index
    %c2 = arith.constant 2 : index
    %c0_36 = arith.constant 0 : index
    %c0_37 = arith.constant 0 : index
    %31 = vector.load %arg7[%c0_35, %c2, %c0_36, %c0_37] : memref<10x10x8x16xf32, #tpu.memory_space<vmem>>, vector<8x8x8x16xf32>
    %32 = vector.shape_cast %31 : vector<8x8x8x16xf32> to vector<512x16xf32>
    %33 = arith.truncf %32 : vector<512x16xf32> to vector<512x16xbf16>
    %c2_38 = arith.constant 2 : index
    %c0_39 = arith.constant 0 : index
    %c0_40 = arith.constant 0 : index
    %34 = vector.load %arg4[%c2_38, %c0_39, %c0_40] : memref<9x16x32xbf16, #tpu.memory_space<vmem>>, vector<1x16x32xbf16>
    %35 = vector.shape_cast %34 : vector<1x16x32xbf16> to vector<16x32xbf16>
    %cst_41 = arith.constant dense<0.000000e+00> : vector<512x32xf32>
    %36 = tpu.matmul %33, %35, %cst_41 {dimension_numbers = #tpu.dot_dimension_numbers<[1], [0], [0], [1], [0, 0, 1, 1], [], []>} : vector<512x16xbf16>, vector<16x32xbf16>, vector<512x32xf32> -> vector<512x32xf32>
    %37 = arith.addf %30, %36 : vector<512x32xf32>
    %c1_42 = arith.constant 1 : index
    %c0_43 = arith.constant 0 : index
    %c0_44 = arith.constant 0 : index
    %c0_45 = arith.constant 0 : index
    %38 = vector.load %arg7[%c1_42, %c0_43, %c0_44, %c0_45] : memref<10x10x8x16xf32, #tpu.memory_space<vmem>>, vector<8x8x8x16xf32>
    %39 = vector.shape_cast %38 : vector<8x8x8x16xf32> to vector<512x16xf32>
    %40 = arith.truncf %39 : vector<512x16xf32> to vector<512x16xbf16>
    %c3 = arith.constant 3 : index
    %c0_46 = arith.constant 0 : index
    %c0_47 = arith.constant 0 : index
    %41 = vector.load %arg4[%c3, %c0_46, %c0_47] : memref<9x16x32xbf16, #tpu.memory_space<vmem>>, vector<1x16x32xbf16>
    %42 = vector.shape_cast %41 : vector<1x16x32xbf16> to vector<16x32xbf16>
    %cst_48 = arith.constant dense<0.000000e+00> : vector<512x32xf32>
    %43 = tpu.matmul %40, %42, %cst_48 {dimension_numbers = #tpu.dot_dimension_numbers<[1], [0], [0], [1], [0, 0, 1, 1], [], []>} : vector<512x16xbf16>, vector<16x32xbf16>, vector<512x32xf32> -> vector<512x32xf32>
    %44 = arith.addf %37, %43 : vector<512x32xf32>
    %c1_49 = arith.constant 1 : index
    %c1_50 = arith.constant 1 : index
    %c0_51 = arith.constant 0 : index
    %c0_52 = arith.constant 0 : index
    %45 = vector.load %arg7[%c1_49, %c1_50, %c0_51, %c0_52] : memref<10x10x8x16xf32, #tpu.memory_space<vmem>>, vector<8x8x8x16xf32>
    %46 = vector.shape_cast %45 : vector<8x8x8x16xf32> to vector<512x16xf32>
    %47 = arith.truncf %46 : vector<512x16xf32> to vector<512x16xbf16>
    %c4 = arith.constant 4 : index
    %c0_53 = arith.constant 0 : index
    %c0_54 = arith.constant 0 : index
    %48 = vector.load %arg4[%c4, %c0_53, %c0_54] : memref<9x16x32xbf16, #tpu.memory_space<vmem>>, vector<1x16x32xbf16>
    %49 = vector.shape_cast %48 : vector<1x16x32xbf16> to vector<16x32xbf16>
    %cst_55 = arith.constant dense<0.000000e+00> : vector<512x32xf32>
    %50 = tpu.matmul %47, %49, %cst_55 {dimension_numbers = #tpu.dot_dimension_numbers<[1], [0], [0], [1], [0, 0, 1, 1], [], []>} : vector<512x16xbf16>, vector<16x32xbf16>, vector<512x32xf32> -> vector<512x32xf32>
    %51 = arith.addf %44, %50 : vector<512x32xf32>
    %c1_56 = arith.constant 1 : index
    %c2_57 = arith.constant 2 : index
    %c0_58 = arith.constant 0 : index
    %c0_59 = arith.constant 0 : index
    %52 = vector.load %arg7[%c1_56, %c2_57, %c0_58, %c0_59] : memref<10x10x8x16xf32, #tpu.memory_space<vmem>>, vector<8x8x8x16xf32>
    %53 = vector.shape_cast %52 : vector<8x8x8x16xf32> to vector<512x16xf32>
    %54 = arith.truncf %53 : vector<512x16xf32> to vector<512x16xbf16>
    %c5 = arith.constant 5 : index
    %c0_60 = arith.constant 0 : index
    %c0_61 = arith.constant 0 : index
    %55 = vector.load %arg4[%c5, %c0_60, %c0_61] : memref<9x16x32xbf16, #tpu.memory_space<vmem>>, vector<1x16x32xbf16>
    %56 = vector.shape_cast %55 : vector<1x16x32xbf16> to vector<16x32xbf16>
    %cst_62 = arith.constant dense<0.000000e+00> : vector<512x32xf32>
    %57 = tpu.matmul %54, %56, %cst_62 {dimension_numbers = #tpu.dot_dimension_numbers<[1], [0], [0], [1], [0, 0, 1, 1], [], []>} : vector<512x16xbf16>, vector<16x32xbf16>, vector<512x32xf32> -> vector<512x32xf32>
    %58 = arith.addf %51, %57 : vector<512x32xf32>
    %c2_63 = arith.constant 2 : index
    %c0_64 = arith.constant 0 : index
    %c0_65 = arith.constant 0 : index
    %c0_66 = arith.constant 0 : index
    %59 = vector.load %arg7[%c2_63, %c0_64, %c0_65, %c0_66] : memref<10x10x8x16xf32, #tpu.memory_space<vmem>>, vector<8x8x8x16xf32>
    %60 = vector.shape_cast %59 : vector<8x8x8x16xf32> to vector<512x16xf32>
    %61 = arith.truncf %60 : vector<512x16xf32> to vector<512x16xbf16>
    %c6 = arith.constant 6 : index
    %c0_67 = arith.constant 0 : index
    %c0_68 = arith.constant 0 : index
    %62 = vector.load %arg4[%c6, %c0_67, %c0_68] : memref<9x16x32xbf16, #tpu.memory_space<vmem>>, vector<1x16x32xbf16>
    %63 = vector.shape_cast %62 : vector<1x16x32xbf16> to vector<16x32xbf16>
    %cst_69 = arith.constant dense<0.000000e+00> : vector<512x32xf32>
    %64 = tpu.matmul %61, %63, %cst_69 {dimension_numbers = #tpu.dot_dimension_numbers<[1], [0], [0], [1], [0, 0, 1, 1], [], []>} : vector<512x16xbf16>, vector<16x32xbf16>, vector<512x32xf32> -> vector<512x32xf32>
    %65 = arith.addf %58, %64 : vector<512x32xf32>
    %c2_70 = arith.constant 2 : index
    %c1_71 = arith.constant 1 : index
    %c0_72 = arith.constant 0 : index
    %c0_73 = arith.constant 0 : index
    %66 = vector.load %arg7[%c2_70, %c1_71, %c0_72, %c0_73] : memref<10x10x8x16xf32, #tpu.memory_space<vmem>>, vector<8x8x8x16xf32>
    %67 = vector.shape_cast %66 : vector<8x8x8x16xf32> to vector<512x16xf32>
    %68 = arith.truncf %67 : vector<512x16xf32> to vector<512x16xbf16>
    %c7 = arith.constant 7 : index
    %c0_74 = arith.constant 0 : index
    %c0_75 = arith.constant 0 : index
    %69 = vector.load %arg4[%c7, %c0_74, %c0_75] : memref<9x16x32xbf16, #tpu.memory_space<vmem>>, vector<1x16x32xbf16>
    %70 = vector.shape_cast %69 : vector<1x16x32xbf16> to vector<16x32xbf16>
    %cst_76 = arith.constant dense<0.000000e+00> : vector<512x32xf32>
    %71 = tpu.matmul %68, %70, %cst_76 {dimension_numbers = #tpu.dot_dimension_numbers<[1], [0], [0], [1], [0, 0, 1, 1], [], []>} : vector<512x16xbf16>, vector<16x32xbf16>, vector<512x32xf32> -> vector<512x32xf32>
    %72 = arith.addf %65, %71 : vector<512x32xf32>
    %c2_77 = arith.constant 2 : index
    %c2_78 = arith.constant 2 : index
    %c0_79 = arith.constant 0 : index
    %c0_80 = arith.constant 0 : index
    %73 = vector.load %arg7[%c2_77, %c2_78, %c0_79, %c0_80] : memref<10x10x8x16xf32, #tpu.memory_space<vmem>>, vector<8x8x8x16xf32>
    %74 = vector.shape_cast %73 : vector<8x8x8x16xf32> to vector<512x16xf32>
    %75 = arith.truncf %74 : vector<512x16xf32> to vector<512x16xbf16>
    %c8 = arith.constant 8 : index
    %c0_81 = arith.constant 0 : index
    %c0_82 = arith.constant 0 : index
    %76 = vector.load %arg4[%c8, %c0_81, %c0_82] : memref<9x16x32xbf16, #tpu.memory_space<vmem>>, vector<1x16x32xbf16>
    %77 = vector.shape_cast %76 : vector<1x16x32xbf16> to vector<16x32xbf16>
    %cst_83 = arith.constant dense<0.000000e+00> : vector<512x32xf32>
    %78 = tpu.matmul %75, %77, %cst_83 {dimension_numbers = #tpu.dot_dimension_numbers<[1], [0], [0], [1], [0, 0, 1, 1], [], []>} : vector<512x16xbf16>, vector<16x32xbf16>, vector<512x32xf32> -> vector<512x32xf32>
    %79 = arith.addf %72, %78 : vector<512x32xf32>
    %c0_84 = arith.constant 0 : index
    %c0_85 = arith.constant 0 : index
    %80 = vector.load %arg5[%c0_84, %c0_85] : memref<1x32xf32, #tpu.memory_space<vmem>>, vector<1x32xf32>
    %81 = vector.broadcast %80 : vector<1x32xf32> to vector<512x32xf32>
    %82 = arith.addf %79, %81 : vector<512x32xf32>
    %cst_86 = arith.constant 0.000000e+00 : f32
    %83 = vector.broadcast %cst_86 : f32 to vector<512x32xf32>
    %84 = arith.maximumf %82, %83 : vector<512x32xf32>
    %85 = vector.shape_cast %84 : vector<512x32xf32> to vector<4x2x4x2x8x32xf32>
    %cst_87 = arith.constant dense<0xFF800000> : vector<4x2x4x8x32xf32>
    %86 = vector.multi_reduction <maximumf>, %85, %cst_87 [3] : vector<4x2x4x2x8x32xf32> to vector<4x2x4x8x32xf32>
    %cst_88 = arith.constant dense<0xFF800000> : vector<4x4x8x32xf32>
    %87 = vector.multi_reduction <maximumf>, %86, %cst_88 [1] : vector<4x2x4x8x32xf32> to vector<4x4x8x32xf32>
    %88 = arith.truncf %87 : vector<4x4x8x32xf32> to vector<4x4x8x32xbf16>
    %c0_89 = arith.constant 0 : index
    %c0_90 = arith.constant 0 : index
    %c0_91 = arith.constant 0 : index
    %c0_92 = arith.constant 0 : index
    %89 = vector.load %arg6[%c0_89, %c0_90, %c0_91, %c0_92] : memref<4x4x8x32xbf16, #tpu.memory_space<vmem>>, vector<4x4x8x32xbf16>
    tpu.vector_store %arg6[%c0_89, %c0_90, %c0_91, %c0_92], %88 {strides = array<i32>} : memref<4x4x8x32xbf16, #tpu.memory_space<vmem>>, vector<4x4x8x32xbf16>,
    return
  }
  func.func @transform_0(%arg0: i32) -> (i32, i32, i32, i32) {
    %c0_i32 = arith.constant 0 : i32
    %c0_i32_0 = arith.constant 0 : i32
    %c0_i32_1 = arith.constant 0 : i32
    %c0_i32_2 = arith.constant 0 : i32
    return %c0_i32, %c0_i32_0, %arg0, %c0_i32_1 : i32, i32, i32, i32
  }
  func.func @transform_1(%arg0: i32) -> (i32, i32) {
    %c0_i32 = arith.constant 0 : i32
    %c0_i32_0 = arith.constant 0 : i32
    %c0_i32_1 = arith.constant 0 : i32
    return %c0_i32, %c0_i32_0 : i32, i32
  }
  func.func @transform_2(%arg0: i32) -> (i32, i32) {
    %c0_i32 = arith.constant 0 : i32
    %c0_i32_0 = arith.constant 0 : i32
    %c0_i32_1 = arith.constant 0 : i32
    return %c0_i32, %c0_i32_0 : i32, i32
  }
  func.func @transform_3(%arg0: i32) -> (i32, i32, i32) {
    %c0_i32 = arith.constant 0 : i32
    %c0_i32_0 = arith.constant 0 : i32
    %c0_i32_1 = arith.constant 0 : i32
    %c0_i32_2 = arith.constant 0 : i32
    return %c0_i32, %c0_i32_0, %c0_i32_1 : i32, i32, i32
  }
  func.func @transform_4(%arg0: i32) -> (i32, i32) {
    %c0_i32 = arith.constant 0 : i32
    %c0_i32_0 = arith.constant 0 : i32
    %c0_i32_1 = arith.constant 0 : i32
    return %c0_i32, %c0_i32_0 : i32, i32
  }
  func.func @transform_5(%arg0: i32) -> (i32, i32, i32, i32) {
    %c0_i32 = arith.constant 0 : i32
    %c0_i32_0 = arith.constant 0 : i32
    %c0_i32_1 = arith.constant 0 : i32
    %c0_i32_2 = arith.constant 0 : i32
    return %c0_i32, %c0_i32_0, %arg0, %c0_i32_1 : i32, i32, i32, i32
  }
}

</mosaic_0001>

<bundles_post_ra>
// kernel: tpu_custom_call.1
= control target key start
LH: loop header
LB: loop body
LE: loop exit
PB: predicated region body
PF: predicated region fallthrough
CT: control target
= control target key end

     0   :  { %s14837_s0 = inlined_call_operand.hbm [shape: f32[16,16,16,27], index: 0, kind: input, shape index: {}]   ;;  %s14838_s1 = inlined_call_operand.vmem [shape: bf16[27,16], index: 1, kind: input, shape index: {}]   ;;  %s14839_s2 = inlined_call_operand.hbm [shape: f32[1,16], index: 2, kind: input, shape index: {}]   ;;  %s14840_s3 = inlined_call_operand.hbm [shape: bf16[9,16,32], index: 3, kind: input, shape index: {}]   ;;  %s14841_s4 = inlined_call_operand.hbm [shape: f32[1,32], index: 4, kind: input, shape index: {}]   ;;  %s14842_s5 = inlined_call_operand.hbm [shape: bf16[4,4,16,32], index: 5, kind: output, shape index: {}]  }
   0x1   :  { %14928 = sst [smem:[#allocation116_spill]] %s14839_s2 }
   0x2   :  { %10 = vsyncpa [#allocation4], 0 }
   0x3   :  { %12 = vsyncpa [#allocation4 + $0x1], 0 }
   0x4   :  { %13 = vsyncpa [#allocation7], 0 }
   0x5   :  { %14 = vsyncpa [#allocation10], 0 }
   0x6   :  { %15 = vsyncpa [#allocation5], 0 }
   0x7   :  { %17 = vsyncpa [#allocation5 + $0x1], 0  ;;  %s11085_s18 = smov 0   ;;  %s11087_s19 = smov 0  }
   0x8   :  { %s11089_s20 = smov 0   ;;  %s11091_s21 = smov 0  }
   0x9 LB: > { %s11106_s22 = sadd.s32 4294967295, %s11038_s21   ;;  %s8428_s23 = sadd.s32 4294967294, %s11038_s21   ;;  %s11038_s21 = sphi %s11091_s21, %s15293_s21   ;;  %s11034_s20 = sphi %s11089_s20, %s15297_s20   ;;  %s11030_s19 = sphi %s11087_s19, %s15296_s19   ;;  %s11026_s18 = sphi %s11085_s18, %s15295_s18  }
   0xa   : > { %s11110_s24 = sadd.s32 1, %s11038_s21   ;;  %s30_s25 = sadd.s32 1, %s11034_s20 }
   0xb   : > { %14929 = sst [smem:[#allocation16_spill]] %s11110_s24  ;;  %s27_s26 = ssub.s32 %s11038_s21, %s11110_s24 }
   0xc   : > { %p37_p0 = scmp.ne.s32.totalorder %s11034_s20, %s11030_s19  ;;  %p28_p1 = scmp.eq.s32.totalorder %s27_s26, 0 }
   0xd   : > { %p38_p2 = scmp.eq.s32.totalorder %s11038_s21, 0  ;;  %p43_p3 = scmp.ne.s32.totalorder %s11030_s19, %s11026_s18 }
   0xe   : > { %p14843_p4 = scmp.eq.s32.totalorder %s11106_s22, 0  ;;  %p151_p7 = scmp.eq.s32.totalorder %s11106_s22, 1 }
   0xf   : > { %s11122_s27 = scalar_select %p28_p1, %s11034_s20, %s30_s25  }
  0x10   : > { %p11124_p5 = por %p38_p2, %p37_p0  ;;  %p11130_p6 = por %p14843_p4, %p43_p3 }
  0x11   : > { %14930 = sst [smem:[#allocation17_spill]] %s11122_s27  ;;  %p157_p8 = scmp.eq.s32.totalorder %s8428_s23, 1 }
  0x12   : > { %s14932_s29 = scalar_select %p11130_p6, 1, 0 }
  0x13   : > { %p8429_p9 = scmp.ge.s32.totalorder %s11038_s21, 1  ;;  %p164_p10 = scmp.lt.s32.totalorder %s11038_s21, 3 }
  0x14   : > { %p11137_p11 = por %p151_p7, %p37_p0  ;;  %p11141_p12 = por %p157_p8, %p43_p3 }
  0x15   : > { %p11145_p13 = pnand %p8429_p9, %p164_p10  ;;  %s11040_s8 = smov [#allocation6]  }
  0x16   : > { %s14933_s30 = scalar_select %p11137_p11, 1, 0 }
  0x17   : > { %s14934_s6 = scalar_select %p11141_p12, 1, 0 }
  0x18   : > { %s14936_s7 = scalar_select %p11145_p13, 1, 0 }
  0x19   : > { %14935 = sst [smem:[#allocation18_spill]] %s14934_s6  ;;  %p10686_p2 = pneg %p11145_p13 }
  0x1a   : > { %s180_s9 = sshll.u32 %s11040_s8, 4  ;;  %p10707_p4 = scmp.lt.s32.totalorder %s11038_s21, 2  ;;  %s181_s9 = int_to_ptr.vmem [resolvable:$true] %s180_s9 }
  0x1b   : > { %p14937_p0 = scmp.eq.s32.totalorder %s11106_s22, 0  ;;  %s11041_s12 = smov [#allocation8]  }
  0x1c   : > { %p11161_p3 = pnand %p10707_p4, %p11124_p5  ;;  %s190_s13 = sshll.u32 %s11041_s12, 4  ;;  %s11165_s13 = int_to_ptr.vmem [resolvable:$true] %s190_s13 }
  0x1d   : > { %p11155_p7 = pnand %p10686_p2, %p14937_p0  ;;  %s14940_s2 = sld [smem:[#allocation116_spill]] }
  0x1e   : > { %s14939_s11 = scalar_select %p11161_p3, 1, 0 }
  0x1f   : > { %p11175_p9 = pneg %p11155_p7 }
  0x23   : > { %s10850_s16 = scalar_lea.hbm %s14940_s2, 16 }
  0x24   : > { %p10851_p8 = scmp.ne.s32.totalorder %s14940_s2, %s10850_s16  ;;  %p10857_p10 = scmp.lt.u32.totalorder %s10850_s16, %s14940_s2 }
  0x26   : > { %p10853_p4 = pnand %p11175_p9, %p10851_p8 }
  0x28   : > { %p10854_p5 = pneg %p10853_p4 }
  0x2a   : > { %p10859_p2 = pnand %p10857_p10, %p10854_p5 }
  0x2c   : > { %10862 = shalt.err (!%p10859_p2)
}
  0x2d   : > { %s10863_s8 = scalar_lea.vmem %s181_s9, 16  ;;  %s10870_s12 = scalar_lea.vmem %s181_s9, 32 }
  0x2e   : > { %p10864_p0 = scmp.ne.s32.totalorder %s181_s9, %s10863_s8  ;;  %p10871_p11 = scmp.lt.s32.totalorder %s181_s9, %s181_s9 }
  0x2f   : > { %p10872_p6 = scmp.lt.s32.totalorder %s10870_s12, %s10863_s8 }
  0x30   : > { %p10866_p1 = pnand %p10864_p0, %p11175_p9 }
  0x31   : > { %p10873_p13 = por %p10872_p6, %p10871_p11 }
  0x32   : > { %p10867_p12 = pneg %p10866_p1 }
  0x34   : > { %p10874_p3 = pnand %p10873_p13, %p10867_p12 }
  0x36   : > { %10877 = shalt.err (!%p10874_p3)
}
  0x37   : > { %10689 = dma.hbm_to_vmem [thread:$0]  (!%p11155_p7), %s14940_s2, 16, %s181_s9, [#allocation7]  }
  0x38   : > { %s10878_s23 = scalar_lea.hbm %s14840_s3, 1152 }
  0x39   : > { %p10879_p1 = scmp.ne.s32.totalorder %s14840_s3, %s10878_s23  ;;  %p10885_p11 = scmp.lt.u32.totalorder %s10878_s23, %s14840_s3 }
  0x3b   : > { %p10881_p8 = pnand %p10879_p1, %p11175_p9 }
  0x3d   : > { %p10882_p6 = pneg %p10881_p8 }
  0x3f   : > { %p10887_p12 = pnand %p10885_p11, %p10882_p6 }
  0x41   : > { %10890 = shalt.err (!%p10887_p12)
}
  0x42   : > { %s10891_s9 = scalar_lea.vmem %s11165_s13, 1152  ;;  %p10899_p5 = scmp.lt.s32.totalorder %s11165_s13, %s11165_s13 }
  0x43   : > { %p10892_p13 = scmp.ne.s32.totalorder %s11165_s13, %s10891_s9  ;;  %p10900_p10 = scmp.lt.s32.totalorder %s10891_s9, %s10891_s9 }
  0x45   : > { %p10894_p3 = pnand %p10892_p13, %p11175_p9  ;;  %p10901_p2 = por %p10900_p10, %p10899_p5 }
  0x47   : > { %p10895_p4 = pneg %p10894_p3 }
  0x49   : > { %p10902_p0 = pnand %p10901_p2, %p10895_p4 }
  0x4b   : > { %10905 = shalt.err (!%p10902_p0)
}
  0x4c   : > { %s11042_s14 = smov 64   ;;  %s11043_s15 = smov 4  }
  0x4d   : > { %10692 = dma.hbm_to_vmem [thread:$0]  (!%p11155_p7), %s14840_s3, 1152, %s11165_s13, [#allocation7], %s11042_s14, %s11042_s14, %s11043_s15  }
  0x4e   : > { %s11044_s23 = smov [#allocation9]   ;;  %s215_s28 = sand.u32 1, %s11034_s20  }
  0x4f   : > { %s204_s26 = sshll.u32 %s11044_s23, 4  ;;  %s10906_s9 = scalar_lea.hbm %s14841_s4, 16  ;;  %s205_s26 = int_to_ptr.vmem [resolvable:$true] %s204_s26 }
  0x50   : > { %p10907_p1 = scmp.ne.s32.totalorder %s14841_s4, %s10906_s9  ;;  %p10913_p11 = scmp.lt.u32.totalorder %s10906_s9, %s14841_s4 }
  0x52   : > { %p10909_p8 = pnand %p10907_p1, %p11175_p9 }
  0x54   : > { %p10910_p6 = pneg %p10909_p8 }
  0x56   : > { %p10915_p12 = pnand %p10913_p11, %p10910_p6 }
  0x58   : > { %10918 = shalt.err (!%p10915_p12)
}
  0x59   : > { %s10919_s13 = scalar_lea.vmem %s205_s26, 16  ;;  %s10926_s14 = scalar_lea.vmem %s205_s26, 32 }
  0x5a   : > { %p10920_p13 = scmp.ne.s32.totalorder %s205_s26, %s10919_s13  ;;  %p10927_p5 = scmp.lt.s32.totalorder %s205_s26, %s205_s26 }
  0x5b   : > { %p10928_p10 = scmp.lt.s32.totalorder %s10926_s14, %s10919_s13 }
  0x5c   : > { %p10922_p3 = pnand %p10920_p13, %p11175_p9 }
  0x5d   : > { %p10929_p2 = por %p10928_p10, %p10927_p5 }
  0x5e   : > { %p10923_p4 = pneg %p10922_p3 }
  0x60   : > { %p10930_p0 = pnand %p10929_p2, %p10923_p4 }
  0x62   : > { %10933 = shalt.err (!%p10930_p0)
}
  0x63   : > { %10695 = dma.hbm_to_vmem [thread:$0]  (!%p11155_p7), %s14841_s4, 16, %s205_s26, [#allocation10]  }
  0x64   : > { %s8434_s24 = sshll.u32 %s215_s28, 11  ;;  %s8435_s6 = sshll.u32 %s11038_s21, 7 }
  0x65   : > { %s11237_s16 = scalar_lea.hbm %s14837_s0, %s8435_s6  ;;  %s219_s17 = scalar_lea.vmem [#allocation3], %s8434_s24 }
  0x66   : > { %s225_s10 = sshll.u32 %s219_s17, 4  ;;  %s11241_s23 = scalar_lea.sflag [#allocation4], %s215_s28  ;;  %s11239_s10 = int_to_ptr.vmem [resolvable:$true] %s225_s10 }
  0x67   : > { %s10934_s8 = scalar_lea.hbm %s11237_s16, 32768  ;;  %p14942_p7 = scmp.ne.s32.totalorder %s14939_s11, 0 }
  0x68   : > { %p10935_p9 = scmp.ne.s32.totalorder %s11237_s16, %s10934_s8  ;;  %s10939_s9 = scalar_lea.hbm %s14837_s0, 65536 }
  0x69   : > { %p10936_p1 = pneg %p14942_p7  ;;  %p10940_p11 = scmp.lt.u32.totalorder %s11237_s16, %s14837_s0 }
  0x6a   : > { %p10941_p12 = scmp.lt.u32.totalorder %s10939_s9, %s10934_s8  ;;  %p10943_p3 = scmp.lt.u32.totalorder %s10934_s8, %s11237_s16 }
  0x6b   : > { %p10937_p8 = pnand %p10936_p1, %p10935_p9 }
  0x6c   : > { %p10942_p13 = por %p10941_p12, %p10940_p11 }
  0x6d   : > { %p10938_p6 = pneg %p10937_p8 }
  0x6e   : > { %p10944_p4 = por %p10943_p3, %p10942_p13 }
  0x70   : > { %p10945_p5 = pnand %p10944_p4, %p10938_p6 }
  0x72   : > { %10948 = shalt.err (!%p10945_p5)
}
  0x73   : > { %s10949_s28 = scalar_lea.vmem %s11239_s10, 32768  ;;  %s11045_s2 = smov [#allocation3]  }
  0x74   : > { %p10950_p10 = scmp.ne.s32.totalorder %s11239_s10, %s10949_s28  ;;  %s10954_s27 = sshll.u32 %s11045_s2, 4  ;;  %s10955_s27 = int_to_ptr.vmem [resolvable:$false] %s10954_s27 }
  0x75   : > { %s10956_s24 = scalar_lea.vmem %s10955_s27, 65536  ;;  %p10957_p9 = scmp.lt.s32.totalorder %s11239_s10, %s10955_s27 }
  0x76   : > { %p10952_p2 = pnand %p10950_p10, %p10936_p1  ;;  %p10958_p8 = scmp.lt.s32.totalorder %s10956_s24, %s10949_s28 }
  0x78   : > { %p10953_p0 = pneg %p10952_p2  ;;  %p10959_p11 = por %p10958_p8, %p10957_p9 }
  0x7a   : > { %p10960_p12 = pnand %p10959_p11, %p10953_p0 }
  0x7c   : > { %10963 = shalt.err (!%p10960_p12)
}
  0x7d   : > { %s11046_s6 = smov 256   ;;  %s11047_s25 = smov 128  }
  0x7e   : > { %s11048_s15 = smov 8   ;;  %p14943_p1 = scmp.ne.s32.totalorder %s14936_s7, 0 }
  0x7f   : > { %10699 = dma.hbm_to_vmem [thread:$0]  (!%p14942_p7), %s11237_s16, 32768, %s11239_s10, %s11241_s23, %s11046_s6, %s11047_s25, %s11048_s15  }
  0x80   : > { %237 = sbr.rel (%p14943_p1) target bundleno = 1843 (0x733), region = 40 }
  0x87   : > { %s11272_s17 = sand.u32 1, %s11030_s19   ;;  %p14944_p6 = scmp.ne.s32.totalorder %s14932_s29, 0 }
  0x88   : > { %s8437_s8 = sshll.u32 %s11272_s17, 11  ;;  %s240_s26 = scalar_lea.sflag [#allocation4], %s11272_s17 }
  0x89   : > { %s11276_s12 = scalar_lea.vmem [#allocation3], %s8437_s8 }
  0x8a   : > { %11009 = dma.done.wait (%p14944_p6), %s240_s26, 32768  }
  0x8b   : > { %11011 = vsyncadd (%p14944_p6), %s240_s26, 4294934528  ;;  %p14945_p7 = scmp.eq.s32.totalorder %s11106_s22, 0 }
  0x8d   : > { %11013 = dma.done.wait (%p14945_p7), [#allocation7], 1168   ;;  %p14946_p13 = pmov %p14945_p7 }
  0x8e   : > { %p14947_p3 = pmov %p14945_p7 }
  0x8f   : > { %11015 = vsyncadd (%p14946_p13), [#allocation7], 4294966128 }
  0x90   : > { %11017 = dma.done.wait (%p14947_p3), [#allocation10], 16   ;;  %p14948_p4 = pmov %p14947_p3 }
  0x91   : > { %vm1074_vm0 = vcmask 1044480   ;;  %vm1075_vm1 = vcmask 1045504   ;;  %v11049_v0 = vmov 65535   ;;  %v10757_v2 = vld [vmem:[%s14838_s1] sm:$0xff]   ;;  %v10758_v4 = vld [vmem:[%s14838_s1 + $0x8] sm:$0x3f]  }
  0x92   : > { %11019 = vsyncadd (%p14948_p4), [#allocation10], 4294967280  ;;  %v1076_v1 = vsel %vm1074_vm0, 4294967295, %v11049_v0  ;;  %9302 = vmatprep.subr.bf16.mxu0 %v10757_v2  ;;  %v283_v5 = vld [vmem:[%s11276_s12] sm:$0xff]  ;;  %v284_v6 = vld [vmem:[%s11276_s12 + $0x8] sm:$0xff]  ;;  %vm689_vm2 = vcmask 220160  }
  0x93   : > { %v1077_v3 = vsel %vm1075_vm1, %v1076_v1, 0  ;;  %9303 = vmatpush3.bf16.msra.mxu0 %v10757_v2  ;;  %v539_v8 = vpack.c.bf16 %v284_v6, %v283_v5  ;;  %v285_v9 = vld [vmem:[%s11276_s12 + $0x10] sm:$0xff]  ;;  %v286_v10 = vld [vmem:[%s11276_s12 + $0x18] sm:$0xff]  ;;  %v287_v11 = vld [vmem:[%s11276_s12 + $0x20] sm:$0xff]  ;;  %vm2394_vm3 = vcmask 130048   ;;  %vm8135_vm4 = vcmask 261120  }
  0x94   : > { %v1079_v7 = vand.u32 %v10758_v4, %v1077_v3  ;;  %v288_v12 = vld [vmem:[%s11276_s12 + $0x28] sm:$0xff]  ;;  %v540_v13 = vpack.c.bf16 %v286_v10, %v285_v9  ;;  %v289_v15 = vld [vmem:[%s11276_s12 + $0x30] sm:$0xff]  ;;  %v290_v16 = vld [vmem:[%s11276_s12 + $0x38] sm:$0xff]  ;;  %s8441_s10 = sshll.u32 %s11272_s17, 6  ;;  %vm8296_vm5 = vcmask 257024   ;;  %s8872_s9 = sshll.u32 %s11106_s22, 6 }
  0x95   : > { %9306 = vmatprep.mubr.msk.bf16.mxu0 %vm689_vm2, %v539_v8  ;;  %v541_v14 = vpack.c.bf16 %v288_v12, %v287_v11  ;;  %v291_v17 = vld [vmem:[%s11276_s12 + $0x40] sm:$0xff]  ;;  %v292_v18 = vld [vmem:[%s11276_s12 + $0x48] sm:$0xff]  ;;  %v542_v19 = vpack.c.bf16 %v290_v16, %v289_v15  ;;  %v293_v21 = vld [vmem:[%s11276_s12 + $0x50] sm:$0xff]  ;;  %s14552_s23 = scalar_lea.vmem [#allocation11], %s8441_s10  ;;  %s14787_s2 = scalar_lea.hbm %s14842_s5, %s8872_s9 }
  0x96   : > { %9304 = vmatprep.subr.bf16.mxu0 %v1079_v7  ;;  %v543_v20 = vpack.c.bf16 %v292_v18, %v291_v17  ;;  %v294_v22 = vld [vmem:[%s11276_s12 + $0x58] sm:$0xff]  ;;  %v295_v23 = vld [vmem:[%s11276_s12 + $0x60] sm:$0xff]  ;;  %v296_v24 = vld [vmem:[%s11276_s12 + $0x68] sm:$0xff]  ;;  %s8326_s13 = sshll.u32 %s14552_s23, 4  ;;  %s8314_s22 = scalar_lea.sflag [#allocation5], %s11272_s17  ;;  %s14789_s13 = int_to_ptr.vmem [resolvable:$true] %s8326_s13 }
  0x97   : > { %9305 = vmatpush3.bf16.msra.mxu0 %v1079_v7  ;;  %v544_v25 = vpack.c.bf16 %v294_v22, %v293_v21  ;;  %v545_v26 = vpack.c.bf16 %v296_v24, %v295_v23  ;;  %v297_v27 = vld [vmem:[%s11276_s12 + $0x70] sm:$0xff]  ;;  %v298_v28 = vld [vmem:[%s11276_s12 + $0x78] sm:$0xff]  ;;  %v299_v29 = vld [vmem:[%s11276_s12 + $0x80] sm:$0xff]  ;;  %s10964_s27 = scalar_lea.vmem %s14789_s13, 1024  ;;  %p15289_p10 = scmp.ne.s32.totalorder %s14933_s30, 0 }
  0x98   : > { %v300_v30 = vld [vmem:[%s11276_s12 + $0x88] sm:$0xff]  ;;  %v546_v31 = vpack.c.bf16 %v298_v28, %v297_v27  ;;  %v301_v33 = vld [vmem:[%s11276_s12 + $0x90] sm:$0xff]  ;;  %v302_v34 = vld [vmem:[%s11276_s12 + $0x98] sm:$0xff]  ;;  %p10965_p5 = scmp.ne.s32.totalorder %s14789_s13, %s10964_s27  ;;  %s11051_s24 = smov [#allocation11]  }
  0x99   : > { %v547_v32 = vpack.c.bf16 %v300_v30, %v299_v29  ;;  %v303_v35 = vld [vmem:[%s11276_s12 + $0xa0] sm:$0xff]  ;;  %v304_v36 = vld [vmem:[%s11276_s12 + $0xa8] sm:$0xff]  ;;  %v548_v37 = vpack.c.bf16 %v302_v34, %v301_v33  ;;  %v305_v39 = vld [vmem:[%s11276_s12 + $0xb0] sm:$0xff]  ;;  %s10968_s6 = sshll.u32 %s11051_s24, 4  ;;  %s10969_s6 = int_to_ptr.vmem [resolvable:$false] %s10968_s6 }
  0x9a   : > { %9307 = vmatmul.mubr.msk.bf16.vlgmr.msra.gmra.mrb[0].mxu0 %vm689_vm2, %v540_v13  ;;  %v549_v38 = vpack.c.bf16 %v304_v36, %v303_v35  ;;  %v306_v40 = vld [vmem:[%s11276_s12 + $0xb8] sm:$0xff]  ;;  %v307_v41 = vld [vmem:[%s11276_s12 + $0xc0] sm:$0xff]  ;;  %v308_v42 = vld [vmem:[%s11276_s12 + $0xc8] sm:$0xff]  ;;  %p10966_p2 = pnand %p10965_p5, %p15289_p10  ;;  %s10970_s25 = scalar_lea.vmem %s10969_s6, 2048 }
  0x9b   : > { %9310 = vmatprep.mubr.msk.bf16.mxu0 %vm689_vm2, %v541_v14  ;;  %v550_v43 = vpack.c.bf16 %v306_v40, %v305_v39  ;;  %v551_v44 = vpack.c.bf16 %v308_v42, %v307_v41  ;;  %v309_v45 = vld [vmem:[%s11276_s12 + $0xd0] sm:$0xff]  ;;  %v310_v46 = vld [vmem:[%s11276_s12 + $0xd8] sm:$0xff]  ;;  %v311_v47 = vld [vmem:[%s11276_s12 + $0xe0] sm:$0xff]  ;;  %p10971_p9 = scmp.lt.s32.totalorder %s14789_s13, %s10969_s6  ;;  %p10972_p8 = scmp.lt.s32.totalorder %s10970_s25, %s10964_s27 }
  0x9c   : > { %v312_v48 = vld [vmem:[%s11276_s12 + $0xe8] sm:$0xff]  ;;  %v552_v49 = vpack.c.bf16 %v310_v46, %v309_v45  ;;  %v313_v51 = vld [vmem:[%s11276_s12 + $0xf0] sm:$0xff]  ;;  %v314_v52 = vld [vmem:[%s11276_s12 + $0xf8] sm:$0xff]  ;;  %p10967_p0 = pneg %p10966_p2 }
  0x9d   : > { %v553_v50 = vpack.c.bf16 %v312_v48, %v311_v47  ;;  %v315_v53 = vld [vmem:[%s11276_s12 + $0x100] sm:$0xff]  ;;  %v316_v54 = vld [vmem:[%s11276_s12 + $0x108] sm:$0xff]  ;;  %v554_v55 = vpack.c.bf16 %v314_v52, %v313_v51  ;;  %v317_v57 = vld [vmem:[%s11276_s12 + $0x110] sm:$0xff]  ;;  %v11050_v47 = vmov 0.0   ;;  %p10973_p11 = por %p10972_p8, %p10971_p9 }
  0x9e   : > { %v555_v56 = vpack.c.bf16 %v316_v54, %v315_v53  ;;  %v318_v58 = vld [vmem:[%s11276_s12 + $0x118] sm:$0xff]  ;;  %v319_v59 = vld [vmem:[%s11276_s12 + $0x120] sm:$0xff]  ;;  %v320_v60 = vld [vmem:[%s11276_s12 + $0x128] sm:$0xff]  ;;  %2983 = vst.msk [vmem:[#allocation2 + $0x60] sm:$0xff] %vm2394_vm3, %v11050_v47 }
  0x9f   : > { %v556_v61 = vpack.c.bf16 %v318_v58, %v317_v57  ;;  %v557_v62 = vpack.c.bf16 %v320_v60, %v319_v59  ;;  %v321_v63 = vld [vmem:[%s11276_s12 + $0x130] sm:$0xff]  ;;  %v322_v0 = vld [vmem:[%s11276_s12 + $0x138] sm:$0xff]  ;;  %v323_v1 = vld [vmem:[%s11276_s12 + $0x140] sm:$0xff]  ;;  %2971 = vst.msk [vmem:[#allocation2] sm:$0xff] %vm2394_vm3, %v11050_v47  ;;  %p10974_p12 = pnand %p10973_p11, %p10967_p0 }
  0xa0   : > { %v324_v2 = vld [vmem:[%s11276_s12 + $0x148] sm:$0xff]  ;;  %v558_v3 = vpack.c.bf16 %v322_v0, %v321_v63  ;;  %v325_v5 = vld [vmem:[%s11276_s12 + $0x150] sm:$0xff]  ;;  %v326_v6 = vld [vmem:[%s11276_s12 + $0x158] sm:$0xff]  ;;  %2972 = vst.msk [vmem:[#allocation2 + $0x8] sm:$0xff] %vm2394_vm3, %v11050_v47 }
  0xa1   : > { %v559_v4 = vpack.c.bf16 %v324_v2, %v323_v1  ;;  %v327_v7 = vld [vmem:[%s11276_s12 + $0x160] sm:$0xff]  ;;  %v328_v8 = vld [vmem:[%s11276_s12 + $0x168] sm:$0xff]  ;;  %v560_v9 = vpack.c.bf16 %v326_v6, %v325_v5  ;;  %v329_v11 = vld [vmem:[%s11276_s12 + $0x170] sm:$0xff]  ;;  %2973 = vst.msk [vmem:[#allocation2 + $0x10] sm:$0xff] %vm2394_vm3, %v11050_v47 }
  0xa2   : > { %9311 = vmatmul.mubr.msk.bf16.gmra.mrb[4].mxu0 %vm689_vm2, %v542_v19  ;;  %v561_v10 = vpack.c.bf16 %v328_v8, %v327_v7  ;;  %v330_v12 = vld [vmem:[%s11276_s12 + $0x178] sm:$0xff]  ;;  %v331_v13 = vld [vmem:[%s11276_s12 + $0x180] sm:$0xff]  ;;  %v332_v14 = vld [vmem:[%s11276_s12 + $0x188] sm:$0xff]  ;;  %2974 = vst.msk [vmem:[#allocation2 + $0x18] sm:$0xff] %vm2394_vm3, %v11050_v47 }
  0xa3   : > { %9314 = vmatprep.mubr.msk.bf16.mxu0 %vm689_vm2, %v543_v20  ;;  %v562_v15 = vpack.c.bf16 %v330_v12, %v329_v11  ;;  %v563_v16 = vpack.c.bf16 %v332_v14, %v331_v13  ;;  %v333_v17 = vld [vmem:[%s11276_s12 + $0x190] sm:$0xff]  ;;  %v334_v18 = vld [vmem:[%s11276_s12 + $0x198] sm:$0xff]  ;;  %v335_v19 = vld [vmem:[%s11276_s12 + $0x1a0] sm:$0xff]  ;;  %2975 = vst.msk [vmem:[#allocation2 + $0x20] sm:$0xff] %vm2394_vm3, %v11050_v47 }
  0xa4   : > { %v336_v20 = vld [vmem:[%s11276_s12 + $0x1a8] sm:$0xff]  ;;  %v564_v21 = vpack.c.bf16 %v334_v18, %v333_v17  ;;  %v337_v23 = vld [vmem:[%s11276_s12 + $0x1b0] sm:$0xff]  ;;  %v338_v24 = vld [vmem:[%s11276_s12 + $0x1b8] sm:$0xff]  ;;  %2976 = vst.msk [vmem:[#allocation2 + $0x28] sm:$0xff] %vm2394_vm3, %v11050_v47 }
  0xa5   : > { %v565_v22 = vpack.c.bf16 %v336_v20, %v335_v19  ;;  %v566_v27 = vpack.c.bf16 %v338_v24, %v337_v23  ;;  %v341_v29 = vld [vmem:[%s11276_s12 + $0x1d0] sm:$0xff]  ;;  %v342_v30 = vld [vmem:[%s11276_s12 + $0x1d8] sm:$0xff]  ;;  %2977 = vst.msk [vmem:[#allocation2 + $0x30] sm:$0xff] %vm2394_vm3, %v11050_v47  ;;  %2978 = vst.msk [vmem:[#allocation2 + $0x38] sm:$0xff] %vm2394_vm3, %v11050_v47 }
  0xa6   : > { %v568_v33 = vpack.c.bf16 %v342_v30, %v341_v29  ;;  %v345_v35 = vld [vmem:[%s11276_s12 + $0x1f0] sm:$0xff]  ;;  %v346_v36 = vld [vmem:[%s11276_s12 + $0x1f8] sm:$0xff]  ;;  %2979 = vst.msk [vmem:[#allocation2 + $0x40] sm:$0xff] %vm2394_vm3, %v11050_v47  ;;  %2980 = vst.msk [vmem:[#allocation2 + $0x48] sm:$0xff] %vm2394_vm3, %v11050_v47 }
  0xa7   : > { %v570_v39 = vpack.c.bf16 %v346_v36, %v345_v35  ;;  %v11396_v41 = vld [vmem:[%s11276_s12 + $0x210] sm:$0xff]  ;;  %v11399_v42 = vld [vmem:[%s11276_s12 + $0x218] sm:$0xff]  ;;  %2981 = vst.msk [vmem:[#allocation2 + $0x50] sm:$0xff] %vm2394_vm3, %v11050_v47  ;;  %2982 = vst.msk [vmem:[#allocation2 + $0x58] sm:$0xff] %vm2394_vm3, %v11050_v47 }
  0xa8   : > { %v572_v45 = vpack.c.bf16 %v11399_v42, %v11396_v41  ;;  %2984 = vst.msk [vmem:[#allocation2 + $0x68] sm:$0xff] %vm2394_vm3, %v11050_v47  ;;  %2985 = vst.msk [vmem:[#allocation2 + $0x70] sm:$0xff] %vm2394_vm3, %v11050_v47  ;;  %v353_v48 = vld [vmem:[%s11276_s12 + $0x230] sm:$0xff]  ;;  %v356_v51 = vld [vmem:[%s11276_s12 + $0x248] sm:$0xff] }
  0xa9   : > { %2986 = vst.msk [vmem:[#allocation2 + $0x78] sm:$0xff] %vm2394_vm3, %v11050_v47  ;;  %2987 = vst.msk [vmem:[#allocation2 + $0x80] sm:$0xff] %vm2394_vm3, %v11050_v47  ;;  %v357_v54 = vld [vmem:[%s11276_s12 + $0x250] sm:$0xff]  ;;  %v360_v57 = vld [vmem:[%s11276_s12 + $0x268] sm:$0xff] }
  0xaa   : > { %9315 = vmatmul.mubr.msk.bf16.gmra.mrb[8].mxu0 %vm689_vm2, %v544_v25  ;;  %v339_v25 = vld [vmem:[%s11276_s12 + $0x1c0] sm:$0xff]  ;;  %2988 = vst.msk [vmem:[#allocation2 + $0x88] sm:$0xff] %vm2394_vm3, %v11050_v47  ;;  %2989 = vst.msk [vmem:[#allocation2 + $0x90] sm:$0xff] %vm2394_vm3, %v11050_v47  ;;  %v361_v60 = vld [vmem:[%s11276_s12 + $0x270] sm:$0xff] }
  0xab   : > { %9318 = vmatprep.mubr.msk.bf16.mxu0 %vm689_vm2, %v545_v26  ;;  %v340_v26 = vld [vmem:[%s11276_s12 + $0x1c8] sm:$0xff]  ;;  %2990 = vst.msk [vmem:[#allocation2 + $0x98] sm:$0xff] %vm2394_vm3, %v11050_v47  ;;  %2991 = vst.msk [vmem:[#allocation2 + $0xa0] sm:$0xff] %vm2394_vm3, %v11050_v47  ;;  %v365_v2 = vld [vmem:[%s11276_s12 + $0x290] sm:$0xff] }
  0xac   : > { %v567_v28 = vpack.c.bf16 %v340_v26, %v339_v25  ;;  %2992 = vst.msk [vmem:[#allocation2 + $0xa8] sm:$0xff] %vm2394_vm3, %v11050_v47  ;;  %2993 = vst.msk [vmem:[#allocation2 + $0xb0] sm:$0xff] %vm2394_vm3, %v11050_v47  ;;  %v364_v63 = vld [vmem:[%s11276_s12 + $0x288] sm:$0xff]  ;;  %v369_v8 = vld [vmem:[%s11276_s12 + $0x2b0] sm:$0xff] }
  0xad   : > { %2994 = vst.msk [vmem:[#allocation2 + $0xb8] sm:$0xff] %vm2394_vm3, %v11050_v47  ;;  %2995 = vst.msk [vmem:[#allocation2 + $0xc0] sm:$0xff] %vm2394_vm3, %v11050_v47  ;;  %v368_v5 = vld [vmem:[%s11276_s12 + $0x2a8] sm:$0xff]  ;;  %v373_v14 = vld [vmem:[%s11276_s12 + $0x2d0] sm:$0xff] }
  0xae   : > { %2996 = vst.msk [vmem:[#allocation2 + $0xc8] sm:$0xff] %vm2394_vm3, %v11050_v47  ;;  %2997 = vst.msk [vmem:[#allocation2 + $0xd0] sm:$0xff] %vm2394_vm3, %v11050_v47  ;;  %v372_v11 = vld [vmem:[%s11276_s12 + $0x2c8] sm:$0xff]  ;;  %v377_v20 = vld [vmem:[%s11276_s12 + $0x2f0] sm:$0xff] }
  0xaf   : > { %2998 = vst.msk [vmem:[#allocation2 + $0xd8] sm:$0xff] %vm2394_vm3, %v11050_v47  ;;  %2999 = vst.msk [vmem:[#allocation2 + $0xe0] sm:$0xff] %vm2394_vm3, %v11050_v47  ;;  %v376_v17 = vld [vmem:[%s11276_s12 + $0x2e8] sm:$0xff]  ;;  %v381_v26 = vld [vmem:[%s11276_s12 + $0x310] sm:$0xff] }
  0xb0   : > { %3000 = vst.msk [vmem:[#allocation2 + $0xe8] sm:$0xff] %vm2394_vm3, %v11050_v47  ;;  %3001 = vst.msk [vmem:[#allocation2 + $0xf0] sm:$0xff] %vm2394_vm3, %v11050_v47  ;;  %v380_v23 = vld [vmem:[%s11276_s12 + $0x308] sm:$0xff] }
  0xb1   : > { %3002 = vst.msk [vmem:[#allocation2 + $0xf8] sm:$0xff] %vm2394_vm3, %v11050_v47  ;;  %3003 = vst.msk [vmem:[#allocation2 + $0x100] sm:$0xff] %vm2394_vm3, %v11050_v47  ;;  %v384_v29 = vld [vmem:[%s11276_s12 + $0x328] sm:$0xff] }
  0xb2   : > { %9319 = vmatmul.mubr.msk.bf16.gmra.mrb[12].mxu0 %vm689_vm2, %v546_v31  ;;  %v343_v31 = vld [vmem:[%s11276_s12 + $0x1e0] sm:$0xff]  ;;  %3004 = vst.msk [vmem:[#allocation2 + $0x108] sm:$0xff] %vm2394_vm3, %v11050_v47  ;;  %3005 = vst.msk [vmem:[#allocation2 + $0x110] sm:$0xff] %vm2394_vm3, %v11050_v47  ;;  %v388_v35 = vld [vmem:[%s11276_s12 + $0x348] sm:$0xff] }
  0xb3   : > { %9322 = vmatprep.mubr.msk.bf16.mxu0 %vm689_vm2, %v547_v32  ;;  %v344_v32 = vld [vmem:[%s11276_s12 + $0x1e8] sm:$0xff]  ;;  %3006 = vst.msk [vmem:[#allocation2 + $0x118] sm:$0xff] %vm2394_vm3, %v11050_v47  ;;  %3007 = vst.msk [vmem:[#allocation2 + $0x120] sm:$0xff] %vm2394_vm3, %v11050_v47 }
  0xb4   : > { %v569_v34 = vpack.c.bf16 %v344_v32, %v343_v31  ;;  %3008 = vst.msk [vmem:[#allocation2 + $0x128] sm:$0xff] %vm2394_vm3, %v11050_v47  ;;  %3009 = vst.msk [vmem:[#allocation2 + $0x130] sm:$0xff] %vm2394_vm3, %v11050_v47  ;;  %v385_v32 = vld [vmem:[%s11276_s12 + $0x330] sm:$0xff]  ;;  %v392_v41 = vld [vmem:[%s11276_s12 + $0x368] sm:$0xff] }
  0xb5   : > { %3010 = vst.msk [vmem:[#allocation2 + $0x138] sm:$0xff] %vm2394_vm3, %v11050_v47  ;;  %3011 = vst.msk [vmem:[#allocation2 + $0x140] sm:$0xff] %vm2394_vm3, %v11050_v47 }
  0xb6   : > { %3012 = vst.msk [vmem:[#allocation2 + $0x148] sm:$0xff] %vm2394_vm3, %v11050_v47  ;;  %3013 = vst.msk [vmem:[#allocation2 + $0x150] sm:$0xff] %vm2394_vm3, %v11050_v47 }
  0xb7   : > { %3014 = vst.msk [vmem:[#allocation2 + $0x158] sm:$0xff] %vm2394_vm3, %v11050_v47  ;;  %3015 = vst.msk [vmem:[#allocation2 + $0x160] sm:$0xff] %vm2394_vm3, %v11050_v47 }
  0xb8   : > { %3016 = vst.msk [vmem:[#allocation2 + $0x168] sm:$0xff] %vm2394_vm3, %v11050_v47  ;;  %3017 = vst.msk [vmem:[#allocation2 + $0x170] sm:$0xff] %vm2394_vm3, %v11050_v47 }
  0xb9   : > { %3018 = vst.msk [vmem:[#allocation2 + $0x178] sm:$0xff] %vm2394_vm3, %v11050_v47  ;;  %3019 = vst.msk [vmem:[#allocation2 + $0x180] sm:$0xff] %vm2394_vm3, %v11050_v47 }
  0xba   : > { %9323 = vmatmul.mubr.msk.bf16.gmra.mrb[16].mxu0 %vm689_vm2, %v548_v37  ;;  %v347_v37 = vld [vmem:[%s11276_s12 + $0x200] sm:$0xff]  ;;  %3020 = vst.msk [vmem:[#allocation2 + $0x188] sm:$0xff] %vm2394_vm3, %v11050_v47  ;;  %3021 = vst.msk [vmem:[#allocation2 + $0x190] sm:$0xff] %vm2394_vm3, %v11050_v47 }
  0xbb   : > { %9326 = vmatprep.mubr.msk.bf16.mxu0 %vm689_vm2, %v549_v38  ;;  %v348_v38 = vld [vmem:[%s11276_s12 + $0x208] sm:$0xff]  ;;  %3022 = vst.msk [vmem:[#allocation2 + $0x198] sm:$0xff] %vm2394_vm3, %v11050_v47  ;;  %3023 = vst.msk [vmem:[#allocation2 + $0x1a0] sm:$0xff] %vm2394_vm3, %v11050_v47 }
  0xbc   : > { %v571_v40 = vpack.c.bf16 %v348_v38, %v347_v37  ;;  %3024 = vst.msk [vmem:[#allocation2 + $0x1a8] sm:$0xff] %vm2394_vm3, %v11050_v47  ;;  %3025 = vst.msk [vmem:[#allocation2 + $0x1b0] sm:$0xff] %vm2394_vm3, %v11050_v47  ;;  %v389_v38 = vld [vmem:[%s11276_s12 + $0x350] sm:$0xff] }
  0xbd   : > { %3026 = vst.msk [vmem:[#allocation2 + $0x1b8] sm:$0xff] %vm2394_vm3, %v11050_v47  ;;  %3027 = vst.msk [vmem:[#allocation2 + $0x1c0] sm:$0xff] %vm2394_vm3, %v11050_v47 }
  0xbe   : > { %3028 = vst.msk [vmem:[#allocation2 + $0x1c8] sm:$0xff] %vm2394_vm3, %v11050_v47  ;;  %3029 = vst.msk [vmem:[#allocation2 + $0x1d0] sm:$0xff] %vm2394_vm3, %v11050_v47 }
  0xbf   : > { %3030 = vst.msk [vmem:[#allocation2 + $0x1d8] sm:$0xff] %vm2394_vm3, %v11050_v47  ;;  %3031 = vst.msk [vmem:[#allocation2 + $0x1e0] sm:$0xff] %vm2394_vm3, %v11050_v47 }
  0xc0   : > { %3032 = vst.msk [vmem:[#allocation2 + $0x1e8] sm:$0xff] %vm2394_vm3, %v11050_v47  ;;  %3033 = vst.msk [vmem:[#allocation2 + $0x1f0] sm:$0xff] %vm2394_vm3, %v11050_v47 }
  0xc1   : > { %3034 = vst.msk [vmem:[#allocation2 + $0x1f8] sm:$0xff] %vm2394_vm3, %v11050_v47  ;;  %3035 = vst.msk [vmem:[#allocation2 + $0x200] sm:$0xff] %vm2394_vm3, %v11050_v47 }
  0xc2   : > { %9327 = vmatmul.mubr.msk.bf16.gmra.mrb[20].mxu0 %vm689_vm2, %v550_v43  ;;  %v11402_v43 = vld [vmem:[%s11276_s12 + $0x220] sm:$0xff]  ;;  %3036 = vst.msk [vmem:[#allocation2 + $0x208] sm:$0xff] %vm2394_vm3, %v11050_v47  ;;  %3037 = vst.msk [vmem:[#allocation2 + $0x210] sm:$0xff] %vm2394_vm3, %v11050_v47 }
  0xc3   : > { %9330 = vmatprep.mubr.msk.bf16.mxu0 %vm689_vm2, %v551_v44  ;;  %v11405_v44 = vld [vmem:[%s11276_s12 + $0x228] sm:$0xff]  ;;  %3038 = vst.msk [vmem:[#allocation2 + $0x218] sm:$0xff] %vm2394_vm3, %v11050_v47  ;;  %3039 = vst.msk [vmem:[#allocation2 + $0x220] sm:$0xff] %vm2394_vm3, %v11050_v47 }
  0xc4   : > { %v573_v46 = vpack.c.bf16 %v11405_v44, %v11402_v43  ;;  %3040 = vst.msk [vmem:[#allocation2 + $0x228] sm:$0xff] %vm2394_vm3, %v11050_v47  ;;  %3041 = vst.msk [vmem:[#allocation2 + $0x230] sm:$0xff] %vm2394_vm3, %v11050_v47  ;;  %v11678_v44 = vld [vmem:[#allocation6] ss:$0 sm:$0xff] }
  0xc5   : > { %3042 = vst.msk [vmem:[#allocation2 + $0x238] sm:$0xff] %vm2394_vm3, %v11050_v47  ;;  %3043 = vst.msk [vmem:[#allocation2 + $0x240] sm:$0xff] %vm2394_vm3, %v11050_v47 }
  0xc6   : > { %3044 = vst.msk [vmem:[#allocation2 + $0x248] sm:$0xff] %vm2394_vm3, %v11050_v47  ;;  %3045 = vst.msk [vmem:[#allocation2 + $0x250] sm:$0xff] %vm2394_vm3, %v11050_v47 }
  0xc7   : > { %3046 = vst.msk [vmem:[#allocation2 + $0x258] sm:$0xff] %vm2394_vm3, %v11050_v47  ;;  %3047 = vst.msk [vmem:[#allocation2 + $0x260] sm:$0xff] %vm2394_vm3, %v11050_v47 }
  0xc8   : > { %3048 = vst.msk [vmem:[#allocation2 + $0x268] sm:$0xff] %vm2394_vm3, %v11050_v47  ;;  %3049 = vst.msk [vmem:[#allocation2 + $0x270] sm:$0xff] %vm2394_vm3, %v11050_v47 }
  0xc9   : > { %3050 = vst.msk [vmem:[#allocation2 + $0x278] sm:$0xff] %vm2394_vm3, %v11050_v47  ;;  %3051 = vst.msk [vmem:[#allocation2 + $0x280] sm:$0xff] %vm2394_vm3, %v11050_v47 }
  0xca   : > { %9331 = vmatmul.mubr.msk.bf16.gmra.mrb[24].mxu0 %vm689_vm2, %v552_v49  ;;  %3052 = vst.msk [vmem:[#allocation2 + $0x288] sm:$0xff] %vm2394_vm3, %v11050_v47  ;;  %3053 = vst.msk [vmem:[#allocation2 + $0x290] sm:$0xff] %vm2394_vm3, %v11050_v47  ;;  %v354_v49 = vld [vmem:[%s11276_s12 + $0x238] sm:$0xff] }
  0xcb   : > { %9334 = vmatprep.mubr.msk.bf16.mxu0 %vm689_vm2, %v553_v50  ;;  %3054 = vst.msk [vmem:[#allocation2 + $0x298] sm:$0xff] %vm2394_vm3, %v11050_v47  ;;  %3055 = vst.msk [vmem:[#allocation2 + $0x2a0] sm:$0xff] %vm2394_vm3, %v11050_v47  ;;  %v355_v50 = vld [vmem:[%s11276_s12 + $0x240] sm:$0xff]  ;;  %v574_v52 = vpack.c.bf16 %v354_v49, %v353_v48  ;;  %v396_v48 = vld [vmem:[%s11276_s12 + $0x388] sm:$0xff] }
  0xcc   : > { %3056 = vst.msk [vmem:[#allocation2 + $0x2a8] sm:$0xff] %vm2394_vm3, %v11050_v47  ;;  %3057 = vst.msk [vmem:[#allocation2 + $0x2b0] sm:$0xff] %vm2394_vm3, %v11050_v47  ;;  %v575_v53 = vpack.c.bf16 %v356_v51, %v355_v50 }
  0xcd   : > { %3058 = vst.msk [vmem:[#allocation2 + $0x2b8] sm:$0xff] %vm2394_vm3, %v11050_v47  ;;  %3059 = vst.msk [vmem:[#allocation2 + $0x2c0] sm:$0xff] %vm2394_vm3, %v11050_v47 }
  0xce   : > { %3060 = vst.msk [vmem:[#allocation2 + $0x2c8] sm:$0xff] %vm2394_vm3, %v11050_v47  ;;  %3061 = vst.msk [vmem:[#allocation2 + $0x2d0] sm:$0xff] %vm2394_vm3, %v11050_v47 }
  0xcf   : > { %3062 = vst.msk [vmem:[#allocation2 + $0x2d8] sm:$0xff] %vm2394_vm3, %v11050_v47  ;;  %3063 = vst.msk [vmem:[#allocation2 + $0x2e0] sm:$0xff] %vm2394_vm3, %v11050_v47 }
  0xd0   : > { %3064 = vst.msk [vmem:[#allocation2 + $0x2e8] sm:$0xff] %vm2394_vm3, %v11050_v47  ;;  %3065 = vst.msk [vmem:[#allocation2 + $0x2f0] sm:$0xff] %vm2394_vm3, %v11050_v47 }
  0xd1   : > { %3066 = vst.msk [vmem:[#allocation2 + $0x2f8] sm:$0xff] %vm2394_vm3, %v11050_v47  ;;  %3067 = vst.msk [vmem:[#allocation2 + $0x300] sm:$0xff] %vm2394_vm3, %v11050_v47 }
  0xd2   : > { %9335 = vmatmul.mubr.msk.bf16.gmra.mrb[28].mxu0 %vm689_vm2, %v554_v55  ;;  %3068 = vst.msk [vmem:[#allocation2 + $0x308] sm:$0xff] %vm2394_vm3, %v11050_v47  ;;  %3069 = vst.msk [vmem:[#allocation2 + $0x310] sm:$0xff] %vm2394_vm3, %v11050_v47  ;;  %v358_v55 = vld [vmem:[%s11276_s12 + $0x258] sm:$0xff] }
  0xd3   : > { %9338 = vmatprep.mubr.msk.bf16.mxu0 %vm689_vm2, %v555_v56  ;;  %3070 = vst.msk [vmem:[#allocation2 + $0x318] sm:$0xff] %vm2394_vm3, %v11050_v47  ;;  %v359_v56 = vld [vmem:[%s11276_s12 + $0x260] sm:$0xff]  ;;  %v576_v58 = vpack.c.bf16 %v358_v55, %v357_v54 }
  0xd4   : > { %v577_v59 = vpack.c.bf16 %v360_v57, %v359_v56  ;;  %v395_v47 = vld [vmem:[%s11276_s12 + $0x380] sm:$0xff] }
  0xd5   : > { %v595_v55 = vpack.c.bf16 %v396_v48, %v395_v47  ;;  %v405_v48 = vld [vmem:[%s11276_s12 + $0x3d0] sm:$0xff] }
  0xda   : > { %9339 = vmatmul.mubr.msk.bf16.gmra.mrb[32].mxu0 %vm689_vm2, %v556_v61  ;;  %v362_v61 = vld [vmem:[%s11276_s12 + $0x278] sm:$0xff] }
  0xdb   : > { %9342 = vmatprep.mubr.msk.bf16.mxu0 %vm689_vm2, %v557_v62  ;;  %v363_v62 = vld [vmem:[%s11276_s12 + $0x280] sm:$0xff]  ;;  %v578_v0 = vpack.c.bf16 %v362_v61, %v361_v60 }
  0xdc   : > { %v579_v1 = vpack.c.bf16 %v364_v63, %v363_v62  ;;  %v397_v63 = vld [vmem:[%s11276_s12 + $0x390] sm:$0xff] }
  0xe2   : > { %9343 = vmatmul.mubr.msk.bf16.gmra.mrb[36].mxu0 %vm689_vm2, %v558_v3  ;;  %v366_v3 = vld [vmem:[%s11276_s12 + $0x298] sm:$0xff] }
  0xe3   : > { %9346 = vmatprep.mubr.msk.bf16.mxu0 %vm689_vm2, %v559_v4  ;;  %v367_v4 = vld [vmem:[%s11276_s12 + $0x2a0] sm:$0xff]  ;;  %v580_v6 = vpack.c.bf16 %v366_v3, %v365_v2 }
  0xe4   : > { %v581_v7 = vpack.c.bf16 %v368_v5, %v367_v4  ;;  %v399_v3 = vld [vmem:[%s11276_s12 + $0x3a0] sm:$0xff]  ;;  %v400_v4 = vld [vmem:[%s11276_s12 + $0x3a8] sm:$0xff] }
  0xea   : > { %9347 = vmatmul.mubr.msk.bf16.gmra.mrb[40].mxu0 %vm689_vm2, %v560_v9  ;;  %v370_v9 = vld [vmem:[%s11276_s12 + $0x2b8] sm:$0xff] }
  0xeb   : > { %9350 = vmatprep.mubr.msk.bf16.mxu0 %vm689_vm2, %v561_v10  ;;  %v371_v10 = vld [vmem:[%s11276_s12 + $0x2c0] sm:$0xff]  ;;  %v582_v12 = vpack.c.bf16 %v370_v9, %v369_v8 }
  0xec   : > { %v583_v13 = vpack.c.bf16 %v372_v11, %v371_v10 }
  0xf2   : > { %9351 = vmatmul.mubr.msk.bf16.gmra.mrb[44].mxu0 %vm689_vm2, %v562_v15  ;;  %v374_v15 = vld [vmem:[%s11276_s12 + $0x2d8] sm:$0xff] }
  0xf3   : > { %9354 = vmatprep.mubr.msk.bf16.mxu0 %vm689_vm2, %v563_v16  ;;  %v375_v16 = vld [vmem:[%s11276_s12 + $0x2e0] sm:$0xff]  ;;  %v584_v18 = vpack.c.bf16 %v374_v15, %v373_v14  ;;  %v597_v15 = vpack.c.bf16 %v400_v4, %v399_v3 }
  0xf4   : > { %v585_v19 = vpack.c.bf16 %v376_v17, %v375_v16 }
  0xfa   : > { %9355 = vmatmul.mubr.msk.bf16.gmra.mrb[48].mxu0 %vm689_vm2, %v564_v21  ;;  %v378_v21 = vld [vmem:[%s11276_s12 + $0x2f8] sm:$0xff] }
  0xfb   : > { %9358 = vmatprep.mubr.msk.bf16.mxu0 %vm689_vm2, %v565_v22  ;;  %v379_v22 = vld [vmem:[%s11276_s12 + $0x300] sm:$0xff]  ;;  %v586_v24 = vpack.c.bf16 %v378_v21, %v377_v20 }
  0xfc   : > { %v587_v25 = vpack.c.bf16 %v380_v23, %v379_v22  ;;  %v401_v23 = vld [vmem:[%s11276_s12 + $0x3b0] sm:$0xff] }
 0x102   : > { %9359 = vmatmul.mubr.msk.bf16.gmra.mrb[52].mxu0 %vm689_vm2, %v566_v27  ;;  %v382_v27 = vld [vmem:[%s11276_s12 + $0x318] sm:$0xff] }
 0x103   : > { %9362 = vmatprep.mubr.msk.bf16.mxu0 %vm689_vm2, %v567_v28  ;;  %v383_v28 = vld [vmem:[%s11276_s12 + $0x320] sm:$0xff]  ;;  %v588_v30 = vpack.c.bf16 %v382_v27, %v381_v26 }
 0x104   : > { %v589_v31 = vpack.c.bf16 %v384_v29, %v383_v28  ;;  %v403_v27 = vld [vmem:[%s11276_s12 + $0x3c0] sm:$0xff]  ;;  %v404_v28 = vld [vmem:[%s11276_s12 + $0x3c8] sm:$0xff] }
 0x10a   : > { %9363 = vmatmul.mubr.msk.bf16.gmra.mrb[56].mxu0 %vm689_vm2, %v568_v33  ;;  %v386_v33 = vld [vmem:[%s11276_s12 + $0x338] sm:$0xff] }
 0x10b   : > { %9366 = vmatprep.mubr.msk.bf16.mxu0 %vm689_vm2, %v569_v34  ;;  %v387_v34 = vld [vmem:[%s11276_s12 + $0x340] sm:$0xff]  ;;  %v590_v36 = vpack.c.bf16 %v386_v33, %v385_v32 }
 0x10c   : > { %v591_v37 = vpack.c.bf16 %v388_v35, %v387_v34 }
 0x112   : > { %9367 = vmatmul.mubr.msk.bf16.gmra.mrb[60].mxu0 %vm689_vm2, %v570_v39  ;;  %v390_v39 = vld [vmem:[%s11276_s12 + $0x358] sm:$0xff] }
 0x113   : > { %9370 = vmatprep.mubr.msk.bf16.mxu0 %vm689_vm2, %v571_v40  ;;  %v391_v40 = vld [vmem:[%s11276_s12 + $0x360] sm:$0xff]  ;;  %v592_v42 = vpack.c.bf16 %v390_v39, %v389_v38  ;;  %v599_v39 = vpack.c.bf16 %v404_v28, %v403_v27 }
 0x114   : > { %v593_v43 = vpack.c.bf16 %v392_v41, %v391_v40 }
 0x11a   : > { %9371 = vmatmul.mubr.msk.bf16.gmra.mrb[64].mxu0 %vm689_vm2, %v572_v45  ;;  %v393_v45 = vld [vmem:[%s11276_s12 + $0x370] sm:$0xff] }
 0x11b   : > { %9374 = vmatprep.mubr.msk.bf16.mxu0 %vm689_vm2, %v573_v46  ;;  %v394_v46 = vld [vmem:[%s11276_s12 + $0x378] sm:$0xff] }
 0x122   : > { %9375 = vmatmul.mubr.msk.bf16.gmra.mrb[68].mxu0 %vm689_vm2, %v574_v52  ;;  %v594_v52 = vpack.c.bf16 %v394_v46, %v393_v45 }
 0x123   : > { %9378 = vmatprep.mubr.msk.bf16.mxu0 %vm689_vm2, %v575_v53 }
 0x12a   : > { %9379 = vmatmul.mubr.msk.bf16.gmra.mrb[72].mxu0 %vm689_vm2, %v576_v58 }
 0x12b   : > { %9382 = vmatprep.mubr.msk.bf16.mxu0 %vm689_vm2, %v577_v59 }
 0x132   : > { %9383 = vmatmul.mubr.msk.bf16.gmra.mrb[76].mxu0 %vm689_vm2, %v578_v0  ;;  %v398_v0 = vld [vmem:[%s11276_s12 + $0x398] sm:$0xff] }
 0x133   : > { %9386 = vmatprep.mubr.msk.bf16.mxu0 %vm689_vm2, %v579_v1 }
 0x13a   : > { %9387 = vmatmul.mubr.msk.bf16.gmra.mrb[80].mxu0 %vm689_vm2, %v580_v6 }
 0x13b   : > { %9390 = vmatprep.mubr.msk.bf16.mxu0 %vm689_vm2, %v581_v7 }
 0x142   : > { %9391 = vmatmul.mubr.msk.bf16.gmra.mrb[84].mxu0 %vm689_vm2, %v582_v12  ;;  %v596_v12 = vpack.c.bf16 %v398_v0, %v397_v63 }
 0x143   : > { %9394 = vmatprep.mubr.msk.bf16.mxu0 %vm689_vm2, %v583_v13 }
 0x14a   : > { %9395 = vmatmul.mubr.msk.bf16.gmra.mrb[88].mxu0 %vm689_vm2, %v584_v18 }
 0x14b   : > { %9398 = vmatprep.mubr.msk.bf16.mxu0 %vm689_vm2, %v585_v19 }
 0x152   : > { %9399 = vmatmul.mubr.msk.bf16.gmra.mrb[92].mxu0 %vm689_vm2, %v586_v24  ;;  %v402_v24 = vld [vmem:[%s11276_s12 + $0x3b8] sm:$0xff] }
 0x153   : > { %9402 = vmatprep.mubr.msk.bf16.mxu0 %vm689_vm2, %v587_v25 }
 0x15a   : > { %9403 = vmatmul.mubr.msk.bf16.gmra.mrb[96].mxu0 %vm689_vm2, %v588_v30 }
 0x15b   : > { %9406 = vmatprep.mubr.msk.bf16.mxu0 %vm689_vm2, %v589_v31 }
 0x162   : > { %9407 = vmatmul.mubr.msk.bf16.gmra.mrb[100].mxu0 %vm689_vm2, %v590_v36  ;;  %v598_v36 = vpack.c.bf16 %v402_v24, %v401_v23 }
 0x163   : > { %9410 = vmatprep.mubr.msk.bf16.mxu0 %vm689_vm2, %v591_v37 }
 0x16a   : > { %9411 = vmatmul.mubr.msk.bf16.gmra.mrb[104].mxu0 %vm689_vm2, %v592_v42 }
 0x16b   : > { %9414 = vmatprep.mubr.msk.bf16.mxu0 %vm689_vm2, %v593_v43 }
 0x16d   : > { %v9308_v49 = vpop.f32.mrb[0].mxu0 }
 0x16e   : > { %v1124_v50 = vadd.f32 %v9308_v49, %v11678_v44  ;;  %v1115_v51 = vpop.f32.mrb[1].mxu0  ;;  %v406_v49 = vld [vmem:[%s11276_s12 + $0x3d8] sm:$0xff] }
 0x16f   : > { %v1116_v53 = vadd.f32 %v11678_v44, %v1115_v51  ;;  %v9309_v54 = vpop.f32.mrb[2].mxu0 }
 0x170   : > { %v2140_v56 = vmax.f32 %v1124_v50, 0.0  ;;  %v1127_v57 = vadd.f32 %v9309_v54, %v11678_v44  ;;  %v1118_v58 = vpop.f32.mrb[3].mxu0 }
 0x171   : > { %v2138_v59 = vmax.f32 %v1116_v53, 0.0  ;;  %v1119_v60 = vadd.f32 %v11678_v44, %v1118_v58  ;;  %v408_v53 = vld [vmem:[%s11276_s12 + $0x3e8] sm:$0xff] }
 0x172   : > { %v2141_v61 = vmax.f32 %v1127_v57, 0.0  ;;  %9415 = vmatmul.mubr.msk.bf16.gmra.mrb[108].mxu0 %vm689_vm2, %v594_v52  ;;  %v11694_v1 = vsel %vm2394_vm3, %v2140_v56, -inf  ;;  %v407_v52 = vld [vmem:[%s11276_s12 + $0x3e0] sm:$0xff] }
 0x173   : > { %v2139_v62 = vmax.f32 %v1119_v60, 0.0  ;;  %9418 = vmatprep.mubr.msk.bf16.mxu0 %vm689_vm2, %v595_v55  ;;  %v11702_v5 = vsel %vm2394_vm3, %v2138_v59, -inf  ;;  %v601_v0 = vpack.c.bf16 %v408_v53, %v407_v52 }
 0x174   : > { %v11697_v2 = vsel %vm2394_vm3, %v2141_v61, -inf  ;;  %v600_v61 = vpack.c.bf16 %v406_v49, %v405_v48  ;;  %v416_v48 = vld [vmem:[%s11276_s12 + $0x428] sm:$0xff] }
 0x175   : > { %v2400_v6 = vmax.f32 %v11694_v1, %v11697_v2  ;;  %v11707_v7 = vsel %vm2394_vm3, %v2139_v62, -inf  ;;  %v9312_v8 = vpop.f32.mrb[4].mxu0 }
 0x176   : > { %v2397_v9 = vmax.f32 %v11702_v5, %v11707_v7  ;;  %v1140_v10 = vadd.f32 %v9312_v8, %v11678_v44  ;;  %v1131_v11 = vpop.f32.mrb[5].mxu0 }
 0x177   : > { %v1132_v13 = vadd.f32 %v11678_v44, %v1131_v11  ;;  %v9313_v14 = vpop.f32.mrb[6].mxu0 }
 0x178   : > { %v2144_v16 = vmax.f32 %v1140_v10, 0.0  ;;  %v1143_v17 = vadd.f32 %v9313_v14, %v11678_v44  ;;  %v1134_v18 = vpop.f32.mrb[7].mxu0  ;;  %v409_v14 = vld [vmem:[%s11276_s12 + $0x3f0] sm:$0xff] }
 0x179   : > { %v2142_v19 = vmax.f32 %v1132_v13, 0.0  ;;  %v1135_v20 = vadd.f32 %v11678_v44, %v1134_v18  ;;  %v411_v18 = vld [vmem:[%s11276_s12 + $0x400] sm:$0xff] }
 0x17a   : > { %v2145_v21 = vmax.f32 %v1143_v17, 0.0  ;;  %9419 = vmatmul.mubr.msk.bf16.gmra.mrb[112].mxu0 %vm689_vm2, %v596_v12  ;;  %v11720_v25 = vsel %vm2394_vm3, %v2144_v16, -inf }
 0x17b   : > { %v2143_v22 = vmax.f32 %v1135_v20, 0.0  ;;  %9422 = vmatprep.mubr.msk.bf16.mxu0 %vm689_vm2, %v597_v15  ;;  %v11728_v29 = vsel %vm2394_vm3, %v2142_v19, -inf  ;;  %v410_v15 = vld [vmem:[%s11276_s12 + $0x3f8] sm:$0xff]  ;;  %v412_v19 = vld [vmem:[%s11276_s12 + $0x408] sm:$0xff] }
 0x17c   : > { %v11723_v26 = vsel %vm2394_vm3, %v2145_v21, -inf }
 0x17d   : > { %v2406_v30 = vmax.f32 %v11720_v25, %v11723_v26  ;;  %v11733_v31 = vsel %vm2394_vm3, %v2143_v22, -inf  ;;  %v9316_v32 = vpop.f32.mrb[8].mxu0 }
 0x17e   : > { %v2403_v33 = vmax.f32 %v11728_v29, %v11733_v31  ;;  %v1156_v34 = vadd.f32 %v9316_v32, %v11678_v44  ;;  %v1147_v35 = vpop.f32.mrb[9].mxu0  ;;  %v602_v32 = vpack.c.bf16 %v410_v15, %v409_v14 }
 0x17f   : > { %v1148_v37 = vadd.f32 %v11678_v44, %v1147_v35  ;;  %v9317_v38 = vpop.f32.mrb[10].mxu0 }
 0x180   : > { %v2148_v40 = vmax.f32 %v1156_v34, 0.0  ;;  %v1159_v41 = vadd.f32 %v9317_v38, %v11678_v44  ;;  %v1150_v42 = vpop.f32.mrb[11].mxu0 }
 0x181   : > { %v2146_v43 = vmax.f32 %v1148_v37, 0.0  ;;  %v1151_v45 = vadd.f32 %v11678_v44, %v1150_v42 }
 0x182   : > { %v2149_v46 = vmax.f32 %v1159_v41, 0.0  ;;  %9423 = vmatmul.mubr.msk.bf16.gmra.mrb[116].mxu0 %vm689_vm2, %v598_v36  ;;  %v11746_v50 = vsel %vm2394_vm3, %v2148_v40, -inf  ;;  %v603_v36 = vpack.c.bf16 %v412_v19, %v411_v18  ;;  %v417_v18 = vld [vmem:[%s11276_s12 + $0x430] sm:$0xff] }
 0x183   : > { %v2147_v47 = vmax.f32 %v1151_v45, 0.0  ;;  %9426 = vmatprep.mubr.msk.bf16.mxu0 %vm689_vm2, %v599_v39  ;;  %v11754_v54 = vsel %vm2394_vm3, %v2146_v43, -inf  ;;  %v413_v43 = vld [vmem:[%s11276_s12 + $0x410] sm:$0xff] }
 0x184   : > { %v11749_v51 = vsel %vm2394_vm3, %v2149_v46, -inf  ;;  %v414_v46 = vld [vmem:[%s11276_s12 + $0x418] sm:$0xff] }
 0x185   : > { %v2412_v55 = vmax.f32 %v11746_v50, %v11749_v51  ;;  %v11759_v56 = vsel %vm2394_vm3, %v2147_v47, -inf  ;;  %v9320_v57 = vpop.f32.mrb[12].mxu0  ;;  %v415_v47 = vld [vmem:[%s11276_s12 + $0x420] sm:$0xff] }
 0x186   : > { %v2409_v58 = vmax.f32 %v11754_v54, %v11759_v56  ;;  %v1172_v59 = vadd.f32 %v9320_v57, %v11678_v44  ;;  %v1163_v60 = vpop.f32.mrb[13].mxu0 }
 0x187   : > { %v1164_v62 = vadd.f32 %v11678_v44, %v1163_v60  ;;  %v9321_v63 = vpop.f32.mrb[14].mxu0 }
 0x188   : > { %v2152_v3 = vmax.f32 %v1172_v59, 0.0  ;;  %v1175_v4 = vadd.f32 %v9321_v63, %v11678_v44  ;;  %v1166_v8 = vpop.f32.mrb[15].mxu0 }
 0x189   : > { %v2150_v10 = vmax.f32 %v1164_v62, 0.0  ;;  %v1167_v11 = vadd.f32 %v11678_v44, %v1166_v8  ;;  %v2779_v8 = vsel %vm2394_vm3, %v2397_v9, -inf }
 0x18a   : > { %v2153_v12 = vmax.f32 %v1175_v4, 0.0  ;;  %9427 = vmatmul.mubr.msk.bf16.gmra.mrb[120].mxu0 %vm689_vm2, %v600_v61  ;;  %v11772_v16 = vsel %vm2394_vm3, %v2152_v3, -inf  ;;  %v605_v3 = vpack.c.bf16 %v416_v48, %v415_v47  ;;  %v2782_v4 = vsel %vm2394_vm3, %v2400_v6, -inf }
 0x18b   : > { %v2151_v13 = vmax.f32 %v1167_v11, 0.0  ;;  %9430 = vmatprep.mubr.msk.bf16.mxu0 %vm689_vm2, %v601_v0  ;;  %v11780_v20 = vsel %vm2394_vm3, %v2150_v10, -inf  ;;  %v604_v0 = vpack.c.bf16 %v414_v46, %v413_v43  ;;  %v2785_v46 = vsel %vm2394_vm3, %v2403_v33, -inf }
 0x18c   : > { %v11775_v17 = vsel %vm2394_vm3, %v2153_v12, -inf }
 0x18d   : > { %v2418_v21 = vmax.f32 %v11772_v16, %v11775_v17  ;;  %v11785_v22 = vsel %vm2394_vm3, %v2151_v13, -inf  ;;  %v9324_v23 = vpop.f32.mrb[16].mxu0 }
 0x18e   : > { %v2415_v24 = vmax.f32 %v11780_v20, %v11785_v22  ;;  %v1188_v27 = vadd.f32 %v9324_v23, %v11678_v44  ;;  %v1179_v28 = vpop.f32.mrb[17].mxu0  ;;  %v418_v23 = vld [vmem:[%s11276_s12 + $0x438] sm:$0xff] }
 0x18f   : > { %v1180_v34 = vadd.f32 %v11678_v44, %v1179_v28  ;;  %v9325_v35 = vpop.f32.mrb[18].mxu0  ;;  %v420_v28 = vld [vmem:[%s11276_s12 + $0x448] sm:$0xff] }
 0x190   : > { %v2156_v37 = vmax.f32 %v1188_v27, 0.0  ;;  %v1191_v38 = vadd.f32 %v9325_v35, %v11678_v44  ;;  %v1182_v39 = vpop.f32.mrb[19].mxu0  ;;  %v419_v27 = vld [vmem:[%s11276_s12 + $0x440] sm:$0xff] }
 0x191   : > { %v2154_v40 = vmax.f32 %v1180_v34, 0.0  ;;  %v1183_v41 = vadd.f32 %v11678_v44, %v1182_v39  ;;  %v607_v43 = vpack.c.bf16 %v420_v28, %v419_v27 }
 0x192   : > { %v2157_v42 = vmax.f32 %v1191_v38, 0.0  ;;  %9431 = vmatmul.mubr.msk.bf16.gmra.mrb[124].mxu0 %vm689_vm2, %v602_v32  ;;  %v2422_v49 = vsel %vm2394_vm3, %v2156_v37, -inf }
 0x193   : > { %v2155_v45 = vmax.f32 %v1183_v41, 0.0  ;;  %9434 = vmatprep.mubr.msk.bf16.mxu0 %vm689_vm2, %v603_v36  ;;  %v2419_v53 = vsel %vm2394_vm3, %v2154_v40, -inf }
 0x194   : > { %v2423_v52 = vsel %vm2394_vm3, %v2157_v42, -inf  ;;  %v606_v42 = vpack.c.bf16 %v418_v23, %v417_v18 }
 0x195   : > { %v2424_v57 = vmax.f32 %v2422_v49, %v2423_v52  ;;  %v2420_v59 = vsel %vm2394_vm3, %v2155_v45, -inf  ;;  %v9328_v60 = vpop.f32.mrb[20].mxu0  ;;  %v2788_v45 = vsel %vm2394_vm3, %v2406_v30, -inf }
 0x196   : > { %v2421_v61 = vmax.f32 %v2419_v53, %v2420_v59  ;;  %v1204_v62 = vadd.f32 %v9328_v60, %v11678_v44  ;;  %v1195_v63 = vpop.f32.mrb[21].mxu0  ;;  %v421_v60 = vld [vmem:[%s11276_s12 + $0x450] sm:$0xff] }
 0x197   : > { %v2783_v10 = vsel %vm2394_vm3, %v2424_v57, -inf  ;;  %v1196_v11 = vadd.f32 %v11678_v44, %v1195_v63  ;;  %v9329_v12 = vpop.f32.mrb[22].mxu0  ;;  %v422_v63 = vld [vmem:[%s11276_s12 + $0x458] sm:$0xff] }
 0x198   : > { %v2784_v13 = vmax.f32 %v2782_v4, %v2783_v10  ;;  %v2780_v14 = vsel %vm2394_vm3, %v2421_v61, -inf  ;;  %v2160_v1 = vmax.f32 %v1204_v62, 0.0  ;;  %v1207_v2 = vadd.f32 %v9329_v12, %v11678_v44  ;;  %v1198_v6 = vpop.f32.mrb[23].mxu0  ;;  %v480_v10 = vld [vmem:[%s11276_s12 + $0x628] sm:$0xff] }
 0x199   : > { %v2781_v15 = vmax.f32 %v2779_v8, %v2780_v14  ;;  %v2158_v5 = vmax.f32 %v1196_v11, 0.0  ;;  %v1199_v7 = vadd.f32 %v11678_v44, %v1198_v6 }
 0x19a   : > { %3073 = vst.msk [vmem:[#allocation2 + $0x60] sm:$0xff] %vm2394_vm3, %v2784_v13  ;;  %v2161_v9 = vmax.f32 %v1207_v2, 0.0  ;;  %9435 = vmatmul.mubr.msk.bf16.gmra.mrb[128].mxu0 %vm689_vm2, %v604_v0  ;;  %v2428_v32 = vsel %vm2394_vm3, %v2160_v1, -inf  ;;  %v423_v0 = vld [vmem:[%s11276_s12 + $0x460] sm:$0xff] }
 0x19b   : > { %3072 = vst.msk [vmem:[#allocation2 + $0x58] sm:$0xff] %vm2394_vm3, %v2781_v15  ;;  %v2159_v19 = vmax.f32 %v1199_v7, 0.0  ;;  %9438 = vmatprep.mubr.msk.bf16.mxu0 %vm689_vm2, %v605_v3  ;;  %v2425_v35 = vsel %vm2394_vm3, %v2158_v5, -inf  ;;  %v424_v3 = vld [vmem:[%s11276_s12 + $0x468] sm:$0xff]  ;;  %v608_v15 = vpack.c.bf16 %v422_v63, %v421_v60  ;;  %v2794_v7 = vsel %vm2394_vm3, %v2412_v55, -inf }
 0x19c   : > { %v2429_v34 = vsel %vm2394_vm3, %v2161_v9, -inf  ;;  %v609_v5 = vpack.c.bf16 %v424_v3, %v423_v0  ;;  %v2791_v9 = vsel %vm2394_vm3, %v2409_v58, -inf }
 0x19d   : > { %v2430_v36 = vmax.f32 %v2428_v32, %v2429_v34  ;;  %v2426_v37 = vsel %vm2394_vm3, %v2159_v19, -inf  ;;  %v9332_v38 = vpop.f32.mrb[24].mxu0 }
 0x19e   : > { %v2427_v39 = vmax.f32 %v2425_v35, %v2426_v37  ;;  %v1220_v40 = vadd.f32 %v9332_v38, %v11678_v44  ;;  %v1211_v41 = vpop.f32.mrb[25].mxu0  ;;  %v425_v35 = vld [vmem:[%s11276_s12 + $0x470] sm:$0xff]  ;;  %v426_v38 = vld [vmem:[%s11276_s12 + $0x478] sm:$0xff] }
 0x19f   : > { %v2789_v47 = vsel %vm2394_vm3, %v2430_v36, -inf  ;;  %v1212_v48 = vadd.f32 %v11678_v44, %v1211_v41  ;;  %v9333_v49 = vpop.f32.mrb[26].mxu0 }
 0x1a0   : > { %v2790_v52 = vmax.f32 %v2788_v45, %v2789_v47  ;;  %v2786_v53 = vsel %vm2394_vm3, %v2427_v39, -inf  ;;  %v2164_v57 = vmax.f32 %v1220_v40, 0.0  ;;  %v1223_v25 = vadd.f32 %v9333_v49, %v11678_v44  ;;  %v1214_v26 = vpop.f32.mrb[27].mxu0  ;;  %v427_v39 = vld [vmem:[%s11276_s12 + $0x480] sm:$0xff]  ;;  %v428_v40 = vld [vmem:[%s11276_s12 + $0x488] sm:$0xff] }
 0x1a1   : > { %v2787_v30 = vmax.f32 %v2785_v46, %v2786_v53  ;;  %v2162_v29 = vmax.f32 %v1212_v48, 0.0  ;;  %v1215_v31 = vadd.f32 %v11678_v44, %v1214_v26  ;;  %v11843_v33 = vld [vmem:[#allocation2 + $0x60] sm:$0xff]  ;;  %v2800_v26 = vsel %vm2394_vm3, %v2418_v21, -inf }
 0x1a2   : > { %3075 = vst.msk [vmem:[#allocation2 + $0x70] sm:$0xff] %vm2394_vm3, %v2790_v52  ;;  %v2165_v59 = vmax.f32 %v1223_v25, 0.0  ;;  %9439 = vmatmul.mubr.msk.bf16.gmra.mrb[132].mxu0 %vm689_vm2, %v606_v42  ;;  %v11848_v61 = vld [vmem:[#allocation2 + $0x58] sm:$0xff]  ;;  %v2434_v4 = vsel %vm2394_vm3, %v2164_v57, -inf  ;;  %v610_v57 = vpack.c.bf16 %v426_v38, %v425_v35  ;;  %v611_v25 = vpack.c.bf16 %v428_v40, %v427_v39  ;;  %v433_v38 = vld [vmem:[%s11276_s12 + $0x4b0] sm:$0xff] }
 0x1a3   : > { %3074 = vst.msk [vmem:[#allocation2 + $0x68] sm:$0xff] %vm2394_vm3, %v2787_v30  ;;  %v2163_v62 = vmax.f32 %v1215_v31, 0.0  ;;  %9442 = vmatprep.mubr.msk.bf16.mxu0 %vm689_vm2, %v607_v43  ;;  %v2431_v11 = vsel %vm2394_vm3, %v2162_v29, -inf  ;;  %v2797_v29 = vsel %vm2394_vm3, %v2415_v24, -inf  ;;  %v434_v39 = vld [vmem:[%s11276_s12 + $0x4b8] sm:$0xff] }
 0x1a4   : > { %v2435_v8 = vsel %vm2394_vm3, %v2165_v59, -inf }
 0x1a5   : > { %v2436_v12 = vmax.f32 %v2434_v4, %v2435_v8  ;;  %v2432_v13 = vsel %vm2394_vm3, %v2163_v62, -inf  ;;  %v9336_v14 = vpop.f32.mrb[28].mxu0  ;;  %v429_v8 = vld [vmem:[%s11276_s12 + $0x490] sm:$0xff] }
 0x1a6   : > { %v2433_v1 = vmax.f32 %v2431_v11, %v2432_v13  ;;  %v1236_v2 = vadd.f32 %v9336_v14, %v11678_v44  ;;  %v1227_v6 = vpop.f32.mrb[29].mxu0  ;;  %v430_v11 = vld [vmem:[%s11276_s12 + $0x498] sm:$0xff]  ;;  %v431_v14 = vld [vmem:[%s11276_s12 + $0x4a0] sm:$0xff] }
 0x1a7   : > { %v2795_v18 = vsel %vm2394_vm3, %v2436_v12, -inf  ;;  %v1228_v19 = vadd.f32 %v11678_v44, %v1227_v6  ;;  %v9337_v23 = vpop.f32.mrb[30].mxu0 }
 0x1a8   : > { %v2796_v27 = vmax.f32 %v2794_v7, %v2795_v18  ;;  %v2792_v28 = vsel %vm2394_vm3, %v2433_v1, -inf  ;;  %v2168_v32 = vmax.f32 %v1236_v2, 0.0  ;;  %v1239_v50 = vadd.f32 %v9337_v23, %v11678_v44  ;;  %v1230_v51 = vpop.f32.mrb[31].mxu0  ;;  %v432_v1 = vld [vmem:[%s11276_s12 + $0x4a8] sm:$0xff] }
 0x1a9   : > { %v2793_v55 = vmax.f32 %v2791_v9, %v2792_v28  ;;  %v2166_v54 = vmax.f32 %v1228_v19, 0.0  ;;  %v1231_v56 = vadd.f32 %v11678_v44, %v1230_v51  ;;  %v11875_v58 = vld [vmem:[#allocation2 + $0x70] sm:$0xff]  ;;  %v612_v23 = vpack.c.bf16 %v430_v11, %v429_v8  ;;  %v440_v8 = vld [vmem:[%s11276_s12 + $0x4e8] sm:$0xff] }
 0x1aa   : > { %3077 = vst.msk [vmem:[#allocation2 + $0x80] sm:$0xff] %vm2394_vm3, %v2796_v27  ;;  %v2169_v34 = vmax.f32 %v1239_v50, 0.0  ;;  %9443 = vmatmul.mubr.msk.bf16.gmra.mrb[136].mxu0 %vm689_vm2, %v608_v15  ;;  %v11880_v36 = vld [vmem:[#allocation2 + $0x68] sm:$0xff]  ;;  %v2440_v41 = vsel %vm2394_vm3, %v2168_v32, -inf  ;;  %v613_v32 = vpack.c.bf16 %v432_v1, %v431_v14 }
 0x1ab   : > { %3076 = vst.msk [vmem:[#allocation2 + $0x78] sm:$0xff] %vm2394_vm3, %v2793_v55  ;;  %v2167_v37 = vmax.f32 %v1231_v56, 0.0  ;;  %9446 = vmatprep.mubr.msk.bf16.mxu0 %vm689_vm2, %v609_v5  ;;  %v2437_v45 = vsel %vm2394_vm3, %v2166_v54, -inf  ;;  %v10759_v54 = vld [vmem:[#allocation8 + $0x10] sm:$0xff]  }
 0x1ac   : > { %v2441_v42 = vsel %vm2394_vm3, %v2169_v34, -inf  ;;  %10156 = vmatprep.subr.bf16.mxu1 %v10759_v54 }
 0x1ad   : > { %v2442_v46 = vmax.f32 %v2440_v41, %v2441_v42  ;;  %v2438_v47 = vsel %vm2394_vm3, %v2167_v37, -inf  ;;  %v9340_v48 = vpop.f32.mrb[32].mxu0  ;;  %10157 = vmatpush3.bf16.msra.mxu1 %v10759_v54  ;;  %v435_v42 = vld [vmem:[%s11276_s12 + $0x4c0] sm:$0xff] }
 0x1ae   : > { %v2439_v49 = vmax.f32 %v2437_v45, %v2438_v47  ;;  %v1252_v52 = vadd.f32 %v9340_v48, %v11678_v44  ;;  %v1243_v53 = vpop.f32.mrb[33].mxu0  ;;  %v436_v45 = vld [vmem:[%s11276_s12 + $0x4c8] sm:$0xff] }
 0x1af   : > { %v2801_v30 = vsel %vm2394_vm3, %v2442_v46, -inf  ;;  %v1244_v31 = vadd.f32 %v11678_v44, %v1243_v53  ;;  %v9341_v59 = vpop.f32.mrb[34].mxu0 }
 0x1b0   : > { %v2802_v60 = vmax.f32 %v2800_v26, %v2801_v30  ;;  %v2798_v62 = vsel %vm2394_vm3, %v2439_v49, -inf  ;;  %v2172_v63 = vmax.f32 %v1252_v52, 0.0  ;;  %v1255_v16 = vadd.f32 %v9341_v59, %v11678_v44  ;;  %v1246_v17 = vpop.f32.mrb[35].mxu0 }
 0x1b1   : > { %v2799_v21 = vmax.f32 %v2797_v29, %v2798_v62  ;;  %v2170_v0 = vmax.f32 %v1244_v31, 0.0  ;;  %v1247_v20 = vadd.f32 %v11678_v44, %v1246_v17  ;;  %v11907_v22 = vld [vmem:[#allocation2 + $0x80] sm:$0xff]  ;;  %v615_v29 = vpack.c.bf16 %v436_v45, %v435_v42 }
 0x1b2   : > { %3079 = vst.msk [vmem:[#allocation2 + $0x90] sm:$0xff] %vm2394_vm3, %v2802_v60  ;;  %v2173_v24 = vmax.f32 %v1255_v16, 0.0  ;;  %9447 = vmatmul.mubr.msk.bf16.gmra.mrb[140].mxu0 %vm689_vm2, %v610_v57  ;;  %v11911_v3 = vld [vmem:[#allocation2 + $0x78] sm:$0xff]  ;;  %v11918_v12 = vsel %vm2394_vm3, %v2172_v63, -inf }
 0x1b3   : > { %3078 = vst.msk [vmem:[#allocation2 + $0x88] sm:$0xff] %vm2394_vm3, %v2799_v21  ;;  %v2171_v4 = vmax.f32 %v1247_v20, 0.0  ;;  %9450 = vmatprep.mubr.msk.bf16.mxu0 %vm689_vm2, %v611_v25  ;;  %v11928_v6 = vsel %vm2394_vm3, %v2170_v0, -inf  ;;  %v614_v25 = vpack.c.bf16 %v434_v39, %v433_v38  ;;  %v437_v21 = vld [vmem:[%s11276_s12 + $0x4d0] sm:$0xff]  ;;  %v438_v0 = vld [vmem:[%s11276_s12 + $0x4d8] sm:$0xff] }
 0x1b4   : > { %v11921_v13 = vsel %vm2394_vm3, %v2173_v24, -inf  ;;  %v441_v38 = vld [vmem:[%s11276_s12 + $0x4f0] sm:$0xff]  ;;  %v442_v39 = vld [vmem:[%s11276_s12 + $0x4f8] sm:$0xff] }
 0x1b5   : > { %v2448_v15 = vmax.f32 %v11918_v12, %v11921_v13  ;;  %v11933_v5 = vsel %vm2394_vm3, %v2171_v4, -inf  ;;  %v9344_v7 = vpop.f32.mrb[36].mxu0  ;;  %v439_v4 = vld [vmem:[%s11276_s12 + $0x4e0] sm:$0xff] }
 0x1b6   : > { %v2445_v9 = vmax.f32 %v11928_v6, %v11933_v5  ;;  %v1268_v18 = vadd.f32 %v9344_v7, %v11678_v44  ;;  %v1259_v19 = vpop.f32.mrb[37].mxu0 }
 0x1b7   : > { %v1260_v27 = vadd.f32 %v11678_v44, %v1259_v19  ;;  %v9345_v28 = vpop.f32.mrb[38].mxu0 }
 0x1b8   : > { %v2176_v50 = vmax.f32 %v1268_v18, 0.0  ;;  %v1271_v51 = vadd.f32 %v9345_v28, %v11678_v44  ;;  %v1262_v55 = vpop.f32.mrb[39].mxu0 }
 0x1b9   : > { %v2174_v56 = vmax.f32 %v1260_v27, 0.0  ;;  %v1263_v34 = vadd.f32 %v11678_v44, %v1262_v55  ;;  %v616_v27 = vpack.c.bf16 %v438_v0, %v437_v21 }
 0x1ba   : > { %v2177_v35 = vmax.f32 %v1271_v51, 0.0  ;;  %9451 = vmatmul.mubr.msk.bf16.gmra.mrb[144].mxu0 %vm689_vm2, %v612_v23  ;;  %v11946_v40 = vsel %vm2394_vm3, %v2176_v50, -inf  ;;  %v617_v50 = vpack.c.bf16 %v440_v8, %v439_v4 }
 0x1bb   : > { %v2175_v37 = vmax.f32 %v1263_v34, 0.0  ;;  %9454 = vmatprep.mubr.msk.bf16.mxu0 %vm689_vm2, %v613_v32  ;;  %v11954_v46 = vsel %vm2394_vm3, %v2174_v56, -inf }
 0x1bc   : > { %v11949_v41 = vsel %vm2394_vm3, %v2177_v35, -inf }
 0x1bd   : > { %v2454_v47 = vmax.f32 %v11946_v40, %v11949_v41  ;;  %v11959_v48 = vsel %vm2394_vm3, %v2175_v37, -inf  ;;  %v9348_v49 = vpop.f32.mrb[40].mxu0 }
 0x1be   : > { %v2451_v52 = vmax.f32 %v11954_v46, %v11959_v48  ;;  %v1284_v53 = vadd.f32 %v9348_v49, %v11678_v44  ;;  %v1275_v57 = vpop.f32.mrb[41].mxu0  ;;  %v443_v49 = vld [vmem:[%s11276_s12 + $0x500] sm:$0xff] }
 0x1bf   : > { %v1276_v26 = vadd.f32 %v11678_v44, %v1275_v57  ;;  %v9349_v30 = vpop.f32.mrb[42].mxu0 }
 0x1c0   : > { %v2180_v31 = vmax.f32 %v1284_v53, 0.0  ;;  %v1287_v59 = vadd.f32 %v9349_v30, %v11678_v44  ;;  %v1278_v60 = vpop.f32.mrb[43].mxu0  ;;  %v444_v53 = vld [vmem:[%s11276_s12 + $0x508] sm:$0xff] }
 0x1c1   : > { %v2178_v62 = vmax.f32 %v1276_v26, 0.0  ;;  %v1279_v63 = vadd.f32 %v11678_v44, %v1278_v60  ;;  %v618_v60 = vpack.c.bf16 %v442_v39, %v441_v38 }
 0x1c2   : > { %v2181_v16 = vmax.f32 %v1287_v59, 0.0  ;;  %9455 = vmatmul.mubr.msk.bf16.gmra.mrb[148].mxu0 %vm689_vm2, %v614_v25  ;;  %v11972_v20 = vsel %vm2394_vm3, %v2180_v31, -inf }
 0x1c3   : > { %v2179_v17 = vmax.f32 %v1279_v63, 0.0  ;;  %9458 = vmatprep.mubr.msk.bf16.mxu0 %vm689_vm2, %v615_v29  ;;  %v11980_v11 = vsel %vm2394_vm3, %v2178_v62, -inf }
 0x1c4   : > { %v11975_v24 = vsel %vm2394_vm3, %v2181_v16, -inf  ;;  %v619_v16 = vpack.c.bf16 %v444_v53, %v443_v49  ;;  %v2806_v53 = vsel %vm2394_vm3, %v2448_v15, -inf }
 0x1c5   : > { %v2460_v14 = vmax.f32 %v11972_v20, %v11975_v24  ;;  %v11985_v1 = vsel %vm2394_vm3, %v2179_v17, -inf  ;;  %v9352_v7 = vpop.f32.mrb[44].mxu0 }
 0x1c6   : > { %v2457_v18 = vmax.f32 %v11980_v11, %v11985_v1  ;;  %v1300_v19 = vadd.f32 %v9352_v7, %v11678_v44  ;;  %v1291_v23 = vpop.f32.mrb[45].mxu0  ;;  %v457_v1 = vld [vmem:[%s11276_s12 + $0x570] sm:$0xff] }
 0x1c7   : > { %v1292_v28 = vadd.f32 %v11678_v44, %v1291_v23  ;;  %v9353_v32 = vpop.f32.mrb[46].mxu0 }
 0x1c8   : > { %v2184_v51 = vmax.f32 %v1300_v19, 0.0  ;;  %v1303_v55 = vadd.f32 %v9353_v32, %v11678_v44  ;;  %v1294_v54 = vpop.f32.mrb[47].mxu0  ;;  %v445_v19 = vld [vmem:[%s11276_s12 + $0x510] sm:$0xff]  ;;  %v448_v32 = vld [vmem:[%s11276_s12 + $0x528] sm:$0xff] }
 0x1c9   : > { %v2182_v56 = vmax.f32 %v1292_v28, 0.0  ;;  %v1295_v34 = vadd.f32 %v11678_v44, %v1294_v54  ;;  %v447_v28 = vld [vmem:[%s11276_s12 + $0x520] sm:$0xff] }
 0x1ca   : > { %v2185_v35 = vmax.f32 %v1303_v55, 0.0  ;;  %9459 = vmatmul.mubr.msk.bf16.gmra.mrb[152].mxu0 %vm689_vm2, %v616_v27  ;;  %v11998_v42 = vsel %vm2394_vm3, %v2184_v51, -inf  ;;  %v446_v27 = vld [vmem:[%s11276_s12 + $0x518] sm:$0xff]  ;;  %v621_v49 = vpack.c.bf16 %v448_v32, %v447_v28 }
 0x1cb   : > { %v2183_v37 = vmax.f32 %v1295_v34, 0.0  ;;  %9462 = vmatprep.mubr.msk.bf16.mxu0 %vm689_vm2, %v617_v50  ;;  %v12006_v57 = vsel %vm2394_vm3, %v2182_v56, -inf  ;;  %v620_v39 = vpack.c.bf16 %v446_v27, %v445_v19 }
 0x1cc   : > { %v12001_v45 = vsel %vm2394_vm3, %v2185_v35, -inf }
 0x1cd   : > { %v2466_v25 = vmax.f32 %v11998_v42, %v12001_v45  ;;  %v12011_v26 = vsel %vm2394_vm3, %v2183_v37, -inf  ;;  %v9356_v30 = vpop.f32.mrb[48].mxu0 }
 0x1ce   : > { %v2463_v29 = vmax.f32 %v12006_v57, %v12011_v26  ;;  %v1316_v31 = vadd.f32 %v9356_v30, %v11678_v44  ;;  %v1307_v59 = vpop.f32.mrb[49].mxu0  ;;  %v2803_v30 = vsel %vm2394_vm3, %v2445_v9, -inf }
 0x1cf   : > { %v1308_v62 = vadd.f32 %v11678_v44, %v1307_v59  ;;  %v9357_v63 = vpop.f32.mrb[50].mxu0 }
 0x1d0   : > { %v2188_v17 = vmax.f32 %v1316_v31, 0.0  ;;  %v1319_v21 = vadd.f32 %v9357_v63, %v11678_v44  ;;  %v1310_v0 = vpop.f32.mrb[51].mxu0 }
 0x1d1   : > { %v2186_v4 = vmax.f32 %v1308_v62, 0.0  ;;  %v1311_v8 = vadd.f32 %v11678_v44, %v1310_v0  ;;  %v450_v0 = vld [vmem:[%s11276_s12 + $0x538] sm:$0xff] }
 0x1d2   : > { %v2189_v7 = vmax.f32 %v1319_v21, 0.0  ;;  %9463 = vmatmul.mubr.msk.bf16.gmra.mrb[156].mxu0 %vm689_vm2, %v618_v60  ;;  %v2470_v50 = vsel %vm2394_vm3, %v2188_v17, -inf  ;;  %v449_v17 = vld [vmem:[%s11276_s12 + $0x530] sm:$0xff] }
 0x1d3   : > { %v2187_v23 = vmax.f32 %v1311_v8, 0.0  ;;  %9466 = vmatprep.mubr.msk.bf16.mxu0 %vm689_vm2, %v619_v16  ;;  %v2467_v55 = vsel %vm2394_vm3, %v2186_v4, -inf  ;;  %v451_v4 = vld [vmem:[%s11276_s12 + $0x540] sm:$0xff]  ;;  %v452_v8 = vld [vmem:[%s11276_s12 + $0x548] sm:$0xff] }
 0x1d4   : > { %v2471_v51 = vsel %vm2394_vm3, %v2189_v7, -inf }
 0x1d5   : > { %v2472_v54 = vmax.f32 %v2470_v50, %v2471_v51  ;;  %v2468_v56 = vsel %vm2394_vm3, %v2187_v23, -inf  ;;  %v9360_v34 = vpop.f32.mrb[52].mxu0 }
 0x1d6   : > { %v2469_v35 = vmax.f32 %v2467_v55, %v2468_v56  ;;  %v1332_v37 = vadd.f32 %v9360_v34, %v11678_v44  ;;  %v1323_v38 = vpop.f32.mrb[53].mxu0  ;;  %v623_v56 = vpack.c.bf16 %v452_v8, %v451_v4  ;;  %v2812_v34 = vsel %vm2394_vm3, %v2454_v47, -inf }
 0x1d7   : > { %v2807_v31 = vsel %vm2394_vm3, %v2472_v54, -inf  ;;  %v1324_v59 = vadd.f32 %v11678_v44, %v1323_v38  ;;  %v9361_v60 = vpop.f32.mrb[54].mxu0  ;;  %v622_v54 = vpack.c.bf16 %v450_v0, %v449_v17 }
 0x1d8   : > { %v2808_v62 = vmax.f32 %v2806_v53, %v2807_v31  ;;  %v2804_v63 = vsel %vm2394_vm3, %v2469_v35, -inf  ;;  %v2192_v12 = vmax.f32 %v1332_v37, 0.0  ;;  %v1335_v13 = vadd.f32 %v9361_v60, %v11678_v44  ;;  %v1326_v15 = vpop.f32.mrb[55].mxu0  ;;  %v453_v60 = vld [vmem:[%s11276_s12 + $0x550] sm:$0xff] }
 0x1d9   : > { %v2805_v16 = vmax.f32 %v2803_v30, %v2804_v63  ;;  %v2190_v6 = vmax.f32 %v1324_v59, 0.0  ;;  %v1327_v5 = vadd.f32 %v11678_v44, %v1326_v15  ;;  %v2809_v35 = vsel %vm2394_vm3, %v2451_v52, -inf  ;;  %v455_v15 = vld [vmem:[%s11276_s12 + $0x560] sm:$0xff] }
 0x1da   : > { %3081 = vst.msk [vmem:[#allocation2 + $0xb0] sm:$0xff] %vm2394_vm3, %v2808_v62  ;;  %v2193_v9 = vmax.f32 %v1335_v13, 0.0  ;;  %9467 = vmatmul.mubr.msk.bf16.gmra.mrb[160].mxu0 %vm689_vm2, %v620_v39  ;;  %v2476_v7 = vsel %vm2394_vm3, %v2192_v12, -inf  ;;  %v454_v13 = vld [vmem:[%s11276_s12 + $0x558] sm:$0xff] }
 0x1db   : > { %3080 = vst.msk [vmem:[#allocation2 + $0xa8] sm:$0xff] %vm2394_vm3, %v2805_v16  ;;  %v2191_v21 = vmax.f32 %v1327_v5, 0.0  ;;  %9470 = vmatprep.mubr.msk.bf16.mxu0 %vm689_vm2, %v621_v49  ;;  %v2473_v23 = vsel %vm2394_vm3, %v2190_v6, -inf  ;;  %v456_v16 = vld [vmem:[%s11276_s12 + $0x568] sm:$0xff] }
 0x1dc   : > { %v2477_v19 = vsel %vm2394_vm3, %v2193_v9, -inf }
 0x1dd   : > { %v2478_v27 = vmax.f32 %v2476_v7, %v2477_v19  ;;  %v2474_v28 = vsel %vm2394_vm3, %v2191_v21, -inf  ;;  %v9364_v32 = vpop.f32.mrb[56].mxu0 }
 0x1de   : > { %v2475_v50 = vmax.f32 %v2473_v23, %v2474_v28  ;;  %v1348_v51 = vadd.f32 %v9364_v32, %v11678_v44  ;;  %v1339_v55 = vpop.f32.mrb[57].mxu0  ;;  %v625_v28 = vpack.c.bf16 %v456_v16, %v455_v15  ;;  %v2818_v32 = vsel %vm2394_vm3, %v2460_v14, -inf }
 0x1df   : > { %v2813_v37 = vsel %vm2394_vm3, %v2478_v27, -inf  ;;  %v1340_v38 = vadd.f32 %v11678_v44, %v1339_v55  ;;  %v9365_v39 = vpop.f32.mrb[58].mxu0  ;;  %v624_v27 = vpack.c.bf16 %v454_v13, %v453_v60 }
 0x1e0   : > { %v2814_v49 = vmax.f32 %v2812_v34, %v2813_v37  ;;  %v2810_v53 = vsel %vm2394_vm3, %v2475_v50, -inf  ;;  %v2196_v30 = vmax.f32 %v1348_v51, 0.0  ;;  %v1351_v31 = vadd.f32 %v9365_v39, %v11678_v44  ;;  %v1342_v40 = vpop.f32.mrb[59].mxu0 }
 0x1e1   : > { %v2811_v41 = vmax.f32 %v2809_v35, %v2810_v53  ;;  %v2194_v46 = vmax.f32 %v1340_v38, 0.0  ;;  %v1343_v47 = vadd.f32 %v11678_v44, %v1342_v40  ;;  %v12069_v48 = vld [vmem:[#allocation2 + $0xb0] sm:$0xff]  ;;  %v2815_v50 = vsel %vm2394_vm3, %v2457_v18, -inf  ;;  %v459_v40 = vld [vmem:[%s11276_s12 + $0x580] sm:$0xff] }
 0x1e2   : > { %v12071_v52 = vld [vmem:[#allocation2 + $0xb0] sm:$0xff]  ;;  %3083 = vst.msk [vmem:[#allocation2 + $0xc0] sm:$0xff] %vm2394_vm3, %v2814_v49  ;;  %v2197_v59 = vmax.f32 %v1351_v31, 0.0  ;;  %9471 = vmatmul.mubr.msk.bf16.gmra.mrb[164].mxu0 %vm689_vm2, %v622_v54  ;;  %v12076_v62 = vld [vmem:[#allocation2 + $0xa8] sm:$0xff]  ;;  %v2482_v6 = vsel %vm2394_vm3, %v2196_v30, -inf  ;;  %v458_v31 = vld [vmem:[%s11276_s12 + $0x578] sm:$0xff] }
 0x1e3   : > { %14949 = vst [vmem:[#allocation19_spill] sm:$0xff] %v12071_v52  ;;  %v12078_v63 = vld [vmem:[#allocation2 + $0xa8] sm:$0xff]  ;;  %3082 = vst.msk [vmem:[#allocation2 + $0xb8] sm:$0xff] %vm2394_vm3, %v2811_v41  ;;  %v2195_v12 = vmax.f32 %v1343_v47, 0.0  ;;  %9474 = vmatprep.mubr.msk.bf16.mxu0 %vm689_vm2, %v623_v56  ;;  %v2479_v21 = vsel %vm2394_vm3, %v2194_v46, -inf }
 0x1e4   : > { %14950 = vst [vmem:[#allocation20_spill] sm:$0xff] %v12078_v63  ;;  %v2483_v5 = vsel %vm2394_vm3, %v2197_v59, -inf  ;;  %v460_v41 = vld [vmem:[%s11276_s12 + $0x588] sm:$0xff]  ;;  %v538_v63 = vld [vmem:[%s11276_s12 + $0x7f8] sm:$0xff] }
 0x1e5   : > { %v2484_v0 = vmax.f32 %v2482_v6, %v2483_v5  ;;  %v2480_v4 = vsel %vm2394_vm3, %v2195_v12, -inf  ;;  %v9368_v8 = vpop.f32.mrb[60].mxu0 }
 0x1e6   : > { %v2481_v7 = vmax.f32 %v2479_v21, %v2480_v4  ;;  %v1364_v19 = vadd.f32 %v9368_v8, %v11678_v44  ;;  %v1355_v23 = vpop.f32.mrb[61].mxu0  ;;  %v627_v4 = vpack.c.bf16 %v460_v41, %v459_v40  ;;  %v2824_v8 = vsel %vm2394_vm3, %v2466_v25, -inf }
 0x1e7   : > { %v2819_v51 = vsel %vm2394_vm3, %v2484_v0, -inf  ;;  %v1356_v55 = vadd.f32 %v11678_v44, %v1355_v23  ;;  %v9369_v54 = vpop.f32.mrb[62].mxu0  ;;  %v626_v0 = vpack.c.bf16 %v458_v31, %v457_v1 }
 0x1e8   : > { %v2820_v56 = vmax.f32 %v2818_v32, %v2819_v51  ;;  %v2816_v34 = vsel %vm2394_vm3, %v2481_v7, -inf  ;;  %v2200_v35 = vmax.f32 %v1364_v19, 0.0  ;;  %v1367_v37 = vadd.f32 %v9369_v54, %v11678_v44  ;;  %v1358_v20 = vpop.f32.mrb[63].mxu0  ;;  %v12143_v51 = vld [vmem:[#allocation6] ss:$0 sm:$0xff] }
 0x1e9   : > { %v2817_v24 = vmax.f32 %v2815_v50, %v2816_v34  ;;  %v2198_v14 = vmax.f32 %v1356_v55, 0.0  ;;  %v1359_v11 = vadd.f32 %v11678_v44, %v1358_v20  ;;  %v12108_v18 = vld [vmem:[#allocation2 + $0xc0] sm:$0xff]  ;;  %v2821_v7 = vsel %vm2394_vm3, %v2463_v29, -inf }
 0x1ea   : > { %3085 = vst.msk [vmem:[#allocation2 + $0xd0] sm:$0xff] %vm2394_vm3, %v2820_v56  ;;  %v2201_v38 = vmax.f32 %v1367_v37, 0.0  ;;  %9475 = vmatmul.mubr.msk.bf16.gmra.mrb[168].mxu0 %vm689_vm2, %v624_v27  ;;  %v12112_v39 = vld [vmem:[#allocation2 + $0xb8] sm:$0xff]  ;;  %v12114_v49 = vld [vmem:[#allocation2 + $0xc0] sm:$0xff]  ;;  %v2488_v46 = vsel %vm2394_vm3, %v2200_v35, -inf  ;;  %v461_v35 = vld [vmem:[%s11276_s12 + $0x590] sm:$0xff] }
 0x1eb   : > { %14951 = vst [vmem:[#allocation21_spill] sm:$0xff] %v12114_v49  ;;  %v12116_v53 = vld [vmem:[#allocation2 + $0xb8] sm:$0xff]  ;;  %3084 = vst.msk [vmem:[#allocation2 + $0xc8] sm:$0xff] %vm2394_vm3, %v2817_v24  ;;  %v2199_v30 = vmax.f32 %v1359_v11, 0.0  ;;  %9478 = vmatprep.mubr.msk.bf16.mxu0 %vm689_vm2, %v625_v28  ;;  %v2485_v60 = vsel %vm2394_vm3, %v2198_v14, -inf  ;;  %v463_v14 = vld [vmem:[%s11276_s12 + $0x5a0] sm:$0xff] }
 0x1ec   : > { %14952 = vst [vmem:[#allocation22_spill] sm:$0xff] %v12116_v53  ;;  %v2489_v47 = vsel %vm2394_vm3, %v2201_v38, -inf  ;;  %v462_v37 = vld [vmem:[%s11276_s12 + $0x598] sm:$0xff]  ;;  %v464_v11 = vld [vmem:[%s11276_s12 + $0x5a8] sm:$0xff] }
 0x1ed   : > { %v2490_v12 = vmax.f32 %v2488_v46, %v2489_v47  ;;  %v2486_v13 = vsel %vm2394_vm3, %v2199_v30, -inf  ;;  %v9372_v15 = vpop.f32.mrb[64].mxu0 }
 0x1ee   : > { %v2487_v6 = vmax.f32 %v2485_v60, %v2486_v13  ;;  %v1380_v5 = vadd.f32 %v9372_v15, %v11678_v44  ;;  %v1371_v21 = vpop.f32.mrb[65].mxu0 }
 0x1ef   : > { %v2825_v19 = vsel %vm2394_vm3, %v2490_v12, -inf  ;;  %v1372_v23 = vadd.f32 %v11678_v44, %v1371_v21  ;;  %v9373_v27 = vpop.f32.mrb[66].mxu0  ;;  %v628_v12 = vpack.c.bf16 %v462_v37, %v461_v35 }
 0x1f0   : > { %v2826_v28 = vmax.f32 %v2824_v8, %v2825_v19  ;;  %v2822_v32 = vsel %vm2394_vm3, %v2487_v6, -inf  ;;  %v2204_v50 = vmax.f32 %v1380_v5, 0.0  ;;  %v1383_v42 = vadd.f32 %v12143_v51, %v9373_v27  ;;  %v1374_v45 = vpop.f32.mrb[67].mxu0 }
 0x1f1   : > { %v2823_v25 = vmax.f32 %v2821_v7, %v2822_v32  ;;  %v2202_v57 = vmax.f32 %v1372_v23, 0.0  ;;  %v1375_v26 = vadd.f32 %v12143_v51, %v1374_v45  ;;  %v12147_v29 = vld [vmem:[#allocation2 + $0xd0] sm:$0xff]  ;;  %v629_v6 = vpack.c.bf16 %v464_v11, %v463_v14  ;;  %v466_v32 = vld [vmem:[%s11276_s12 + $0x5b8] sm:$0xff]  ;;  %v467_v45 = vld [vmem:[%s11276_s12 + $0x5c0] sm:$0xff] }
 0x1f2   : > { %3087 = vst.msk [vmem:[#allocation2 + $0xe0] sm:$0xff] %vm2394_vm3, %v2826_v28  ;;  %v2205_v44 = vmax.f32 %v1383_v42, 0.0  ;;  %9479 = vmatmul.mubr.msk.bf16.gmra.mrb[172].mxu0 %vm689_vm2, %v626_v0  ;;  %v12151_v55 = vld [vmem:[#allocation2 + $0xc8] sm:$0xff]  ;;  %v12153_v54 = vld [vmem:[#allocation2 + $0xd0] sm:$0xff]  ;;  %v12162_v20 = vsel %vm2394_vm3, %v2204_v50, -inf }
 0x1f3   : > { %14953 = vst [vmem:[#allocation23_spill] sm:$0xff] %v12153_v54  ;;  %v12155_v56 = vld [vmem:[#allocation2 + $0xc8] sm:$0xff]  ;;  %3086 = vst.msk [vmem:[#allocation2 + $0xd8] sm:$0xff] %vm2394_vm3, %v2823_v25  ;;  %v2203_v34 = vmax.f32 %v1375_v26, 0.0  ;;  %9482 = vmatprep.mubr.msk.bf16.mxu0 %vm689_vm2, %v627_v4  ;;  %v12172_v38 = vsel %vm2394_vm3, %v2202_v57, -inf  ;;  %v465_v28 = vld [vmem:[%s11276_s12 + $0x5b0] sm:$0xff] }
 0x1f4   : > { %14954 = vst [vmem:[#allocation24_spill] sm:$0xff] %v12155_v56  ;;  %v12165_v24 = vsel %vm2394_vm3, %v2205_v44, -inf  ;;  %v468_v25 = vld [vmem:[%s11276_s12 + $0x5c8] sm:$0xff] }
 0x1f5   : > { %v2496_v30 = vmax.f32 %v12162_v20, %v12165_v24  ;;  %v12177_v31 = vsel %vm2394_vm3, %v2203_v34, -inf  ;;  %v9376_v40 = vpop.f32.mrb[68].mxu0 }
 0x1f6   : > { %v2493_v46 = vmax.f32 %v12172_v38, %v12177_v31  ;;  %v1396_v47 = vadd.f32 %v12143_v51, %v9376_v40  ;;  %v1387_v60 = vpop.f32.mrb[69].mxu0  ;;  %v630_v40 = vpack.c.bf16 %v466_v32, %v465_v28  ;;  %v471_v32 = vld [vmem:[%s11276_s12 + $0x5e0] sm:$0xff] }
 0x1f7   : > { %v1388_v13 = vadd.f32 %v12143_v51, %v1387_v60  ;;  %v9377_v15 = vpop.f32.mrb[70].mxu0 }
 0x1f8   : > { %v2208_v5 = vmax.f32 %v1396_v47, 0.0  ;;  %v1399_v21 = vadd.f32 %v12143_v51, %v9377_v15  ;;  %v1390_v0 = vpop.f32.mrb[71].mxu0 }
 0x1f9   : > { %v2206_v4 = vmax.f32 %v1388_v13, 0.0  ;;  %v1391_v8 = vadd.f32 %v12143_v51, %v1390_v0  ;;  %v12187_v7 = vld [vmem:[#allocation2 + $0xe0] sm:$0xff] }
 0x1fa   : > { %14955 = vst [vmem:[#allocation25_spill] sm:$0xff] %v12187_v7  ;;  %v2209_v19 = vmax.f32 %v1399_v21, 0.0  ;;  %9483 = vmatmul.mubr.msk.bf16.gmra.mrb[176].mxu0 %vm689_vm2, %v628_v12  ;;  %v12190_v23 = vld [vmem:[#allocation2 + $0xd8] sm:$0xff]  ;;  %v12196_v50 = vsel %vm2394_vm3, %v2208_v5, -inf  ;;  %v631_v12 = vpack.c.bf16 %v468_v25, %v467_v45  ;;  %v472_v45 = vld [vmem:[%s11276_s12 + $0x5e8] sm:$0xff] }
 0x1fb   : > { %14956 = vst [vmem:[#allocation26_spill] sm:$0xff] %v12190_v23  ;;  %v2207_v27 = vmax.f32 %v1391_v8, 0.0  ;;  %9486 = vmatprep.mubr.msk.bf16.mxu0 %vm689_vm2, %v629_v6  ;;  %v12206_v26 = vsel %vm2394_vm3, %v2206_v4, -inf  ;;  %v469_v8 = vld [vmem:[%s11276_s12 + $0x5d0] sm:$0xff]  ;;  %v10761_v7 = vld [vmem:[#allocation8 + $0x18] sm:$0xff]  }
 0x1fc   : > { %v12199_v42 = vsel %vm2394_vm3, %v2209_v19, -inf  ;;  %v470_v19 = vld [vmem:[%s11276_s12 + $0x5d8] sm:$0xff]  ;;  %9760 = vmatprep.subr.bf16.mxu1 %v10761_v7 }
 0x1fd   : > { %v2502_v44 = vmax.f32 %v12196_v50, %v12199_v42  ;;  %v12211_v34 = vsel %vm2394_vm3, %v2207_v27, -inf  ;;  %v9380_v35 = vpop.f32.mrb[72].mxu0 }
 0x1fe   : > { %v2499_v37 = vmax.f32 %v12206_v26, %v12211_v34  ;;  %v1412_v14 = vadd.f32 %v12143_v51, %v9380_v35  ;;  %v1403_v11 = vpop.f32.mrb[73].mxu0 }
 0x1ff   : > { %v1404_v47 = vadd.f32 %v12143_v51, %v1403_v11  ;;  %v9381_v60 = vpop.f32.mrb[74].mxu0 }
 0x200   : > { %v2212_v13 = vmax.f32 %v1412_v14, 0.0  ;;  %v1415_v15 = vadd.f32 %v12143_v51, %v9381_v60  ;;  %v1406_v6 = vpop.f32.mrb[75].mxu0 }
 0x201   : > { %v2210_v5 = vmax.f32 %v1404_v47, 0.0  ;;  %v1407_v21 = vadd.f32 %v12143_v51, %v1406_v6  ;;  %v633_v6 = vpack.c.bf16 %v472_v45, %v471_v32  ;;  %v475_v45 = vld [vmem:[%s11276_s12 + $0x600] sm:$0xff] }
 0x202   : > { %v2213_v0 = vmax.f32 %v1415_v15, 0.0  ;;  %9487 = vmatmul.mubr.msk.bf16.gmra.mrb[180].mxu0 %vm689_vm2, %v630_v40  ;;  %v12224_v27 = vsel %vm2394_vm3, %v2212_v13, -inf }
 0x203   : > { %v2211_v4 = vmax.f32 %v1407_v21, 0.0  ;;  %9490 = vmatprep.mubr.msk.bf16.mxu0 %vm689_vm2, %v631_v12  ;;  %v12232_v25 = vsel %vm2394_vm3, %v2210_v5, -inf  ;;  %v632_v12 = vpack.c.bf16 %v470_v19, %v469_v8  ;;  %v473_v8 = vld [vmem:[%s11276_s12 + $0x5f0] sm:$0xff]  ;;  %v474_v19 = vld [vmem:[%s11276_s12 + $0x5f8] sm:$0xff] }
 0x204   : > { %v12227_v28 = vsel %vm2394_vm3, %v2213_v0, -inf }
 0x205   : > { %v2508_v35 = vmax.f32 %v12224_v27, %v12227_v28  ;;  %v12237_v14 = vsel %vm2394_vm3, %v2211_v4, -inf  ;;  %v9384_v11 = vpop.f32.mrb[76].mxu0 }
 0x206   : > { %v2505_v40 = vmax.f32 %v12232_v25, %v12237_v14  ;;  %v1428_v47 = vadd.f32 %v12143_v51, %v9384_v11  ;;  %v1419_v60 = vpop.f32.mrb[77].mxu0 }
 0x207   : > { %v1420_v13 = vadd.f32 %v12143_v51, %v1419_v60  ;;  %v9385_v15 = vpop.f32.mrb[78].mxu0 }
 0x208   : > { %v2216_v5 = vmax.f32 %v1428_v47, 0.0  ;;  %v1431_v21 = vadd.f32 %v12143_v51, %v9385_v15  ;;  %v1422_v0 = vpop.f32.mrb[79].mxu0  ;;  %v476_v47 = vld [vmem:[%s11276_s12 + $0x608] sm:$0xff] }
 0x209   : > { %v2214_v4 = vmax.f32 %v1420_v13, 0.0  ;;  %v1423_v57 = vadd.f32 %v12143_v51, %v1422_v0  ;;  %v635_v16 = vpack.c.bf16 %v476_v47, %v475_v45  ;;  %v10760_v47 = vld [vmem:[#allocation8 + $0x8] sm:$0xff]  }
 0x20a   : > { %v2217_v41 = vmax.f32 %v1431_v21, 0.0  ;;  %9491 = vmatmul.mubr.msk.bf16.gmra.mrb[184].mxu0 %vm689_vm2, %v632_v12  ;;  %v12250_v60 = vsel %vm2394_vm3, %v2216_v5, -inf  ;;  %v634_v21 = vpack.c.bf16 %v474_v19, %v473_v8  ;;  %v478_v8 = vld [vmem:[%s11276_s12 + $0x618] sm:$0xff]  ;;  %v479_v19 = vld [vmem:[%s11276_s12 + $0x620] sm:$0xff]  ;;  %9562 = vmatprep.subr.bf16.mxu0 %v10760_v47 }
 0x20b   : > { %v2215_v11 = vmax.f32 %v1423_v57, 0.0  ;;  %9494 = vmatprep.mubr.msk.bf16.mxu0 %vm689_vm2, %v633_v6  ;;  %v12258_v13 = vsel %vm2394_vm3, %v2214_v4, -inf  ;;  %9563 = vmatpush3.bf16.msra.mxu0 %v10760_v47  ;;  %v482_v47 = vld [vmem:[%s11276_s12 + $0x638] sm:$0xff] }
 0x20c   : > { %v12253_v32 = vsel %vm2394_vm3, %v2217_v41, -inf }
 0x20d   : > { %v2514_v15 = vmax.f32 %v12250_v60, %v12253_v32  ;;  %v12263_v57 = vsel %vm2394_vm3, %v2215_v11, -inf  ;;  %v9388_v12 = vpop.f32.mrb[80].mxu0 }
 0x20e   : > { %v1444_v5 = vadd.f32 %v12143_v51, %v9388_v12  ;;  %v1435_v41 = vpop.f32.mrb[81].mxu0  ;;  %v477_v12 = vld [vmem:[%s11276_s12 + $0x610] sm:$0xff] }
 0x20f   : > { %v1436_v0 = vadd.f32 %v12143_v51, %v1435_v41  ;;  %v9389_v4 = vpop.f32.mrb[82].mxu0  ;;  %v636_v6 = vpack.c.bf16 %v478_v8, %v477_v12 }
 0x210   : > { %v2220_v17 = vmax.f32 %v1444_v5, 0.0  ;;  %v1447_v11 = vadd.f32 %v12143_v51, %v9389_v4  ;;  %v1438_v1 = vpop.f32.mrb[83].mxu0 }
 0x211   : > { %v2218_v59 = vmax.f32 %v1436_v0, 0.0  ;;  %v1439_v9 = vadd.f32 %v12143_v51, %v1438_v1 }
 0x212   : > { %v2221_v2 = vmax.f32 %v1447_v11, 0.0  ;;  %9495 = vmatmul.mubr.msk.bf16.gmra.mrb[188].mxu0 %vm689_vm2, %v634_v21  ;;  %v2518_v41 = vsel %vm2394_vm3, %v2220_v17, -inf  ;;  %v2830_v17 = vsel %vm2394_vm3, %v2496_v30, -inf }
 0x213   : > { %v2219_v43 = vmax.f32 %v1439_v9, 0.0  ;;  %9498 = vmatprep.mubr.msk.bf16.mxu0 %vm689_vm2, %v635_v16  ;;  %v2515_v5 = vsel %vm2394_vm3, %v2218_v59, -inf  ;;  %v637_v16 = vpack.c.bf16 %v480_v10, %v479_v19  ;;  %v481_v19 = vld [vmem:[%s11276_s12 + $0x630] sm:$0xff] }
 0x214   : > { %v2519_v45 = vsel %vm2394_vm3, %v2221_v2, -inf  ;;  %v2827_v2 = vsel %vm2394_vm3, %v2493_v46, -inf }
 0x215   : > { %v2520_v0 = vmax.f32 %v2518_v41, %v2519_v45  ;;  %v2516_v1 = vsel %vm2394_vm3, %v2219_v43, -inf  ;;  %v9392_v4 = vpop.f32.mrb[84].mxu0 }
 0x216   : > { %v2517_v11 = vmax.f32 %v2515_v5, %v2516_v1  ;;  %v1460_v21 = vadd.f32 %v12143_v51, %v9392_v4  ;;  %v1451_v9 = vpop.f32.mrb[85].mxu0  ;;  %v483_v5 = vld [vmem:[%s11276_s12 + $0x640] sm:$0xff] }
 0x217   : > { %v2831_v43 = vsel %vm2394_vm3, %v2520_v0, -inf  ;;  %v1452_v59 = vadd.f32 %v12143_v51, %v1451_v9  ;;  %v9393_v41 = vpop.f32.mrb[86].mxu0  ;;  %v484_v0 = vld [vmem:[%s11276_s12 + $0x648] sm:$0xff] }
 0x218   : > { %v2832_v10 = vmax.f32 %v2830_v17, %v2831_v43  ;;  %v2828_v12 = vsel %vm2394_vm3, %v2517_v11, -inf  ;;  %v2224_v20 = vmax.f32 %v1460_v21, 0.0  ;;  %v1463_v24 = vadd.f32 %v12143_v51, %v9393_v41  ;;  %v1454_v30 = vpop.f32.mrb[87].mxu0 }
 0x219   : > { %v2829_v38 = vmax.f32 %v2827_v2, %v2828_v12  ;;  %v2222_v31 = vmax.f32 %v1452_v59, 0.0  ;;  %v1455_v46 = vadd.f32 %v12143_v51, %v1454_v30  ;;  %v638_v59 = vpack.c.bf16 %v482_v47, %v481_v19  ;;  %v485_v19 = vld [vmem:[%s11276_s12 + $0x650] sm:$0xff] }
 0x21a   : > { %3089 = vst.msk [vmem:[#allocation2 + $0x100] sm:$0xff] %vm2394_vm3, %v2832_v10  ;;  %v2225_v8 = vmax.f32 %v1463_v24, 0.0  ;;  %9499 = vmatmul.mubr.msk.bf16.gmra.mrb[192].mxu0 %vm689_vm2, %v636_v6  ;;  %v2524_v1 = vsel %vm2394_vm3, %v2224_v20, -inf  ;;  %v639_v41 = vpack.c.bf16 %v484_v0, %v483_v5  ;;  %v2833_v10 = vsel %vm2394_vm3, %v2499_v37, -inf  ;;  %v486_v0 = vld [vmem:[%s11276_s12 + $0x658] sm:$0xff] }
 0x21b   : > { %3088 = vst.msk [vmem:[#allocation2 + $0xf8] sm:$0xff] %vm2394_vm3, %v2829_v38  ;;  %v2223_v45 = vmax.f32 %v1455_v46, 0.0  ;;  %9502 = vmatprep.mubr.msk.bf16.mxu0 %vm689_vm2, %v637_v16  ;;  %v2521_v11 = vsel %vm2394_vm3, %v2222_v31, -inf  ;;  %v2836_v16 = vsel %vm2394_vm3, %v2502_v44, -inf }
 0x21c   : > { %v2525_v4 = vsel %vm2394_vm3, %v2225_v8, -inf }
 0x21d   : > { %v2526_v21 = vmax.f32 %v2524_v1, %v2525_v4  ;;  %v2522_v9 = vsel %vm2394_vm3, %v2223_v45, -inf  ;;  %v9396_v17 = vpop.f32.mrb[88].mxu0  ;;  %v487_v1 = vld [vmem:[%s11276_s12 + $0x660] sm:$0xff]  ;;  %v488_v4 = vld [vmem:[%s11276_s12 + $0x668] sm:$0xff] }
 0x21e   : > { %v2523_v6 = vmax.f32 %v2521_v11, %v2522_v9  ;;  %v1476_v2 = vadd.f32 %v12143_v51, %v9396_v17  ;;  %v1467_v43 = vpop.f32.mrb[89].mxu0 }
 0x21f   : > { %v2837_v12 = vsel %vm2394_vm3, %v2526_v21, -inf  ;;  %v1468_v20 = vadd.f32 %v12143_v51, %v1467_v43  ;;  %v9397_v24 = vpop.f32.mrb[90].mxu0 }
 0x220   : > { %v2838_v30 = vmax.f32 %v2836_v16, %v2837_v12  ;;  %v2834_v38 = vsel %vm2394_vm3, %v2523_v6, -inf  ;;  %v2228_v31 = vmax.f32 %v1476_v2, 0.0  ;;  %v1479_v46 = vadd.f32 %v12143_v51, %v9397_v24  ;;  %v1470_v50 = vpop.f32.mrb[91].mxu0 }
 0x221   : > { %v2835_v42 = vmax.f32 %v2833_v10, %v2834_v38  ;;  %v2226_v26 = vmax.f32 %v1468_v20, 0.0  ;;  %v1471_v44 = vadd.f32 %v12143_v51, %v1470_v50  ;;  %v12321_v34 = vld [vmem:[#allocation2 + $0x100] sm:$0xff]  ;;  %v640_v12 = vpack.c.bf16 %v486_v0, %v485_v19  ;;  %v489_v19 = vld [vmem:[%s11276_s12 + $0x670] sm:$0xff] }
 0x222   : > { %v12323_v37 = vld [vmem:[#allocation2 + $0x100] sm:$0xff]  ;;  %3091 = vst.msk [vmem:[#allocation2 + $0x110] sm:$0xff] %vm2394_vm3, %v2838_v30  ;;  %v2229_v8 = vmax.f32 %v1479_v46, 0.0  ;;  %9503 = vmatmul.mubr.msk.bf16.gmra.mrb[196].mxu0 %vm689_vm2, %v638_v59  ;;  %v12328_v45 = vld [vmem:[#allocation2 + $0xf8] sm:$0xff]  ;;  %v2530_v11 = vsel %vm2394_vm3, %v2228_v31, -inf  ;;  %v641_v20 = vpack.c.bf16 %v488_v4, %v487_v1  ;;  %v2842_v24 = vsel %vm2394_vm3, %v2508_v35, -inf }
 0x223   : > { %14957 = vst [vmem:[#allocation27_spill] sm:$0xff] %v12323_v37  ;;  %v12330_v47 = vld [vmem:[#allocation2 + $0xf8] sm:$0xff]  ;;  %3090 = vst.msk [vmem:[#allocation2 + $0x108] sm:$0xff] %vm2394_vm3, %v2835_v42  ;;  %v2227_v5 = vmax.f32 %v1471_v44, 0.0  ;;  %9506 = vmatprep.mubr.msk.bf16.mxu0 %vm689_vm2, %v639_v41  ;;  %v2527_v6 = vsel %vm2394_vm3, %v2226_v26, -inf  ;;  %v2839_v30 = vsel %vm2394_vm3, %v2505_v40, -inf }
 0x224   : > { %14958 = vst [vmem:[#allocation28_spill] sm:$0xff] %v12330_v47  ;;  %v2531_v21 = vsel %vm2394_vm3, %v2229_v8, -inf  ;;  %v490_v4 = vld [vmem:[%s11276_s12 + $0x678] sm:$0xff] }
 0x225   : > { %v2532_v2 = vmax.f32 %v2530_v11, %v2531_v21  ;;  %v2528_v43 = vsel %vm2394_vm3, %v2227_v5, -inf  ;;  %v9400_v59 = vpop.f32.mrb[92].mxu0  ;;  %v491_v11 = vld [vmem:[%s11276_s12 + $0x680] sm:$0xff]  ;;  %v492_v21 = vld [vmem:[%s11276_s12 + $0x688] sm:$0xff] }
 0x226   : > { %v2529_v41 = vmax.f32 %v2527_v6, %v2528_v43  ;;  %v1492_v16 = vadd.f32 %v12143_v51, %v9400_v59  ;;  %v1483_v10 = vpop.f32.mrb[93].mxu0 }
 0x227   : > { %v2843_v38 = vsel %vm2394_vm3, %v2532_v2, -inf  ;;  %v1484_v31 = vadd.f32 %v12143_v51, %v1483_v10  ;;  %v9401_v46 = vpop.f32.mrb[94].mxu0 }
 0x228   : > { %v2844_v50 = vmax.f32 %v2842_v24, %v2843_v38  ;;  %v2840_v42 = vsel %vm2394_vm3, %v2529_v41, -inf  ;;  %v2232_v26 = vmax.f32 %v1492_v16, 0.0  ;;  %v1495_v44 = vadd.f32 %v12143_v51, %v9401_v46  ;;  %v1486_v27 = vpop.f32.mrb[95].mxu0 }
 0x229   : > { %v2841_v28 = vmax.f32 %v2839_v30, %v2840_v42  ;;  %v2230_v25 = vmax.f32 %v1484_v31, 0.0  ;;  %v1487_v35 = vadd.f32 %v12143_v51, %v1486_v27  ;;  %v12359_v14 = vld [vmem:[#allocation2 + $0x110] sm:$0xff]  ;;  %v642_v38 = vpack.c.bf16 %v490_v4, %v489_v19 }
 0x22a   : > { %14959 = vst [vmem:[#allocation29_spill] sm:$0xff] %v12359_v14  ;;  %v12361_v40 = vld [vmem:[#allocation2 + $0x110] sm:$0xff]  ;;  %3093 = vst.msk [vmem:[#allocation2 + $0x120] sm:$0xff] %vm2394_vm3, %v2844_v50  ;;  %v2233_v8 = vmax.f32 %v1495_v44, 0.0  ;;  %9507 = vmatmul.mubr.msk.bf16.gmra.mrb[200].mxu0 %vm689_vm2, %v640_v12  ;;  %v12366_v5 = vld [vmem:[#allocation2 + $0x108] sm:$0xff]  ;;  %v2536_v6 = vsel %vm2394_vm3, %v2232_v26, -inf  ;;  %v643_v31 = vpack.c.bf16 %v492_v21, %v491_v11  ;;  %v14963_v50 = vmax.f32 %v12258_v13, %v12263_v57 }
 0x22b   : > { %14960 = vst [vmem:[#allocation30_spill] sm:$0xff] %v12361_v40  ;;  %14961 = vst [vmem:[#allocation31_spill] sm:$0xff] %v12366_v5  ;;  %v12368_v0 = vld [vmem:[#allocation2 + $0x108] sm:$0xff]  ;;  %v2231_v1 = vmax.f32 %v1487_v35, 0.0  ;;  %9510 = vmatprep.mubr.msk.bf16.mxu0 %vm689_vm2, %v641_v20  ;;  %v2533_v41 = vsel %vm2394_vm3, %v2230_v25, -inf  ;;  %v2848_v46 = vsel %vm2394_vm3, %v2514_v15, -inf }
 0x22c   : > { %14962 = vst [vmem:[#allocation32_spill] sm:$0xff] %v12368_v0  ;;  %3092 = vst.msk [vmem:[#allocation2 + $0x118] sm:$0xff] %vm2394_vm3, %v2841_v28  ;;  %v2537_v2 = vsel %vm2394_vm3, %v2233_v8, -inf  ;;  %v2845_v42 = vsel %vm2394_vm3, %v14963_v50, -inf  ;;  %v493_v21 = vld [vmem:[%s11276_s12 + $0x690] sm:$0xff]  ;;  %v512_v40 = vld [vmem:[%s11276_s12 + $0x728] sm:$0xff] }
 0x22d   : > { %v2538_v16 = vmax.f32 %v2536_v6, %v2537_v2  ;;  %v2534_v10 = vsel %vm2394_vm3, %v2231_v1, -inf  ;;  %v9404_v12 = vpop.f32.mrb[96].mxu0  ;;  %v494_v6 = vld [vmem:[%s11276_s12 + $0x698] sm:$0xff] }
 0x22e   : > { %v2535_v20 = vmax.f32 %v2533_v41, %v2534_v10  ;;  %v1508_v24 = vadd.f32 %v12143_v51, %v9404_v12  ;;  %v1499_v30 = vpop.f32.mrb[97].mxu0  ;;  %v495_v10 = vld [vmem:[%s11276_s12 + $0x6a0] sm:$0xff]  ;;  %v496_v12 = vld [vmem:[%s11276_s12 + $0x6a8] sm:$0xff] }
 0x22f   : > { %v2849_v26 = vsel %vm2394_vm3, %v2538_v16, -inf  ;;  %v1500_v44 = vadd.f32 %v12143_v51, %v1499_v30  ;;  %v9405_v27 = vpop.f32.mrb[98].mxu0 }
 0x230   : > { %v2850_v28 = vmax.f32 %v2848_v46, %v2849_v26  ;;  %v2846_v25 = vsel %vm2394_vm3, %v2535_v20, -inf  ;;  %v2236_v35 = vmax.f32 %v1508_v24, 0.0  ;;  %v1511_v60 = vadd.f32 %v12143_v51, %v9405_v27  ;;  %v1502_v32 = vpop.f32.mrb[99].mxu0  ;;  %v500_v24 = vld [vmem:[%s11276_s12 + $0x6c8] sm:$0xff] }
 0x231   : > { %v2847_v15 = vmax.f32 %v2845_v42, %v2846_v25  ;;  %v2234_v8 = vmax.f32 %v1500_v44, 0.0  ;;  %v1503_v13 = vadd.f32 %v12143_v51, %v1502_v32  ;;  %v12397_v57 = vld [vmem:[#allocation2 + $0x120] sm:$0xff]  ;;  %v644_v44 = vpack.c.bf16 %v494_v6, %v493_v21 }
 0x232   : > { %14964 = vst [vmem:[#allocation33_spill] sm:$0xff] %v12397_v57  ;;  %3095 = vst.msk [vmem:[#allocation2 + $0x130] sm:$0xff] %vm2394_vm3, %v2850_v28  ;;  %v2237_v19 = vmax.f32 %v1511_v60, 0.0  ;;  %9511 = vmatmul.mubr.msk.bf16.gmra.mrb[204].mxu0 %vm689_vm2, %v642_v38  ;;  %v12409_v2 = vld [vmem:[#allocation2 + $0x120] sm:$0xff]  ;;  %v12412_v41 = vsel %vm2394_vm3, %v2236_v35, -inf  ;;  %v645_v25 = vpack.c.bf16 %v496_v12, %v495_v10  ;;  %v498_v12 = vld [vmem:[%s11276_s12 + $0x6b8] sm:$0xff] }
 0x233   : > { %v12401_v1 = vld [vmem:[#allocation2 + $0x118] sm:$0xff]  ;;  %3094 = vst.msk [vmem:[#allocation2 + $0x128] sm:$0xff] %vm2394_vm3, %v2847_v15  ;;  %v2235_v11 = vmax.f32 %v1503_v13, 0.0  ;;  %9514 = vmatprep.mubr.msk.bf16.mxu0 %vm689_vm2, %v643_v31  ;;  %14967 = vst [vmem:[#allocation36_spill] sm:$0xff] %v12409_v2  ;;  %v12424_v30 = vsel %vm2394_vm3, %v2234_v8, -inf  ;;  %v4145_v21 = vld [vmem:[#allocation2 + $0x120] sm:$0xff] }
 0x234   : > { %14965 = vst [vmem:[#allocation34_spill] sm:$0xff] %v12401_v1  ;;  %v12403_v4 = vld [vmem:[#allocation2 + $0x118] sm:$0xff]  ;;  %v12415_v16 = vsel %vm2394_vm3, %v2237_v19, -inf }
 0x235   : > { %14966 = vst [vmem:[#allocation35_spill] sm:$0xff] %v12403_v4  ;;  %v12429_v31 = vsel %vm2394_vm3, %v2235_v11, -inf  ;;  %v9408_v46 = vpop.f32.mrb[100].mxu0  ;;  %v4148_v19 = vld [vmem:[#allocation2 + $0x138] sm:$0xff] }
 0x236   : > { %v1524_v42 = vadd.f32 %v12143_v51, %v9408_v46  ;;  %v1515_v26 = vpop.f32.mrb[101].mxu0  ;;  %v497_v46 = vld [vmem:[%s11276_s12 + $0x6b0] sm:$0xff] }
 0x237   : > { %v1516_v27 = vadd.f32 %v12143_v51, %v1515_v26  ;;  %v9409_v28 = vpop.f32.mrb[102].mxu0 }
 0x238   : > { %v2240_v35 = vmax.f32 %v1524_v42, 0.0  ;;  %v1527_v60 = vadd.f32 %v12143_v51, %v9409_v28  ;;  %v1518_v32 = vpop.f32.mrb[103].mxu0 }
 0x239   : > { %v2238_v15 = vmax.f32 %v1516_v27, 0.0  ;;  %v1519_v8 = vadd.f32 %v12143_v51, %v1518_v32  ;;  %v4147_v13 = vld [vmem:[#allocation2 + $0x130] sm:$0xff] }
 0x23a   : > { %v2241_v11 = vmax.f32 %v1527_v60, 0.0  ;;  %9515 = vmatmul.mubr.msk.bf16.gmra.mrb[208].mxu0 %vm689_vm2, %v644_v44  ;;  %v4146_v6 = vld [vmem:[#allocation2 + $0x128] sm:$0xff]  ;;  %v12441_v42 = vld [vmem:[#allocation2 + $0x130] sm:$0xff]  ;;  %v12446_v28 = vsel %vm2394_vm3, %v2240_v35, -inf  ;;  %v4196_v60 = vpack.c.bf16 %v4148_v19, %v4147_v13  ;;  %v499_v44 = vld [vmem:[%s11276_s12 + $0x6c0] sm:$0xff] }
 0x23b   : > { %v2239_v26 = vmax.f32 %v1519_v8, 0.0  ;;  %v4195_v10 = vpack.c.bf16 %v4146_v6, %v4145_v21  ;;  %9518 = vmatprep.mubr.msk.bf16.mxu0 %vm689_vm2, %v645_v25  ;;  %14968 = vst [vmem:[#allocation37_spill] sm:$0xff] %v12441_v42  ;;  %v12443_v27 = vld [vmem:[#allocation2 + $0x128] sm:$0xff]  ;;  %v12454_v59 = vsel %vm2394_vm3, %v2238_v15, -inf }
 0x23c   : > { %14969 = vst [vmem:[#allocation38_spill] sm:$0xff] %v12443_v27  ;;  %v12449_v32 = vsel %vm2394_vm3, %v2241_v11, -inf  ;;  %v646_v11 = vpack.c.bf16 %v498_v12, %v497_v46  ;;  %v501_v46 = vld [vmem:[%s11276_s12 + $0x6d0] sm:$0xff]  ;;  %v502_v12 = vld [vmem:[%s11276_s12 + $0x6d8] sm:$0xff] }
 0x23d   : > { %v12459_v8 = vsel %vm2394_vm3, %v2239_v26, -inf  ;;  %v9412_v21 = vpop.f32.mrb[104].mxu0  ;;  %9724 = vmatprep.mubr.msk.bf16.mxu1 %vm2394_vm3, %v4195_v10  ;;  %v647_v10 = vpack.c.bf16 %v500_v24, %v499_v44  ;;  %v503_v44 = vld [vmem:[%s11276_s12 + $0x6e0] sm:$0xff] }
 0x23e   : > { %v1540_v19 = vadd.f32 %v12143_v51, %v9412_v21  ;;  %v1531_v15 = vpop.f32.mrb[105].mxu0  ;;  %9725 = vmatmul.mubr.msk.bf16.vlgmr.msra.gmra.mrb[0].mxu1 %vm2394_vm3, %v4196_v60 }
 0x23f   : > { %v1532_v6 = vadd.f32 %v12143_v51, %v1531_v15  ;;  %v9413_v26 = vpop.f32.mrb[106].mxu0  ;;  %9761 = vmatpush3.bf16.msra.mxu1 %v10761_v7 }
 0x240   : > { %v2244_v17 = vmax.f32 %v1540_v19, 0.0  ;;  %v1543_v35 = vadd.f32 %v12143_v51, %v9413_v26  ;;  %v1534_v20 = vpop.f32.mrb[107].mxu0  ;;  %v504_v19 = vld [vmem:[%s11276_s12 + $0x6e8] sm:$0xff]  ;;  %v648_v26 = vpack.c.bf16 %v502_v12, %v501_v46  ;;  %v505_v46 = vld [vmem:[%s11276_s12 + $0x6f0] sm:$0xff]  ;;  %v506_v12 = vld [vmem:[%s11276_s12 + $0x6f8] sm:$0xff] }
 0x241   : > { %v2242_v43 = vmax.f32 %v1532_v6, 0.0  ;;  %v1535_v9 = vadd.f32 %v12143_v51, %v1534_v20 }
 0x242   : > { %v2245_v21 = vmax.f32 %v1543_v35, 0.0  ;;  %9519 = vmatmul.mubr.msk.bf16.gmra.mrb[212].mxu0 %vm689_vm2, %v646_v11  ;;  %v12476_v60 = vsel %vm2394_vm3, %v2244_v17, -inf }
 0x243   : > { %v2243_v13 = vmax.f32 %v1535_v9, 0.0  ;;  %9522 = vmatprep.mubr.msk.bf16.mxu0 %vm689_vm2, %v647_v10  ;;  %v12484_v15 = vsel %vm2394_vm3, %v2242_v43, -inf }
 0x244   : > { %v12479_v24 = vsel %vm2394_vm3, %v2245_v21, -inf  ;;  %v649_v21 = vpack.c.bf16 %v504_v19, %v503_v44  ;;  %v507_v19 = vld [vmem:[%s11276_s12 + $0x700] sm:$0xff] }
 0x245   : > { %v12489_v9 = vsel %vm2394_vm3, %v2243_v13, -inf  ;;  %v9416_v35 = vpop.f32.mrb[108].mxu0 }
 0x246   : > { %v1556_v17 = vadd.f32 %v12143_v51, %v9416_v35  ;;  %v1547_v6 = vpop.f32.mrb[109].mxu0 }
 0x247   : > { %v1548_v10 = vadd.f32 %v12143_v51, %v1547_v6  ;;  %v9417_v43 = vpop.f32.mrb[110].mxu0 }
 0x248   : > { %v2248_v20 = vmax.f32 %v1556_v17, 0.0  ;;  %v1559_v13 = vadd.f32 %v12143_v51, %v9417_v43  ;;  %v1550_v25 = vpop.f32.mrb[111].mxu0  ;;  %v508_v17 = vld [vmem:[%s11276_s12 + $0x708] sm:$0xff] }
 0x249   : > { %v2246_v50 = vmax.f32 %v1548_v10, 0.0  ;;  %v1551_v38 = vadd.f32 %v12143_v51, %v1550_v25  ;;  %v651_v27 = vpack.c.bf16 %v508_v17, %v507_v19 }
 0x24a   : > { %v2249_v11 = vmax.f32 %v1559_v13, 0.0  ;;  %9523 = vmatmul.mubr.msk.bf16.gmra.mrb[216].mxu0 %vm689_vm2, %v648_v26  ;;  %v12502_v6 = vsel %vm2394_vm3, %v2248_v20, -inf }
 0x24b   : > { %v2247_v35 = vmax.f32 %v1551_v38, 0.0  ;;  %9526 = vmatprep.mubr.msk.bf16.mxu0 %vm689_vm2, %v649_v21  ;;  %v12510_v10 = vsel %vm2394_vm3, %v2246_v50, -inf  ;;  %v650_v21 = vpack.c.bf16 %v506_v12, %v505_v46  ;;  %v510_v46 = vld [vmem:[%s11276_s12 + $0x718] sm:$0xff]  ;;  %v511_v12 = vld [vmem:[%s11276_s12 + $0x720] sm:$0xff] }
 0x24c   : > { %v12505_v44 = vsel %vm2394_vm3, %v2249_v11, -inf  ;;  %v653_v47 = vpack.c.bf16 %v512_v40, %v511_v12 }
 0x24d   : > { %v12515_v38 = vsel %vm2394_vm3, %v2247_v35, -inf  ;;  %v9420_v26 = vpop.f32.mrb[112].mxu0 }
 0x24e   : > { %v1572_v43 = vadd.f32 %v12143_v51, %v9420_v26  ;;  %v1563_v11 = vpop.f32.mrb[113].mxu0  ;;  %v509_v26 = vld [vmem:[%s11276_s12 + $0x710] sm:$0xff] }
 0x24f   : > { %v1564_v50 = vadd.f32 %v12143_v51, %v1563_v11  ;;  %v9421_v13 = vpop.f32.mrb[114].mxu0 }
 0x250   : > { %v2252_v25 = vmax.f32 %v1572_v43, 0.0  ;;  %v1575_v35 = vadd.f32 %v12143_v51, %v9421_v13  ;;  %v1566_v42 = vpop.f32.mrb[115].mxu0 }
 0x251   : > { %v2250_v4 = vmax.f32 %v1564_v50, 0.0  ;;  %v1567_v2 = vadd.f32 %v12143_v51, %v1566_v42 }
 0x252   : > { %v2253_v0 = vmax.f32 %v1575_v35, 0.0  ;;  %9527 = vmatmul.mubr.msk.bf16.gmra.mrb[220].mxu0 %vm689_vm2, %v650_v21  ;;  %v2566_v11 = vsel %vm2394_vm3, %v2252_v25, -inf }
 0x253   : > { %v2251_v20 = vmax.f32 %v1567_v2, 0.0  ;;  %9530 = vmatprep.mubr.msk.bf16.mxu0 %vm689_vm2, %v651_v27  ;;  %v2563_v17 = vsel %vm2394_vm3, %v2250_v4, -inf  ;;  %v652_v2 = vpack.c.bf16 %v510_v46, %v509_v26  ;;  %v14970_v27 = vmax.f32 %v12412_v41, %v12415_v16 }
 0x254   : > { %v2567_v19 = vsel %vm2394_vm3, %v2253_v0, -inf  ;;  %v14971_v0 = vmax.f32 %v12424_v30, %v12429_v31 }
 0x255   : > { %v2568_v43 = vmax.f32 %v2566_v11, %v2567_v19  ;;  %v2564_v50 = vsel %vm2394_vm3, %v2251_v20, -inf  ;;  %v9424_v42 = vpop.f32.mrb[116].mxu0  ;;  %v2854_v37 = vsel %vm2394_vm3, %v14970_v27, -inf }
 0x256   : > { %v2565_v13 = vmax.f32 %v2563_v17, %v2564_v50  ;;  %v1588_v21 = vadd.f32 %v12143_v51, %v9424_v42  ;;  %v1579_v35 = vpop.f32.mrb[117].mxu0  ;;  %v2851_v4 = vsel %vm2394_vm3, %v14971_v0, -inf  ;;  %v513_v17 = vld [vmem:[%s11276_s12 + $0x730] sm:$0xff]  ;;  %v515_v50 = vld [vmem:[%s11276_s12 + $0x740] sm:$0xff]  ;;  %v516_v42 = vld [vmem:[%s11276_s12 + $0x748] sm:$0xff] }
 0x257   : > { %v2855_v25 = vsel %vm2394_vm3, %v2568_v43, -inf  ;;  %v1580_v20 = vadd.f32 %v12143_v51, %v1579_v35  ;;  %v9425_v11 = vpop.f32.mrb[118].mxu0  ;;  %v514_v43 = vld [vmem:[%s11276_s12 + $0x738] sm:$0xff] }
 0x258   : > { %v2856_v19 = vmax.f32 %v2854_v37, %v2855_v25  ;;  %v2852_v40 = vsel %vm2394_vm3, %v2565_v13, -inf  ;;  %v2256_v41 = vmax.f32 %v1588_v21, 0.0  ;;  %v1591_v16 = vadd.f32 %v12143_v51, %v9425_v11  ;;  %v1582_v26 = vpop.f32.mrb[119].mxu0 }
 0x259   : > { %v2853_v46 = vmax.f32 %v2851_v4, %v2852_v40  ;;  %v2254_v30 = vmax.f32 %v1580_v20, 0.0  ;;  %v1583_v31 = vadd.f32 %v12143_v51, %v1582_v26  ;;  %v654_v11 = vpack.c.bf16 %v514_v43, %v513_v17 }
 0x25a   : > { %3097 = vst.msk [vmem:[#allocation2 + $0x150] sm:$0xff] %vm2394_vm3, %v2856_v19  ;;  %v2257_v12 = vmax.f32 %v1591_v16, 0.0  ;;  %9531 = vmatmul.mubr.msk.bf16.gmra.mrb[224].mxu0 %vm689_vm2, %v652_v2  ;;  %v2572_v13 = vsel %vm2394_vm3, %v2256_v41, -inf  ;;  %v655_v19 = vpack.c.bf16 %v516_v42, %v515_v50  ;;  %v14973_v41 = vmax.f32 %v12454_v59, %v12459_v8 }
 0x25b   : > { %3096 = vst.msk [vmem:[#allocation2 + $0x148] sm:$0xff] %vm2394_vm3, %v2853_v46  ;;  %v2255_v37 = vmax.f32 %v1583_v31, 0.0  ;;  %9534 = vmatprep.mubr.msk.bf16.mxu0 %vm689_vm2, %v653_v47  ;;  %v2569_v35 = vsel %vm2394_vm3, %v2254_v30, -inf  ;;  %v14972_v47 = vmax.f32 %v12446_v28, %v12449_v32 }
 0x25c   : > { %v2573_v21 = vsel %vm2394_vm3, %v2257_v12, -inf  ;;  %v2857_v16 = vsel %vm2394_vm3, %v14973_v41, -inf }
 0x25d   : > { %v2574_v27 = vmax.f32 %v2572_v13, %v2573_v21  ;;  %v2570_v0 = vsel %vm2394_vm3, %v2255_v37, -inf  ;;  %v9428_v4 = vpop.f32.mrb[120].mxu0  ;;  %v2860_v40 = vsel %vm2394_vm3, %v14972_v47, -inf  ;;  %v517_v13 = vld [vmem:[%s11276_s12 + $0x750] sm:$0xff] }
 0x25e   : > { %v2571_v2 = vmax.f32 %v2569_v35, %v2570_v0  ;;  %v1604_v25 = vadd.f32 %v12143_v51, %v9428_v4  ;;  %v1595_v20 = vpop.f32.mrb[121].mxu0  ;;  %v518_v0 = vld [vmem:[%s11276_s12 + $0x758] sm:$0xff]  ;;  %v519_v4 = vld [vmem:[%s11276_s12 + $0x760] sm:$0xff] }
 0x25f   : > { %v2861_v26 = vsel %vm2394_vm3, %v2574_v27, -inf  ;;  %v1596_v46 = vadd.f32 %v12143_v51, %v1595_v20  ;;  %v9429_v30 = vpop.f32.mrb[122].mxu0 }
 0x260   : > { %v2862_v31 = vmax.f32 %v2860_v40, %v2861_v26  ;;  %v2858_v12 = vsel %vm2394_vm3, %v2571_v2, -inf  ;;  %v2260_v17 = vmax.f32 %v1604_v25, 0.0  ;;  %v1607_v37 = vadd.f32 %v12143_v51, %v9429_v30  ;;  %v1598_v28 = vpop.f32.mrb[123].mxu0  ;;  %v520_v2 = vld [vmem:[%s11276_s12 + $0x768] sm:$0xff] }
 0x261   : > { %v2859_v32 = vmax.f32 %v2857_v16, %v2858_v12  ;;  %v2258_v59 = vmax.f32 %v1596_v46, 0.0  ;;  %v1599_v8 = vadd.f32 %v12143_v51, %v1598_v28  ;;  %v12573_v43 = vld [vmem:[#allocation2 + $0x150] sm:$0xff]  ;;  %v657_v12 = vpack.c.bf16 %v520_v2, %v519_v4 }
 0x262   : > { %14974 = vst [vmem:[#allocation39_spill] sm:$0xff] %v12573_v43  ;;  %v12575_v50 = vld [vmem:[#allocation2 + $0x150] sm:$0xff]  ;;  %3099 = vst.msk [vmem:[#allocation2 + $0x160] sm:$0xff] %vm2394_vm3, %v2862_v31  ;;  %v2261_v42 = vmax.f32 %v1607_v37, 0.0  ;;  %9535 = vmatmul.mubr.msk.bf16.gmra.mrb[228].mxu0 %vm689_vm2, %v654_v11  ;;  %v12580_v21 = vld [vmem:[#allocation2 + $0x148] sm:$0xff]  ;;  %v2578_v25 = vsel %vm2394_vm3, %v2260_v17, -inf  ;;  %v656_v31 = vpack.c.bf16 %v518_v0, %v517_v13  ;;  %v14978_v17 = vmax.f32 %v12476_v60, %v12479_v24 }
 0x263   : > { %14975 = vst [vmem:[#allocation40_spill] sm:$0xff] %v12575_v50  ;;  %14976 = vst [vmem:[#allocation41_spill] sm:$0xff] %v12580_v21  ;;  %v12582_v35 = vld [vmem:[#allocation2 + $0x148] sm:$0xff]  ;;  %v2259_v27 = vmax.f32 %v1599_v8, 0.0  ;;  %9538 = vmatprep.mubr.msk.bf16.mxu0 %vm689_vm2, %v655_v19  ;;  %v2575_v40 = vsel %vm2394_vm3, %v2258_v59, -inf  ;;  %v14979_v28 = vmax.f32 %v12484_v15, %v12489_v9  ;;  %v12610_v60 = vld [vmem:[#allocation2 + $0x150] sm:$0xff] }
 0x264   : > { %14977 = vst [vmem:[#allocation42_spill] sm:$0xff] %v12582_v35  ;;  %3098 = vst.msk [vmem:[#allocation2 + $0x158] sm:$0xff] %vm2394_vm3, %v2859_v32  ;;  %v2579_v20 = vsel %vm2394_vm3, %v2261_v42, -inf  ;;  %v2866_v37 = vsel %vm2394_vm3, %v14978_v17, -inf  ;;  %v521_v9 = vld [vmem:[%s11276_s12 + $0x770] sm:$0xff]  ;;  %v522_v17 = vld [vmem:[%s11276_s12 + $0x778] sm:$0xff] }
 0x265   : > { %v2580_v41 = vmax.f32 %v2578_v25, %v2579_v20  ;;  %v2576_v16 = vsel %vm2394_vm3, %v2259_v27, -inf  ;;  %v9432_v26 = vpop.f32.mrb[124].mxu0  ;;  %v2863_v32 = vsel %vm2394_vm3, %v14979_v28, -inf  ;;  %v524_v28 = vld [vmem:[%s11276_s12 + $0x788] sm:$0xff] }
 0x266   : > { %v2577_v19 = vmax.f32 %v2575_v40, %v2576_v16  ;;  %v1620_v46 = vadd.f32 %v12143_v51, %v9432_v26  ;;  %v1611_v30 = vpop.f32.mrb[125].mxu0 }
 0x267   : > { %v2867_v59 = vsel %vm2394_vm3, %v2580_v41, -inf  ;;  %v1612_v8 = vadd.f32 %v12143_v51, %v1611_v30  ;;  %v9433_v42 = vpop.f32.mrb[126].mxu0 }
 0x268   : > { %v2868_v27 = vmax.f32 %v2866_v37, %v2867_v59  ;;  %v2864_v13 = vsel %vm2394_vm3, %v2577_v19, -inf  ;;  %v2264_v0 = vmax.f32 %v1620_v46, 0.0  ;;  %v1623_v4 = vadd.f32 %v12143_v51, %v9433_v42  ;;  %v1614_v2 = vpop.f32.mrb[127].mxu0  ;;  %v523_v37 = vld [vmem:[%s11276_s12 + $0x780] sm:$0xff] }
 0x269   : > { %v2865_v24 = vmax.f32 %v2863_v32, %v2864_v13  ;;  %v2262_v25 = vmax.f32 %v1612_v8, 0.0  ;;  %v1615_v15 = vadd.f32 %v12143_v51, %v1614_v2  ;;  %v12614_v20 = vld [vmem:[#allocation2 + $0x160] sm:$0xff]  ;;  %v659_v47 = vpack.c.bf16 %v524_v28, %v523_v37 }
 0x26a   : > { %v12616_v40 = vld [vmem:[#allocation2 + $0x160] sm:$0xff]  ;;  %3101 = vst.msk [vmem:[#allocation2 + $0x170] sm:$0xff] %vm2394_vm3, %v2868_v27  ;;  %v2265_v16 = vmax.f32 %v1623_v4, 0.0  ;;  %9539 = vmatmul.mubr.msk.bf16.gmra.mrb[232].mxu0 %vm689_vm2, %v656_v31  ;;  %v2584_v32 = vsel %vm2394_vm3, %v2264_v0, -inf }
 0x26b   : > { %14980 = vst [vmem:[#allocation43_spill] sm:$0xff] %v12616_v40  ;;  %v12618_v41 = vld [vmem:[#allocation2 + $0x160] sm:$0xff]  ;;  %v12622_v26 = vld [vmem:[#allocation2 + $0x158] sm:$0xff]  ;;  %3100 = vst.msk [vmem:[#allocation2 + $0x168] sm:$0xff] %vm2394_vm3, %v2865_v24  ;;  %v2263_v51 = vmax.f32 %v1615_v15, 0.0  ;;  %9542 = vmatprep.mubr.msk.bf16.mxu0 %vm689_vm2, %v657_v12  ;;  %v2581_v42 = vsel %vm2394_vm3, %v2262_v25, -inf  ;;  %v14984_v25 = vmax.f32 %v12502_v6, %v12505_v44 }
 0x26c   : > { %14981 = vst [vmem:[#allocation44_spill] sm:$0xff] %v12618_v41  ;;  %v12624_v19 = vld [vmem:[#allocation2 + $0x158] sm:$0xff]  ;;  %v4197_v30 = vpack.c.bf16 %v12622_v26, %v12610_v60  ;;  %v2585_v59 = vsel %vm2394_vm3, %v2265_v16, -inf  ;;  %v12646_v24 = vld [vmem:[#allocation6] ss:$0 sm:$0xff]  ;;  %v658_v16 = vpack.c.bf16 %v522_v17, %v521_v9 }
 0x26d   : > { %14982 = vst [vmem:[#allocation45_spill] sm:$0xff] %v12624_v19  ;;  %v12626_v46 = vld [vmem:[#allocation2 + $0x158] sm:$0xff]  ;;  %v2586_v27 = vmax.f32 %v2584_v32, %v2585_v59  ;;  %v2582_v13 = vsel %vm2394_vm3, %v2263_v51, -inf  ;;  %v9436_v4 = vpop.f32.mrb[128].mxu0  ;;  %v2872_v32 = vsel %vm2394_vm3, %v14984_v25, -inf  ;;  %v14985_v51 = vmax.f32 %v12510_v10, %v12515_v38 }
 0x26e   : > { %14983 = vst [vmem:[#allocation46_spill] sm:$0xff] %v12626_v46  ;;  %9728 = vmatprep.mubr.msk.bf16.mxu1 %vm2394_vm3, %v4197_v30  ;;  %v2583_v2 = vmax.f32 %v2581_v42, %v2582_v13  ;;  %v1636_v0 = vadd.f32 %v12646_v24, %v9436_v4  ;;  %v1627_v15 = vpop.f32.mrb[129].mxu0  ;;  %v3237_v19 = vld [vmem:[#allocation2 + $0x18] sm:$0xff] }
 0x26f   : > { %v2869_v30 = vsel %vm2394_vm3, %v14985_v51, -inf  ;;  %v2873_v59 = vsel %vm2394_vm3, %v2586_v27, -inf  ;;  %v1628_v42 = vadd.f32 %v12646_v24, %v1627_v15  ;;  %v9437_v13 = vpop.f32.mrb[130].mxu0 }
 0x270   : > { %v2874_v12 = vmax.f32 %v2872_v32, %v2873_v59  ;;  %v2870_v4 = vsel %vm2394_vm3, %v2583_v2, -inf  ;;  %v2268_v9 = vmax.f32 %v1636_v0, 0.0  ;;  %v1639_v17 = vadd.f32 %v12646_v24, %v9437_v13  ;;  %v1630_v37 = vpop.f32.mrb[131].mxu0  ;;  %v527_v13 = vld [vmem:[%s11276_s12 + $0x7a0] sm:$0xff] }
 0x271   : > { %v2871_v6 = vmax.f32 %v2869_v30, %v2870_v4  ;;  %v2266_v44 = vmax.f32 %v1628_v42, 0.0  ;;  %v1631_v10 = vadd.f32 %v12646_v24, %v1630_v37  ;;  %v12662_v38 = vld [vmem:[#allocation2 + $0x170] sm:$0xff]  ;;  %v528_v4 = vld [vmem:[%s11276_s12 + $0x7a8] sm:$0xff] }
 0x272   : > { %v12664_v28 = vld [vmem:[#allocation2 + $0x170] sm:$0xff]  ;;  %3103 = vst.msk [vmem:[#allocation2 + $0x180] sm:$0xff] %vm2394_vm3, %v2874_v12  ;;  %v2269_v2 = vmax.f32 %v1639_v17, 0.0  ;;  %9543 = vmatmul.mubr.msk.bf16.gmra.mrb[236].mxu0 %vm689_vm2, %v658_v16  ;;  %v12670_v0 = vld [vmem:[#allocation2 + $0x168] sm:$0xff]  ;;  %v526_v12 = vld [vmem:[%s11276_s12 + $0x798] sm:$0xff]  ;;  %v12685_v16 = vsel %vm2394_vm3, %v2268_v9, -inf  ;;  %v661_v31 = vpack.c.bf16 %v528_v4, %v527_v13 }
 0x273   : > { %14986 = vst [vmem:[#allocation47_spill] sm:$0xff] %v12664_v28  ;;  %v12666_v27 = vld [vmem:[#allocation2 + $0x170] sm:$0xff]  ;;  %v12672_v15 = vld [vmem:[#allocation2 + $0x168] sm:$0xff]  ;;  %3102 = vst.msk [vmem:[#allocation2 + $0x178] sm:$0xff] %vm2394_vm3, %v2871_v6  ;;  %v2267_v32 = vmax.f32 %v1631_v10, 0.0  ;;  %v4198_v51 = vpack.c.bf16 %v12670_v0, %v12614_v20  ;;  %9546 = vmatprep.mubr.msk.bf16.mxu0 %vm689_vm2, %v659_v47  ;;  %v12695_v37 = vsel %vm2394_vm3, %v2266_v44, -inf }
 0x274   : > { %14987 = vst [vmem:[#allocation48_spill] sm:$0xff] %v12666_v27  ;;  %14988 = vst [vmem:[#allocation49_spill] sm:$0xff] %v12672_v15  ;;  %v12674_v25 = vld [vmem:[#allocation2 + $0x168] sm:$0xff]  ;;  %v525_v30 = vld [vmem:[%s11276_s12 + $0x790] sm:$0xff]  ;;  %v12688_v42 = vsel %vm2394_vm3, %v2269_v2, -inf }
 0x275   : > { %14989 = vst [vmem:[#allocation50_spill] sm:$0xff] %v12674_v25  ;;  %v12700_v6 = vsel %vm2394_vm3, %v2267_v32, -inf  ;;  %v9440_v10 = vpop.f32.mrb[132].mxu0  ;;  %9729 = vmatmul.mubr.msk.bf16.gmra.mrb[4].mxu1 %vm2394_vm3, %v4198_v51  ;;  %v660_v44 = vpack.c.bf16 %v526_v12, %v525_v30  ;;  %v4156_v2 = vld [vmem:[#allocation2 + $0x188] sm:$0xff]  ;;  %v530_v4 = vld [vmem:[%s11276_s12 + $0x7b8] sm:$0xff]  ;;  %v531_v27 = vld [vmem:[%s11276_s12 + $0x7c0] sm:$0xff] }
 0x276   : > { %v1652_v17 = vadd.f32 %v12646_v24, %v9440_v10  ;;  %v1643_v8 = vpop.f32.mrb[133].mxu0 }
 0x277   : > { %v1644_v11 = vadd.f32 %v12646_v24, %v1643_v8  ;;  %v9441_v59 = vpop.f32.mrb[134].mxu0 }
 0x278   : > { %v2272_v32 = vmax.f32 %v1652_v17, 0.0  ;;  %v1655_v47 = vadd.f32 %v12646_v24, %v9441_v59  ;;  %v1646_v51 = vpop.f32.mrb[135].mxu0  ;;  %v529_v59 = vld [vmem:[%s11276_s12 + $0x7b0] sm:$0xff] }
 0x279   : > { %v2270_v46 = vmax.f32 %v1644_v11, 0.0  ;;  %v1647_v9 = vadd.f32 %v12646_v24, %v1646_v51  ;;  %v12711_v25 = vld [vmem:[#allocation2 + $0x180] sm:$0xff] }
 0x27a   : > { %v2273_v10 = vmax.f32 %v1655_v47, 0.0  ;;  %9547 = vmatmul.mubr.msk.bf16.gmra.mrb[240].mxu0 %vm689_vm2, %v660_v44  ;;  %v12714_v8 = vld [vmem:[#allocation2 + $0x178] sm:$0xff]  ;;  %v12716_v30 = vld [vmem:[#allocation2 + $0x180] sm:$0xff]  ;;  %v12728_v47 = vsel %vm2394_vm3, %v2272_v32, -inf  ;;  %v4200_v51 = vpack.c.bf16 %v4156_v2, %v12711_v25 }
 0x27b   : > { %14990 = vst [vmem:[#allocation51_spill] sm:$0xff] %v12716_v30  ;;  %v12718_v12 = vld [vmem:[#allocation2 + $0x178] sm:$0xff]  ;;  %v2271_v13 = vmax.f32 %v1647_v9, 0.0  ;;  %v4199_v11 = vpack.c.bf16 %v12714_v8, %v12662_v38  ;;  %9550 = vmatprep.mubr.msk.bf16.mxu0 %vm689_vm2, %v661_v31  ;;  %v532_v9 = vld [vmem:[%s11276_s12 + $0x7c8] sm:$0xff]  ;;  %v12737_v41 = vsel %vm2394_vm3, %v2270_v46, -inf  ;;  %v662_v46 = vpack.c.bf16 %v530_v4, %v529_v59  ;;  %v533_v59 = vld [vmem:[%s11276_s12 + $0x7d0] sm:$0xff] }
 0x27c   : > { %14991 = vst [vmem:[#allocation52_spill] sm:$0xff] %v12718_v12  ;;  %v12731_v44 = vsel %vm2394_vm3, %v2273_v10, -inf  ;;  %v663_v23 = vpack.c.bf16 %v532_v9, %v531_v27  ;;  %v535_v9 = vld [vmem:[%s11276_s12 + $0x7e0] sm:$0xff] }
 0x27d   : > { %v12742_v35 = vsel %vm2394_vm3, %v2271_v13, -inf  ;;  %v9444_v17 = vpop.f32.mrb[136].mxu0  ;;  %9732 = vmatprep.mubr.msk.bf16.mxu1 %vm2394_vm3, %v4199_v11 }
 0x27e   : > { %v1668_v10 = vadd.f32 %v12646_v24, %v9444_v17  ;;  %v1659_v50 = vpop.f32.mrb[137].mxu0  ;;  %9733 = vmatmul.mubr.msk.bf16.gmra.mrb[8].mxu1 %vm2394_vm3, %v4200_v51 }
 0x27f   : > { %v1660_v13 = vadd.f32 %v12646_v24, %v1659_v50  ;;  %v9445_v31 = vpop.f32.mrb[138].mxu0  ;;  %v534_v50 = vld [vmem:[%s11276_s12 + $0x7d8] sm:$0xff] }
 0x280   : > { %v2276_v11 = vmax.f32 %v1668_v10, 0.0  ;;  %v1671_v32 = vadd.f32 %v12646_v24, %v9445_v31  ;;  %v1662_v12 = vpop.f32.mrb[139].mxu0  ;;  %v536_v31 = vld [vmem:[%s11276_s12 + $0x7e8] sm:$0xff] }
 0x281   : > { %v2274_v30 = vmax.f32 %v1660_v13, 0.0  ;;  %v1663_v2 = vadd.f32 %v12646_v24, %v1662_v12  ;;  %v665_v56 = vpack.c.bf16 %v536_v31, %v535_v9  ;;  %v3235_v9 = vld [vmem:[#allocation2 + $0x8] sm:$0xff]  ;;  %v3236_v31 = vld [vmem:[#allocation2 + $0x10] sm:$0xff] }
 0x282   : > { %v2277_v17 = vmax.f32 %v1671_v32, 0.0  ;;  %9551 = vmatmul.mubr.msk.bf16.gmra.mrb[244].mxu0 %vm689_vm2, %v662_v46  ;;  %v12759_v4 = vsel %vm2394_vm3, %v2276_v11, -inf  ;;  %v664_v11 = vpack.c.bf16 %v534_v50, %v533_v59 }
 0x283   : > { %v2275_v51 = vmax.f32 %v1663_v2, 0.0  ;;  %9554 = vmatprep.mubr.msk.bf16.mxu0 %vm689_vm2, %v663_v23  ;;  %v12767_v12 = vsel %vm2394_vm3, %v2274_v30, -inf }
 0x284   : > { %v12762_v27 = vsel %vm2394_vm3, %v2277_v17, -inf }
 0x285   : > { %v12772_v2 = vsel %vm2394_vm3, %v2275_v51, -inf  ;;  %v9448_v23 = vpop.f32.mrb[140].mxu0 }
 0x286   : > { %v1684_v46 = vadd.f32 %v12646_v24, %v9448_v23  ;;  %v1675_v13 = vpop.f32.mrb[141].mxu0  ;;  %v537_v23 = vld [vmem:[%s11276_s12 + $0x7f0] sm:$0xff] }
 0x287   : > { %v1676_v30 = vadd.f32 %v12646_v24, %v1675_v13  ;;  %v9449_v17 = vpop.f32.mrb[142].mxu0 }
 0x288   : > { %v2280_v54 = vmax.f32 %v1684_v46, 0.0  ;;  %v1687_v32 = vadd.f32 %v12646_v24, %v9449_v17  ;;  %v1678_v51 = vpop.f32.mrb[143].mxu0 }
 0x289   : > { %v2278_v53 = vmax.f32 %v1676_v30, 0.0  ;;  %v1679_v7 = vadd.f32 %v12646_v24, %v1678_v51 }
 0x28a   : > { %v2281_v49 = vmax.f32 %v1687_v32, 0.0  ;;  %9555 = vmatmul.mubr.msk.bf16.gmra.mrb[248].mxu0 %vm689_vm2, %v664_v11  ;;  %v12785_v59 = vsel %vm2394_vm3, %v2280_v54, -inf }
 0x28b   : > { %v2279_v10 = vmax.f32 %v1679_v7, 0.0  ;;  %9558 = vmatprep.mubr.msk.bf16.mxu0 %vm689_vm2, %v665_v56  ;;  %v12791_v46 = vsel %vm2394_vm3, %v2278_v53, -inf  ;;  %v3299_v7 = vpack.c.bf16 %v3236_v31, %v3235_v9 }
 0x28c   : > { %v12788_v50 = vsel %vm2394_vm3, %v2281_v49, -inf  ;;  %v666_v49 = vpack.c.bf16 %v538_v63, %v537_v23  ;;  %v3239_v63 = vld [vmem:[#allocation2 + $0x28] sm:$0xff]  ;;  %v3240_v23 = vld [vmem:[#allocation2 + $0x30] sm:$0xff] }
 0x28d   : > { %v12796_v13 = vsel %vm2394_vm3, %v2279_v10, -inf  ;;  %v9452_v56 = vpop.f32.mrb[144].mxu0  ;;  %v3301_v40 = vpack.c.bf16 %v3240_v23, %v3239_v63 }
 0x28e   : > { %v1700_v54 = vadd.f32 %v12646_v24, %v9452_v56  ;;  %v1691_v30 = vpop.f32.mrb[145].mxu0  ;;  %v3238_v56 = vld [vmem:[#allocation2 + $0x20] sm:$0xff] }
 0x28f   : > { %v1692_v17 = vadd.f32 %v12646_v24, %v1691_v30  ;;  %v9453_v51 = vpop.f32.mrb[146].mxu0 }
 0x290   : > { %v2284_v53 = vmax.f32 %v1700_v54, 0.0  ;;  %v1703_v52 = vadd.f32 %v12646_v24, %v9453_v51  ;;  %v1694_v15 = vpop.f32.mrb[147].mxu0 }
 0x291   : > { %v2282_v32 = vmax.f32 %v1692_v17, 0.0  ;;  %v1695_v10 = vadd.f32 %v12646_v24, %v1694_v15 }
 0x292   : > { %v2285_v28 = vmax.f32 %v1703_v52, 0.0  ;;  %9559 = vmatmul.mubr.msk.bf16.gmra.mrb[252].mxu0 %vm689_vm2, %v666_v49  ;;  %v2614_v30 = vsel %vm2394_vm3, %v2284_v53, -inf }
 0x293   : > { %v2283_v11 = vmax.f32 %v1695_v10, 0.0  ;;  %9564 = vmatprep.mubr.msk.bf16.mxu0 %vm2394_vm3, %v3299_v7  ;;  %v2611_v31 = vsel %vm2394_vm3, %v2282_v32, -inf  ;;  %v3300_v10 = vpack.c.bf16 %v3238_v56, %v3237_v19  ;;  %v14992_v7 = vmax.f32 %v12685_v16, %v12688_v42 }
 0x294   : > { %v2615_v9 = vsel %vm2394_vm3, %v2285_v28, -inf  ;;  %v14993_v28 = vmax.f32 %v12695_v37, %v12700_v6 }
 0x295   : > { %v2616_v54 = vmax.f32 %v2614_v30, %v2615_v9  ;;  %v2612_v17 = vsel %vm2394_vm3, %v2283_v11, -inf  ;;  %v9456_v15 = vpop.f32.mrb[148].mxu0  ;;  %v2878_v21 = vsel %vm2394_vm3, %v14992_v7, -inf }
 0x296   : > { %v2613_v52 = vmax.f32 %v2611_v31, %v2612_v17  ;;  %v1716_v49 = vadd.f32 %v12646_v24, %v9456_v15  ;;  %v1707_v51 = vpop.f32.mrb[149].mxu0  ;;  %v2875_v32 = vsel %vm2394_vm3, %v14993_v28, -inf }
 0x297   : > { %v2879_v53 = vsel %vm2394_vm3, %v2616_v54, -inf  ;;  %v1708_v11 = vadd.f32 %v12646_v24, %v1707_v51  ;;  %v9457_v30 = vpop.f32.mrb[150].mxu0  ;;  %v3242_v54 = vld [vmem:[#allocation2 + $0x40] sm:$0xff] }
 0x298   : > { %v2880_v9 = vmax.f32 %v2878_v21, %v2879_v53  ;;  %v2876_v31 = vsel %vm2394_vm3, %v2613_v52, -inf  ;;  %v2288_v19 = vmax.f32 %v1716_v49, 0.0  ;;  %v1719_v56 = vadd.f32 %v12646_v24, %v9457_v30  ;;  %v1710_v63 = vpop.f32.mrb[151].mxu0  ;;  %v3241_v21 = vld [vmem:[#allocation2 + $0x38] sm:$0xff]  ;;  %v3244_v30 = vld [vmem:[#allocation2 + $0x60] sm:$0xff] }
 0x299   : > { %v2877_v16 = vmax.f32 %v2875_v32, %v2876_v31  ;;  %v2286_v42 = vmax.f32 %v1708_v11, 0.0  ;;  %v1711_v23 = vadd.f32 %v12646_v24, %v1710_v63  ;;  %v3302_v53 = vpack.c.bf16 %v3242_v54, %v3241_v21  ;;  %v3243_v11 = vld [vmem:[#allocation2 + $0x58] sm:$0xff] }
 0x29a   : > { %3105 = vst.msk [vmem:[#allocation2 + $0x1a0] sm:$0xff] %vm2394_vm3, %v2880_v9  ;;  %v2289_v37 = vmax.f32 %v1719_v56, 0.0  ;;  %9565 = vmatmul.mubr.msk.bf16.vlgmr.msra.gmra.mrb[0].mxu0 %vm2394_vm3, %v3300_v10  ;;  %v2620_v17 = vsel %vm2394_vm3, %v2288_v19, -inf  ;;  %v14995_v31 = vmax.f32 %v12737_v41, %v12742_v35 }
 0x29b   : > { %3104 = vst.msk [vmem:[#allocation2 + $0x198] sm:$0xff] %vm2394_vm3, %v2877_v16  ;;  %v2287_v6 = vmax.f32 %v1711_v23, 0.0  ;;  %9568 = vmatprep.mubr.msk.bf16.mxu0 %vm2394_vm3, %v3301_v40  ;;  %v2617_v52 = vsel %vm2394_vm3, %v2286_v42, -inf  ;;  %v14994_v40 = vmax.f32 %v12728_v47, %v12731_v44 }
 0x29c   : > { %v2621_v15 = vsel %vm2394_vm3, %v2289_v37, -inf  ;;  %v2881_v19 = vsel %vm2394_vm3, %v14995_v31, -inf }
 0x29d   : > { %v2622_v49 = vmax.f32 %v2620_v17, %v2621_v15  ;;  %v2618_v51 = vsel %vm2394_vm3, %v2287_v6, -inf  ;;  %v9460_v7 = vpop.f32.mrb[152].mxu0  ;;  %v2884_v9 = vsel %vm2394_vm3, %v14994_v40, -inf  ;;  %v3303_v17 = vpack.c.bf16 %v3244_v30, %v3243_v11 }
 0x29e   : > { %v2619_v28 = vmax.f32 %v2617_v52, %v2618_v51  ;;  %v1732_v10 = vadd.f32 %v12646_v24, %v9460_v7  ;;  %v1723_v32 = vpop.f32.mrb[153].mxu0  ;;  %v3245_v7 = vld [vmem:[#allocation2 + $0x68] sm:$0xff] }
 0x29f   : > { %v2885_v56 = vsel %vm2394_vm3, %v2622_v49, -inf  ;;  %v1724_v63 = vadd.f32 %v12646_v24, %v1723_v32  ;;  %v9461_v16 = vpop.f32.mrb[154].mxu0 }
 0x2a0   : > { %v2886_v42 = vmax.f32 %v2884_v9, %v2885_v56  ;;  %v2882_v23 = vsel %vm2394_vm3, %v2619_v28, -inf  ;;  %v2292_v37 = vmax.f32 %v1732_v10, 0.0  ;;  %v1735_v6 = vadd.f32 %v12646_v24, %v9461_v16  ;;  %v1726_v21 = vpop.f32.mrb[155].mxu0  ;;  %v3246_v28 = vld [vmem:[#allocation2 + $0x70] sm:$0xff] }
 0x2a1   : > { %v2883_v47 = vmax.f32 %v2881_v19, %v2882_v23  ;;  %v2290_v44 = vmax.f32 %v1724_v63, 0.0  ;;  %v1727_v54 = vadd.f32 %v12646_v24, %v1726_v21  ;;  %v12846_v35 = vld [vmem:[#allocation2 + $0x1a0] sm:$0xff]  ;;  %v3304_v16 = vpack.c.bf16 %v3246_v28, %v3245_v7 }
 0x2a2   : > { %14996 = vst [vmem:[#allocation53_spill] sm:$0xff] %v12846_v35  ;;  %v12848_v41 = vld [vmem:[#allocation2 + $0x1a0] sm:$0xff]  ;;  %3107 = vst.msk [vmem:[#allocation2 + $0x1b0] sm:$0xff] %vm2394_vm3, %v2886_v42  ;;  %v2293_v15 = vmax.f32 %v1735_v6, 0.0  ;;  %9569 = vmatmul.mubr.msk.bf16.gmra.mrb[4].mxu0 %vm2394_vm3, %v3302_v53  ;;  %v12852_v52 = vld [vmem:[#allocation2 + $0x198] sm:$0xff]  ;;  %v2626_v10 = vsel %vm2394_vm3, %v2292_v37, -inf  ;;  %v15000_v37 = vmax.f32 %v12759_v4, %v12762_v27  ;;  %v15001_v21 = vmax.f32 %v12767_v12, %v12772_v2 }
 0x2a3   : > { %14997 = vst [vmem:[#allocation54_spill] sm:$0xff] %v12848_v41  ;;  %14998 = vst [vmem:[#allocation55_spill] sm:$0xff] %v12852_v52  ;;  %v12854_v49 = vld [vmem:[#allocation2 + $0x198] sm:$0xff]  ;;  %v2291_v51 = vmax.f32 %v1727_v54, 0.0  ;;  %9572 = vmatprep.mubr.msk.bf16.mxu0 %vm2394_vm3, %v3303_v17  ;;  %v2623_v30 = vsel %vm2394_vm3, %v2290_v44, -inf  ;;  %v3248_v23 = vld [vmem:[#allocation2 + $0x80] sm:$0xff] }
 0x2a4   : > { %14999 = vst [vmem:[#allocation56_spill] sm:$0xff] %v12854_v49  ;;  %3106 = vst.msk [vmem:[#allocation2 + $0x1a8] sm:$0xff] %vm2394_vm3, %v2883_v47  ;;  %v2627_v32 = vsel %vm2394_vm3, %v2293_v15, -inf  ;;  %v3247_v42 = vld [vmem:[#allocation2 + $0x78] sm:$0xff]  ;;  %v2890_v6 = vsel %vm2394_vm3, %v15000_v37, -inf  ;;  %v2887_v47 = vsel %vm2394_vm3, %v15001_v21, -inf }
 0x2a5   : > { %v2628_v40 = vmax.f32 %v2626_v10, %v2627_v32  ;;  %v2624_v9 = vsel %vm2394_vm3, %v2291_v51, -inf  ;;  %v9464_v31 = vpop.f32.mrb[156].mxu0  ;;  %v12880_v12 = vld [vmem:[#allocation2 + $0x1a0] sm:$0xff]  ;;  %v3250_v37 = vld [vmem:[#allocation2 + $0x90] sm:$0xff] }
 0x2a6   : > { %v2625_v19 = vmax.f32 %v2623_v30, %v2624_v9  ;;  %v1748_v56 = vadd.f32 %v12646_v24, %v9464_v31  ;;  %v1739_v63 = vpop.f32.mrb[157].mxu0  ;;  %v3305_v30 = vpack.c.bf16 %v3248_v23, %v3247_v42  ;;  %v3249_v23 = vld [vmem:[#allocation2 + $0x88] sm:$0xff] }
 0x2a7   : > { %v2891_v44 = vsel %vm2394_vm3, %v2628_v40, -inf  ;;  %v1740_v54 = vadd.f32 %v12646_v24, %v1739_v63  ;;  %v9465_v17 = vpop.f32.mrb[158].mxu0  ;;  %v10762_v41 = vld [vmem:[#allocation8] sm:$0xff]  }
 0x2a8   : > { %v2892_v15 = vmax.f32 %v2890_v6, %v2891_v44  ;;  %v2888_v51 = vsel %vm2394_vm3, %v2625_v19, -inf  ;;  %v2296_v7 = vmax.f32 %v1748_v56, 0.0  ;;  %v1751_v28 = vadd.f32 %v12646_v24, %v9465_v17  ;;  %v1742_v10 = vpop.f32.mrb[159].mxu0  ;;  %9628 = vmatprep.subr.bf16.mxu0 %v10762_v41 }
 0x2a9   : > { %v2889_v4 = vmax.f32 %v2887_v47, %v2888_v51  ;;  %v2294_v27 = vmax.f32 %v1740_v54, 0.0  ;;  %v1743_v32 = vadd.f32 %v12646_v24, %v1742_v10  ;;  %v12882_v2 = vld [vmem:[#allocation2 + $0x1b0] sm:$0xff]  ;;  %v3306_v10 = vpack.c.bf16 %v3250_v37, %v3249_v23  ;;  %9629 = vmatpush3.bf16.msra.mxu0 %v10762_v41 }
 0x2aa   : > { %15002 = vst [vmem:[#allocation57_spill] sm:$0xff] %v12882_v2  ;;  %v12884_v40 = vld [vmem:[#allocation2 + $0x1b0] sm:$0xff]  ;;  %3109 = vst.msk [vmem:[#allocation2 + $0x1c0] sm:$0xff] %vm2394_vm3, %v2892_v15  ;;  %v2297_v9 = vmax.f32 %v1751_v28, 0.0  ;;  %9573 = vmatmul.mubr.msk.bf16.gmra.mrb[8].mxu0 %vm2394_vm3, %v3304_v16  ;;  %v2632_v6 = vsel %vm2394_vm3, %v2296_v7, -inf }
 0x2ab   : > { %15003 = vst [vmem:[#allocation58_spill] sm:$0xff] %v12884_v40  ;;  %v12888_v31 = vld [vmem:[#allocation2 + $0x1a8] sm:$0xff]  ;;  %3108 = vst.msk [vmem:[#allocation2 + $0x1b8] sm:$0xff] %vm2394_vm3, %v2889_v4  ;;  %v2295_v63 = vmax.f32 %v1743_v32, 0.0  ;;  %9576 = vmatprep.mubr.msk.bf16.mxu0 %vm2394_vm3, %v3305_v30  ;;  %v2629_v47 = vsel %vm2394_vm3, %v2294_v27, -inf  ;;  %v3252_v32 = vld [vmem:[#allocation2 + $0xb0] sm:$0xff]  ;;  %v15006_v30 = vmax.f32 %v12785_v59, %v12788_v50 }
 0x2ac   : > { %v12890_v19 = vld [vmem:[#allocation2 + $0x1a8] sm:$0xff]  ;;  %v4201_v42 = vpack.c.bf16 %v12888_v31, %v12880_v12  ;;  %v2633_v16 = vsel %vm2394_vm3, %v2297_v9, -inf  ;;  %v15007_v9 = vmax.f32 %v12791_v46, %v12796_v13  ;;  %v12921_v46 = vld [vmem:[#allocation2 + $0x1b0] sm:$0xff]  ;;  %v3260_v40 = vld [vmem:[#allocation2 + $0x100] sm:$0xff] }
 0x2ad   : > { %15004 = vst [vmem:[#allocation59_spill] sm:$0xff] %v12890_v19  ;;  %v12892_v56 = vld [vmem:[#allocation2 + $0x1a8] sm:$0xff]  ;;  %v2634_v44 = vmax.f32 %v2632_v6, %v2633_v16  ;;  %v2630_v54 = vsel %vm2394_vm3, %v2295_v63, -inf  ;;  %v9468_v17 = vpop.f32.mrb[160].mxu0  ;;  %v2896_v27 = vsel %vm2394_vm3, %v15006_v30, -inf }
 0x2ae   : > { %15005 = vst [vmem:[#allocation60_spill] sm:$0xff] %v12892_v56  ;;  %9736 = vmatprep.mubr.msk.bf16.mxu1 %vm2394_vm3, %v4201_v42  ;;  %v2631_v51 = vmax.f32 %v2629_v47, %v2630_v54  ;;  %v1764_v28 = vadd.f32 %v12646_v24, %v9468_v17  ;;  %v1755_v7 = vpop.f32.mrb[161].mxu0  ;;  %v3251_v4 = vld [vmem:[#allocation2 + $0xa8] sm:$0xff]  ;;  %v2893_v63 = vsel %vm2394_vm3, %v15007_v9, -inf }
 0x2af   : > { %v2897_v42 = vsel %vm2394_vm3, %v2634_v44, -inf  ;;  %v1756_v6 = vadd.f32 %v12646_v24, %v1755_v7  ;;  %v9469_v16 = vpop.f32.mrb[162].mxu0  ;;  %v3307_v15 = vpack.c.bf16 %v3252_v32, %v3251_v4 }
 0x2b0   : > { %v2898_v47 = vmax.f32 %v2896_v27, %v2897_v42  ;;  %v2894_v23 = vsel %vm2394_vm3, %v2631_v51, -inf  ;;  %v2300_v37 = vmax.f32 %v1764_v28, 0.0  ;;  %v1767_v54 = vadd.f32 %v12646_v24, %v9469_v16  ;;  %v1758_v17 = vpop.f32.mrb[163].mxu0 }
 0x2b1   : > { %v2895_v59 = vmax.f32 %v2893_v63, %v2894_v23  ;;  %v2298_v50 = vmax.f32 %v1756_v6, 0.0  ;;  %v1759_v30 = vadd.f32 %v12646_v24, %v1758_v17  ;;  %v12923_v13 = vld [vmem:[#allocation2 + $0x1c0] sm:$0xff] }
 0x2b2   : > { %15008 = vst [vmem:[#allocation61_spill] sm:$0xff] %v12923_v13  ;;  %v12925_v44 = vld [vmem:[#allocation2 + $0x1c0] sm:$0xff]  ;;  %3111 = vst.msk [vmem:[#allocation2 + $0x1d0] sm:$0xff] %vm2394_vm3, %v2898_v47  ;;  %v2301_v7 = vmax.f32 %v1767_v54, 0.0  ;;  %9577 = vmatmul.mubr.msk.bf16.gmra.mrb[12].mxu0 %vm2394_vm3, %v3306_v10  ;;  %v12929_v51 = vld [vmem:[#allocation2 + $0x1b8] sm:$0xff]  ;;  %v12940_v9 = vsel %vm2394_vm3, %v2300_v37, -inf }
 0x2b3   : > { %15009 = vst [vmem:[#allocation62_spill] sm:$0xff] %v12925_v44  ;;  %v12931_v28 = vld [vmem:[#allocation2 + $0x1b8] sm:$0xff]  ;;  %3110 = vst.msk [vmem:[#allocation2 + $0x1c8] sm:$0xff] %vm2394_vm3, %v2895_v59  ;;  %v2299_v4 = vmax.f32 %v1759_v30, 0.0  ;;  %9580 = vmatprep.mubr.msk.bf16.mxu0 %vm2394_vm3, %v3307_v15  ;;  %v4202_v32 = vpack.c.bf16 %v12929_v51, %v12921_v46  ;;  %v12948_v42 = vsel %vm2394_vm3, %v2298_v50, -inf  ;;  %v3254_v23 = vld [vmem:[#allocation2 + $0xc0] sm:$0xff] }
 0x2b4   : > { %15010 = vst [vmem:[#allocation63_spill] sm:$0xff] %v12931_v28  ;;  %v12933_v27 = vld [vmem:[#allocation2 + $0x1b8] sm:$0xff]  ;;  %v12943_v63 = vsel %vm2394_vm3, %v2301_v7, -inf  ;;  %v3255_v50 = vld [vmem:[#allocation2 + $0xc8] sm:$0xff]  ;;  %v3256_v30 = vld [vmem:[#allocation2 + $0xd0] sm:$0xff] }
 0x2b5   : > { %15011 = vst [vmem:[#allocation64_spill] sm:$0xff] %v12933_v27  ;;  %v12953_v15 = vsel %vm2394_vm3, %v2299_v4, -inf  ;;  %v9472_v16 = vpop.f32.mrb[164].mxu0  ;;  %9737 = vmatmul.mubr.msk.bf16.gmra.mrb[12].mxu1 %vm2394_vm3, %v4202_v32  ;;  %v3253_v47 = vld [vmem:[#allocation2 + $0xb8] sm:$0xff]  ;;  %v3309_v37 = vpack.c.bf16 %v3256_v30, %v3255_v50  ;;  %v12964_v27 = vld [vmem:[#allocation2 + $0x1c0] sm:$0xff] }
 0x2b6   : > { %v1780_v17 = vadd.f32 %v12646_v24, %v9472_v16  ;;  %v1771_v59 = vpop.f32.mrb[165].mxu0  ;;  %v3308_v21 = vpack.c.bf16 %v3254_v23, %v3253_v47  ;;  %v4164_v16 = vld [vmem:[#allocation2 + $0x1d8] sm:$0xff] }
 0x2b7   : > { %v1772_v7 = vadd.f32 %v12646_v24, %v1771_v59  ;;  %v9473_v4 = vpop.f32.mrb[166].mxu0  ;;  %v3259_v30 = vld [vmem:[#allocation2 + $0xf8] sm:$0xff] }
 0x2b8   : > { %v2304_v53 = vmax.f32 %v1780_v17, 0.0  ;;  %v1783_v10 = vadd.f32 %v12646_v24, %v9473_v4  ;;  %v1774_v32 = vpop.f32.mrb[167].mxu0 }
 0x2b9   : > { %v2302_v11 = vmax.f32 %v1772_v7, 0.0  ;;  %v1775_v6 = vadd.f32 %v12646_v24, %v1774_v32  ;;  %v12966_v54 = vld [vmem:[#allocation2 + $0x1d0] sm:$0xff]  ;;  %v3257_v7 = vld [vmem:[#allocation2 + $0xd8] sm:$0xff]  ;;  %v3311_v32 = vpack.c.bf16 %v3260_v40, %v3259_v30  ;;  %v13022_v30 = vld [vmem:[#allocation8 + $0x20] sm:$0xff]  }
 0x2ba   : > { %v2305_v44 = vmax.f32 %v1783_v10, 0.0  ;;  %9581 = vmatmul.mubr.msk.bf16.gmra.mrb[16].mxu0 %vm2394_vm3, %v3308_v21  ;;  %v12969_v56 = vld [vmem:[#allocation2 + $0x1c8] sm:$0xff]  ;;  %v12971_v59 = vld [vmem:[#allocation2 + $0x1d0] sm:$0xff]  ;;  %v12979_v23 = vsel %vm2394_vm3, %v2304_v53, -inf  ;;  %v4204_v21 = vpack.c.bf16 %v4164_v16, %v12966_v54  ;;  %v3258_v53 = vld [vmem:[#allocation2 + $0xe0] sm:$0xff]  ;;  %9826 = vmatprep.subr.bf16.mxu1 %v13022_v30 }
 0x2bb   : > { %15012 = vst [vmem:[#allocation65_spill] sm:$0xff] %v12971_v59  ;;  %v12973_v17 = vld [vmem:[#allocation2 + $0x1c8] sm:$0xff]  ;;  %v2303_v4 = vmax.f32 %v1775_v6, 0.0  ;;  %9584 = vmatprep.mubr.msk.bf16.mxu0 %vm2394_vm3, %v3309_v37  ;;  %v4203_v47 = vpack.c.bf16 %v12969_v56, %v12964_v27  ;;  %v12986_v10 = vsel %vm2394_vm3, %v2302_v11, -inf  ;;  %v3310_v19 = vpack.c.bf16 %v3258_v53, %v3257_v7 }
 0x2bc   : > { %15013 = vst [vmem:[#allocation66_spill] sm:$0xff] %v12973_v17  ;;  %v12982_v50 = vsel %vm2394_vm3, %v2305_v44, -inf }
 0x2bd   : > { %v12991_v6 = vsel %vm2394_vm3, %v2303_v4, -inf  ;;  %v9476_v37 = vpop.f32.mrb[168].mxu0  ;;  %9740 = vmatprep.mubr.msk.bf16.mxu1 %vm2394_vm3, %v4203_v47 }
 0x2be   : > { %v1796_v11 = vadd.f32 %v12646_v24, %v9476_v37  ;;  %v1787_v16 = vpop.f32.mrb[169].mxu0  ;;  %9741 = vmatmul.mubr.msk.bf16.gmra.mrb[16].mxu1 %vm2394_vm3, %v4204_v21 }
 0x2bf   : > { %v1788_v4 = vadd.f32 %v12646_v24, %v1787_v16  ;;  %v9477_v49 = vpop.f32.mrb[170].mxu0 }
 0x2c0   : > { %v2308_v47 = vmax.f32 %v1796_v11, 0.0  ;;  %v1799_v28 = vadd.f32 %v12646_v24, %v9477_v49  ;;  %v1790_v13 = vpop.f32.mrb[171].mxu0  ;;  %v13011_v49 = vld [vmem:[#allocation8 + $0x10] sm:$0xff]  }
 0x2c1   : > { %v2306_v44 = vmax.f32 %v1788_v4, 0.0  ;;  %v1791_v17 = vadd.f32 %v12646_v24, %v1790_v13  ;;  %9694 = vmatprep.subr.bf16.mxu0 %v13011_v49  ;;  %v3263_v4 = vld [vmem:[#allocation2 + $0x118] sm:$0xff] }
 0x2c2   : > { %v2309_v37 = vmax.f32 %v1799_v28, 0.0  ;;  %9585 = vmatmul.mubr.msk.bf16.gmra.mrb[20].mxu0 %vm2394_vm3, %v3310_v19  ;;  %v13006_v16 = vsel %vm2394_vm3, %v2308_v47, -inf  ;;  %v3261_v28 = vld [vmem:[#allocation2 + $0x108] sm:$0xff] }
 0x2c3   : > { %v2307_v21 = vmax.f32 %v1791_v17, 0.0  ;;  %9588 = vmatprep.mubr.msk.bf16.mxu0 %vm2394_vm3, %v3311_v32  ;;  %v13015_v40 = vsel %vm2394_vm3, %v2306_v44, -inf  ;;  %v3262_v17 = vld [vmem:[#allocation2 + $0x110] sm:$0xff]  ;;  %v3264_v44 = vld [vmem:[#allocation2 + $0x120] sm:$0xff] }
 0x2c4   : > { %v13009_v11 = vsel %vm2394_vm3, %v2309_v37, -inf  ;;  %v3312_v2 = vpack.c.bf16 %v3262_v17, %v3261_v28  ;;  %v3313_v43 = vpack.c.bf16 %v3264_v44, %v3263_v4 }
 0x2c5   : > { %v13020_v13 = vsel %vm2394_vm3, %v2307_v21, -inf  ;;  %v9480_v41 = vpop.f32.mrb[172].mxu0 }
 0x2c6   : > { %v1812_v53 = vadd.f32 %v12646_v24, %v9480_v41  ;;  %v1803_v32 = vpop.f32.mrb[173].mxu0 }
 0x2c7   : > { %v1804_v47 = vadd.f32 %v12646_v24, %v1803_v32  ;;  %v9481_v37 = vpop.f32.mrb[174].mxu0 }
 0x2c8   : > { %v2312_v21 = vmax.f32 %v1812_v53, 0.0  ;;  %v1815_v19 = vadd.f32 %v12646_v24, %v9481_v37  ;;  %v1806_v59 = vpop.f32.mrb[175].mxu0 }
 0x2c9   : > { %v2310_v52 = vmax.f32 %v1804_v47, 0.0  ;;  %v1807_v35 = vadd.f32 %v12646_v24, %v1806_v59 }
 0x2ca   : > { %v2313_v7 = vmax.f32 %v1815_v19, 0.0  ;;  %9589 = vmatmul.mubr.msk.bf16.gmra.mrb[24].mxu0 %vm2394_vm3, %v3312_v2  ;;  %v13034_v32 = vsel %vm2394_vm3, %v2312_v21, -inf  ;;  %v3265_v2 = vld [vmem:[#allocation2 + $0x128] sm:$0xff] }
 0x2cb   : > { %v2311_v41 = vmax.f32 %v1807_v35, 0.0  ;;  %9592 = vmatprep.mubr.msk.bf16.mxu0 %vm2394_vm3, %v3313_v43  ;;  %v13040_v53 = vsel %vm2394_vm3, %v2310_v52, -inf  ;;  %v3266_v35 = vld [vmem:[#allocation2 + $0x130] sm:$0xff] }
 0x2cc   : > { %v13037_v1 = vsel %vm2394_vm3, %v2313_v7, -inf  ;;  %v3267_v7 = vld [vmem:[#allocation2 + $0x148] sm:$0xff]  ;;  %v3314_v28 = vpack.c.bf16 %v3266_v35, %v3265_v2 }
 0x2cd   : > { %v13045_v59 = vsel %vm2394_vm3, %v2311_v41, -inf  ;;  %v9484_v19 = vpop.f32.mrb[176].mxu0  ;;  %v3315_v5 = vpack.c.bf16 %v12610_v60, %v3267_v7 }
 0x2ce   : > { %v1828_v17 = vadd.f32 %v12646_v24, %v9484_v19  ;;  %v1819_v4 = vpop.f32.mrb[177].mxu0 }
 0x2cf   : > { %v1820_v44 = vadd.f32 %v12646_v24, %v1819_v4  ;;  %v9485_v52 = vpop.f32.mrb[178].mxu0 }
 0x2d0   : > { %v2316_v47 = vmax.f32 %v1828_v17, 0.0  ;;  %v1831_v37 = vadd.f32 %v12646_v24, %v9485_v52  ;;  %v1822_v21 = vpop.f32.mrb[179].mxu0 }
 0x2d1   : > { %v2314_v41 = vmax.f32 %v1820_v44, 0.0  ;;  %v1823_v57 = vadd.f32 %v12646_v24, %v1822_v21 }
 0x2d2   : > { %v2317_v14 = vmax.f32 %v1831_v37, 0.0  ;;  %9593 = vmatmul.mubr.msk.bf16.gmra.mrb[28].mxu0 %vm2394_vm3, %v3314_v28  ;;  %v2662_v19 = vsel %vm2394_vm3, %v2316_v47, -inf  ;;  %v15014_v28 = vmax.f32 %v12940_v9, %v12943_v63 }
 0x2d3   : > { %v2315_v43 = vmax.f32 %v1823_v57, 0.0  ;;  %9596 = vmatprep.mubr.msk.bf16.mxu0 %vm2394_vm3, %v3315_v5  ;;  %v2659_v17 = vsel %vm2394_vm3, %v2314_v41, -inf  ;;  %v15015_v5 = vmax.f32 %v12948_v42, %v12953_v15  ;;  %v15016_v15 = vpack.c.bf16 %v12614_v20, %v12622_v26 }
 0x2d4   : > { %v2663_v4 = vsel %vm2394_vm3, %v2317_v14, -inf  ;;  %v2902_v57 = vsel %vm2394_vm3, %v15014_v28, -inf }
 0x2d5   : > { %v2664_v52 = vmax.f32 %v2662_v19, %v2663_v4  ;;  %v2660_v2 = vsel %vm2394_vm3, %v2315_v43, -inf  ;;  %v9488_v35 = vpop.f32.mrb[180].mxu0  ;;  %v2899_v14 = vsel %vm2394_vm3, %v15015_v5, -inf }
 0x2d6   : > { %v2661_v44 = vmax.f32 %v2659_v17, %v2660_v2  ;;  %v1844_v21 = vadd.f32 %v12646_v24, %v9488_v35  ;;  %v1835_v60 = vpop.f32.mrb[181].mxu0  ;;  %v15017_v35 = vpack.c.bf16 %v12662_v38, %v12670_v0  ;;  %v15018_v38 = vmax.f32 %v12979_v23, %v12982_v50 }
 0x2d7   : > { %v2903_v7 = vsel %vm2394_vm3, %v2664_v52, -inf  ;;  %v1836_v47 = vadd.f32 %v12646_v24, %v1835_v60  ;;  %v9489_v43 = vpop.f32.mrb[182].mxu0 }
 0x2d8   : > { %v2904_v37 = vmax.f32 %v2902_v57, %v2903_v7  ;;  %v2900_v41 = vsel %vm2394_vm3, %v2661_v44, -inf  ;;  %v2320_v19 = vmax.f32 %v1844_v21, 0.0  ;;  %v1847_v4 = vadd.f32 %v12646_v24, %v9489_v43  ;;  %v1838_v17 = vpop.f32.mrb[183].mxu0  ;;  %v3275_v7 = vld [vmem:[#allocation2 + $0x198] sm:$0xff] }
 0x2d9   : > { %v2901_v9 = vmax.f32 %v2899_v14, %v2900_v41  ;;  %v2318_v63 = vmax.f32 %v1836_v47, 0.0  ;;  %v1839_v2 = vadd.f32 %v12646_v24, %v1838_v17  ;;  %v2908_v0 = vsel %vm2394_vm3, %v15018_v38, -inf }
 0x2da   : > { %3113 = vst.msk [vmem:[#allocation2 + $0x1f0] sm:$0xff] %vm2394_vm3, %v2904_v37  ;;  %v2321_v42 = vmax.f32 %v1847_v4, 0.0  ;;  %9597 = vmatmul.mubr.msk.bf16.gmra.mrb[32].mxu0 %vm2394_vm3, %v15016_v15  ;;  %v2668_v44 = vsel %vm2394_vm3, %v2320_v19, -inf  ;;  %v15019_v47 = vmax.f32 %v12986_v10, %v12991_v6  ;;  %v3319_v10 = vpack.c.bf16 %v12880_v12, %v3275_v7 }
 0x2db   : > { %3112 = vst.msk [vmem:[#allocation2 + $0x1e8] sm:$0xff] %vm2394_vm3, %v2901_v9  ;;  %v2319_v52 = vmax.f32 %v1839_v2, 0.0  ;;  %9600 = vmatprep.mubr.msk.bf16.mxu0 %vm2394_vm3, %v15017_v35  ;;  %v2665_v60 = vsel %vm2394_vm3, %v2318_v63, -inf  ;;  %v15021_v35 = vpack.c.bf16 %v12711_v25, %v12714_v8 }
 0x2dc   : > { %v2669_v21 = vsel %vm2394_vm3, %v2321_v42, -inf  ;;  %v2905_v43 = vsel %vm2394_vm3, %v15019_v47, -inf  ;;  %v15023_v47 = vmax.f32 %v13006_v16, %v13009_v11 }
 0x2dd   : > { %v2670_v28 = vmax.f32 %v2668_v44, %v2669_v21  ;;  %v2666_v57 = vsel %vm2394_vm3, %v2319_v52, -inf  ;;  %v9492_v20 = vpop.f32.mrb[184].mxu0 }
 0x2de   : > { %v2667_v26 = vmax.f32 %v2665_v60, %v2666_v57  ;;  %v1860_v5 = vadd.f32 %v12646_v24, %v9492_v20  ;;  %v1851_v14 = vpop.f32.mrb[185].mxu0 }
 0x2df   : > { %v2909_v37 = vsel %vm2394_vm3, %v2670_v28, -inf  ;;  %v1852_v41 = vadd.f32 %v12646_v24, %v1851_v14  ;;  %v9493_v19 = vpop.f32.mrb[186].mxu0 }
 0x2e0   : > { %v2910_v4 = vmax.f32 %v2908_v0, %v2909_v37  ;;  %v2906_v17 = vsel %vm2394_vm3, %v2667_v26, -inf  ;;  %v2324_v9 = vmax.f32 %v1860_v5, 0.0  ;;  %v1863_v63 = vadd.f32 %v12646_v24, %v9493_v19  ;;  %v1854_v2 = vpop.f32.mrb[187].mxu0 }
 0x2e1   : > { %v2907_v23 = vmax.f32 %v2905_v43, %v2906_v17  ;;  %v2322_v50 = vmax.f32 %v1852_v41, 0.0  ;;  %v1855_v42 = vadd.f32 %v12646_v24, %v1854_v2  ;;  %v13103_v6 = vld [vmem:[#allocation2 + $0x1f0] sm:$0xff]  ;;  %v3320_v0 = vpack.c.bf16 %v12921_v46, %v12888_v31  ;;  %v13140_v31 = vld [vmem:[#allocation6] ss:$0 sm:$0xff] }
 0x2e2   : > { %v13105_v15 = vld [vmem:[#allocation2 + $0x1f0] sm:$0xff]  ;;  %3115 = vst.msk [vmem:[#allocation2 + $0x200] sm:$0xff] %vm2394_vm3, %v2910_v4  ;;  %v2325_v52 = vmax.f32 %v1863_v63, 0.0  ;;  %9601 = vmatmul.mubr.msk.bf16.gmra.mrb[36].mxu0 %vm2394_vm3, %v15021_v35  ;;  %v13112_v44 = vld [vmem:[#allocation2 + $0x1e8] sm:$0xff]  ;;  %v2674_v12 = vsel %vm2394_vm3, %v2324_v9, -inf  ;;  %v2914_v43 = vsel %vm2394_vm3, %v15023_v47, -inf  ;;  %v15024_v37 = vmax.f32 %v13015_v40, %v13020_v13 }
 0x2e3   : > { %15020 = vst [vmem:[#allocation67_spill] sm:$0xff] %v13105_v15  ;;  %v13114_v21 = vld [vmem:[#allocation2 + $0x1e8] sm:$0xff]  ;;  %3114 = vst.msk [vmem:[#allocation2 + $0x1f8] sm:$0xff] %vm2394_vm3, %v2907_v23  ;;  %v2323_v60 = vmax.f32 %v1855_v42, 0.0  ;;  %9604 = vmatprep.mubr.msk.bf16.mxu0 %vm2394_vm3, %v3319_v10  ;;  %v2671_v8 = vsel %vm2394_vm3, %v2322_v50, -inf  ;;  %v3321_v13 = vpack.c.bf16 %v12964_v27, %v12929_v51  ;;  %v4165_v50 = vld [vmem:[#allocation2 + $0x1f0] sm:$0xff] }
 0x2e4   : > { %15022 = vst [vmem:[#allocation68_spill] sm:$0xff] %v13114_v21  ;;  %v2675_v28 = vsel %vm2394_vm3, %v2325_v52, -inf  ;;  %v2911_v41 = vsel %vm2394_vm3, %v15024_v37, -inf  ;;  %v3283_v37 = vld [vmem:[#allocation2 + $0x1e8] sm:$0xff]  ;;  %v10773_v15 = vld [vmem:[#allocation2 + $0x60] sm:$0xff] }
 0x2e5   : > { %v2676_v20 = vmax.f32 %v2674_v12, %v2675_v28  ;;  %v2672_v26 = vsel %vm2394_vm3, %v2323_v60, -inf  ;;  %v9496_v5 = vpop.f32.mrb[188].mxu0 }
 0x2e6   : > { %v2673_v14 = vmax.f32 %v2671_v8, %v2672_v26  ;;  %v1876_v7 = vadd.f32 %v12646_v24, %v9496_v5  ;;  %v1867_v38 = vpop.f32.mrb[189].mxu0 }
 0x2e7   : > { %v2915_v19 = vsel %vm2394_vm3, %v2676_v20, -inf  ;;  %v1868_v4 = vadd.f32 %v12646_v24, %v1867_v38  ;;  %v9497_v17 = vpop.f32.mrb[190].mxu0 }
 0x2e8   : > { %v2916_v9 = vmax.f32 %v2914_v43, %v2915_v19  ;;  %v2912_v63 = vsel %vm2394_vm3, %v2673_v14, -inf  ;;  %v2328_v2 = vmax.f32 %v1876_v7, 0.0  ;;  %v1879_v46 = vadd.f32 %v13140_v31, %v9497_v17  ;;  %v1870_v16 = vpop.f32.mrb[191].mxu0 }
 0x2e9   : > { %v2913_v11 = vmax.f32 %v2911_v41, %v2912_v63  ;;  %v2326_v23 = vmax.f32 %v1868_v4, 0.0  ;;  %v1871_v40 = vadd.f32 %v13140_v31, %v1870_v16  ;;  %v13146_v42 = vld [vmem:[#allocation2 + $0x200] sm:$0xff]  ;;  %v3322_v43 = vpack.c.bf16 %v12966_v54, %v12969_v56 }
 0x2ea   : > { %15025 = vst [vmem:[#allocation69_spill] sm:$0xff] %v13146_v42  ;;  %v13148_v24 = vld [vmem:[#allocation2 + $0x200] sm:$0xff]  ;;  %3117 = vst.msk [vmem:[#allocation2 + $0x210] sm:$0xff] %vm2394_vm3, %v2916_v9  ;;  %v2329_v10 = vmax.f32 %v1879_v46, 0.0  ;;  %9605 = vmatmul.mubr.msk.bf16.gmra.mrb[40].mxu0 %vm2394_vm3, %v3320_v0  ;;  %v13152_v52 = vld [vmem:[#allocation2 + $0x1f8] sm:$0xff]  ;;  %v2680_v27 = vsel %vm2394_vm3, %v2328_v2, -inf  ;;  %v15029_v41 = vmax.f32 %v13034_v32, %v13037_v1  ;;  %v15030_v4 = vmax.f32 %v13040_v53, %v13045_v59 }
 0x2eb   : > { %15026 = vst [vmem:[#allocation70_spill] sm:$0xff] %v13148_v24  ;;  %v13154_v35 = vld [vmem:[#allocation2 + $0x1f8] sm:$0xff]  ;;  %3116 = vst.msk [vmem:[#allocation2 + $0x208] sm:$0xff] %vm2394_vm3, %v2913_v11  ;;  %v2327_v12 = vmax.f32 %v1871_v40, 0.0  ;;  %9608 = vmatprep.mubr.msk.bf16.mxu0 %vm2394_vm3, %v3321_v13  ;;  %v4205_v51 = vpack.c.bf16 %v13152_v52, %v4165_v50  ;;  %v2677_v20 = vsel %vm2394_vm3, %v2326_v23, -inf  ;;  %v3323_v40 = vpack.c.bf16 %v4165_v50, %v3283_v37  ;;  %v4167_v53 = vld [vmem:[#allocation2 + $0x200] sm:$0xff] }
 0x2ec   : > { %15027 = vst [vmem:[#allocation71_spill] sm:$0xff] %v13154_v35  ;;  %v13156_v60 = vld [vmem:[#allocation2 + $0x1f8] sm:$0xff]  ;;  %v2681_v28 = vsel %vm2394_vm3, %v2329_v10, -inf  ;;  %v2920_v19 = vsel %vm2394_vm3, %v15029_v41, -inf  ;;  %v2917_v17 = vsel %vm2394_vm3, %v15030_v4, -inf }
 0x2ed   : > { %15028 = vst [vmem:[#allocation72_spill] sm:$0xff] %v13156_v60  ;;  %v2682_v26 = vmax.f32 %v2680_v27, %v2681_v28  ;;  %v2678_v5 = vsel %vm2394_vm3, %v2327_v12, -inf  ;;  %v9500_v14 = vpop.f32.mrb[192].mxu0  ;;  %9744 = vmatprep.mubr.msk.bf16.mxu1 %vm2394_vm3, %v4205_v51 }
 0x2ee   : > { %v2679_v38 = vmax.f32 %v2677_v20, %v2678_v5  ;;  %v1892_v0 = vadd.f32 %v13140_v31, %v9500_v14  ;;  %v1883_v47 = vpop.f32.mrb[193].mxu0 }
 0x2ef   : > { %v2921_v9 = vsel %vm2394_vm3, %v2682_v26, -inf  ;;  %v1884_v63 = vadd.f32 %v13140_v31, %v1883_v47  ;;  %v9501_v2 = vpop.f32.mrb[194].mxu0 }
 0x2f0   : > { %v2922_v46 = vmax.f32 %v2920_v19, %v2921_v9  ;;  %v2918_v16 = vsel %vm2394_vm3, %v2679_v38, -inf  ;;  %v2332_v56 = vmax.f32 %v1892_v0, 0.0  ;;  %v1895_v54 = vadd.f32 %v13140_v31, %v9501_v2  ;;  %v1886_v11 = vpop.f32.mrb[195].mxu0 }
 0x2f1   : > { %v2919_v1 = vmax.f32 %v2917_v17, %v2918_v16  ;;  %v2330_v32 = vmax.f32 %v1884_v63, 0.0  ;;  %v1887_v23 = vadd.f32 %v13140_v31, %v1886_v11  ;;  %v13186_v59 = vld [vmem:[#allocation2 + $0x210] sm:$0xff]  ;;  %v3324_v16 = vpack.c.bf16 %v4167_v53, %v13152_v52 }
 0x2f2   : > { %15031 = vst [vmem:[#allocation73_spill] sm:$0xff] %v13186_v59  ;;  %v13188_v13 = vld [vmem:[#allocation2 + $0x210] sm:$0xff]  ;;  %3119 = vst.msk [vmem:[#allocation2 + $0x220] sm:$0xff] %vm2394_vm3, %v2922_v46  ;;  %v2333_v10 = vmax.f32 %v1895_v54, 0.0  ;;  %9609 = vmatmul.mubr.msk.bf16.gmra.mrb[44].mxu0 %vm2394_vm3, %v3322_v43  ;;  %v4168_v12 = vld [vmem:[#allocation2 + $0x208] sm:$0xff]  ;;  %v13199_v20 = vsel %vm2394_vm3, %v2332_v56, -inf }
 0x2f3   : > { %15032 = vst [vmem:[#allocation74_spill] sm:$0xff] %v13188_v13  ;;  %v13192_v51 = vld [vmem:[#allocation2 + $0x208] sm:$0xff]  ;;  %3118 = vst.msk [vmem:[#allocation2 + $0x218] sm:$0xff] %vm2394_vm3, %v2919_v1  ;;  %v2331_v28 = vmax.f32 %v1887_v23, 0.0  ;;  %9612 = vmatprep.mubr.msk.bf16.mxu0 %vm2394_vm3, %v3323_v40  ;;  %v4206_v50 = vpack.c.bf16 %v4168_v12, %v4167_v53  ;;  %v13207_v14 = vsel %vm2394_vm3, %v2330_v32, -inf  ;;  %v3288_v4 = vld [vmem:[#allocation2 + $0x210] sm:$0xff] }
 0x2f4   : > { %15033 = vst [vmem:[#allocation75_spill] sm:$0xff] %v13192_v51  ;;  %v13194_v27 = vld [vmem:[#allocation2 + $0x208] sm:$0xff]  ;;  %v13202_v26 = vsel %vm2394_vm3, %v2333_v10, -inf  ;;  %v3325_v11 = vpack.c.bf16 %v3288_v4, %v4168_v12  ;;  %v10780_v51 = vld [vmem:[#allocation2 + $0xb8] sm:$0xff] }
 0x2f5   : > { %15034 = vst [vmem:[#allocation76_spill] sm:$0xff] %v13194_v27  ;;  %v13212_v0 = vsel %vm2394_vm3, %v2331_v28, -inf  ;;  %v9504_v47 = vpop.f32.mrb[196].mxu0  ;;  %9745 = vmatmul.mubr.msk.bf16.gmra.mrb[20].mxu1 %vm2394_vm3, %v4206_v50  ;;  %v4172_v32 = vld [vmem:[#allocation2 + $0x228] sm:$0xff] }
 0x2f6   : > { %v1908_v41 = vadd.f32 %v13140_v31, %v9504_v47  ;;  %v1899_v19 = vpop.f32.mrb[197].mxu0 }
 0x2f7   : > { %v1900_v17 = vadd.f32 %v13140_v31, %v1899_v19  ;;  %v9505_v9 = vpop.f32.mrb[198].mxu0 }
 0x2f8   : > { %v2336_v63 = vmax.f32 %v1908_v41, 0.0  ;;  %v1911_v2 = vadd.f32 %v13140_v31, %v9505_v9  ;;  %v1902_v46 = vpop.f32.mrb[199].mxu0 }
 0x2f9   : > { %v2334_v56 = vmax.f32 %v1900_v17, 0.0  ;;  %v1903_v54 = vadd.f32 %v13140_v31, %v1902_v46  ;;  %v4171_v1 = vld [vmem:[#allocation2 + $0x220] sm:$0xff] }
 0x2fa   : > { %v2337_v23 = vmax.f32 %v1911_v2, 0.0  ;;  %9613 = vmatmul.mubr.msk.bf16.gmra.mrb[48].mxu0 %vm2394_vm3, %v3324_v16  ;;  %v4170_v40 = vld [vmem:[#allocation2 + $0x218] sm:$0xff]  ;;  %v13225_v10 = vld [vmem:[#allocation2 + $0x220] sm:$0xff]  ;;  %v13231_v52 = vsel %vm2394_vm3, %v2336_v63, -inf  ;;  %v4208_v12 = vpack.c.bf16 %v4172_v32, %v4171_v1 }
 0x2fb   : > { %15035 = vst [vmem:[#allocation77_spill] sm:$0xff] %v13225_v10  ;;  %v13227_v28 = vld [vmem:[#allocation2 + $0x218] sm:$0xff]  ;;  %v2335_v50 = vmax.f32 %v1903_v54, 0.0  ;;  %9616 = vmatprep.mubr.msk.bf16.mxu0 %vm2394_vm3, %v3325_v11  ;;  %v4207_v47 = vpack.c.bf16 %v4170_v40, %v3288_v4  ;;  %v13237_v41 = vsel %vm2394_vm3, %v2334_v56, -inf }
 0x2fc   : > { %15036 = vst [vmem:[#allocation78_spill] sm:$0xff] %v13227_v28  ;;  %v13234_v53 = vsel %vm2394_vm3, %v2337_v23, -inf  ;;  %v3326_v23 = vpack.c.bf16 %v4171_v1, %v4170_v40 }
 0x2fd   : > { %v13242_v17 = vsel %vm2394_vm3, %v2335_v50, -inf  ;;  %v9508_v9 = vpop.f32.mrb[200].mxu0  ;;  %9748 = vmatprep.mubr.msk.bf16.mxu1 %vm2394_vm3, %v4207_v47 }
 0x2fe   : > { %v1924_v2 = vadd.f32 %v13140_v31, %v9508_v9  ;;  %v1915_v46 = vpop.f32.mrb[201].mxu0  ;;  %9749 = vmatmul.mubr.msk.bf16.gmra.mrb[24].mxu1 %vm2394_vm3, %v4208_v12 }
 0x2ff   : > { %v1916_v16 = vadd.f32 %v13140_v31, %v1915_v46  ;;  %v9509_v56 = vpop.f32.mrb[202].mxu0 }
 0x300   : > { %v2340_v54 = vmax.f32 %v1924_v2, 0.0  ;;  %v1927_v11 = vadd.f32 %v13140_v31, %v9509_v56  ;;  %v1918_v32 = vpop.f32.mrb[203].mxu0 }
 0x301   : > { %v2338_v50 = vmax.f32 %v1916_v16, 0.0  ;;  %v1919_v47 = vadd.f32 %v13140_v31, %v1918_v32 }
 0x302   : > { %v2341_v4 = vmax.f32 %v1927_v11, 0.0  ;;  %9617 = vmatmul.mubr.msk.bf16.gmra.mrb[52].mxu0 %vm2394_vm3, %v3326_v23  ;;  %v13256_v9 = vsel %vm2394_vm3, %v2340_v54, -inf }
 0x303   : > { %v2339_v43 = vmax.f32 %v1919_v47, 0.0  ;;  %v13262_v46 = vsel %vm2394_vm3, %v2338_v50, -inf }
 0x304   : > { %v13259_v12 = vsel %vm2394_vm3, %v2341_v4, -inf }
 0x305   : > { %v13267_v1 = vsel %vm2394_vm3, %v2339_v43, -inf  ;;  %v9512_v40 = vpop.f32.mrb[204].mxu0 }
 0x306   : > { %v1940_v56 = vadd.f32 %v13140_v31, %v9512_v40  ;;  %v1931_v54 = vpop.f32.mrb[205].mxu0 }
 0x307   : > { %v1932_v11 = vadd.f32 %v13140_v31, %v1931_v54  ;;  %v9513_v4 = vpop.f32.mrb[206].mxu0 }
 0x308   : > { %v2344_v32 = vmax.f32 %v1940_v56, 0.0  ;;  %v1943_v23 = vadd.f32 %v13140_v31, %v9513_v4  ;;  %v1934_v50 = vpop.f32.mrb[207].mxu0 }
 0x309   : > { %v2342_v47 = vmax.f32 %v1932_v11, 0.0  ;;  %v1935_v7 = vadd.f32 %v13140_v31, %v1934_v50 }
 0x30a   : > { %v2345_v25 = vmax.f32 %v1943_v23, 0.0  ;;  %v13276_v5 = vsel %vm2394_vm3, %v2344_v32, -inf }
 0x30b   : > { %v2343_v43 = vmax.f32 %v1935_v7, 0.0  ;;  %v13282_v40 = vsel %vm2394_vm3, %v2342_v47, -inf }
 0x30c   : > { %v13279_v8 = vsel %vm2394_vm3, %v2345_v25, -inf }
 0x30d   : > { %v13287_v54 = vsel %vm2394_vm3, %v2343_v43, -inf  ;;  %v9516_v11 = vpop.f32.mrb[208].mxu0 }
 0x30e   : > { %v1956_v7 = vadd.f32 %v13140_v31, %v9516_v11  ;;  %v1947_v32 = vpop.f32.mrb[209].mxu0 }
 0x30f   : > { %v1948_v23 = vadd.f32 %v13140_v31, %v1947_v32  ;;  %v9517_v25 = vpop.f32.mrb[210].mxu0 }
 0x310   : > { %v2348_v50 = vmax.f32 %v1956_v7, 0.0  ;;  %v1959_v47 = vadd.f32 %v13140_v31, %v9517_v25  ;;  %v1950_v57 = vpop.f32.mrb[211].mxu0 }
 0x311   : > { %v2346_v16 = vmax.f32 %v1948_v23, 0.0  ;;  %v1951_v56 = vadd.f32 %v13140_v31, %v1950_v57  ;;  %v15037_v23 = vmax.f32 %v13199_v20, %v13202_v26 }
 0x312   : > { %v2349_v2 = vmax.f32 %v1959_v47, 0.0  ;;  %v2710_v63 = vsel %vm2394_vm3, %v2348_v50, -inf }
 0x313   : > { %v2347_v43 = vmax.f32 %v1951_v56, 0.0  ;;  %v2707_v4 = vsel %vm2394_vm3, %v2346_v16, -inf  ;;  %v2926_v57 = vsel %vm2394_vm3, %v15037_v23, -inf  ;;  %v15038_v56 = vmax.f32 %v13207_v14, %v13212_v0 }
 0x314   : > { %v2711_v19 = vsel %vm2394_vm3, %v2349_v2, -inf }
 0x315   : > { %v2712_v11 = vmax.f32 %v2710_v63, %v2711_v19  ;;  %v2708_v37 = vsel %vm2394_vm3, %v2347_v43, -inf  ;;  %v9520_v32 = vpop.f32.mrb[212].mxu0  ;;  %v2923_v2 = vsel %vm2394_vm3, %v15038_v56, -inf }
 0x316   : > { %v2709_v38 = vmax.f32 %v2707_v4, %v2708_v37  ;;  %v1972_v7 = vadd.f32 %v13140_v31, %v9520_v32  ;;  %v1963_v25 = vpop.f32.mrb[213].mxu0 }
 0x317   : > { %v2927_v16 = vsel %vm2394_vm3, %v2712_v11, -inf  ;;  %v1964_v19 = vadd.f32 %v13140_v31, %v1963_v25  ;;  %v9521_v63 = vpop.f32.mrb[214].mxu0 }
 0x318   : > { %v2928_v50 = vmax.f32 %v2926_v57, %v2927_v16  ;;  %v2924_v37 = vsel %vm2394_vm3, %v2709_v38, -inf  ;;  %v2352_v4 = vmax.f32 %v1972_v7, 0.0  ;;  %v1975_v47 = vadd.f32 %v13140_v31, %v9521_v63  ;;  %v1966_v43 = vpop.f32.mrb[215].mxu0 }
 0x319   : > { %v2925_v20 = vmax.f32 %v2923_v2, %v2924_v37  ;;  %v2350_v26 = vmax.f32 %v1964_v19, 0.0  ;;  %v1967_v32 = vadd.f32 %v13140_v31, %v1966_v43  ;;  %v15039_v19 = vmax.f32 %v13231_v52, %v13234_v53 }
 0x31a   : > { %3121 = vst.msk [vmem:[#allocation2 + $0x240] sm:$0xff] %vm2394_vm3, %v2928_v50  ;;  %v2353_v14 = vmax.f32 %v1975_v47, 0.0  ;;  %v2716_v11 = vsel %vm2394_vm3, %v2352_v4, -inf  ;;  %v15040_v50 = vmax.f32 %v13237_v41, %v13242_v17 }
 0x31b   : > { %3120 = vst.msk [vmem:[#allocation2 + $0x238] sm:$0xff] %vm2394_vm3, %v2925_v20  ;;  %v2351_v0 = vmax.f32 %v1967_v32, 0.0  ;;  %v2713_v38 = vsel %vm2394_vm3, %v2350_v26, -inf  ;;  %v2932_v63 = vsel %vm2394_vm3, %v15039_v19, -inf }
 0x31c   : > { %v2717_v25 = vsel %vm2394_vm3, %v2353_v14, -inf  ;;  %v2929_v37 = vsel %vm2394_vm3, %v15040_v50, -inf }
 0x31d   : > { %v2718_v7 = vmax.f32 %v2716_v11, %v2717_v25  ;;  %v2714_v23 = vsel %vm2394_vm3, %v2351_v0, -inf  ;;  %v9524_v57 = vpop.f32.mrb[216].mxu0 }
 0x31e   : > { %v2715_v56 = vmax.f32 %v2713_v38, %v2714_v23  ;;  %v1988_v2 = vadd.f32 %v13140_v31, %v9524_v57  ;;  %v1979_v16 = vpop.f32.mrb[217].mxu0 }
 0x31f   : > { %v2933_v4 = vsel %vm2394_vm3, %v2718_v7, -inf  ;;  %v1980_v47 = vadd.f32 %v13140_v31, %v1979_v16  ;;  %v9525_v43 = vpop.f32.mrb[218].mxu0 }
 0x320   : > { %v2934_v20 = vmax.f32 %v2932_v63, %v2933_v4  ;;  %v2930_v26 = vsel %vm2394_vm3, %v2715_v56, -inf  ;;  %v2356_v32 = vmax.f32 %v1988_v2, 0.0  ;;  %v1991_v14 = vadd.f32 %v13140_v31, %v9525_v43  ;;  %v1982_v0 = vpop.f32.mrb[219].mxu0 }
 0x321   : > { %v2931_v52 = vmax.f32 %v2929_v37, %v2930_v26  ;;  %v2354_v53 = vmax.f32 %v1980_v47, 0.0  ;;  %v1983_v11 = vadd.f32 %v13140_v31, %v1982_v0  ;;  %v3292_v25 = vld [vmem:[#allocation2 + $0x240] sm:$0xff]  ;;  %v15041_v4 = vmax.f32 %v13256_v9, %v13259_v12 }
 0x322   : > { %3123 = vst.msk [vmem:[#allocation2 + $0x250] sm:$0xff] %vm2394_vm3, %v2934_v20  ;;  %v2357_v41 = vmax.f32 %v1991_v14, 0.0  ;;  %v13334_v17 = vld [vmem:[#allocation2 + $0x238] sm:$0xff]  ;;  %v2722_v23 = vsel %vm2394_vm3, %v2356_v32, -inf  ;;  %v15042_v43 = vmax.f32 %v13262_v46, %v13267_v1 }
 0x323   : > { %3122 = vst.msk [vmem:[#allocation2 + $0x248] sm:$0xff] %vm2394_vm3, %v2931_v52  ;;  %v2355_v38 = vmax.f32 %v1983_v11, 0.0  ;;  %v3327_v7 = vpack.c.bf16 %v3292_v25, %v13334_v17  ;;  %v2719_v56 = vsel %vm2394_vm3, %v2354_v53, -inf  ;;  %v2938_v47 = vsel %vm2394_vm3, %v15041_v4, -inf }
 0x324   : > { %v2723_v57 = vsel %vm2394_vm3, %v2357_v41, -inf  ;;  %v2935_v20 = vsel %vm2394_vm3, %v15042_v43, -inf }
 0x325   : > { %v2724_v2 = vmax.f32 %v2722_v23, %v2723_v57  ;;  %v2720_v16 = vsel %vm2394_vm3, %v2355_v38, -inf  ;;  %v9528_v19 = vpop.f32.mrb[220].mxu0  ;;  %9620 = vmatprep.mubr.msk.bf16.mxu0 %vm2394_vm3, %v3327_v7 }
 0x326   : > { %v2721_v63 = vmax.f32 %v2719_v56, %v2720_v16  ;;  %v2004_v50 = vadd.f32 %v13140_v31, %v9528_v19  ;;  %v1995_v37 = vpop.f32.mrb[221].mxu0  ;;  %v13363_v16 = vld [vmem:[#allocation2 + $0x240] sm:$0xff] }
 0x327   : > { %v2939_v26 = vsel %vm2394_vm3, %v2724_v2, -inf  ;;  %v1996_v32 = vadd.f32 %v13140_v31, %v1995_v37  ;;  %v9529_v14 = vpop.f32.mrb[222].mxu0  ;;  %15044 = vst [vmem:[#allocation80_spill] sm:$0xff] %v13363_v16 }
 0x328   : > { %v2940_v0 = vmax.f32 %v2938_v47, %v2939_v26  ;;  %v2936_v52 = vsel %vm2394_vm3, %v2721_v63, -inf  ;;  %v2360_v53 = vmax.f32 %v2004_v50, 0.0  ;;  %v2007_v11 = vadd.f32 %v13140_v31, %v9529_v14  ;;  %v1998_v41 = vpop.f32.mrb[223].mxu0 }
 0x329   : > { %v2937_v9 = vmax.f32 %v2935_v20, %v2936_v52  ;;  %v2358_v12 = vmax.f32 %v1996_v32, 0.0  ;;  %v1999_v38 = vadd.f32 %v13140_v31, %v1998_v41  ;;  %v3294_v7 = vld [vmem:[#allocation2 + $0x250] sm:$0xff]  ;;  %v15046_v32 = vmax.f32 %v13276_v5, %v13279_v8 }
 0x32a   : > { %3125 = vst.msk [vmem:[#allocation2 + $0x260] sm:$0xff] %vm2394_vm3, %v2940_v0  ;;  %v2361_v46 = vmax.f32 %v2007_v11, 0.0  ;;  %v3293_v1 = vld [vmem:[#allocation2 + $0x248] sm:$0xff]  ;;  %v2728_v19 = vsel %vm2394_vm3, %v2360_v53, -inf  ;;  %v15047_v0 = vmax.f32 %v13282_v40, %v13287_v54 }
 0x32b   : > { %v13358_v23 = vld [vmem:[#allocation2 + $0x248] sm:$0xff]  ;;  %3124 = vst.msk [vmem:[#allocation2 + $0x258] sm:$0xff] %vm2394_vm3, %v2937_v9  ;;  %v2359_v57 = vmax.f32 %v1999_v38, 0.0  ;;  %v3328_v56 = vpack.c.bf16 %v3294_v7, %v3293_v1  ;;  %v13361_v2 = vpack.c.bf16 %v3293_v1, %v3292_v25  ;;  %v2725_v37 = vsel %vm2394_vm3, %v2358_v12, -inf }
 0x32c   : > { %15043 = vst [vmem:[#allocation79_spill] sm:$0xff] %v13358_v23  ;;  %v2729_v63 = vsel %vm2394_vm3, %v2361_v46, -inf  ;;  %v13369_v50 = vpack.c.bf16 %v13358_v23, %v13363_v16  ;;  %v2944_v14 = vsel %vm2394_vm3, %v15046_v32, -inf  ;;  %v2941_v52 = vsel %vm2394_vm3, %v15047_v0, -inf  ;;  %v13544_v16 = vld [vmem:[#allocation2 + $0xb0] sm:$0xff] }
 0x32d   : > { %v2730_v4 = vmax.f32 %v2728_v19, %v2729_v63  ;;  %v2726_v47 = vsel %vm2394_vm3, %v2359_v57, -inf  ;;  %9621 = vmatmul.mubr.msk.bf16.gmra.mrb[56].mxu0 %vm2394_vm3, %v3328_v56  ;;  %9752 = vmatprep.mubr.msk.bf16.mxu1 %vm2394_vm3, %v13361_v2  ;;  %v9532_v25 = vpop.f32.mrb[224].mxu0  ;;  %v4741_v59 = vpack.c.bf16 %v10780_v51, %v13544_v16 }
 0x32e   : > { %15045 = vst [vmem:[#allocation81_spill] sm:$0xff] %v13369_v50  ;;  %v2727_v43 = vmax.f32 %v2725_v37, %v2726_v47  ;;  %v2020_v20 = vadd.f32 %v13140_v31, %v9532_v25  ;;  %v2011_v26 = vpop.f32.mrb[225].mxu0  ;;  %v4680_v50 = vld [vmem:[#allocation2 + $0xa0] sm:$0xff] }
 0x32f   : > { %v2945_v53 = vsel %vm2394_vm3, %v2730_v4, -inf  ;;  %v2012_v11 = vadd.f32 %v13140_v31, %v2011_v26  ;;  %v9533_v41 = vpop.f32.mrb[226].mxu0 }
 0x330   : > { %v2946_v9 = vmax.f32 %v2944_v14, %v2945_v53  ;;  %v2942_v12 = vsel %vm2394_vm3, %v2727_v43, -inf  ;;  %v2364_v38 = vmax.f32 %v2020_v20, 0.0  ;;  %v2023_v46 = vadd.f32 %v13140_v31, %v9533_v41  ;;  %v2014_v1 = vpop.f32.mrb[227].mxu0  ;;  %v13402_v43 = vld [vmem:[#allocation2 + $0x250] sm:$0xff]  ;;  %v3137_v41 = vld [vmem:[#allocation2 + $0x8] sm:$0xff] }
 0x331   : > { %v2943_v8 = vmax.f32 %v2941_v52, %v2942_v12  ;;  %v3296_v5 = vld [vmem:[#allocation2 + $0x260] sm:$0xff]  ;;  %v2362_v57 = vmax.f32 %v2012_v11, 0.0  ;;  %v2015_v56 = vadd.f32 %v13140_v31, %v2014_v1  ;;  %15049 = vst [vmem:[#allocation83_spill] sm:$0xff] %v13402_v43 }
 0x332   : > { %3127 = vst.msk [vmem:[#allocation2 + $0x270] sm:$0xff] %vm2394_vm3, %v2946_v9  ;;  %v3295_v40 = vld [vmem:[#allocation2 + $0x258] sm:$0xff]  ;;  %v13392_v54 = vsel %vm2394_vm3, %v2364_v38, -inf  ;;  %v2365_v19 = vmax.f32 %v2023_v46, 0.0  ;;  %v3136_v11 = vld [vmem:[#allocation2] sm:$0xff] }
 0x333   : > { %v13394_v63 = vld [vmem:[#allocation2 + $0x258] sm:$0xff]  ;;  %3126 = vst.msk [vmem:[#allocation2 + $0x268] sm:$0xff] %vm2394_vm3, %v2943_v8  ;;  %v3329_v37 = vpack.c.bf16 %v3296_v5, %v3295_v40  ;;  %v13397_v4 = vpack.c.bf16 %v3295_v40, %v3294_v7  ;;  %v13400_v47 = vsel %vm2394_vm3, %v2362_v57, -inf  ;;  %v2363_v25 = vmax.f32 %v2015_v56, 0.0  ;;  %v13435_v10 = vld [vmem:[#allocation2 + $0x260] sm:$0xff] }
 0x334   : > { %15048 = vst [vmem:[#allocation82_spill] sm:$0xff] %v13394_v63  ;;  %v13405_v20 = vsel %vm2394_vm3, %v2365_v19, -inf  ;;  %v13409_v26 = vpack.c.bf16 %v13394_v63, %v13402_v43  ;;  %v4180_v57 = vld [vmem:[#allocation2 + $0x278] sm:$0xff]  ;;  %15052 = vst [vmem:[#allocation86_spill] sm:$0xff] %v13435_v10 }
 0x335   : > { %9624 = vmatprep.mubr.msk.bf16.mxu0 %vm2394_vm3, %v3329_v37  ;;  %9753 = vmatmul.mubr.msk.bf16.gmra.mrb[28].mxu1 %vm2394_vm3, %v13397_v4  ;;  %v13417_v32 = vsel %vm2394_vm3, %v2363_v25, -inf  ;;  %v9536_v14 = vpop.f32.mrb[228].mxu0  ;;  %v4672_v37 = vld [vmem:[#allocation2 + $0x50] sm:$0xff]  ;;  %v3200_v25 = vpack.c.bf16 %v3137_v41, %v3136_v11 }
 0x336   : > { %15050 = vst [vmem:[#allocation84_spill] sm:$0xff] %v13409_v26  ;;  %v2036_v52 = vadd.f32 %v13140_v31, %v9536_v14  ;;  %v2027_v53 = vpop.f32.mrb[229].mxu0  ;;  %v15055_v51 = vmax.f32 %v13400_v47, %v13417_v32  ;;  %v13571_v32 = vld [vmem:[#allocation2 + $0xd8] sm:$0xff] }
 0x337   : > { %v2028_v9 = vadd.f32 %v13140_v31, %v2027_v53  ;;  %v9537_v12 = vpop.f32.mrb[230].mxu0 }
 0x338   : > { %v2368_v38 = vmax.f32 %v2036_v52, 0.0  ;;  %v2039_v46 = vadd.f32 %v13140_v31, %v9537_v12  ;;  %v2030_v1 = vpop.f32.mrb[231].mxu0 }
 0x339   : > { %v3298_v8 = vld [vmem:[#allocation2 + $0x270] sm:$0xff]  ;;  %v2366_v56 = vmax.f32 %v2028_v9, 0.0  ;;  %v2031_v40 = vadd.f32 %v13140_v31, %v2030_v1 }
 0x33a   : > { %v3297_v19 = vld [vmem:[#allocation2 + $0x268] sm:$0xff]  ;;  %v13426_v14 = vsel %vm2394_vm3, %v2368_v38, -inf  ;;  %v2369_v0 = vmax.f32 %v2039_v46, 0.0  ;;  %v4212_v9 = vpack.c.bf16 %v4180_v57, %v3298_v8  ;;  %v3139_v57 = vld [vmem:[#allocation2 + $0x18] sm:$0xff] }
 0x33b   : > { %v13428_v7 = vld [vmem:[#allocation2 + $0x268] sm:$0xff]  ;;  %v3330_v53 = vpack.c.bf16 %v3298_v8, %v3297_v19  ;;  %v13430_v28 = vpack.c.bf16 %v3297_v19, %v3296_v5  ;;  %v13433_v52 = vsel %vm2394_vm3, %v2366_v56, -inf  ;;  %v2367_v12 = vmax.f32 %v2031_v40, 0.0  ;;  %v10772_v5 = vld [vmem:[#allocation2 + $0x58] sm:$0xff]  ;;  %v3138_v8 = vld [vmem:[#allocation2 + $0x10] sm:$0xff] }
 0x33c   : > { %15051 = vst [vmem:[#allocation85_spill] sm:$0xff] %v13428_v7  ;;  %v13438_v1 = vsel %vm2394_vm3, %v2369_v0, -inf  ;;  %v13442_v11 = vpack.c.bf16 %v13428_v7, %v13435_v10  ;;  %v13447_v41 = vpack.c.bf16 %v10772_v5, %v4672_v37  ;;  %v3140_v37 = vld [vmem:[#allocation2 + $0x20] sm:$0xff]  ;;  %v13463_v27 = vpack.c.bf16 %v3139_v57, %v3138_v8  ;;  %v10775_v57 = vld [vmem:[#allocation2 + $0x70] sm:$0xff] }
 0x33d   : > { %9625 = vmatmul.mubr.msk.bf16.gmra.mrb[60].mxu0 %vm2394_vm3, %v3330_v53  ;;  %9756 = vmatprep.mubr.msk.bf16.mxu1 %vm2394_vm3, %v13430_v28  ;;  %v13452_v46 = vsel %vm2394_vm3, %v2367_v12, -inf  ;;  %v9540_v0 = vpop.f32.mrb[232].mxu0  ;;  %v3141_v53 = vld [vmem:[#allocation2 + $0x28] sm:$0xff]  ;;  %v10777_v10 = vld [vmem:[#allocation2 + $0x80] sm:$0xff] }
 0x33e   : > { %15053 = vst [vmem:[#allocation87_spill] sm:$0xff] %v13442_v11  ;;  %9757 = vmatmul.mubr.msk.bf16.gmra.mrb[32].mxu1 %vm2394_vm3, %v4212_v9  ;;  %9630 = vmatprep.mubr.msk.bf16.mxu0 %vm2394_vm3, %v3200_v25  ;;  %v2052_v40 = vadd.f32 %v13140_v31, %v9540_v0  ;;  %v2043_v19 = vpop.f32.mrb[233].mxu0  ;;  %v13466_v60 = vpack.c.bf16 %v3141_v53, %v3140_v37  ;;  %v10776_v37 = vld [vmem:[#allocation2 + $0x78] sm:$0xff] }
 0x33f   : > { %9762 = vmatprep.mubr.msk.bf16.mxu1 %vm2394_vm3, %v13447_v41  ;;  %v2044_v12 = vadd.f32 %v13140_v31, %v2043_v19  ;;  %v9541_v5 = vpop.f32.mrb[234].mxu0  ;;  %v13481_v53 = vpack.c.bf16 %v10776_v37, %v10775_v57 }
 0x340   : > { %v2372_v38 = vmax.f32 %v2052_v40, 0.0  ;;  %v2055_v9 = vadd.f32 %v13140_v31, %v9541_v5  ;;  %v2046_v25 = vpop.f32.mrb[235].mxu0  ;;  %v10774_v40 = vld [vmem:[#allocation2 + $0x68] sm:$0xff] }
 0x341   : > { %v2370_v13 = vmax.f32 %v2044_v12, 0.0  ;;  %v2047_v56 = vadd.f32 %v13140_v31, %v2046_v25  ;;  %v13474_v11 = vpack.c.bf16 %v10774_v40, %v10773_v15  ;;  %v13488_v12 = vld [vmem:[#allocation8 + $0x28] sm:$0xff]  }
 0x342   : > { %v13469_v0 = vsel %vm2394_vm3, %v2372_v38, -inf  ;;  %v2373_v24 = vmax.f32 %v2055_v9, 0.0  ;;  %v3142_v15 = vld [vmem:[#allocation2 + $0x30] sm:$0xff] }
 0x343   : > { %v13472_v21 = vsel %vm2394_vm3, %v2370_v13, -inf  ;;  %v2371_v19 = vmax.f32 %v2047_v56, 0.0 }
 0x344   : > { %v13477_v8 = vsel %vm2394_vm3, %v2373_v24, -inf  ;;  %v3143_v24 = vld [vmem:[#allocation2 + $0x38] sm:$0xff] }
 0x345   : > { %9631 = vmatmul.mubr.msk.bf16.vlgmr.msra.gmra.mrb[0].mxu0 %vm2394_vm3, %v13463_v27  ;;  %v13486_v13 = vsel %vm2394_vm3, %v2371_v19, -inf  ;;  %v9544_v56 = vpop.f32.mrb[236].mxu0  ;;  %v13504_v5 = vpack.c.bf16 %v3143_v24, %v3142_v15 }
 0x346   : > { %9763 = vmatmul.mubr.msk.bf16.vlgmr.msra.gmra.mrb[36].mxu1 %vm2394_vm3, %v13474_v11  ;;  %9634 = vmatprep.mubr.msk.bf16.mxu0 %vm2394_vm3, %v13466_v60  ;;  %v2068_v9 = vadd.f32 %v13140_v31, %v9544_v56  ;;  %v2059_v25 = vpop.f32.mrb[237].mxu0  ;;  %v13506_v56 = vld [vmem:[#allocation2 + $0x88] sm:$0xff] }
 0x347   : > { %9827 = vmatpush3.bf16.msra.mxu1 %v13022_v30  ;;  %9766 = vmatprep.mubr.msk.bf16.mxu1 %vm2394_vm3, %v13481_v53  ;;  %v2060_v19 = vadd.f32 %v13140_v31, %v2059_v25  ;;  %v9545_v40 = vpop.f32.mrb[238].mxu0 }
 0x348   : > { %v2376_v57 = vmax.f32 %v2068_v9, 0.0  ;;  %v2071_v37 = vadd.f32 %v13140_v31, %v9545_v40  ;;  %v2062_v38 = vpop.f32.mrb[239].mxu0  ;;  %9695 = vmatpush3.bf16.msra.mxu0 %v13011_v49  ;;  %9892 = vmatprep.subr.bf16.mxu1 %v13488_v12  ;;  %v13516_v49 = vpack.c.bf16 %v13506_v56, %v10777_v10 }
 0x349   : > { %v2374_v26 = vmax.f32 %v2060_v19, 0.0  ;;  %v2063_v30 = vadd.f32 %v13140_v31, %v2062_v38  ;;  %v10778_v38 = vld [vmem:[#allocation2 + $0xa8] sm:$0xff] }
 0x34a   : > { %v13510_v7 = vsel %vm2394_vm3, %v2376_v57, -inf  ;;  %v2377_v25 = vmax.f32 %v2071_v37, 0.0  ;;  %v13523_v24 = vpack.c.bf16 %v10778_v38, %v4680_v50 }
 0x34b   : > { %v13513_v9 = vsel %vm2394_vm3, %v2374_v26, -inf  ;;  %v2375_v40 = vmax.f32 %v2063_v30, 0.0 }
 0x34c   : > { %v13519_v15 = vsel %vm2394_vm3, %v2377_v25, -inf }
 0x34d   : > { %9635 = vmatmul.mubr.msk.bf16.gmra.mrb[4].mxu0 %vm2394_vm3, %v13504_v5  ;;  %v13528_v26 = vsel %vm2394_vm3, %v2375_v40, -inf  ;;  %v9548_v57 = vpop.f32.mrb[240].mxu0 }
 0x34e   : > { %9638 = vmatprep.mubr.msk.bf16.mxu0 %vm2394_vm3, %v13447_v41  ;;  %9767 = vmatmul.mubr.msk.bf16.gmra.mrb[40].mxu1 %vm2394_vm3, %v13516_v49  ;;  %v2084_v37 = vadd.f32 %v13140_v31, %v9548_v57  ;;  %v2075_v50 = vpop.f32.mrb[241].mxu0 }
 0x34f   : > { %9770 = vmatprep.mubr.msk.bf16.mxu1 %vm2394_vm3, %v13523_v24  ;;  %v2076_v30 = vadd.f32 %v13140_v31, %v2075_v50  ;;  %v9549_v25 = vpop.f32.mrb[242].mxu0 }
 0x350   : > { %v2380_v40 = vmax.f32 %v2084_v37, 0.0  ;;  %v2087_v38 = vadd.f32 %v13140_v31, %v9549_v25  ;;  %v2078_v19 = vpop.f32.mrb[243].mxu0  ;;  %v13550_v37 = vld [vmem:[#allocation2 + $0xc0] sm:$0xff]  ;;  %v15054_v25 = vmax.f32 %v13392_v54, %v13405_v20 }
 0x351   : > { %v2378_v41 = vmax.f32 %v2076_v30, 0.0  ;;  %v2079_v63 = vadd.f32 %v13140_v31, %v2078_v19  ;;  %v10782_v30 = vld [vmem:[#allocation2 + $0xc8] sm:$0xff] }
 0x352   : > { %v2758_v43 = vsel %vm2394_vm3, %v2380_v40, -inf  ;;  %v2381_v23 = vmax.f32 %v2087_v38, 0.0  ;;  %v4742_v19 = vpack.c.bf16 %v10782_v30, %v13550_v37 }
 0x353   : > { %v2755_v10 = vsel %vm2394_vm3, %v2378_v41, -inf  ;;  %v2379_v57 = vmax.f32 %v2079_v63, 0.0  ;;  %v2950_v63 = vsel %vm2394_vm3, %v15054_v25, -inf }
 0x354   : > { %v2759_v50 = vsel %vm2394_vm3, %v2381_v23, -inf  ;;  %v2947_v23 = vsel %vm2394_vm3, %v15055_v51, -inf  ;;  %v4688_v51 = vld [vmem:[#allocation2 + $0xf0] sm:$0xff] }
 0x355   : > { %9639 = vmatmul.mubr.msk.bf16.gmra.mrb[8].mxu0 %vm2394_vm3, %v13474_v11  ;;  %v2760_v40 = vmax.f32 %v2758_v43, %v2759_v50  ;;  %v2756_v38 = vsel %vm2394_vm3, %v2379_v57, -inf  ;;  %v9552_v41 = vpop.f32.mrb[244].mxu0 }
 0x356   : > { %9642 = vmatprep.mubr.msk.bf16.mxu0 %vm2394_vm3, %v13481_v53  ;;  %9771 = vmatmul.mubr.msk.bf16.gmra.mrb[44].mxu1 %vm2394_vm3, %v4741_v59  ;;  %v2757_v30 = vmax.f32 %v2755_v10, %v2756_v38  ;;  %v2100_v35 = vadd.f32 %v13140_v31, %v9552_v41  ;;  %v2091_v54 = vpop.f32.mrb[245].mxu0 }
 0x357   : > { %9774 = vmatprep.mubr.msk.bf16.mxu1 %vm2394_vm3, %v4742_v19  ;;  %v2951_v43 = vsel %vm2394_vm3, %v2760_v40, -inf  ;;  %v2092_v20 = vadd.f32 %v13140_v31, %v2091_v54  ;;  %v9553_v57 = vpop.f32.mrb[246].mxu0 }
 0x358   : > { %v2952_v50 = vmax.f32 %v2950_v63, %v2951_v43  ;;  %v2948_v25 = vsel %vm2394_vm3, %v2757_v30, -inf  ;;  %v2384_v59 = vmax.f32 %v2100_v35, 0.0  ;;  %v2103_v42 = vadd.f32 %v13140_v31, %v9553_v57  ;;  %v2094_v47 = vpop.f32.mrb[247].mxu0  ;;  %v10783_v30 = vld [vmem:[#allocation2 + $0xd0] sm:$0xff] }
 0x359   : > { %v2949_v10 = vmax.f32 %v2947_v23, %v2948_v25  ;;  %v2382_v38 = vmax.f32 %v2092_v20, 0.0  ;;  %v2095_v41 = vadd.f32 %v13140_v31, %v2094_v47  ;;  %v13579_v54 = vpack.c.bf16 %v13571_v32, %v10783_v30 }
 0x35a   : > { %3129 = vst.msk [vmem:[#allocation2 + $0x290] sm:$0xff] %vm2394_vm3, %v2952_v50  ;;  %v2764_v19 = vsel %vm2394_vm3, %v2384_v59, -inf  ;;  %v2385_v40 = vmax.f32 %v2103_v42, 0.0  ;;  %v15056_v43 = vmax.f32 %v13426_v14, %v13438_v1  ;;  %v10784_v42 = vld [vmem:[#allocation2 + $0xf8] sm:$0xff]  ;;  %v15057_v47 = vmax.f32 %v13433_v52, %v13452_v46 }
 0x35b   : > { %3128 = vst.msk [vmem:[#allocation2 + $0x288] sm:$0xff] %vm2394_vm3, %v2949_v10  ;;  %v2761_v63 = vsel %vm2394_vm3, %v2382_v38, -inf  ;;  %v2383_v35 = vmax.f32 %v2095_v41, 0.0  ;;  %v13588_v57 = vpack.c.bf16 %v10784_v42, %v4688_v51 }
 0x35c   : > { %v2765_v23 = vsel %vm2394_vm3, %v2385_v40, -inf  ;;  %v2956_v20 = vsel %vm2394_vm3, %v15056_v43, -inf  ;;  %v2953_v10 = vsel %vm2394_vm3, %v15057_v47, -inf }
 0x35d   : > { %9643 = vmatmul.mubr.msk.bf16.gmra.mrb[12].mxu0 %vm2394_vm3, %v13516_v49  ;;  %v2766_v50 = vmax.f32 %v2764_v19, %v2765_v23  ;;  %v2762_v25 = vsel %vm2394_vm3, %v2383_v35, -inf  ;;  %v9556_v59 = vpop.f32.mrb[248].mxu0 }
 0x35e   : > { %9646 = vmatprep.mubr.msk.bf16.mxu0 %vm2394_vm3, %v13523_v24  ;;  %9775 = vmatmul.mubr.msk.bf16.gmra.mrb[48].mxu1 %vm2394_vm3, %v13579_v54  ;;  %v2763_v14 = vmax.f32 %v2761_v63, %v2762_v25  ;;  %v2116_v1 = vadd.f32 %v13140_v31, %v9556_v59  ;;  %v2107_v38 = vpop.f32.mrb[249].mxu0 }
 0x35f   : > { %9778 = vmatprep.mubr.msk.bf16.mxu1 %vm2394_vm3, %v13588_v57  ;;  %v2957_v41 = vsel %vm2394_vm3, %v2766_v50, -inf  ;;  %v2108_v51 = vadd.f32 %v13140_v31, %v2107_v38  ;;  %v9557_v52 = vpop.f32.mrb[250].mxu0 }
 0x360   : > { %v2958_v46 = vmax.f32 %v2956_v20, %v2957_v41  ;;  %v2954_v19 = vsel %vm2394_vm3, %v2763_v14, -inf  ;;  %v2388_v40 = vmax.f32 %v2116_v1, 0.0  ;;  %v2119_v24 = vadd.f32 %v13140_v31, %v9557_v52  ;;  %v2110_v35 = vpop.f32.mrb[251].mxu0  ;;  %v13613_v20 = vld [vmem:[#allocation2 + $0xb8] sm:$0xff]  ;;  %v13623_v1 = vld [vmem:[#allocation2 + $0xc8] sm:$0xff]  ;;  %v10787_v41 = vld [vmem:[#allocation2 + $0x100] sm:$0xff] }
 0x361   : > { %v2955_v30 = vmax.f32 %v2953_v10, %v2954_v19  ;;  %v2386_v63 = vmax.f32 %v2108_v51, 0.0  ;;  %v2111_v23 = vadd.f32 %v13140_v31, %v2110_v35  ;;  %v13607_v43 = vld [vmem:[#allocation2 + $0x290] sm:$0xff]  ;;  %v13617_v59 = vpack.c.bf16 %v13613_v20, %v13544_v16  ;;  %v10788_v51 = vld [vmem:[#allocation2 + $0x108] sm:$0xff] }
 0x362   : > { %3131 = vst.msk [vmem:[#allocation2 + $0x2a0] sm:$0xff] %vm2394_vm3, %v2958_v46  ;;  %v2770_v42 = vsel %vm2394_vm3, %v2388_v40, -inf  ;;  %v2389_v50 = vmax.f32 %v2119_v24, 0.0  ;;  %v13611_v25 = vld [vmem:[#allocation2 + $0x288] sm:$0xff]  ;;  %v13627_v38 = vpack.c.bf16 %v13623_v1, %v13550_v37  ;;  %v13629_v52 = vpack.c.bf16 %v10788_v51, %v10787_v41  ;;  %v10789_v40 = vld [vmem:[#allocation2 + $0x110] sm:$0xff]  ;;  %v10790_v24 = vld [vmem:[#allocation2 + $0x118] sm:$0xff] }
 0x363   : > { %3130 = vst.msk [vmem:[#allocation2 + $0x298] sm:$0xff] %vm2394_vm3, %v2955_v30  ;;  %v2767_v47 = vsel %vm2394_vm3, %v2386_v63, -inf  ;;  %v2387_v10 = vmax.f32 %v2111_v23, 0.0  ;;  %v15058_v46 = vmax.f32 %v13469_v0, %v13477_v8  ;;  %v13638_v35 = vpack.c.bf16 %v10790_v24, %v10789_v40  ;;  %v13656_v24 = vld [vmem:[#allocation2 + $0x128] sm:$0xff]  ;;  %v13661_v14 = vld [vmem:[#allocation2 + $0x290] sm:$0xff] }
 0x364   : > { %v2771_v16 = vsel %vm2394_vm3, %v2389_v50, -inf  ;;  %v15059_v23 = vmax.f32 %v13472_v21, %v13486_v13 }
 0x365   : > { %v2962_v19 = vsel %vm2394_vm3, %v15058_v46, -inf  ;;  %9647 = vmatmul.mubr.msk.bf16.gmra.mrb[16].mxu0 %vm2394_vm3, %v13617_v59  ;;  %v2772_v37 = vmax.f32 %v2770_v42, %v2771_v16  ;;  %v2768_v30 = vsel %vm2394_vm3, %v2387_v10, -inf  ;;  %v9560_v63 = vpop.f32.mrb[252].mxu0 }
 0x366   : > { %v2959_v50 = vsel %vm2394_vm3, %v15059_v23, -inf  ;;  %9650 = vmatprep.mubr.msk.bf16.mxu0 %vm2394_vm3, %v13627_v38  ;;  %9779 = vmatmul.mubr.msk.bf16.gmra.mrb[52].mxu1 %vm2394_vm3, %v13629_v52  ;;  %v2769_v0 = vmax.f32 %v2767_v47, %v2768_v30  ;;  %v2132_v8 = vadd.f32 %v13140_v31, %v9560_v63  ;;  %v2123_v41 = vpop.f32.mrb[253].mxu0 }
 0x367   : > { %9782 = vmatprep.mubr.msk.bf16.mxu1 %vm2394_vm3, %v13638_v35  ;;  %v2963_v42 = vsel %vm2394_vm3, %v2772_v37, -inf  ;;  %v2124_v10 = vadd.f32 %v13140_v31, %v2123_v41  ;;  %v9561_v21 = vpop.f32.mrb[254].mxu0  ;;  %v4696_v37 = vld [vmem:[#allocation2 + $0x140] sm:$0xff] }
 0x368   : > { %v2964_v13 = vmax.f32 %v2962_v19, %v2963_v42  ;;  %v2960_v51 = vsel %vm2394_vm3, %v2769_v0, -inf  ;;  %v2392_v16 = vmax.f32 %v2132_v8, 0.0  ;;  %v2135_v46 = vadd.f32 %v13140_v31, %v9561_v21  ;;  %v2126_v40 = vpop.f32.mrb[255].mxu0 }
 0x369   : > { %v2961_v47 = vmax.f32 %v2959_v50, %v2960_v51  ;;  %v2390_v30 = vmax.f32 %v2124_v10, 0.0  ;;  %v2127_v63 = vadd.f32 %v13140_v31, %v2126_v40  ;;  %v13659_v23 = vld [vmem:[#allocation2 + $0x2a0] sm:$0xff]  ;;  %v10792_v40 = vld [vmem:[#allocation2 + $0x148] sm:$0xff] }
 0x36a   : > { %3133 = vst.msk [vmem:[#allocation2 + $0x2b0] sm:$0xff] %vm2394_vm3, %v2964_v13  ;;  %v2776_v19 = vsel %vm2394_vm3, %v2392_v16, -inf  ;;  %v2393_v0 = vmax.f32 %v2135_v46, 0.0  ;;  %v13665_v8 = vld [vmem:[#allocation2 + $0x298] sm:$0xff]  ;;  %v10791_v10 = vld [vmem:[#allocation2 + $0x120] sm:$0xff]  ;;  %v15060_v16 = vmax.f32 %v13510_v7, %v13519_v15  ;;  %v10800_v51 = vld [vmem:[#allocation2 + $0x1a8] sm:$0xff] }
 0x36b   : > { %v13667_v41 = vld [vmem:[#allocation2 + $0x298] sm:$0xff]  ;;  %3132 = vst.msk [vmem:[#allocation2 + $0x2a8] sm:$0xff] %vm2394_vm3, %v2961_v47  ;;  %v2773_v50 = vsel %vm2394_vm3, %v2390_v30, -inf  ;;  %v2391_v42 = vmax.f32 %v2127_v63, 0.0  ;;  %v13674_v21 = vpack.c.bf16 %v13656_v24, %v10791_v10  ;;  %v4748_v47 = vpack.c.bf16 %v10792_v40, %v4696_v37 }
 0x36c   : > { %v2777_v13 = vsel %vm2394_vm3, %v2393_v0, -inf  ;;  %v2968_v46 = vsel %vm2394_vm3, %v15060_v16, -inf  ;;  %v15061_v10 = vmax.f32 %v13513_v9, %v13528_v26  ;;  %v10794_v40 = vld [vmem:[#allocation2 + $0x158] sm:$0xff]  ;;  %v10799_v16 = vld [vmem:[#allocation2 + $0x1a0] sm:$0xff] }
 0x36d   : > { %9651 = vmatmul.mubr.msk.bf16.gmra.mrb[20].mxu0 %vm2394_vm3, %v13579_v54  ;;  %v2778_v30 = vmax.f32 %v2776_v19, %v2777_v13  ;;  %v2774_v63 = vsel %vm2394_vm3, %v2391_v42, -inf  ;;  %v13697_v42 = vld [vmem:[#allocation2 + $0x2a0] sm:$0xff] }
 0x36e   : > { %v2965_v0 = vsel %vm2394_vm3, %v15061_v10, -inf  ;;  %9654 = vmatprep.mubr.msk.bf16.mxu0 %vm2394_vm3, %v13588_v57  ;;  %9783 = vmatmul.mubr.msk.bf16.gmra.mrb[56].mxu1 %vm2394_vm3, %v13674_v21  ;;  %v2775_v7 = vmax.f32 %v2773_v50, %v2774_v63  ;;  %15062 = vst [vmem:[#allocation88_spill] sm:$0xff] %v13697_v42  ;;  %v10795_v63 = vld [vmem:[#allocation2 + $0x160] sm:$0xff]  ;;  %v10796_v10 = vld [vmem:[#allocation2 + $0x168] sm:$0xff]  ;;  %v13740_v50 = vpack.c.bf16 %v10800_v51, %v10799_v16 }
 0x36f   : > { %9786 = vmatprep.mubr.msk.bf16.mxu1 %vm2394_vm3, %v4748_v47  ;;  %v2969_v15 = vsel %vm2394_vm3, %v2778_v30, -inf  ;;  %v4712_v51 = vld [vmem:[#allocation2 + $0x1e0] sm:$0xff] }
 0x370   : > { %v2970_v37 = vmax.f32 %v2968_v46, %v2969_v15  ;;  %v2966_v19 = vsel %vm2394_vm3, %v2775_v7, -inf  ;;  %v10793_v46 = vld [vmem:[#allocation2 + $0x150] sm:$0xff]  ;;  %v13725_v15 = vld [vmem:[#allocation2 + $0x178] sm:$0xff]  ;;  %v10803_v16 = vld [vmem:[#allocation2 + $0x1c0] sm:$0xff] }
 0x371   : > { %v2967_v13 = vmax.f32 %v2965_v0, %v2966_v19  ;;  %v13699_v9 = vld [vmem:[#allocation2 + $0x2b0] sm:$0xff]  ;;  %v13711_v30 = vpack.c.bf16 %v10794_v40, %v10793_v46  ;;  %v13715_v0 = vpack.c.bf16 %v10796_v10, %v10795_v63  ;;  %v10798_v63 = vld [vmem:[#allocation2 + $0x198] sm:$0xff] }
 0x372   : > { %3135 = vst.msk [vmem:[#allocation2 + $0x2c0] sm:$0xff] %vm2394_vm3, %v2970_v37  ;;  %v13702_v26 = vld [vmem:[#allocation2 + $0x2a8] sm:$0xff]  ;;  %v13723_v7 = vld [vmem:[#allocation2 + $0x2b0] sm:$0xff] }
 0x373   : > { %v13704_v57 = vld [vmem:[#allocation2 + $0x2a8] sm:$0xff]  ;;  %3134 = vst.msk [vmem:[#allocation2 + $0x2b8] sm:$0xff] %vm2394_vm3, %v2967_v13  ;;  %15064 = vst [vmem:[#allocation90_spill] sm:$0xff] %v13723_v7  ;;  %v4704_v37 = vld [vmem:[#allocation2 + $0x190] sm:$0xff] }
 0x374   : > { %15063 = vst [vmem:[#allocation89_spill] sm:$0xff] %v13704_v57  ;;  %v10797_v46 = vld [vmem:[#allocation2 + $0x170] sm:$0xff]  ;;  %v4752_v10 = vpack.c.bf16 %v10798_v63, %v4704_v37  ;;  %v10802_v13 = vld [vmem:[#allocation2 + $0x1b8] sm:$0xff]  ;;  %v10808_v57 = vld [vmem:[#allocation2 + $0x208] sm:$0xff] }
 0x375   : > { %9655 = vmatmul.mubr.msk.bf16.gmra.mrb[24].mxu0 %vm2394_vm3, %v13629_v52  ;;  %v13732_v40 = vpack.c.bf16 %v13725_v15, %v10797_v46  ;;  %v10801_v46 = vld [vmem:[#allocation2 + $0x1b0] sm:$0xff] }
 0x376   : > { %9658 = vmatprep.mubr.msk.bf16.mxu0 %vm2394_vm3, %v13638_v35  ;;  %9787 = vmatmul.mubr.msk.bf16.gmra.mrb[60].mxu1 %vm2394_vm3, %v13711_v30  ;;  %v13744_v31 = vpack.c.bf16 %v10802_v13, %v10801_v46  ;;  %v10804_v13 = vld [vmem:[#allocation2 + $0x1e8] sm:$0xff]  ;;  %v10805_v46 = vld [vmem:[#allocation2 + $0x1f0] sm:$0xff] }
 0x377   : > { %9790 = vmatprep.mubr.msk.bf16.mxu1 %vm2394_vm3, %v13715_v0  ;;  %v4756_v63 = vpack.c.bf16 %v10804_v13, %v4712_v51  ;;  %v10809_v51 = vld [vmem:[#allocation2 + $0x210] sm:$0xff] }
 0x37a   : > { %v13727_v19 = vld [vmem:[#allocation2 + $0x2b8] sm:$0xff] }
 0x37b   : > { %15065 = vst [vmem:[#allocation91_spill] sm:$0xff] %v13727_v19  ;;  %v10806_v19 = vld [vmem:[#allocation2 + $0x1f8] sm:$0xff] }
 0x37c   : > { %v13763_v7 = vpack.c.bf16 %v10806_v19, %v10805_v46  ;;  %v4720_v19 = vld [vmem:[#allocation2 + $0x230] sm:$0xff]  ;;  %v13804_v46 = vpack.c.bf16 %v13665_v8, %v13607_v43 }
 0x37d   : > { %9659 = vmatmul.mubr.msk.bf16.gmra.mrb[28].mxu0 %vm2394_vm3, %v13674_v21 }
 0x37e   : > { %9662 = vmatprep.mubr.msk.bf16.mxu0 %vm2394_vm3, %v4748_v47  ;;  %9791 = vmatmul.mubr.msk.bf16.gmra.mrb[0].mxu1 %vm2394_vm3, %v13732_v40  ;;  %v13752_v47 = vld [vmem:[#allocation2 + $0x1c8] sm:$0xff] }
 0x37f   : > { %9794 = vmatprep.mubr.msk.bf16.mxu1 %vm2394_vm3, %v4752_v10  ;;  %v13755_v37 = vpack.c.bf16 %v13752_v47, %v10803_v16  ;;  %v10807_v16 = vld [vmem:[#allocation2 + $0x200] sm:$0xff] }
 0x380   : > { %v13767_v42 = vpack.c.bf16 %v10808_v57, %v10807_v16  ;;  %v4760_v57 = vpack.c.bf16 %v13334_v17, %v4720_v19  ;;  %v4728_v17 = vld [vmem:[#allocation2 + $0x280] sm:$0xff]  ;;  %v13810_v16 = vpack.c.bf16 %v13702_v26, %v13659_v23  ;;  %v13818_v19 = vld [vmem:[#allocation2 + $0x2b8] sm:$0xff] }
 0x385   : > { %9663 = vmatmul.mubr.msk.bf16.gmra.mrb[32].mxu0 %vm2394_vm3, %v13711_v30 }
 0x386   : > { %9666 = vmatprep.mubr.msk.bf16.mxu0 %vm2394_vm3, %v13715_v0  ;;  %9795 = vmatmul.mubr.msk.bf16.gmra.mrb[4].mxu1 %vm2394_vm3, %v13740_v50 }
 0x387   : > { %9798 = vmatprep.mubr.msk.bf16.mxu1 %vm2394_vm3, %v13744_v31 }
 0x38d   : > { %9667 = vmatmul.mubr.msk.bf16.gmra.mrb[36].mxu0 %vm2394_vm3, %v13732_v40 }
 0x38e   : > { %9670 = vmatprep.mubr.msk.bf16.mxu0 %vm2394_vm3, %v4752_v10  ;;  %9799 = vmatmul.mubr.msk.bf16.gmra.mrb[8].mxu1 %vm2394_vm3, %v13755_v37  ;;  %v13775_v10 = vld [vmem:[#allocation2 + $0x218] sm:$0xff] }
 0x38f   : > { %9802 = vmatprep.mubr.msk.bf16.mxu1 %vm2394_vm3, %v4756_v63  ;;  %v13778_v13 = vpack.c.bf16 %v13775_v10, %v10809_v51  ;;  %v13822_v51 = vpack.c.bf16 %v13818_v19, %v13699_v9 }
 0x395   : > { %9671 = vmatmul.mubr.msk.bf16.gmra.mrb[40].mxu0 %vm2394_vm3, %v13740_v50 }
 0x396   : > { %9674 = vmatprep.mubr.msk.bf16.mxu0 %vm2394_vm3, %v13744_v31  ;;  %9803 = vmatmul.mubr.msk.bf16.gmra.mrb[12].mxu1 %vm2394_vm3, %v13763_v7 }
 0x397   : > { %9806 = vmatprep.mubr.msk.bf16.mxu1 %vm2394_vm3, %v13767_v42 }
 0x39d   : > { %9675 = vmatmul.mubr.msk.bf16.gmra.mrb[44].mxu0 %vm2394_vm3, %v13755_v37 }
 0x39e   : > { %9678 = vmatprep.mubr.msk.bf16.mxu0 %vm2394_vm3, %v4756_v63  ;;  %9807 = vmatmul.mubr.msk.bf16.gmra.mrb[16].mxu1 %vm2394_vm3, %v13778_v13  ;;  %v4764_v63 = vpack.c.bf16 %v13611_v25, %v4728_v17  ;;  %v15082_v17 = vld [vmem:[#allocation43_spill] sm:$0xff] }
 0x39f   : > { %9810 = vmatprep.mubr.msk.bf16.mxu1 %vm2394_vm3, %v4760_v57 }
 0x3a5   : > { %9679 = vmatmul.mubr.msk.bf16.gmra.mrb[48].mxu0 %vm2394_vm3, %v13763_v7 }
 0x3a6   : > { %9682 = vmatprep.mubr.msk.bf16.mxu0 %vm2394_vm3, %v13767_v42  ;;  %9811 = vmatmul.mubr.msk.bf16.gmra.mrb[20].mxu1 %vm2394_vm3, %v13361_v2 }
 0x3a7   : > { %9814 = vmatprep.mubr.msk.bf16.mxu1 %vm2394_vm3, %v13397_v4 }
 0x3ad   : > { %9683 = vmatmul.mubr.msk.bf16.gmra.mrb[52].mxu0 %vm2394_vm3, %v13778_v13 }
 0x3ae   : > { %9686 = vmatprep.mubr.msk.bf16.mxu0 %vm2394_vm3, %v4760_v57  ;;  %9815 = vmatmul.mubr.msk.bf16.gmra.mrb[24].mxu1 %vm2394_vm3, %v13430_v28  ;;  %v15067_v57 = vpack.c.bf16 %v11875_v58, %v11880_v36  ;;  %v15069_v36 = vpack.c.bf16 %v12069_v48, %v12076_v62  ;;  %v10810_v62 = vld [vmem:[#allocation2 + $0xe0] sm:$0xff] }
 0x3af   : > { %9818 = vmatprep.mubr.msk.bf16.mxu1 %vm2394_vm3, %v4764_v63  ;;  %v15083_v63 = vld [vmem:[#allocation45_spill] sm:$0xff] }
 0x3b5   : > { %9687 = vmatmul.mubr.msk.bf16.gmra.mrb[56].mxu0 %vm2394_vm3, %v13361_v2  ;;  %v15066_v2 = vpack.c.bf16 %v11843_v33, %v11848_v61  ;;  %v15068_v33 = vpack.c.bf16 %v11907_v22, %v11911_v3  ;;  %v15070_v22 = vpack.c.bf16 %v12108_v18, %v12112_v39  ;;  %v15071_v3 = vpack.c.bf16 %v12147_v29, %v12151_v55  ;;  %v15073_v39 = vld [vmem:[#allocation29_spill] sm:$0xff]  ;;  %v15074_v29 = vld [vmem:[#allocation31_spill] sm:$0xff] }
 0x3b6   : > { %9690 = vmatprep.mubr.msk.bf16.mxu0 %vm2394_vm3, %v13397_v4  ;;  %9819 = vmatmul.mubr.msk.bf16.gmra.mrb[28].mxu1 %vm2394_vm3, %v13804_v46  ;;  %v13834_v4 = vld [vmem:[#allocation8 + $0x30] sm:$0xff]   ;;  %v15072_v18 = vpack.c.bf16 %v12321_v34, %v12328_v45  ;;  %v15075_v55 = vpack.c.bf16 %v15073_v39, %v15074_v29  ;;  %v15097_v39 = vpack.c.bf16 %v13103_v6, %v13112_v44  ;;  %v15098_v29 = vld [vmem:[#allocation69_spill] sm:$0xff] }
 0x3b7   : > { %9822 = vmatprep.mubr.msk.bf16.mxu1 %vm2394_vm3, %v13810_v16  ;;  %v13897_v45 = vld [vmem:[#allocation2 + $0x130] sm:$0xff] }
 0x3b8   : > { %v15104_v6 = vld [vmem:[#allocation80_spill] sm:$0xff] }
 0x3bd   : > { %9691 = vmatmul.mubr.msk.bf16.gmra.mrb[60].mxu0 %vm2394_vm3, %v13430_v28  ;;  %v4123_v28 = vld [vmem:[#allocation2 + $0x40] sm:$0xff] }
 0x3be   : > { %9823 = vmatmul.mubr.msk.bf16.gmra.mrb[32].mxu1 %vm2394_vm3, %v13822_v51  ;;  %9696 = vmatprep.mubr.msk.bf16.mxu0 %vm2394_vm3, %v13463_v27  ;;  %v4124_v27 = vld [vmem:[#allocation2 + $0x48] sm:$0xff] }
 0x3bf   : > { %9828 = vmatprep.mubr.msk.bf16.mxu1 %vm2394_vm3, %v15066_v2  ;;  %v4184_v61 = vpack.c.bf16 %v4124_v27, %v4123_v28  ;;  %v15084_v2 = vpack.c.bf16 %v15082_v17, %v15083_v63  ;;  %v13920_v27 = vld [vmem:[#allocation2 + $0x180] sm:$0xff] }
 0x3c0   : > { %v15107_v63 = vld [vmem:[#allocation82_spill] sm:$0xff] }
 0x3c5   : > { %9697 = vmatmul.mubr.msk.bf16.vlgmr.msra.gmra.mrb[0].mxu0 %vm2394_vm3, %v13466_v60  ;;  %v5233_v60 = vld [vmem:[#allocation2 + $0x90] sm:$0xff] }
 0x3c6   : > { %9829 = vmatmul.mubr.msk.bf16.vlgmr.msra.gmra.mrb[36].mxu1 %vm2394_vm3, %v15067_v57  ;;  %9700 = vmatprep.mubr.msk.bf16.mxu0 %vm2394_vm3, %v13504_v5  ;;  %v5293_v58 = vpack.c.bf16 %v5233_v60, %v13506_v56  ;;  %v15077_v5 = vld [vmem:[#allocation34_spill] sm:$0xff]  ;;  %v15086_v57 = vld [vmem:[#allocation49_spill] sm:$0xff] }
 0x3c7   : > { %9893 = vmatpush3.bf16.msra.mxu1 %v13488_v12  ;;  %9832 = vmatprep.mubr.msk.bf16.mxu1 %vm2394_vm3, %v15068_v33  ;;  %v5297_v12 = vpack.c.bf16 %v10810_v62, %v13571_v32  ;;  %v5301_v32 = vpack.c.bf16 %v13897_v45, %v13656_v24  ;;  %v15085_v24 = vld [vmem:[#allocation47_spill] sm:$0xff]  ;;  %v5305_v33 = vpack.c.bf16 %v13920_v27, %v13725_v15 }
 0x3c8   : > { %9958 = vmatprep.subr.bf16.mxu1 %v13834_v4  ;;  %v15087_v28 = vpack.c.bf16 %v15085_v24, %v15086_v57  ;;  %v15109_v57 = vld [vmem:[#allocation85_spill] sm:$0xff] }
 0x3cd   : > { %9701 = vmatmul.mubr.msk.bf16.gmra.mrb[4].mxu0 %vm2394_vm3, %v4184_v61  ;;  %v15088_v61 = vld [vmem:[#allocation53_spill] sm:$0xff] }
 0x3ce   : > { %9704 = vmatprep.mubr.msk.bf16.mxu0 %vm2394_vm3, %v13474_v11  ;;  %9833 = vmatmul.mubr.msk.bf16.gmra.mrb[40].mxu1 %vm2394_vm3, %v5293_v58  ;;  %v4132_v11 = vld [vmem:[#allocation2 + $0x98] sm:$0xff] }
 0x3cf   : > { %9836 = vmatprep.mubr.msk.bf16.mxu1 %vm2394_vm3, %v15069_v36  ;;  %v13871_v48 = vpack.c.bf16 %v4132_v11, %v5233_v60  ;;  %v15089_v60 = vld [vmem:[#allocation55_spill] sm:$0xff]  ;;  %v15091_v36 = vld [vmem:[#allocation57_spill] sm:$0xff] }
 0x3d0   : > { %v15090_v58 = vpack.c.bf16 %v15088_v61, %v15089_v60  ;;  %v15094_v11 = vld [vmem:[#allocation61_spill] sm:$0xff]  ;;  %v15111_v61 = vpack.c.bf16 %v13659_v23, %v13665_v8  ;;  %v15112_v60 = vpack.c.bf16 %v13699_v9, %v13702_v26  ;;  %v5786_v23 = vld [vmem:[#allocation2 + $0x88] sm:$0xff]  ;;  %v5783_v8 = vld [vmem:[#allocation2 + $0x70] sm:$0xff] }
 0x3d1   : > { %v14005_v9 = vld [vmem:[#allocation8 + $0x38] sm:$0xff]  }
 0x3d5   : > { %9705 = vmatmul.mubr.msk.bf16.gmra.mrb[8].mxu0 %vm2394_vm3, %v13481_v53  ;;  %v15076_v53 = vld [vmem:[#allocation33_spill] sm:$0xff] }
 0x3d6   : > { %9708 = vmatprep.mubr.msk.bf16.mxu0 %vm2394_vm3, %v13516_v49  ;;  %9837 = vmatmul.mubr.msk.bf16.gmra.mrb[44].mxu1 %vm2394_vm3, %v15070_v22  ;;  %v15078_v56 = vpack.c.bf16 %v15076_v53, %v15077_v5  ;;  %v4140_v49 = vld [vmem:[#allocation2 + $0xe8] sm:$0xff]  ;;  %v15101_v5 = vld [vmem:[#allocation73_spill] sm:$0xff] }
 0x3d7   : > { %9840 = vmatprep.mubr.msk.bf16.mxu1 %vm2394_vm3, %v15071_v3  ;;  %v13895_v34 = vpack.c.bf16 %v4140_v49, %v10810_v62  ;;  %v15092_v22 = vld [vmem:[#allocation59_spill] sm:$0xff] }
 0x3d8   : > { %v15093_v3 = vpack.c.bf16 %v15091_v36, %v15092_v22  ;;  %v15095_v62 = vld [vmem:[#allocation63_spill] sm:$0xff] }
 0x3d9   : > { %v5782_v36 = vld [vmem:[#allocation2 + $0x68] sm:$0xff] }
 0x3dd   : > { %9709 = vmatmul.mubr.msk.bf16.gmra.mrb[12].mxu0 %vm2394_vm3, %v13871_v48 }
 0x3de   : > { %9712 = vmatprep.mubr.msk.bf16.mxu0 %vm2394_vm3, %v13617_v59  ;;  %9841 = vmatmul.mubr.msk.bf16.gmra.mrb[48].mxu1 %vm2394_vm3, %v5297_v12  ;;  %v15080_v59 = vld [vmem:[#allocation41_spill] sm:$0xff]  ;;  %v15096_v12 = vpack.c.bf16 %v15094_v11, %v15095_v62 }
 0x3df   : > { %9844 = vmatprep.mubr.msk.bf16.mxu1 %vm2394_vm3, %v15072_v18  ;;  %v13937_v18 = vld [vmem:[#allocation2 + $0x1d0] sm:$0xff]  ;;  %v5785_v62 = vld [vmem:[#allocation2 + $0x80] sm:$0xff] }
 0x3e0   : > { %v5309_v15 = vpack.c.bf16 %v13937_v18, %v13752_v47  ;;  %v13956_v47 = vld [vmem:[#allocation2 + $0x220] sm:$0xff]  ;;  %v5847_v26 = vpack.c.bf16 %v5786_v23, %v5785_v62  ;;  %v14117_v62 = vld [vmem:[#allocation2 + $0x1d8] sm:$0xff] }
 0x3e5   : > { %9713 = vmatmul.mubr.msk.bf16.gmra.mrb[16].mxu0 %vm2394_vm3, %v13627_v38 }
 0x3e6   : > { %9716 = vmatprep.mubr.msk.bf16.mxu0 %vm2394_vm3, %v13579_v54  ;;  %9845 = vmatmul.mubr.msk.bf16.gmra.mrb[52].mxu1 %vm2394_vm3, %v15075_v55  ;;  %v15079_v54 = vld [vmem:[#allocation39_spill] sm:$0xff] }
 0x3e7   : > { %9848 = vmatprep.mubr.msk.bf16.mxu1 %vm2394_vm3, %v15078_v56  ;;  %v15081_v38 = vpack.c.bf16 %v15079_v54, %v15080_v59  ;;  %v15099_v55 = vld [vmem:[#allocation71_spill] sm:$0xff]  ;;  %v5313_v54 = vpack.c.bf16 %v13956_v47, %v13775_v10 }
 0x3e8   : > { %v15100_v53 = vpack.c.bf16 %v15098_v29, %v15099_v55  ;;  %v15102_v56 = vld [vmem:[#allocation75_spill] sm:$0xff]  ;;  %v14026_v55 = vld [vmem:[#allocation2 + $0xc0] sm:$0xff] }
 0x3e9   : > { %v15103_v49 = vpack.c.bf16 %v15101_v5, %v15102_v56  ;;  %v15105_v59 = vld [vmem:[#allocation79_spill] sm:$0xff] }
 0x3ea   : > { %v13979_v10 = vld [vmem:[#allocation2 + $0x270] sm:$0xff] }
 0x3eb   : > { %v10817_v5 = vld [vmem:[#allocation2 + $0xd0] sm:$0xff] }
 0x3ed   : > { %9717 = vmatmul.mubr.msk.bf16.gmra.mrb[20].mxu0 %vm2394_vm3, %v13895_v34 }
 0x3ee   : > { %9720 = vmatprep.mubr.msk.bf16.mxu0 %vm2394_vm3, %v13629_v52  ;;  %9849 = vmatmul.mubr.msk.bf16.gmra.mrb[56].mxu1 %vm2394_vm3, %v5301_v32  ;;  %v13954_v32 = vld [vmem:[#allocation2 + $0x238] sm:$0xff] }
 0x3ef   : > { %9852 = vmatprep.mubr.msk.bf16.mxu1 %vm2394_vm3, %v15081_v38  ;;  %v13962_v44 = vpack.c.bf16 %v15104_v6, %v13954_v32  ;;  %v15106_v38 = vld [vmem:[#allocation83_spill] sm:$0xff] }
 0x3f0   : > { %v13969_v17 = vpack.c.bf16 %v15106_v38, %v15105_v59 }
 0x3f5   : > { %9721 = vmatmul.mubr.msk.bf16.gmra.mrb[24].mxu0 %vm2394_vm3, %v13638_v35 }
 0x3f6   : > { %9853 = vmatmul.mubr.msk.bf16.gmra.mrb[60].mxu1 %vm2394_vm3, %v15084_v2  ;;  %v15108_v2 = vld [vmem:[#allocation86_spill] sm:$0xff] }
 0x3f7   : > { %9856 = vmatprep.mubr.msk.bf16.mxu1 %vm2394_vm3, %v15087_v28  ;;  %v13973_v24 = vpack.c.bf16 %v15108_v2, %v15107_v63  ;;  %v13983_v28 = vpack.c.bf16 %v13979_v10, %v15109_v57  ;;  %v14063_v57 = vld [vmem:[#allocation2 + $0x138] sm:$0xff] }
 0x3fe   : > { %9857 = vmatmul.mubr.msk.bf16.gmra.mrb[0].mxu1 %vm2394_vm3, %v5305_v33  ;;  %v15110_v33 = vpack.c.bf16 %v13607_v43, %v13611_v25  ;;  %v5784_v25 = vld [vmem:[#allocation2 + $0x78] sm:$0xff] }
 0x3ff   : > { %9860 = vmatprep.mubr.msk.bf16.mxu1 %vm2394_vm3, %v15090_v58  ;;  %v13999_v58 = vld [vmem:[#allocation2 + $0x2c0] sm:$0xff]  ;;  %v5846_v11 = vpack.c.bf16 %v5784_v25, %v5783_v8 }
 0x400   : > { %v5321_v22 = vpack.c.bf16 %v13999_v58, %v13818_v19  ;;  %v14011_v19 = vld [vmem:[#allocation2 + $0xb0] sm:$0xff] }
 0x406   : > { %9861 = vmatmul.mubr.msk.bf16.gmra.mrb[4].mxu1 %vm2394_vm3, %v15093_v3  ;;  %v5781_v3 = vld [vmem:[#allocation2 + $0x60] sm:$0xff] }
 0x407   : > { %9864 = vmatprep.mubr.msk.bf16.mxu1 %vm2394_vm3, %v15096_v12  ;;  %v5845_v43 = vpack.c.bf16 %v5782_v36, %v5781_v3  ;;  %v5849_v12 = vpack.c.bf16 %v13613_v20, %v14011_v19  ;;  %v10818_v20 = vld [vmem:[#allocation2 + $0xd8] sm:$0xff]  ;;  %v14090_v3 = vld [vmem:[#allocation2 + $0x188] sm:$0xff] }
 0x408   : > { %v14030_v56 = vpack.c.bf16 %v10818_v20, %v10817_v5  ;;  %v5860_v25 = vpack.c.bf16 %v14090_v3, %v13920_v27  ;;  %v14142_v20 = vld [vmem:[#allocation2 + $0x228] sm:$0xff] }
 0x40e   : > { %9865 = vmatmul.mubr.msk.bf16.gmra.mrb[8].mxu1 %vm2394_vm3, %v5309_v15 }
 0x40f   : > { %9868 = vmatprep.mubr.msk.bf16.mxu1 %vm2394_vm3, %v15097_v39 }
 0x416   : > { %9869 = vmatmul.mubr.msk.bf16.gmra.mrb[12].mxu1 %vm2394_vm3, %v15100_v53  ;;  %v5850_v53 = vpack.c.bf16 %v13623_v1, %v14026_v55 }
 0x417   : > { %9872 = vmatprep.mubr.msk.bf16.mxu1 %vm2394_vm3, %v15103_v49 }
 0x41e   : > { %9873 = vmatmul.mubr.msk.bf16.gmra.mrb[16].mxu1 %vm2394_vm3, %v5313_v54 }
 0x41f   : > { %9876 = vmatprep.mubr.msk.bf16.mxu1 %vm2394_vm3, %v13962_v44 }
 0x426   : > { %9877 = vmatmul.mubr.msk.bf16.gmra.mrb[20].mxu1 %vm2394_vm3, %v13969_v17 }
 0x427   : > { %9880 = vmatprep.mubr.msk.bf16.mxu1 %vm2394_vm3, %v13973_v24 }
 0x42e   : > { %9881 = vmatmul.mubr.msk.bf16.gmra.mrb[24].mxu1 %vm2394_vm3, %v13983_v28 }
 0x42f   : > { %9884 = vmatprep.mubr.msk.bf16.mxu1 %vm2394_vm3, %v15110_v33 }
 0x436   : > { %9885 = vmatmul.mubr.msk.bf16.gmra.mrb[28].mxu1 %vm2394_vm3, %v15111_v61  ;;  %v5856_v61 = vpack.c.bf16 %v14063_v57, %v13897_v45 }
 0x437   : > { %9888 = vmatprep.mubr.msk.bf16.mxu1 %vm2394_vm3, %v15112_v60 }
 0x43e   : > { %9889 = vmatmul.mubr.msk.bf16.gmra.mrb[32].mxu1 %vm2394_vm3, %v5321_v22 }
 0x43f   : > { %9894 = vmatprep.mubr.msk.bf16.mxu1 %vm2394_vm3, %v5845_v43 }
 0x446   : > { %9895 = vmatmul.mubr.msk.bf16.vlgmr.msra.gmra.mrb[36].mxu1 %vm2394_vm3, %v5846_v11 }
 0x447   : > { %9959 = vmatpush3.bf16.msra.mxu1 %v13834_v4  ;;  %9898 = vmatprep.mubr.msk.bf16.mxu1 %vm2394_vm3, %v5847_v26 }
 0x448   : > { %10024 = vmatprep.subr.bf16.mxu1 %v14005_v9 }
 0x44e   : > { %9899 = vmatmul.mubr.msk.bf16.gmra.mrb[40].mxu1 %vm2394_vm3, %v13871_v48 }
 0x44f   : > { %9902 = vmatprep.mubr.msk.bf16.mxu1 %vm2394_vm3, %v5849_v12  ;;  %v5864_v12 = vpack.c.bf16 %v14117_v62, %v13937_v18 }
 0x450   : > { %v14018_v15 = vpop.f32.mrb[28].mxu0 }
 0x451   : > { %15113 = vst [vmem:[#allocation29_spill] sm:$0xff] %v14018_v15  ;;  %v14020_v39 = vpop.f32.mrb[29].mxu0 }
 0x452   : > { %15114 = vst [vmem:[#allocation31_spill] sm:$0xff] %v14020_v39  ;;  %v14022_v29 = vpop.f32.mrb[30].mxu0 }
 0x453   : > { %15115 = vst [vmem:[#allocation33_spill] sm:$0xff] %v14022_v29  ;;  %v14024_v4 = vpop.f32.mrb[31].mxu0  ;;  %v10828_v29 = vld [vmem:[#allocation2 + $0x128] sm:$0xff] }
 0x454   : > { %15116 = vst [vmem:[#allocation34_spill] sm:$0xff] %v14024_v4 }
 0x456   : > { %9903 = vmatmul.mubr.msk.bf16.gmra.mrb[44].mxu1 %vm2394_vm3, %v5850_v53 }
 0x457   : > { %9906 = vmatprep.mubr.msk.bf16.mxu1 %vm2394_vm3, %v14030_v56 }
 0x458   : > { %v14035_v48 = vpop.f32.mrb[32].mxu0 }
 0x459   : > { %15117 = vst [vmem:[#allocation39_spill] sm:$0xff] %v14035_v48  ;;  %v14037_v49 = vpop.f32.mrb[33].mxu0  ;;  %v10826_v48 = vld [vmem:[#allocation2 + $0x118] sm:$0xff] }
 0x45a   : > { %15118 = vst [vmem:[#allocation41_spill] sm:$0xff] %v14037_v49  ;;  %v14039_v54 = vpop.f32.mrb[34].mxu0  ;;  %v10825_v49 = vld [vmem:[#allocation2 + $0x110] sm:$0xff] }
 0x45b   : > { %15119 = vst [vmem:[#allocation43_spill] sm:$0xff] %v14039_v54  ;;  %v14041_v6 = vpop.f32.mrb[35].mxu0  ;;  %v14243_v4 = vpack.c.bf16 %v10826_v48, %v10825_v49  ;;  %v10830_v48 = vld [vmem:[#allocation2 + $0x150] sm:$0xff]  ;;  %v10831_v49 = vld [vmem:[#allocation2 + $0x158] sm:$0xff] }
 0x45c   : > { %15120 = vst [vmem:[#allocation45_spill] sm:$0xff] %v14041_v6  ;;  %v10824_v6 = vld [vmem:[#allocation2 + $0x108] sm:$0xff] }
 0x45e   : > { %9907 = vmatmul.mubr.msk.bf16.gmra.mrb[48].mxu1 %vm2394_vm3, %v13895_v34 }
 0x45f   : > { %9910 = vmatprep.mubr.msk.bf16.mxu1 %vm2394_vm3, %v13629_v52 }
 0x460   : > { %v14047_v1 = vpop.f32.mrb[36].mxu0 }
 0x461   : > { %15121 = vst [vmem:[#allocation47_spill] sm:$0xff] %v14047_v1  ;;  %v14049_v59 = vpop.f32.mrb[37].mxu0  ;;  %v10821_v1 = vld [vmem:[#allocation2 + $0xc8] sm:$0xff] }
 0x462   : > { %15122 = vst [vmem:[#allocation49_spill] sm:$0xff] %v14049_v59  ;;  %v14051_v38 = vpop.f32.mrb[38].mxu0  ;;  %v14219_v59 = vld [vmem:[#allocation8 + $0x40] sm:$0xff]  }
 0x463   : > { %15123 = vst [vmem:[#allocation53_spill] sm:$0xff] %v14051_v38  ;;  %v14053_v63 = vpop.f32.mrb[39].mxu0 }
 0x464   : > { %15124 = vst [vmem:[#allocation55_spill] sm:$0xff] %v14053_v63  ;;  %v10820_v63 = vld [vmem:[#allocation2 + $0xb8] sm:$0xff] }
 0x465   : > { %v14217_v38 = vpack.c.bf16 %v10820_v63, %v14011_v19 }
 0x466   : > { %9911 = vmatmul.mubr.msk.bf16.gmra.mrb[52].mxu1 %vm2394_vm3, %v13638_v35 }
 0x467   : > { %9914 = vmatprep.mubr.msk.bf16.mxu1 %vm2394_vm3, %v13674_v21 }
 0x468   : > { %v14059_v2 = vpop.f32.mrb[40].mxu0 }
 0x469   : > { %15125 = vst [vmem:[#allocation57_spill] sm:$0xff] %v14059_v2  ;;  %v14061_v34 = vpop.f32.mrb[41].mxu0 }
 0x46a   : > { %15126 = vst [vmem:[#allocation59_spill] sm:$0xff] %v14061_v34  ;;  %v14065_v52 = vpop.f32.mrb[42].mxu0 }
 0x46b   : > { %15127 = vst [vmem:[#allocation61_spill] sm:$0xff] %v14065_v52  ;;  %v14067_v33 = vpop.f32.mrb[43].mxu0 }
 0x46c   : > { %15128 = vst [vmem:[#allocation63_spill] sm:$0xff] %v14067_v33 }
 0x46e   : > { %9915 = vmatmul.mubr.msk.bf16.gmra.mrb[56].mxu1 %vm2394_vm3, %v5856_v61 }
 0x46f   : > { %9918 = vmatprep.mubr.msk.bf16.mxu1 %vm2394_vm3, %v13711_v30 }
 0x470   : > { %v14074_v35 = vpop.f32.mrb[44].mxu0 }
 0x471   : > { %15129 = vst [vmem:[#allocation69_spill] sm:$0xff] %v14074_v35  ;;  %v14076_v21 = vpop.f32.mrb[45].mxu0 }
 0x472   : > { %15130 = vst [vmem:[#allocation71_spill] sm:$0xff] %v14076_v21  ;;  %v14078_v60 = vpop.f32.mrb[46].mxu0  ;;  %v10819_v21 = vld [vmem:[#allocation2 + $0xa8] sm:$0xff] }
 0x473   : > { %15131 = vst [vmem:[#allocation73_spill] sm:$0xff] %v14078_v60  ;;  %v14080_v36 = vpop.f32.mrb[47].mxu0 }
 0x474   : > { %15132 = vst [vmem:[#allocation75_spill] sm:$0xff] %v14080_v36 }
 0x476   : > { %9919 = vmatmul.mubr.msk.bf16.gmra.mrb[60].mxu1 %vm2394_vm3, %v13715_v0 }
 0x477   : > { %9922 = vmatprep.mubr.msk.bf16.mxu1 %vm2394_vm3, %v13732_v40 }
 0x478   : > { %v14086_v45 = vpop.f32.mrb[48].mxu0 }
 0x479   : > { %15133 = vst [vmem:[#allocation80_spill] sm:$0xff] %v14086_v45  ;;  %v14088_v22 = vpop.f32.mrb[49].mxu0  ;;  %v6336_v45 = vld [vmem:[#allocation2 + $0xa0] sm:$0xff] }
 0x47a   : > { %15134 = vst [vmem:[#allocation79_spill] sm:$0xff] %v14088_v22  ;;  %v14092_v30 = vpop.f32.mrb[50].mxu0  ;;  %v6400_v35 = vpack.c.bf16 %v10819_v21, %v6336_v45  ;;  %v14222_v21 = vpack.c.bf16 %v10821_v1, %v14026_v55  ;;  %v10822_v55 = vld [vmem:[#allocation2 + $0xf8] sm:$0xff] }
 0x47b   : > { %15135 = vst [vmem:[#allocation83_spill] sm:$0xff] %v14092_v30  ;;  %v14094_v43 = vpop.f32.mrb[51].mxu0  ;;  %v14198_v30 = vld [vmem:[#allocation2 + $0x2c8] sm:$0xff] }
 0x47c   : > { %15136 = vst [vmem:[#allocation82_spill] sm:$0xff] %v14094_v43  ;;  %v5876_v60 = vpack.c.bf16 %v14198_v30, %v13999_v58 }
 0x47e   : > { %9923 = vmatmul.mubr.msk.bf16.gmra.mrb[0].mxu1 %vm2394_vm3, %v5860_v25 }
 0x47f   : > { %9926 = vmatprep.mubr.msk.bf16.mxu1 %vm2394_vm3, %v13740_v50 }
 0x480   : > { %v14101_v0 = vpop.f32.mrb[52].mxu0 }
 0x481   : > { %15137 = vst [vmem:[#allocation86_spill] sm:$0xff] %v14101_v0  ;;  %v14103_v40 = vpop.f32.mrb[53].mxu0 }
 0x482   : > { %15138 = vst [vmem:[#allocation85_spill] sm:$0xff] %v14103_v40  ;;  %v14105_v23 = vpop.f32.mrb[54].mxu0 }
 0x483   : > { %15139 = vst [vmem:[#allocation92_spill] sm:$0xff] %v14105_v23  ;;  %v14107_v8 = vpop.f32.mrb[55].mxu0 }
 0x484   : > { %15140 = vst [vmem:[#allocation93_spill] sm:$0xff] %v14107_v8 }
 0x486   : > { %9927 = vmatmul.mubr.msk.bf16.gmra.mrb[4].mxu1 %vm2394_vm3, %v13744_v31 }
 0x487   : > { %9930 = vmatprep.mubr.msk.bf16.mxu1 %vm2394_vm3, %v13755_v37 }
 0x488   : > { %v14113_v27 = vpop.f32.mrb[56].mxu0 }
 0x489   : > { %15141 = vst [vmem:[#allocation94_spill] sm:$0xff] %v14113_v27  ;;  %v14115_v11 = vpop.f32.mrb[57].mxu0 }
 0x48a   : > { %15142 = vst [vmem:[#allocation95_spill] sm:$0xff] %v14115_v11  ;;  %v14119_v50 = vpop.f32.mrb[58].mxu0 }
 0x48b   : > { %15143 = vst [vmem:[#allocation96_spill] sm:$0xff] %v14119_v50  ;;  %v14121_v26 = vpop.f32.mrb[59].mxu0  ;;  %v14171_v50 = vld [vmem:[#allocation2 + $0x278] sm:$0xff] }
 0x48c   : > { %15144 = vst [vmem:[#allocation97_spill] sm:$0xff] %v14121_v26  ;;  %v15151_v26 = vld [vmem:[#allocation87_spill] sm:$0xff]  ;;  %v5872_v8 = vpack.c.bf16 %v14171_v50, %v13979_v10 }
 0x48e   : > { %9931 = vmatmul.mubr.msk.bf16.gmra.mrb[8].mxu1 %vm2394_vm3, %v5864_v12  ;;  %v5868_v12 = vpack.c.bf16 %v14142_v20, %v13956_v47 }
 0x48f   : > { %9934 = vmatprep.mubr.msk.bf16.mxu1 %vm2394_vm3, %v13763_v7 }
 0x490   : > { %v14128_v31 = vpop.f32.mrb[60].mxu0 }
 0x491   : > { %15145 = vst [vmem:[#allocation98_spill] sm:$0xff] %v14128_v31  ;;  %v14130_v37 = vpop.f32.mrb[61].mxu0  ;;  %v15150_v31 = vld [vmem:[#allocation84_spill] sm:$0xff] }
 0x492   : > { %15146 = vst [vmem:[#allocation99_spill] sm:$0xff] %v14130_v37  ;;  %v14132_v53 = vpop.f32.mrb[62].mxu0 }
 0x493   : > { %15147 = vst [vmem:[#allocation100_spill] sm:$0xff] %v14132_v53  ;;  %v14134_v5 = vpop.f32.mrb[63].mxu0 }
 0x494   : > { %15148 = vst [vmem:[#allocation101_spill] sm:$0xff] %v14134_v5  ;;  %v15149_v5 = vld [vmem:[#allocation81_spill] sm:$0xff] }
 0x496   : > { %9935 = vmatmul.mubr.msk.bf16.gmra.mrb[12].mxu1 %vm2394_vm3, %v13767_v42 }
 0x497   : > { %9938 = vmatprep.mubr.msk.bf16.mxu1 %vm2394_vm3, %v13778_v13 }
 0x498   : > { %v14140_v18 = vpop.f32.mrb[0].mxu0 }
 0x499   : > { %v14144_v61 = vpop.f32.mrb[1].mxu0 }
 0x49a   : > { %v14146_v7 = vpop.f32.mrb[2].mxu0 }
 0x49b   : > { %v14148_v25 = vpop.f32.mrb[3].mxu0 }
 0x49e   : > { %9939 = vmatmul.mubr.msk.bf16.gmra.mrb[16].mxu1 %vm2394_vm3, %v5868_v12 }
 0x49f   : > { %9942 = vmatprep.mubr.msk.bf16.mxu1 %vm2394_vm3, %v15149_v5 }
 0x4a0   : > { %v14155_v42 = vpop.f32.mrb[4].mxu0 }
 0x4a1   : > { %v14157_v13 = vpop.f32.mrb[5].mxu0 }
 0x4a2   : > { %v14159_v53 = vpop.f32.mrb[6].mxu0 }
 0x4a3   : > { %v14161_v37 = vpop.f32.mrb[7].mxu0 }
 0x4a6   : > { %9943 = vmatmul.mubr.msk.bf16.gmra.mrb[20].mxu1 %vm2394_vm3, %v15150_v31 }
 0x4a7   : > { %9946 = vmatprep.mubr.msk.bf16.mxu1 %vm2394_vm3, %v15151_v26 }
 0x4a8   : > { %v14167_v47 = vpop.f32.mrb[8].mxu0 }
 0x4a9   : > { %v14169_v12 = vpop.f32.mrb[9].mxu0 }
 0x4aa   : > { %v14173_v11 = vpop.f32.mrb[10].mxu0 }
 0x4ab   : > { %v14175_v27 = vpop.f32.mrb[11].mxu0 }
 0x4ac   : > { %15152 = vst [vmem:[#allocation81_spill] sm:$0xff] %v14175_v27  ;;  %v15188_v27 = vld [vmem:[#allocation35_spill] sm:$0xff] }
 0x4ae   : > { %9947 = vmatmul.mubr.msk.bf16.gmra.mrb[24].mxu1 %vm2394_vm3, %v5872_v8 }
 0x4af   : > { %9950 = vmatprep.mubr.msk.bf16.mxu1 %vm2394_vm3, %v13804_v46 }
 0x4b0   : > { %v14182_v23 = vpop.f32.mrb[12].mxu0 }
 0x4b1   : > { %15153 = vst [vmem:[#allocation84_spill] sm:$0xff] %v14182_v23  ;;  %v14184_v40 = vpop.f32.mrb[13].mxu0 }
 0x4b2   : > { %15154 = vst [vmem:[#allocation87_spill] sm:$0xff] %v14184_v40  ;;  %v14186_v0 = vpop.f32.mrb[14].mxu0  ;;  %v15179_v40 = vld [vmem:[#allocation26_spill] sm:$0xff] }
 0x4b3   : > { %15155 = vst [vmem:[#allocation102_spill] sm:$0xff] %v14186_v0  ;;  %v14188_v43 = vpop.f32.mrb[15].mxu0  ;;  %v15178_v0 = vld [vmem:[#allocation25_spill] sm:$0xff] }
 0x4b4   : > { %15156 = vst [vmem:[#allocation103_spill] sm:$0xff] %v14188_v43  ;;  %v15180_v23 = vpack.c.bf16 %v15178_v0, %v15179_v40  ;;  %v15193_v40 = vld [vmem:[#allocation40_spill] sm:$0xff] }
 0x4b6   : > { %9951 = vmatmul.mubr.msk.bf16.gmra.mrb[28].mxu1 %vm2394_vm3, %v13810_v16 }
 0x4b7   : > { %9954 = vmatprep.mubr.msk.bf16.mxu1 %vm2394_vm3, %v13822_v51 }
 0x4b8   : > { %v14194_v10 = vpop.f32.mrb[16].mxu0 }
 0x4b9   : > { %15157 = vst [vmem:[#allocation104_spill] sm:$0xff] %v14194_v10  ;;  %v14196_v8 = vpop.f32.mrb[17].mxu0  ;;  %v15176_v10 = vld [vmem:[#allocation24_spill] sm:$0xff] }
 0x4ba   : > { %15158 = vst [vmem:[#allocation105_spill] sm:$0xff] %v14196_v8  ;;  %v14200_v22 = vpop.f32.mrb[18].mxu0  ;;  %v15175_v8 = vld [vmem:[#allocation23_spill] sm:$0xff] }
 0x4bb   : > { %15159 = vst [vmem:[#allocation106_spill] sm:$0xff] %v14200_v22  ;;  %v14202_v36 = vpop.f32.mrb[19].mxu0  ;;  %v15177_v43 = vpack.c.bf16 %v15175_v8, %v15176_v10  ;;  %v15191_v8 = vld [vmem:[#allocation38_spill] sm:$0xff] }
 0x4bc   : > { %15160 = vst [vmem:[#allocation107_spill] sm:$0xff] %v14202_v36  ;;  %v15173_v36 = vld [vmem:[#allocation22_spill] sm:$0xff] }
 0x4be   : > { %9955 = vmatmul.mubr.msk.bf16.gmra.mrb[32].mxu1 %vm2394_vm3, %v5876_v60  ;;  %v6344_v60 = vld [vmem:[#allocation2 + $0xf0] sm:$0xff] }
 0x4bf   : > { %9960 = vmatprep.mubr.msk.bf16.mxu1 %vm2394_vm3, %v6400_v35  ;;  %v6404_v1 = vpack.c.bf16 %v10822_v55, %v6344_v60  ;;  %v6352_v60 = vld [vmem:[#allocation2 + $0x140] sm:$0xff] }
 0x4c0   : > { %v14208_v33 = vpop.f32.mrb[20].mxu0  ;;  %v10827_v55 = vld [vmem:[#allocation2 + $0x120] sm:$0xff] }
 0x4c1   : > { %15161 = vst [vmem:[#allocation108_spill] sm:$0xff] %v14208_v33  ;;  %v14210_v52 = vpop.f32.mrb[21].mxu0  ;;  %v14249_v39 = vpack.c.bf16 %v10828_v29, %v10827_v55  ;;  %v6360_v29 = vld [vmem:[#allocation2 + $0x190] sm:$0xff]  ;;  %v10835_v55 = vld [vmem:[#allocation2 + $0x178] sm:$0xff] }
 0x4c2   : > { %15162 = vst [vmem:[#allocation109_spill] sm:$0xff] %v14210_v52  ;;  %v14212_v34 = vpop.f32.mrb[22].mxu0  ;;  %v10847_v52 = vld [vmem:[#allocation2 + $0x208] sm:$0xff] }
 0x4c3   : > { %15163 = vst [vmem:[#allocation110_spill] sm:$0xff] %v14212_v34  ;;  %v14214_v2 = vpop.f32.mrb[23].mxu0 }
 0x4c4   : > { %15164 = vst [vmem:[#allocation111_spill] sm:$0xff] %v14214_v2 }
 0x4c6   : > { %9961 = vmatmul.mubr.msk.bf16.vlgmr.msra.gmra.mrb[36].mxu1 %vm2394_vm3, %v14217_v38 }
 0x4c7   : > { %10025 = vmatpush3.bf16.msra.mxu1 %v14005_v9  ;;  %9964 = vmatprep.mubr.msk.bf16.mxu1 %vm2394_vm3, %v14222_v21  ;;  %v10823_v9 = vld [vmem:[#allocation2 + $0x100] sm:$0xff] }
 0x4c8   : > { %v14229_v35 = vpop.f32.mrb[24].mxu0  ;;  %10090 = vmatprep.subr.bf16.mxu1 %v14219_v59  ;;  %v14241_v54 = vpack.c.bf16 %v10824_v6, %v10823_v9  ;;  %v14254_v6 = vpack.c.bf16 %v10831_v49, %v10830_v48  ;;  %v10832_v9 = vld [vmem:[#allocation2 + $0x160] sm:$0xff]  ;;  %v10838_v48 = vld [vmem:[#allocation2 + $0x1a8] sm:$0xff] }
 0x4c9   : > { %15165 = vst [vmem:[#allocation112_spill] sm:$0xff] %v14229_v35  ;;  %v14232_v19 = vpop.f32.mrb[25].mxu0  ;;  %v10840_v35 = vld [vmem:[#allocation2 + $0x1b8] sm:$0xff] }
 0x4ca   : > { %15166 = vst [vmem:[#allocation113_spill] sm:$0xff] %v14232_v19  ;;  %v14234_v63 = vpop.f32.mrb[26].mxu0 }
 0x4cb   : > { %15167 = vst [vmem:[#allocation114_spill] sm:$0xff] %v14234_v63  ;;  %v14236_v45 = vpop.f32.mrb[27].mxu0 }
 0x4cc   : > { %15168 = vst [vmem:[#allocation115_spill] sm:$0xff] %v14236_v45  ;;  %v10833_v45 = vld [vmem:[#allocation2 + $0x168] sm:$0xff] }
 0x4cd   : > { %v14256_v63 = vpack.c.bf16 %v10833_v45, %v10832_v9  ;;  %v10837_v45 = vld [vmem:[#allocation2 + $0x1a0] sm:$0xff]  ;;  %v10839_v9 = vld [vmem:[#allocation2 + $0x1b0] sm:$0xff] }
 0x4ce   : > { %9965 = vmatmul.mubr.msk.bf16.gmra.mrb[40].mxu1 %vm2394_vm3, %v14030_v56  ;;  %v14267_v49 = vpack.c.bf16 %v10838_v48, %v10837_v45  ;;  %v14269_v2 = vpack.c.bf16 %v10840_v35, %v10839_v9  ;;  %v10844_v35 = vld [vmem:[#allocation2 + $0x1f0] sm:$0xff]  ;;  %v10845_v45 = vld [vmem:[#allocation2 + $0x1f8] sm:$0xff]  ;;  %v10846_v9 = vld [vmem:[#allocation2 + $0x200] sm:$0xff] }
 0x4cf   : > { %9968 = vmatprep.mubr.msk.bf16.mxu1 %vm2394_vm3, %v6404_v1  ;;  %v10829_v1 = vld [vmem:[#allocation2 + $0x148] sm:$0xff]  ;;  %v14280_v48 = vpack.c.bf16 %v10845_v45, %v10844_v35  ;;  %v14282_v33 = vpack.c.bf16 %v10847_v52, %v10846_v9  ;;  %v6384_v52 = vld [vmem:[#allocation2 + $0x280] sm:$0xff]  ;;  %v6393_v9 = vld [vmem:[#allocation2 + $0x2d8] sm:$0xff] }
 0x4d0   : > { %v6408_v15 = vpack.c.bf16 %v10829_v1, %v6352_v60  ;;  %v10834_v60 = vld [vmem:[#allocation2 + $0x170] sm:$0xff]  ;;  %v6385_v35 = vld [vmem:[#allocation2 + $0x288] sm:$0xff] }
 0x4d1   : > { %v14262_v1 = vpack.c.bf16 %v10835_v55, %v10834_v60  ;;  %v10841_v60 = vld [vmem:[#allocation2 + $0x1c0] sm:$0xff]  ;;  %v10842_v55 = vld [vmem:[#allocation2 + $0x1c8] sm:$0xff]  ;;  %v6424_v45 = vpack.c.bf16 %v6385_v35, %v6384_v52 }
 0x4d6   : > { %9969 = vmatmul.mubr.msk.bf16.gmra.mrb[44].mxu1 %vm2394_vm3, %v14241_v54 }
 0x4d7   : > { %9972 = vmatprep.mubr.msk.bf16.mxu1 %vm2394_vm3, %v14243_v4 }
 0x4de   : > { %9973 = vmatmul.mubr.msk.bf16.gmra.mrb[48].mxu1 %vm2394_vm3, %v14249_v39 }
 0x4df   : > { %9976 = vmatprep.mubr.msk.bf16.mxu1 %vm2394_vm3, %v6408_v15  ;;  %v10836_v15 = vld [vmem:[#allocation2 + $0x198] sm:$0xff] }
 0x4e0   : > { %v6412_v19 = vpack.c.bf16 %v10836_v15, %v6360_v29  ;;  %v6368_v29 = vld [vmem:[#allocation2 + $0x1e0] sm:$0xff]  ;;  %v14275_v15 = vpack.c.bf16 %v10842_v55, %v10841_v60  ;;  %v10848_v60 = vld [vmem:[#allocation2 + $0x210] sm:$0xff]  ;;  %v10849_v55 = vld [vmem:[#allocation2 + $0x218] sm:$0xff] }
 0x4e6   : > { %9977 = vmatmul.mubr.msk.bf16.gmra.mrb[52].mxu1 %vm2394_vm3, %v14254_v6 }
 0x4e7   : > { %9980 = vmatprep.mubr.msk.bf16.mxu1 %vm2394_vm3, %v14256_v63 }
 0x4ee   : > { %9981 = vmatmul.mubr.msk.bf16.gmra.mrb[56].mxu1 %vm2394_vm3, %v14262_v1 }
 0x4ef   : > { %9984 = vmatprep.mubr.msk.bf16.mxu1 %vm2394_vm3, %v6412_v19  ;;  %v10843_v19 = vld [vmem:[#allocation2 + $0x1e8] sm:$0xff] }
 0x4f0   : > { %v6416_v34 = vpack.c.bf16 %v10843_v19, %v6368_v29  ;;  %v6376_v29 = vld [vmem:[#allocation2 + $0x230] sm:$0xff]  ;;  %v14288_v19 = vpack.c.bf16 %v10849_v55, %v10848_v60 }
 0x4f1   : > { %v6396_v60 = vld [vmem:[#allocation2 + $0x2f0] sm:$0xff] }
 0x4f6   : > { %9985 = vmatmul.mubr.msk.bf16.gmra.mrb[60].mxu1 %vm2394_vm3, %v14267_v49 }
 0x4f7   : > { %9988 = vmatprep.mubr.msk.bf16.mxu1 %vm2394_vm3, %v14269_v2 }
 0x4fe   : > { %9989 = vmatmul.mubr.msk.bf16.gmra.mrb[0].mxu1 %vm2394_vm3, %v14275_v15 }
 0x4ff   : > { %9992 = vmatprep.mubr.msk.bf16.mxu1 %vm2394_vm3, %v6416_v34  ;;  %v6420_v34 = vpack.c.bf16 %v13954_v32, %v6376_v29  ;;  %v6392_v32 = vld [vmem:[#allocation2 + $0x2d0] sm:$0xff]  ;;  %v6395_v29 = vld [vmem:[#allocation2 + $0x2e8] sm:$0xff] }
 0x506   : > { %9993 = vmatmul.mubr.msk.bf16.gmra.mrb[4].mxu1 %vm2394_vm3, %v14280_v48 }
 0x507   : > { %9996 = vmatprep.mubr.msk.bf16.mxu1 %vm2394_vm3, %v14282_v33 }
 0x50e   : > { %9997 = vmatmul.mubr.msk.bf16.gmra.mrb[8].mxu1 %vm2394_vm3, %v14288_v19 }
 0x50f   : > { %10000 = vmatprep.mubr.msk.bf16.mxu1 %vm2394_vm3, %v6420_v34 }
 0x516   : > { %10001 = vmatmul.mubr.msk.bf16.gmra.mrb[12].mxu1 %vm2394_vm3, %v15149_v5  ;;  %v6428_v5 = vpack.c.bf16 %v6393_v9, %v6392_v32 }
 0x517   : > { %10004 = vmatprep.mubr.msk.bf16.mxu1 %vm2394_vm3, %v15150_v31  ;;  %v6394_v31 = vld [vmem:[#allocation2 + $0x2e0] sm:$0xff] }
 0x518   : > { %v14308_v55 = vpack.c.bf16 %v6395_v29, %v6394_v31 }
 0x51e   : > { %10005 = vmatmul.mubr.msk.bf16.gmra.mrb[16].mxu1 %vm2394_vm3, %v15151_v26  ;;  %v6397_v26 = vld [vmem:[#allocation2 + $0x2f8] sm:$0xff] }
 0x51f   : > { %10008 = vmatprep.mubr.msk.bf16.mxu1 %vm2394_vm3, %v6424_v45  ;;  %v14310_v34 = vpack.c.bf16 %v6397_v26, %v6396_v60  ;;  %v15170_v45 = vld [vmem:[#allocation20_spill] sm:$0xff] }
 0x526   : > { %10009 = vmatmul.mubr.msk.bf16.gmra.mrb[20].mxu1 %vm2394_vm3, %v13804_v46  ;;  %v6398_v46 = vld [vmem:[#allocation2 + $0x300] sm:$0xff] }
 0x527   : > { %10012 = vmatprep.mubr.msk.bf16.mxu1 %vm2394_vm3, %v13810_v16  ;;  %v6399_v16 = vld [vmem:[#allocation2 + $0x308] sm:$0xff] }
 0x528   : > { %v14316_v52 = vpack.c.bf16 %v6399_v16, %v6398_v46 }
 0x52e   : > { %10013 = vmatmul.mubr.msk.bf16.gmra.mrb[24].mxu1 %vm2394_vm3, %v13822_v51  ;;  %v15169_v51 = vld [vmem:[#allocation19_spill] sm:$0xff] }
 0x52f   : > { %10016 = vmatprep.mubr.msk.bf16.mxu1 %vm2394_vm3, %v6428_v5  ;;  %v15171_v32 = vpack.c.bf16 %v15169_v51, %v15170_v45  ;;  %v15172_v5 = vld [vmem:[#allocation21_spill] sm:$0xff]  ;;  %v15181_v51 = vld [vmem:[#allocation27_spill] sm:$0xff]  ;;  %v15182_v45 = vld [vmem:[#allocation28_spill] sm:$0xff] }
 0x530   : > { %v15174_v22 = vpack.c.bf16 %v15172_v5, %v15173_v36  ;;  %v15184_v36 = vld [vmem:[#allocation30_spill] sm:$0xff]  ;;  %v15185_v5 = vld [vmem:[#allocation32_spill] sm:$0xff] }
 0x536   : > { %10017 = vmatmul.mubr.msk.bf16.gmra.mrb[28].mxu1 %vm2394_vm3, %v14308_v55 }
 0x537   : > { %10020 = vmatprep.mubr.msk.bf16.mxu1 %vm2394_vm3, %v14310_v34 }
 0x53e   : > { %10021 = vmatmul.mubr.msk.bf16.gmra.mrb[32].mxu1 %vm2394_vm3, %v14316_v52 }
 0x53f   : > { %10026 = vmatprep.mubr.msk.bf16.mxu1 %vm2394_vm3, %v15171_v32  ;;  %v15183_v32 = vpack.c.bf16 %v15181_v51, %v15182_v45  ;;  %v15196_v45 = vld [vmem:[#allocation44_spill] sm:$0xff] }
 0x546   : > { %10027 = vmatmul.mubr.msk.bf16.vlgmr.msra.gmra.mrb[36].mxu1 %vm2394_vm3, %v15174_v22  ;;  %v15186_v22 = vpack.c.bf16 %v15184_v36, %v15185_v5  ;;  %v15199_v5 = vld [vmem:[#allocation48_spill] sm:$0xff] }
 0x547   : > { %10091 = vmatpush3.bf16.msra.mxu1 %v14219_v59  ;;  %10030 = vmatprep.mubr.msk.bf16.mxu1 %vm2394_vm3, %v15177_v43  ;;  %v15187_v59 = vld [vmem:[#allocation36_spill] sm:$0xff]  ;;  %v15190_v43 = vld [vmem:[#allocation37_spill] sm:$0xff] }
 0x548   : > { %v15189_v10 = vpack.c.bf16 %v15187_v59, %v15188_v27  ;;  %v15192_v0 = vpack.c.bf16 %v15190_v43, %v15191_v8  ;;  %v15202_v59 = vld [vmem:[#allocation51_spill] sm:$0xff]  ;;  %v15205_v8 = vld [vmem:[#allocation54_spill] sm:$0xff] }
 0x54e   : > { %10031 = vmatmul.mubr.msk.bf16.gmra.mrb[40].mxu1 %vm2394_vm3, %v15180_v23  ;;  %v15194_v23 = vld [vmem:[#allocation42_spill] sm:$0xff] }
 0x54f   : > { %10034 = vmatprep.mubr.msk.bf16.mxu1 %vm2394_vm3, %v15183_v32  ;;  %v15195_v51 = vpack.c.bf16 %v15193_v40, %v15194_v23  ;;  %v15197_v32 = vld [vmem:[#allocation46_spill] sm:$0xff] }
 0x550   : > { %v15198_v36 = vpack.c.bf16 %v15196_v45, %v15197_v32  ;;  %v15208_v23 = vld [vmem:[#allocation58_spill] sm:$0xff] }
 0x551   : > { %v15211_v32 = vld [vmem:[#allocation62_spill] sm:$0xff] }
 0x556   : > { %10035 = vmatmul.mubr.msk.bf16.gmra.mrb[44].mxu1 %vm2394_vm3, %v15186_v22  ;;  %v15200_v22 = vld [vmem:[#allocation50_spill] sm:$0xff] }
 0x557   : > { %10038 = vmatprep.mubr.msk.bf16.mxu1 %vm2394_vm3, %v15189_v10  ;;  %v15201_v27 = vpack.c.bf16 %v15199_v5, %v15200_v22  ;;  %v15203_v10 = vld [vmem:[#allocation52_spill] sm:$0xff]  ;;  %v15214_v22 = vld [vmem:[#allocation65_spill] sm:$0xff] }
 0x558   : > { %v15204_v43 = vpack.c.bf16 %v15202_v59, %v15203_v10  ;;  %v15217_v10 = vld [vmem:[#allocation67_spill] sm:$0xff] }
 0x55e   : > { %10039 = vmatmul.mubr.msk.bf16.gmra.mrb[48].mxu1 %vm2394_vm3, %v15192_v0  ;;  %v15206_v0 = vld [vmem:[#allocation56_spill] sm:$0xff] }
 0x55f   : > { %10042 = vmatprep.mubr.msk.bf16.mxu1 %vm2394_vm3, %v15195_v51  ;;  %v15207_v40 = vpack.c.bf16 %v15205_v8, %v15206_v0  ;;  %v15209_v51 = vld [vmem:[#allocation60_spill] sm:$0xff]  ;;  %v15220_v0 = vld [vmem:[#allocation70_spill] sm:$0xff] }
 0x560   : > { %v15210_v45 = vpack.c.bf16 %v15208_v23, %v15209_v51  ;;  %v15223_v51 = vld [vmem:[#allocation74_spill] sm:$0xff] }
 0x566   : > { %10043 = vmatmul.mubr.msk.bf16.gmra.mrb[52].mxu1 %vm2394_vm3, %v15198_v36  ;;  %v15212_v36 = vld [vmem:[#allocation64_spill] sm:$0xff] }
 0x567   : > { %10046 = vmatprep.mubr.msk.bf16.mxu1 %vm2394_vm3, %v15201_v27  ;;  %v15213_v5 = vpack.c.bf16 %v15211_v32, %v15212_v36  ;;  %v15215_v27 = vld [vmem:[#allocation66_spill] sm:$0xff]  ;;  %v15226_v36 = vld [vmem:[#allocation77_spill] sm:$0xff] }
 0x568   : > { %v15216_v59 = vpack.c.bf16 %v15214_v22, %v15215_v27  ;;  %v6979_v27 = vpack.c.bf16 %v13661_v14, %v6385_v35  ;;  %v6985_v35 = vpack.c.bf16 %v6398_v46, %v6397_v26  ;;  %v7500_v46 = vld [vmem:[#allocation2 + $0x2c0] sm:$0xff] }
 0x56e   : > { %10047 = vmatmul.mubr.msk.bf16.gmra.mrb[56].mxu1 %vm2394_vm3, %v15204_v43  ;;  %v15218_v43 = vld [vmem:[#allocation68_spill] sm:$0xff] }
 0x56f   : > { %10050 = vmatprep.mubr.msk.bf16.mxu1 %vm2394_vm3, %v15207_v40  ;;  %v15219_v8 = vpack.c.bf16 %v15217_v10, %v15218_v43  ;;  %v15221_v40 = vld [vmem:[#allocation72_spill] sm:$0xff]  ;;  %v15230_v43 = vld [vmem:[#allocation89_spill] sm:$0xff] }
 0x570   : > { %v15222_v23 = vpack.c.bf16 %v15220_v0, %v15221_v40  ;;  %v6954_v40 = vld [vmem:[#allocation2 + $0x310] sm:$0xff] }
 0x576   : > { %10051 = vmatmul.mubr.msk.bf16.gmra.mrb[60].mxu1 %vm2394_vm3, %v15210_v45  ;;  %v15224_v45 = vld [vmem:[#allocation76_spill] sm:$0xff] }
 0x577   : > { %10054 = vmatprep.mubr.msk.bf16.mxu1 %vm2394_vm3, %v15213_v5  ;;  %v15225_v32 = vpack.c.bf16 %v15223_v51, %v15224_v45  ;;  %v15227_v5 = vld [vmem:[#allocation78_spill] sm:$0xff] }
 0x578   : > { %v15228_v22 = vpack.c.bf16 %v15226_v36, %v15227_v5  ;;  %v14489_v51 = vld [vmem:[#allocation9] ss:$0 sm:$0xff] }
 0x57e   : > { %10055 = vmatmul.mubr.msk.bf16.gmra.mrb[0].mxu1 %vm2394_vm3, %v15216_v59  ;;  %v15229_v59 = vld [vmem:[#allocation88_spill] sm:$0xff] }
 0x57f   : > { %10058 = vmatprep.mubr.msk.bf16.mxu1 %vm2394_vm3, %v15219_v8  ;;  %v6980_v10 = vpack.c.bf16 %v15229_v59, %v13667_v41  ;;  %v15231_v8 = vld [vmem:[#allocation90_spill] sm:$0xff] }
 0x580   : > { %v6981_v0 = vpack.c.bf16 %v15231_v8, %v15230_v43 }
 0x586   : > { %10059 = vmatmul.mubr.msk.bf16.gmra.mrb[4].mxu1 %vm2394_vm3, %v15222_v23  ;;  %v6986_v23 = vpack.c.bf16 %v6954_v40, %v6399_v16 }
 0x587   : > { %10062 = vmatprep.mubr.msk.bf16.mxu1 %vm2394_vm3, %v15225_v32 }
 0x58e   : > { %10063 = vmatmul.mubr.msk.bf16.gmra.mrb[8].mxu1 %vm2394_vm3, %v15228_v22 }
 0x58f   : > { %10066 = vmatprep.mubr.msk.bf16.mxu1 %vm2394_vm3, %v13962_v44  ;;  %v6983_v44 = vpack.c.bf16 %v6394_v31, %v6393_v9  ;;  %v7453_v9 = vld [vmem:[#allocation2 + $0xe8] sm:$0xff] }
 0x596   : > { %10067 = vmatmul.mubr.msk.bf16.gmra.mrb[12].mxu1 %vm2394_vm3, %v13969_v17  ;;  %v15232_v17 = vld [vmem:[#allocation91_spill] sm:$0xff] }
 0x597   : > { %10070 = vmatprep.mubr.msk.bf16.mxu1 %vm2394_vm3, %v13973_v24  ;;  %v6982_v24 = vpack.c.bf16 %v13999_v58, %v15232_v17  ;;  %v7452_v58 = vld [vmem:[#allocation2 + $0xe0] sm:$0xff]  ;;  %v15235_v26 = vpack.c.bf16 %v15232_v17, %v15231_v8 }
 0x598   : > { %v7513_v31 = vpack.c.bf16 %v7453_v9, %v7452_v58 }
 0x59e   : > { %10071 = vmatmul.mubr.msk.bf16.gmra.mrb[16].mxu1 %vm2394_vm3, %v13983_v28  ;;  %v6984_v28 = vpack.c.bf16 %v6396_v60, %v6395_v29  ;;  %v15234_v60 = vpack.c.bf16 %v15230_v43, %v15229_v59 }
 0x59f   : > { %10074 = vmatprep.mubr.msk.bf16.mxu1 %vm2394_vm3, %v6979_v27 }
 0x5a6   : > { %10075 = vmatmul.mubr.msk.bf16.gmra.mrb[20].mxu1 %vm2394_vm3, %v6980_v10 }
 0x5a7   : > { %10078 = vmatprep.mubr.msk.bf16.mxu1 %vm2394_vm3, %v6981_v0 }
 0x5ae   : > { %10079 = vmatmul.mubr.msk.bf16.gmra.mrb[24].mxu1 %vm2394_vm3, %v6982_v24 }
 0x5af   : > { %10082 = vmatprep.mubr.msk.bf16.mxu1 %vm2394_vm3, %v6983_v44 }
 0x5b6   : > { %10083 = vmatmul.mubr.msk.bf16.gmra.mrb[28].mxu1 %vm2394_vm3, %v6984_v28 }
 0x5b7   : > { %10086 = vmatprep.mubr.msk.bf16.mxu1 %vm2394_vm3, %v6985_v35 }
 0x5be   : > { %10087 = vmatmul.mubr.msk.bf16.gmra.mrb[32].mxu1 %vm2394_vm3, %v6986_v23 }
 0x5bf   : > { %10092 = vmatprep.mubr.msk.bf16.mxu1 %vm2394_vm3, %v14217_v38  ;;  %v7460_v38 = vld [vmem:[#allocation2 + $0x130] sm:$0xff] }
 0x5c6   : > { %10093 = vmatmul.mubr.msk.bf16.vlgmr.msra.gmra.mrb[36].mxu1 %vm2394_vm3, %v14222_v21  ;;  %v7517_v21 = vpack.c.bf16 %v14063_v57, %v7460_v38  ;;  %v7484_v57 = vld [vmem:[#allocation2 + $0x220] sm:$0xff] }
 0x5c7   : > { %10096 = vmatprep.mubr.msk.bf16.mxu1 %vm2394_vm3, %v14030_v56  ;;  %v7468_v56 = vld [vmem:[#allocation2 + $0x180] sm:$0xff] }
 0x5ce   : > { %10097 = vmatmul.mubr.msk.bf16.gmra.mrb[40].mxu1 %vm2394_vm3, %v7513_v31 }
 0x5cf   : > { %10100 = vmatprep.mubr.msk.bf16.mxu1 %vm2394_vm3, %v14241_v54 }
 0x5d6   : > { %10101 = vmatmul.mubr.msk.bf16.gmra.mrb[44].mxu1 %vm2394_vm3, %v14243_v4  ;;  %v7521_v4 = vpack.c.bf16 %v14090_v3, %v7468_v56  ;;  %v7487_v3 = vld [vmem:[#allocation2 + $0x248] sm:$0xff] }
 0x5d7   : > { %10104 = vmatprep.mubr.msk.bf16.mxu1 %vm2394_vm3, %v14249_v39  ;;  %v7476_v39 = vld [vmem:[#allocation2 + $0x1d0] sm:$0xff] }
 0x5d8   : > { %v7525_v54 = vpack.c.bf16 %v14117_v62, %v7476_v39  ;;  %v7489_v62 = vld [vmem:[#allocation2 + $0x258] sm:$0xff] }
 0x5de   : > { %10105 = vmatmul.mubr.msk.bf16.gmra.mrb[48].mxu1 %vm2394_vm3, %v7517_v21 }
 0x5df   : > { %10108 = vmatprep.mubr.msk.bf16.mxu1 %vm2394_vm3, %v14254_v6 }
 0x5e6   : > { %10109 = vmatmul.mubr.msk.bf16.gmra.mrb[52].mxu1 %vm2394_vm3, %v14256_v63  ;;  %v7486_v63 = vld [vmem:[#allocation2 + $0x240] sm:$0xff] }
 0x5e7   : > { %10112 = vmatprep.mubr.msk.bf16.mxu1 %vm2394_vm3, %v14262_v1  ;;  %v7530_v6 = vpack.c.bf16 %v7487_v3, %v7486_v63  ;;  %v7491_v1 = vld [vmem:[#allocation2 + $0x268] sm:$0xff] }
 0x5ee   : > { %10113 = vmatmul.mubr.msk.bf16.gmra.mrb[56].mxu1 %vm2394_vm3, %v7521_v4 }
 0x5ef   : > { %10116 = vmatprep.mubr.msk.bf16.mxu1 %vm2394_vm3, %v14267_v49  ;;  %v7488_v49 = vld [vmem:[#allocation2 + $0x250] sm:$0xff] }
 0x5f6   : > { %10117 = vmatmul.mubr.msk.bf16.gmra.mrb[60].mxu1 %vm2394_vm3, %v14269_v2  ;;  %v7529_v2 = vpack.c.bf16 %v14142_v20, %v7484_v57  ;;  %v15233_v20 = vpack.c.bf16 %v13667_v41, %v13661_v14  ;;  %v7509_v14 = vld [vmem:[#allocation2 + $0x318] sm:$0xff] }
 0x5f7   : > { %10120 = vmatprep.mubr.msk.bf16.mxu1 %vm2394_vm3, %v14275_v15  ;;  %v7531_v15 = vpack.c.bf16 %v7489_v62, %v7488_v49  ;;  %v7541_v41 = vpack.c.bf16 %v7509_v14, %v6954_v40 }
 0x5fe   : > { %10121 = vmatmul.mubr.msk.bf16.gmra.mrb[0].mxu1 %vm2394_vm3, %v7525_v54 }
 0x5ff   : > { %10124 = vmatprep.mubr.msk.bf16.mxu1 %vm2394_vm3, %v14280_v48  ;;  %v7490_v48 = vld [vmem:[#allocation2 + $0x260] sm:$0xff] }
 0x600   : > { %v7532_v29 = vpack.c.bf16 %v7491_v1, %v7490_v48 }
 0x606   : > { %10125 = vmatmul.mubr.msk.bf16.gmra.mrb[4].mxu1 %vm2394_vm3, %v14282_v33  ;;  %v7492_v33 = vld [vmem:[#allocation2 + $0x270] sm:$0xff] }
 0x607   : > { %10128 = vmatprep.mubr.msk.bf16.mxu1 %vm2394_vm3, %v14288_v19  ;;  %v7533_v19 = vpack.c.bf16 %v14171_v50, %v7492_v33  ;;  %v7537_v50 = vpack.c.bf16 %v14198_v30, %v7500_v46 }
 0x60e   : > { %10129 = vmatmul.mubr.msk.bf16.gmra.mrb[8].mxu1 %vm2394_vm3, %v7529_v2 }
 0x60f   : > { %10132 = vmatprep.mubr.msk.bf16.mxu1 %vm2394_vm3, %v7530_v6 }
 0x616   : > { %10133 = vmatmul.mubr.msk.bf16.gmra.mrb[12].mxu1 %vm2394_vm3, %v7531_v15 }
 0x617   : > { %10136 = vmatprep.mubr.msk.bf16.mxu1 %vm2394_vm3, %v7532_v29 }
 0x61e   : > { %10137 = vmatmul.mubr.msk.bf16.gmra.mrb[16].mxu1 %vm2394_vm3, %v7533_v19  ;;  %v15236_v19 = vld [vmem:[#allocation81_spill] sm:$0xff] }
 0x61f   : > { %10140 = vmatprep.mubr.msk.bf16.mxu1 %vm2394_vm3, %v15233_v20 }
 0x626   : > { %10141 = vmatmul.mubr.msk.bf16.gmra.mrb[20].mxu1 %vm2394_vm3, %v15234_v60 }
 0x627   : > { %10144 = vmatprep.mubr.msk.bf16.mxu1 %vm2394_vm3, %v15235_v26 }
 0x62e   : > { %10145 = vmatmul.mubr.msk.bf16.gmra.mrb[24].mxu1 %vm2394_vm3, %v7537_v50 }
 0x62f   : > { %10148 = vmatprep.mubr.msk.bf16.mxu1 %vm2394_vm3, %v14308_v55 }
 0x636   : > { %10149 = vmatmul.mubr.msk.bf16.gmra.mrb[28].mxu1 %vm2394_vm3, %v14310_v34 }
 0x637   : > { %10152 = vmatprep.mubr.msk.bf16.mxu1 %vm2394_vm3, %v14316_v52 }
 0x63e   : > { %10153 = vmatmul.mubr.msk.bf16.gmra.mrb[32].mxu1 %vm2394_vm3, %v7541_v41 }
 0x699   : > { %v10094_v16 = vpop.f32.mrb[36].mxu1 }
 0x69a   : > { %v10158_v30 = vadd.f32 %v10094_v16, %v14140_v18  ;;  %v7681_v45 = vpop.f32.mrb[37].mxu1 }
 0x69b   : > { %v10159_v32 = vadd.f32 %v7681_v45, %v14144_v61  ;;  %v10095_v36 = vpop.f32.mrb[38].mxu1 }
 0x69c   : > { %v8009_v55 = vadd.f32 %v10158_v30, %v14489_v51  ;;  %v10160_v34 = vadd.f32 %v10095_v36, %v14146_v7  ;;  %v7684_v5 = vpop.f32.mrb[39].mxu1 }
 0x69d   : > { %v8007_v52 = vadd.f32 %v10159_v32, %v14489_v51  ;;  %v10161_v22 = vadd.f32 %v7684_v5, %v14148_v25  ;;  %v15238_v5 = vld [vmem:[#allocation87_spill] sm:$0xff] }
 0x69e   : > { %v8073_v27 = vmax.f32 %v8009_v55, 0.0  ;;  %v8010_v59 = vadd.f32 %v10160_v34, %v14489_v51 }
 0x69f   : > { %v8071_v10 = vmax.f32 %v8007_v52, 0.0  ;;  %v8008_v18 = vadd.f32 %v10161_v22, %v14489_v51 }
 0x6a0   : > { %v8074_v43 = vmax.f32 %v8010_v59, 0.0  ;;  %v8139_v0 = vsel %vm8135_vm4, %v8073_v27, -inf }
 0x6a1   : > { %v8072_v8 = vmax.f32 %v8008_v18, 0.0  ;;  %v10098_v61 = vpop.f32.mrb[40].mxu1  ;;  %v8136_v24 = vsel %vm8135_vm4, %v8071_v10, -inf  ;;  %v15239_v18 = vld [vmem:[#allocation102_spill] sm:$0xff] }
 0x6a2   : > { %v8140_v44 = vsel %vm8135_vm4, %v8074_v43, -inf  ;;  %v10162_v7 = vadd.f32 %v10098_v61, %v14155_v42  ;;  %v7697_v17 = vpop.f32.mrb[41].mxu1 }
 0x6a3   : > { %v8141_v25 = vmax.f32 %v8139_v0, %v8140_v44  ;;  %v8137_v28 = vsel %vm8135_vm4, %v8072_v8, -inf  ;;  %v10163_v35 = vadd.f32 %v7697_v17, %v14157_v13  ;;  %v10099_v40 = vpop.f32.mrb[42].mxu1 }
 0x6a4   : > { %v8138_v23 = vmax.f32 %v8136_v24, %v8137_v28  ;;  %v8013_v58 = vadd.f32 %v10162_v7, %v14489_v51  ;;  %v10164_v9 = vadd.f32 %v10099_v40, %v14159_v53  ;;  %v7700_v31 = vpop.f32.mrb[43].mxu1  ;;  %v15240_v7 = vld [vmem:[#allocation103_spill] sm:$0xff] }
 0x6a5   : > { %v8011_v38 = vadd.f32 %v10163_v35, %v14489_v51  ;;  %v10165_v21 = vadd.f32 %v7700_v31, %v14161_v37  ;;  %v8235_v27 = vsel %vm8135_vm4, %v8141_v25, -inf }
 0x6a6   : > { %v8077_v42 = vmax.f32 %v8013_v58, 0.0  ;;  %v8014_v56 = vadd.f32 %v10164_v9, %v14489_v51  ;;  %v8232_v61 = vsel %vm8135_vm4, %v8138_v23, -inf }
 0x6a7   : > { %v8075_v4 = vmax.f32 %v8011_v38, 0.0  ;;  %v8012_v39 = vadd.f32 %v10165_v21, %v14489_v51 }
 0x6a8   : > { %v8078_v54 = vmax.f32 %v8014_v56, 0.0  ;;  %v14512_v3 = vsel %vm8135_vm4, %v8077_v42, -inf }
 0x6a9   : > { %v8076_v57 = vmax.f32 %v8012_v39, 0.0  ;;  %v10102_v13 = vpop.f32.mrb[44].mxu1  ;;  %v14519_v37 = vsel %vm8135_vm4, %v8075_v4, -inf  ;;  %v15241_v39 = vld [vmem:[#allocation104_spill] sm:$0xff] }
 0x6aa   : > { %v14515_v2 = vsel %vm8135_vm4, %v8078_v54, -inf  ;;  %v10166_v53 = vadd.f32 %v10102_v13, %v14167_v47  ;;  %v7713_v63 = vpop.f32.mrb[45].mxu1 }
 0x6ab   : > { %v8147_v6 = vmax.f32 %v14512_v3, %v14515_v2  ;;  %v14524_v62 = vsel %vm8135_vm4, %v8076_v57, -inf  ;;  %v10167_v1 = vadd.f32 %v7713_v63, %v14169_v12  ;;  %v10103_v49 = vpop.f32.mrb[46].mxu1 }
 0x6ac   : > { %v8144_v15 = vmax.f32 %v14519_v37, %v14524_v62  ;;  %v8017_v48 = vadd.f32 %v10166_v53, %v14489_v51  ;;  %v10168_v47 = vadd.f32 %v10103_v49, %v14173_v11  ;;  %v7716_v29 = vpop.f32.mrb[47].mxu1  ;;  %v15237_v11 = vld [vmem:[#allocation84_spill] sm:$0xff]  ;;  %v15242_v53 = vld [vmem:[#allocation105_spill] sm:$0xff] }
 0x6ad   : > { %v8015_v33 = vadd.f32 %v10167_v1, %v14489_v51  ;;  %v10169_v20 = vadd.f32 %v7716_v29, %v15236_v19  ;;  %v8241_v62 = vsel %vm8135_vm4, %v8147_v6, -inf }
 0x6ae   : > { %v8081_v60 = vmax.f32 %v8017_v48, 0.0  ;;  %v8018_v26 = vadd.f32 %v10168_v47, %v14489_v51  ;;  %v15243_v48 = vld [vmem:[#allocation106_spill] sm:$0xff] }
 0x6af   : > { %v8079_v46 = vmax.f32 %v8015_v33, 0.0  ;;  %v8016_v12 = vadd.f32 %v10169_v20, %v14489_v51  ;;  %v8238_v33 = vsel %vm8135_vm4, %v8144_v15, -inf }
 0x6b0   : > { %v8082_v50 = vmax.f32 %v8018_v26, 0.0  ;;  %v8151_v16 = vsel %vm8135_vm4, %v8081_v60, -inf  ;;  %v15244_v60 = vld [vmem:[#allocation107_spill] sm:$0xff] }
 0x6b1   : > { %v8080_v14 = vmax.f32 %v8016_v12, 0.0  ;;  %v10106_v41 = vpop.f32.mrb[48].mxu1  ;;  %v8148_v36 = vsel %vm8135_vm4, %v8079_v46, -inf }
 0x6b2   : > { %v8152_v30 = vsel %vm8135_vm4, %v8082_v50, -inf  ;;  %v10170_v45 = vadd.f32 %v10106_v41, %v15237_v11  ;;  %v7729_v32 = vpop.f32.mrb[49].mxu1 }
 0x6b3   : > { %v8153_v55 = vmax.f32 %v8151_v16, %v8152_v30  ;;  %v8149_v34 = vsel %vm8135_vm4, %v8080_v14, -inf  ;;  %v10171_v52 = vadd.f32 %v7729_v32, %v15238_v5  ;;  %v10107_v22 = vpop.f32.mrb[50].mxu1 }
 0x6b4   : > { %v8150_v59 = vmax.f32 %v8148_v36, %v8149_v34  ;;  %v8021_v10 = vadd.f32 %v10170_v45, %v14489_v51  ;;  %v10172_v43 = vadd.f32 %v10107_v22, %v15239_v18  ;;  %v7732_v8 = vpop.f32.mrb[51].mxu1  ;;  %v15245_v34 = vld [vmem:[#allocation108_spill] sm:$0xff] }
 0x6b5   : > { %v8236_v0 = vsel %vm8135_vm4, %v8153_v55, -inf  ;;  %v8019_v44 = vadd.f32 %v10171_v52, %v14489_v51  ;;  %v10173_v17 = vadd.f32 %v7732_v8, %v15240_v7 }
 0x6b6   : > { %v8237_v24 = vmax.f32 %v8235_v27, %v8236_v0  ;;  %v8233_v28 = vsel %vm8135_vm4, %v8150_v59, -inf  ;;  %v8085_v35 = vmax.f32 %v8021_v10, 0.0  ;;  %v8022_v25 = vadd.f32 %v10172_v43, %v14489_v51  ;;  %v15246_v10 = vld [vmem:[#allocation109_spill] sm:$0xff]  ;;  %v15247_v0 = vld [vmem:[#allocation110_spill] sm:$0xff] }
 0x6b7   : > { %v8234_v40 = vmax.f32 %v8232_v61, %v8233_v28  ;;  %v8083_v58 = vmax.f32 %v8019_v44, 0.0  ;;  %v8020_v9 = vadd.f32 %v10173_v17, %v14489_v51 }
 0x6b8   : > { %v8281_v31 = vpack.c.bf16 %v8237_v24, %v8237_v24  ;;  %v8086_v38 = vmax.f32 %v8022_v25, 0.0  ;;  %v8157_v56 = vsel %vm8135_vm4, %v8085_v35, -inf  ;;  %v15248_v24 = vld [vmem:[#allocation111_spill] sm:$0xff] }
 0x6b9   : > { %v8280_v23 = vpack.c.bf16 %v8234_v40, %v8234_v40  ;;  %v8084_v21 = vmax.f32 %v8020_v9, 0.0  ;;  %v10110_v42 = vpop.f32.mrb[52].mxu1  ;;  %v8154_v13 = vsel %vm8135_vm4, %v8083_v58, -inf }
 0x6ba   : > { %8298 = vst.msk [vmem:[%s14552_s23 + $0x4] sm:$0xf] %vm8296_vm5, %v8281_v31  ;;  %v8158_v4 = vsel %vm8135_vm4, %v8086_v38, -inf  ;;  %v10174_v54 = vadd.f32 %v10110_v42, %v15241_v39  ;;  %v7745_v57 = vpop.f32.mrb[53].mxu1  ;;  %v15249_v42 = vld [vmem:[#allocation112_spill] sm:$0xff] }
 0x6bb   : > { %8297 = vst.msk [vmem:[%s14552_s23] sm:$0xf] %vm8296_vm5, %v8280_v23  ;;  %v8159_v3 = vmax.f32 %v8157_v56, %v8158_v4  ;;  %v8155_v2 = vsel %vm8135_vm4, %v8084_v21, -inf  ;;  %v10175_v63 = vadd.f32 %v7745_v57, %v15242_v53  ;;  %v10111_v37 = vpop.f32.mrb[54].mxu1 }
 0x6bc   : > { %v8156_v1 = vmax.f32 %v8154_v13, %v8155_v2  ;;  %v8025_v49 = vadd.f32 %v10174_v54, %v14489_v51  ;;  %v10176_v47 = vadd.f32 %v10111_v37, %v15243_v48  ;;  %v7748_v29 = vpop.f32.mrb[55].mxu1  ;;  %v15250_v13 = vld [vmem:[#allocation113_spill] sm:$0xff]  ;;  %v15251_v37 = vld [vmem:[#allocation114_spill] sm:$0xff]  ;;  %v15252_v48 = vld [vmem:[#allocation115_spill] sm:$0xff] }
 0x6bd   : > { %v8242_v19 = vsel %vm8135_vm4, %v8159_v3, -inf  ;;  %v8023_v20 = vadd.f32 %v10175_v63, %v14489_v51  ;;  %v10177_v26 = vadd.f32 %v7748_v29, %v15244_v60 }
 0x6be   : > { %v8243_v46 = vmax.f32 %v8241_v62, %v8242_v19  ;;  %v8239_v12 = vsel %vm8135_vm4, %v8156_v1, -inf  ;;  %v8089_v6 = vmax.f32 %v8025_v49, 0.0  ;;  %v8026_v50 = vadd.f32 %v10176_v47, %v14489_v51 }
 0x6bf   : > { %v8240_v14 = vmax.f32 %v8238_v33, %v8239_v12  ;;  %v8087_v41 = vmax.f32 %v8023_v20, 0.0  ;;  %v8024_v16 = vadd.f32 %v10177_v26, %v14489_v51 }
 0x6c0   : > { %v8283_v30 = vpack.c.bf16 %v8243_v46, %v8243_v46  ;;  %v8090_v15 = vmax.f32 %v8026_v50, 0.0  ;;  %v8163_v36 = vsel %vm8135_vm4, %v8089_v6, -inf  ;;  %v15253_v50 = vld [vmem:[#allocation29_spill] sm:$0xff] }
 0x6c1   : > { %v8282_v11 = vpack.c.bf16 %v8240_v14, %v8240_v14  ;;  %v8088_v45 = vmax.f32 %v8024_v16, 0.0  ;;  %v10114_v32 = vpop.f32.mrb[56].mxu1  ;;  %v8160_v22 = vsel %vm8135_vm4, %v8087_v41, -inf }
 0x6c2   : > { %8300 = vst.msk [vmem:[%s14552_s23 + $0xc] sm:$0xf] %vm8296_vm5, %v8283_v30  ;;  %v8164_v55 = vsel %vm8135_vm4, %v8090_v15, -inf  ;;  %v10178_v5 = vadd.f32 %v10114_v32, %v15245_v34  ;;  %v7761_v52 = vpop.f32.mrb[57].mxu1 }
 0x6c3   : > { %8299 = vst.msk [vmem:[%s14552_s23 + $0x8] sm:$0xf] %vm8296_vm5, %v8282_v11  ;;  %v8165_v27 = vmax.f32 %v8163_v36, %v8164_v55  ;;  %v8161_v59 = vsel %vm8135_vm4, %v8088_v45, -inf  ;;  %v10179_v18 = vadd.f32 %v7761_v52, %v15246_v10  ;;  %v10115_v43 = vpop.f32.mrb[58].mxu1  ;;  %v15254_v11 = vld [vmem:[#allocation31_spill] sm:$0xff] }
 0x6c4   : > { %v8162_v8 = vmax.f32 %v8160_v22, %v8161_v59  ;;  %v8029_v61 = vadd.f32 %v10178_v5, %v14489_v51  ;;  %v10180_v44 = vadd.f32 %v10115_v43, %v15247_v0  ;;  %v7764_v7 = vpop.f32.mrb[59].mxu1  ;;  %v15255_v5 = vld [vmem:[#allocation33_spill] sm:$0xff]  ;;  %v15256_v43 = vld [vmem:[#allocation34_spill] sm:$0xff] }
 0x6c5   : > { %v8027_v17 = vadd.f32 %v10179_v18, %v14489_v51  ;;  %v10181_v28 = vadd.f32 %v7764_v7, %v15248_v24  ;;  %v8247_v36 = vsel %vm8135_vm4, %v8165_v27, -inf }
 0x6c6   : > { %v8093_v35 = vmax.f32 %v8029_v61, 0.0  ;;  %v8030_v25 = vadd.f32 %v10180_v44, %v14489_v51  ;;  %v8244_v59 = vsel %vm8135_vm4, %v8162_v8, -inf }
 0x6c7   : > { %v8091_v40 = vmax.f32 %v8027_v17, 0.0  ;;  %v8028_v58 = vadd.f32 %v10181_v28, %v14489_v51 }
 0x6c8   : > { %v8094_v9 = vmax.f32 %v8030_v25, 0.0  ;;  %v14591_v23 = vsel %vm8135_vm4, %v8093_v35, -inf }
 0x6c9   : > { %v8092_v31 = vmax.f32 %v8028_v58, 0.0  ;;  %v10118_v38 = vpop.f32.mrb[60].mxu1  ;;  %v14598_v39 = vsel %vm8135_vm4, %v8091_v40, -inf }
 0x6ca   : > { %v14594_v21 = vsel %vm8135_vm4, %v8094_v9, -inf  ;;  %v10182_v56 = vadd.f32 %v10118_v38, %v15249_v42  ;;  %v7777_v4 = vpop.f32.mrb[61].mxu1  ;;  %v15257_v38 = vld [vmem:[#allocation39_spill] sm:$0xff] }
 0x6cb   : > { %v8171_v54 = vmax.f32 %v14591_v23, %v14594_v21  ;;  %v14603_v57 = vsel %vm8135_vm4, %v8092_v31, -inf  ;;  %v10183_v3 = vadd.f32 %v7777_v4, %v15250_v13  ;;  %v10119_v2 = vpop.f32.mrb[62].mxu1 }
 0x6cc   : > { %v8168_v53 = vmax.f32 %v14598_v39, %v14603_v57  ;;  %v8033_v63 = vadd.f32 %v10182_v56, %v14489_v51  ;;  %v10184_v62 = vadd.f32 %v10119_v2, %v15251_v37  ;;  %v7780_v1 = vpop.f32.mrb[63].mxu1  ;;  %v15258_v39 = vld [vmem:[#allocation41_spill] sm:$0xff]  ;;  %v15259_v37 = vld [vmem:[#allocation43_spill] sm:$0xff] }
 0x6cd   : > { %v8031_v49 = vadd.f32 %v10183_v3, %v14489_v51  ;;  %v10185_v47 = vadd.f32 %v7780_v1, %v15252_v48  ;;  %v8253_v3 = vsel %vm8135_vm4, %v8171_v54, -inf }
 0x6ce   : > { %v8097_v29 = vmax.f32 %v8033_v63, 0.0  ;;  %v8034_v33 = vadd.f32 %v10184_v62, %v14489_v51 }
 0x6cf   : > { %v8095_v19 = vmax.f32 %v8031_v49, 0.0  ;;  %v8032_v20 = vadd.f32 %v10185_v47, %v14489_v51  ;;  %v8250_v49 = vsel %vm8135_vm4, %v8168_v53, -inf }
 0x6d0   : > { %v8098_v60 = vmax.f32 %v8034_v33, 0.0  ;;  %v8175_v12 = vsel %vm8135_vm4, %v8097_v29, -inf  ;;  %v15260_v29 = vld [vmem:[#allocation45_spill] sm:$0xff] }
 0x6d1   : > { %v8096_v26 = vmax.f32 %v8032_v20, 0.0  ;;  %v10122_v46 = vpop.f32.mrb[0].mxu1  ;;  %v8172_v16 = vsel %vm8135_vm4, %v8095_v19, -inf }
 0x6d2   : > { %v8176_v6 = vsel %vm8135_vm4, %v8098_v60, -inf  ;;  %v10186_v14 = vadd.f32 %v10122_v46, %v15253_v50  ;;  %v7793_v41 = vpop.f32.mrb[1].mxu1 }
 0x6d3   : > { %v8177_v30 = vmax.f32 %v8175_v12, %v8176_v6  ;;  %v8173_v15 = vsel %vm8135_vm4, %v8096_v26, -inf  ;;  %v10187_v45 = vadd.f32 %v7793_v41, %v15254_v11  ;;  %v10123_v32 = vpop.f32.mrb[2].mxu1 }
 0x6d4   : > { %v8174_v55 = vmax.f32 %v8172_v16, %v8173_v15  ;;  %v8037_v34 = vadd.f32 %v10186_v14, %v14489_v51  ;;  %v10188_v52 = vadd.f32 %v10123_v32, %v15255_v5  ;;  %v7796_v22 = vpop.f32.mrb[3].mxu1  ;;  %v15261_v15 = vld [vmem:[#allocation47_spill] sm:$0xff] }
 0x6d5   : > { %v8248_v10 = vsel %vm8135_vm4, %v8177_v30, -inf  ;;  %v8035_v18 = vadd.f32 %v10187_v45, %v14489_v51  ;;  %v10189_v61 = vadd.f32 %v7796_v22, %v15256_v43 }
 0x6d6   : > { %v8249_v0 = vmax.f32 %v8247_v36, %v8248_v10  ;;  %v8245_v44 = vsel %vm8135_vm4, %v8174_v55, -inf  ;;  %v8101_v27 = vmax.f32 %v8037_v34, 0.0  ;;  %v8038_v7 = vadd.f32 %v10188_v52, %v14489_v51  ;;  %v15262_v34 = vld [vmem:[#allocation49_spill] sm:$0xff] }
 0x6d7   : > { %v8246_v17 = vmax.f32 %v8244_v59, %v8245_v44  ;;  %v8099_v24 = vmax.f32 %v8035_v18, 0.0  ;;  %v8036_v28 = vadd.f32 %v10189_v61, %v14489_v51  ;;  %v15263_v10 = vld [vmem:[#allocation53_spill] sm:$0xff] }
 0x6d8   : > { %v8285_v35 = vpack.c.bf16 %v8249_v0, %v8249_v0  ;;  %v8102_v8 = vmax.f32 %v8038_v7, 0.0  ;;  %v8181_v9 = vsel %vm8135_vm4, %v8101_v27, -inf  ;;  %v15264_v0 = vld [vmem:[#allocation55_spill] sm:$0xff] }
 0x6d9   : > { %v8284_v25 = vpack.c.bf16 %v8246_v17, %v8246_v17  ;;  %v8100_v40 = vmax.f32 %v8036_v28, 0.0  ;;  %v10126_v58 = vpop.f32.mrb[4].mxu1  ;;  %v8178_v42 = vsel %vm8135_vm4, %v8099_v24, -inf }
 0x6da   : > { %8302 = vst.msk [vmem:[%s14552_s23 + $0x14] sm:$0xf] %vm8296_vm5, %v8285_v35  ;;  %v8182_v31 = vsel %vm8135_vm4, %v8102_v8, -inf  ;;  %v10190_v23 = vadd.f32 %v10126_v58, %v15257_v38  ;;  %v7809_v21 = vpop.f32.mrb[5].mxu1  ;;  %v15265_v58 = vld [vmem:[#allocation57_spill] sm:$0xff] }
 0x6db   : > { %8301 = vst.msk [vmem:[%s14552_s23 + $0x10] sm:$0xf] %vm8296_vm5, %v8284_v25  ;;  %v8183_v56 = vmax.f32 %v8181_v9, %v8182_v31  ;;  %v8179_v4 = vsel %vm8135_vm4, %v8100_v40, -inf  ;;  %v10191_v57 = vadd.f32 %v7809_v21, %v15258_v39  ;;  %v10127_v13 = vpop.f32.mrb[6].mxu1 }
 0x6dc   : > { %v8180_v2 = vmax.f32 %v8178_v42, %v8179_v4  ;;  %v8041_v63 = vadd.f32 %v10190_v23, %v14489_v51  ;;  %v10192_v62 = vadd.f32 %v10127_v13, %v15259_v37  ;;  %v7812_v1 = vpop.f32.mrb[7].mxu1  ;;  %v15266_v42 = vld [vmem:[#allocation59_spill] sm:$0xff]  ;;  %v15267_v13 = vld [vmem:[#allocation61_spill] sm:$0xff] }
 0x6dd   : > { %v8254_v48 = vsel %vm8135_vm4, %v8183_v56, -inf  ;;  %v8039_v47 = vadd.f32 %v10191_v57, %v14489_v51  ;;  %v10193_v33 = vadd.f32 %v7812_v1, %v15260_v29  ;;  %v15268_v37 = vld [vmem:[#allocation63_spill] sm:$0xff] }
 0x6de   : > { %v8255_v19 = vmax.f32 %v8253_v3, %v8254_v48  ;;  %v8251_v20 = vsel %vm8135_vm4, %v8180_v2, -inf  ;;  %v8105_v54 = vmax.f32 %v8041_v63, 0.0  ;;  %v8042_v60 = vadd.f32 %v10192_v62, %v14489_v51 }
 0x6df   : > { %v8252_v26 = vmax.f32 %v8250_v49, %v8251_v20  ;;  %v8103_v46 = vmax.f32 %v8039_v47, 0.0  ;;  %v8040_v12 = vadd.f32 %v10193_v33, %v14489_v51 }
 0x6e0   : > { %v8287_v6 = vpack.c.bf16 %v8255_v19, %v8255_v19  ;;  %v8106_v53 = vmax.f32 %v8042_v60, 0.0  ;;  %v8187_v16 = vsel %vm8135_vm4, %v8105_v54, -inf  ;;  %v15269_v60 = vld [vmem:[#allocation69_spill] sm:$0xff] }
 0x6e1   : > { %v8286_v50 = vpack.c.bf16 %v8252_v26, %v8252_v26  ;;  %v8104_v14 = vmax.f32 %v8040_v12, 0.0  ;;  %v10130_v41 = vpop.f32.mrb[8].mxu1  ;;  %v8184_v32 = vsel %vm8135_vm4, %v8103_v46, -inf }
 0x6e2   : > { %8304 = vst.msk [vmem:[%s14552_s23 + $0x1c] sm:$0xf] %vm8296_vm5, %v8287_v6  ;;  %v8188_v30 = vsel %vm8135_vm4, %v8106_v53, -inf  ;;  %v10194_v11 = vadd.f32 %v10130_v41, %v15261_v15  ;;  %v7825_v45 = vpop.f32.mrb[9].mxu1 }
 0x6e3   : > { %8303 = vst.msk [vmem:[%s14552_s23 + $0x18] sm:$0xf] %vm8296_vm5, %v8286_v50  ;;  %v8189_v36 = vmax.f32 %v8187_v16, %v8188_v30  ;;  %v8185_v55 = vsel %vm8135_vm4, %v8104_v14, -inf  ;;  %v10195_v5 = vadd.f32 %v7825_v45, %v15262_v34  ;;  %v10131_v52 = vpop.f32.mrb[10].mxu1  ;;  %v15270_v50 = vld [vmem:[#allocation71_spill] sm:$0xff] }
 0x6e4   : > { %v8186_v22 = vmax.f32 %v8184_v32, %v8185_v55  ;;  %v8045_v59 = vadd.f32 %v10194_v11, %v14489_v51  ;;  %v10196_v18 = vadd.f32 %v10131_v52, %v15263_v10  ;;  %v7828_v43 = vpop.f32.mrb[11].mxu1  ;;  %v15271_v11 = vld [vmem:[#allocation73_spill] sm:$0xff]  ;;  %v15272_v52 = vld [vmem:[#allocation75_spill] sm:$0xff] }
 0x6e5   : > { %v8043_v61 = vadd.f32 %v10195_v5, %v14489_v51  ;;  %v10197_v44 = vadd.f32 %v7828_v43, %v15264_v0  ;;  %v8259_v16 = vsel %vm8135_vm4, %v8189_v36, -inf }
 0x6e6   : > { %v8109_v27 = vmax.f32 %v8045_v59, 0.0  ;;  %v8046_v7 = vadd.f32 %v10196_v18, %v14489_v51  ;;  %v8256_v55 = vsel %vm8135_vm4, %v8186_v22, -inf }
 0x6e7   : > { %v8107_v17 = vmax.f32 %v8043_v61, 0.0  ;;  %v8044_v24 = vadd.f32 %v10197_v44, %v14489_v51 }
 0x6e8   : > { %v8110_v28 = vmax.f32 %v8046_v7, 0.0  ;;  %v14667_v25 = vsel %vm8135_vm4, %v8109_v27, -inf }
 0x6e9   : > { %v8108_v35 = vmax.f32 %v8044_v24, 0.0  ;;  %v10134_v8 = vpop.f32.mrb[12].mxu1  ;;  %v14674_v38 = vsel %vm8135_vm4, %v8107_v17, -inf }
 0x6ea   : > { %v14670_v40 = vsel %vm8135_vm4, %v8110_v28, -inf  ;;  %v10198_v9 = vadd.f32 %v10134_v8, %v15265_v58  ;;  %v7841_v31 = vpop.f32.mrb[13].mxu1  ;;  %v15273_v8 = vld [vmem:[#allocation80_spill] sm:$0xff] }
 0x6eb   : > { %v8195_v23 = vmax.f32 %v14667_v25, %v14670_v40  ;;  %v14679_v21 = vsel %vm8135_vm4, %v8108_v35, -inf  ;;  %v10199_v56 = vadd.f32 %v7841_v31, %v15266_v42  ;;  %v10135_v4 = vpop.f32.mrb[14].mxu1 }
 0x6ec   : > { %v8192_v39 = vmax.f32 %v14674_v38, %v14679_v21  ;;  %v8049_v57 = vadd.f32 %v10198_v9, %v14489_v51  ;;  %v10200_v3 = vadd.f32 %v10135_v4, %v15267_v13  ;;  %v7844_v2 = vpop.f32.mrb[15].mxu1  ;;  %v15274_v38 = vld [vmem:[#allocation79_spill] sm:$0xff] }
 0x6ed   : > { %v8047_v63 = vadd.f32 %v10199_v56, %v14489_v51  ;;  %v10201_v62 = vadd.f32 %v7844_v2, %v15268_v37  ;;  %v8265_v56 = vsel %vm8135_vm4, %v8195_v23, -inf  ;;  %v15275_v13 = vld [vmem:[#allocation83_spill] sm:$0xff] }
 0x6ee   : > { %v8113_v1 = vmax.f32 %v8049_v57, 0.0  ;;  %v8050_v49 = vadd.f32 %v10200_v3, %v14489_v51 }
 0x6ef   : > { %v8111_v48 = vmax.f32 %v8047_v63, 0.0  ;;  %v8048_v47 = vadd.f32 %v10201_v62, %v14489_v51  ;;  %v8262_v63 = vsel %vm8135_vm4, %v8192_v39, -inf }
 0x6f0   : > { %v8114_v29 = vmax.f32 %v8050_v49, 0.0  ;;  %v8199_v20 = vsel %vm8135_vm4, %v8113_v1, -inf  ;;  %v15276_v1 = vld [vmem:[#allocation82_spill] sm:$0xff] }
 0x6f1   : > { %v8112_v33 = vmax.f32 %v8048_v47, 0.0  ;;  %v10138_v19 = vpop.f32.mrb[16].mxu1  ;;  %v8196_v12 = vsel %vm8135_vm4, %v8111_v48, -inf }
 0x6f2   : > { %v8200_v54 = vsel %vm8135_vm4, %v8114_v29, -inf  ;;  %v10202_v26 = vadd.f32 %v10138_v19, %v15269_v60  ;;  %v7857_v46 = vpop.f32.mrb[17].mxu1 }
 0x6f3   : > { %v8201_v6 = vmax.f32 %v8199_v20, %v8200_v54  ;;  %v8197_v53 = vsel %vm8135_vm4, %v8112_v33, -inf  ;;  %v10203_v14 = vadd.f32 %v7857_v46, %v15270_v50  ;;  %v10139_v41 = vpop.f32.mrb[18].mxu1 }
 0x6f4   : > { %v8198_v30 = vmax.f32 %v8196_v12, %v8197_v53  ;;  %v8053_v15 = vadd.f32 %v10202_v26, %v14489_v51  ;;  %v10204_v45 = vadd.f32 %v10139_v41, %v15271_v11  ;;  %v7860_v32 = vpop.f32.mrb[19].mxu1  ;;  %v15277_v53 = vld [vmem:[#allocation86_spill] sm:$0xff] }
 0x6f5   : > { %v8260_v34 = vsel %vm8135_vm4, %v8201_v6, -inf  ;;  %v8051_v5 = vadd.f32 %v10203_v14, %v14489_v51  ;;  %v10205_v59 = vadd.f32 %v7860_v32, %v15272_v52 }
 0x6f6   : > { %v8261_v10 = vmax.f32 %v8259_v16, %v8260_v34  ;;  %v8257_v18 = vsel %vm8135_vm4, %v8198_v30, -inf  ;;  %v8117_v36 = vmax.f32 %v8053_v15, 0.0  ;;  %v8054_v43 = vadd.f32 %v10204_v45, %v14489_v51  ;;  %v15278_v15 = vld [vmem:[#allocation85_spill] sm:$0xff]  ;;  %v15279_v34 = vld [vmem:[#allocation92_spill] sm:$0xff] }
 0x6f7   : > { %v8258_v61 = vmax.f32 %v8256_v55, %v8257_v18  ;;  %v8115_v0 = vmax.f32 %v8051_v5, 0.0  ;;  %v8052_v44 = vadd.f32 %v10205_v59, %v14489_v51 }
 0x6f8   : > { %v8289_v27 = vpack.c.bf16 %v8261_v10, %v8261_v10  ;;  %v8118_v22 = vmax.f32 %v8054_v43, 0.0  ;;  %v8205_v28 = vsel %vm8135_vm4, %v8117_v36, -inf  ;;  %v15280_v10 = vld [vmem:[#allocation93_spill] sm:$0xff] }
 0x6f9   : > { %v8288_v7 = vpack.c.bf16 %v8258_v61, %v8258_v61  ;;  %v8116_v17 = vmax.f32 %v8052_v44, 0.0  ;;  %v10142_v24 = vpop.f32.mrb[20].mxu1  ;;  %v8202_v58 = vsel %vm8135_vm4, %v8115_v0, -inf }
 0x6fa   : > { %8306 = vst.msk [vmem:[%s14552_s23 + $0x24] sm:$0xf] %vm8296_vm5, %v8289_v27  ;;  %v8206_v35 = vsel %vm8135_vm4, %v8118_v22, -inf  ;;  %v10206_v25 = vadd.f32 %v10142_v24, %v15273_v8  ;;  %v7873_v40 = vpop.f32.mrb[21].mxu1  ;;  %v15281_v24 = vld [vmem:[#allocation94_spill] sm:$0xff] }
 0x6fb   : > { %8305 = vst.msk [vmem:[%s14552_s23 + $0x20] sm:$0xf] %vm8296_vm5, %v8288_v7  ;;  %v8207_v9 = vmax.f32 %v8205_v28, %v8206_v35  ;;  %v8203_v31 = vsel %vm8135_vm4, %v8116_v17, -inf  ;;  %v10207_v21 = vadd.f32 %v7873_v40, %v15274_v38  ;;  %v10143_v42 = vpop.f32.mrb[22].mxu1 }
 0x6fc   : > { %v8204_v4 = vmax.f32 %v8202_v58, %v8203_v31  ;;  %v8057_v57 = vadd.f32 %v10206_v25, %v14489_v51  ;;  %v10208_v3 = vadd.f32 %v10143_v42, %v15275_v13  ;;  %v7876_v2 = vpop.f32.mrb[23].mxu1  ;;  %v15282_v58 = vld [vmem:[#allocation95_spill] sm:$0xff]  ;;  %v15283_v42 = vld [vmem:[#allocation96_spill] sm:$0xff]  ;;  %v15284_v13 = vld [vmem:[#allocation97_spill] sm:$0xff] }
 0x6fd   : > { %v8266_v37 = vsel %vm8135_vm4, %v8207_v9, -inf  ;;  %v8055_v62 = vadd.f32 %v10207_v21, %v14489_v51  ;;  %v10209_v49 = vadd.f32 %v7876_v2, %v15276_v1 }
 0x6fe   : > { %v8267_v48 = vmax.f32 %v8265_v56, %v8266_v37  ;;  %v8263_v47 = vsel %vm8135_vm4, %v8204_v4, -inf  ;;  %v8121_v23 = vmax.f32 %v8057_v57, 0.0  ;;  %v8058_v29 = vadd.f32 %v10208_v3, %v14489_v51 }
 0x6ff   : > { %v8264_v33 = vmax.f32 %v8262_v63, %v8263_v47  ;;  %v8119_v19 = vmax.f32 %v8055_v62, 0.0  ;;  %v8056_v20 = vadd.f32 %v10209_v49, %v14489_v51 }
 0x700   : > { %v8291_v54 = vpack.c.bf16 %v8267_v48, %v8267_v48  ;;  %v8122_v39 = vmax.f32 %v8058_v29, 0.0  ;;  %v8211_v12 = vsel %vm8135_vm4, %v8121_v23, -inf  ;;  %v15285_v29 = vld [vmem:[#allocation98_spill] sm:$0xff] }
 0x701   : > { %v8290_v60 = vpack.c.bf16 %v8264_v33, %v8264_v33  ;;  %v8120_v26 = vmax.f32 %v8056_v20, 0.0  ;;  %v10146_v46 = vpop.f32.mrb[24].mxu1  ;;  %v8208_v41 = vsel %vm8135_vm4, %v8119_v19, -inf }
 0x702   : > { %8308 = vst.msk [vmem:[%s14552_s23 + $0x2c] sm:$0xf] %vm8296_vm5, %v8291_v54  ;;  %v8212_v6 = vsel %vm8135_vm4, %v8122_v39, -inf  ;;  %v10210_v50 = vadd.f32 %v10146_v46, %v15277_v53  ;;  %v7889_v14 = vpop.f32.mrb[25].mxu1 }
 0x703   : > { %8307 = vst.msk [vmem:[%s14552_s23 + $0x28] sm:$0xf] %vm8296_vm5, %v8290_v60  ;;  %v8213_v16 = vmax.f32 %v8211_v12, %v8212_v6  ;;  %v8209_v30 = vsel %vm8135_vm4, %v8120_v26, -inf  ;;  %v10211_v11 = vadd.f32 %v7889_v14, %v15278_v15  ;;  %v10147_v45 = vpop.f32.mrb[26].mxu1  ;;  %v15286_v60 = vld [vmem:[#allocation99_spill] sm:$0xff] }
 0x704   : > { %v8210_v32 = vmax.f32 %v8208_v41, %v8209_v30  ;;  %v8061_v55 = vadd.f32 %v10210_v50, %v14489_v51  ;;  %v10212_v5 = vadd.f32 %v10147_v45, %v15279_v34  ;;  %v7892_v52 = vpop.f32.mrb[27].mxu1  ;;  %v15287_v50 = vld [vmem:[#allocation100_spill] sm:$0xff]  ;;  %v15288_v45 = vld [vmem:[#allocation101_spill] sm:$0xff] }
 0x705   : > { %v8059_v59 = vadd.f32 %v10211_v11, %v14489_v51  ;;  %v10213_v18 = vadd.f32 %v7892_v52, %v15280_v10  ;;  %v8271_v12 = vsel %vm8135_vm4, %v8213_v16, -inf }
 0x706   : > { %v8125_v36 = vmax.f32 %v8061_v55, 0.0  ;;  %v8062_v43 = vadd.f32 %v10212_v5, %v14489_v51  ;;  %v8268_v30 = vsel %vm8135_vm4, %v8210_v32, -inf }
 0x707   : > { %v8123_v61 = vmax.f32 %v8059_v59, 0.0  ;;  %v8060_v0 = vadd.f32 %v10213_v18, %v14489_v51 }
 0x708   : > { %v8126_v44 = vmax.f32 %v8062_v43, 0.0  ;;  %v8217_v7 = vsel %vm8135_vm4, %v8125_v36, -inf }
 0x709   : > { %v8124_v27 = vmax.f32 %v8060_v0, 0.0  ;;  %v10150_v22 = vpop.f32.mrb[28].mxu1  ;;  %v8214_v8 = vsel %vm8135_vm4, %v8123_v61, -inf }
 0x70a   : > { %v8218_v17 = vsel %vm8135_vm4, %v8126_v44, -inf  ;;  %v10214_v28 = vadd.f32 %v10150_v22, %v15281_v24  ;;  %v7905_v35 = vpop.f32.mrb[29].mxu1 }
 0x70b   : > { %v8219_v25 = vmax.f32 %v8217_v7, %v8218_v17  ;;  %v8215_v40 = vsel %vm8135_vm4, %v8124_v27, -inf  ;;  %v10215_v9 = vadd.f32 %v7905_v35, %v15282_v58  ;;  %v10151_v31 = vpop.f32.mrb[30].mxu1 }
 0x70c   : > { %v8216_v38 = vmax.f32 %v8214_v8, %v8215_v40  ;;  %v8065_v21 = vadd.f32 %v10214_v28, %v14489_v51  ;;  %v10216_v56 = vadd.f32 %v10151_v31, %v15283_v42  ;;  %v7908_v4 = vpop.f32.mrb[31].mxu1 }
 0x70d   : > { %v8063_v57 = vadd.f32 %v10215_v9, %v14489_v51  ;;  %v10217_v3 = vadd.f32 %v7908_v4, %v15284_v13  ;;  %v8277_v17 = vsel %vm8135_vm4, %v8219_v25, -inf }
 0x70e   : > { %v8129_v2 = vmax.f32 %v8065_v21, 0.0  ;;  %v8066_v63 = vadd.f32 %v10216_v56, %v14489_v51  ;;  %v8274_v28 = vsel %vm8135_vm4, %v8216_v38, -inf }
 0x70f   : > { %v8127_v37 = vmax.f32 %v8063_v57, 0.0  ;;  %v8064_v62 = vadd.f32 %v10217_v3, %v14489_v51 }
 0x710   : > { %v8130_v1 = vmax.f32 %v8066_v63, 0.0  ;;  %v8223_v47 = vsel %vm8135_vm4, %v8129_v2, -inf }
 0x711   : > { %v8128_v49 = vmax.f32 %v8064_v62, 0.0  ;;  %v10154_v48 = vpop.f32.mrb[32].mxu1  ;;  %v8220_v20 = vsel %vm8135_vm4, %v8127_v37, -inf }
 0x712   : > { %v8224_v23 = vsel %vm8135_vm4, %v8130_v1, -inf  ;;  %v10218_v33 = vadd.f32 %v10154_v48, %v15285_v29  ;;  %v7921_v19 = vpop.f32.mrb[33].mxu1 }
 0x713   : > { %v8225_v54 = vmax.f32 %v8223_v47, %v8224_v23  ;;  %v8221_v39 = vsel %vm8135_vm4, %v8128_v49, -inf  ;;  %v10219_v26 = vadd.f32 %v7921_v19, %v15286_v60  ;;  %v10155_v46 = vpop.f32.mrb[34].mxu1 }
 0x714   : > { %v8222_v6 = vmax.f32 %v8220_v20, %v8221_v39  ;;  %v8069_v53 = vadd.f32 %v10218_v33, %v14489_v51  ;;  %v10220_v14 = vadd.f32 %v10155_v46, %v15287_v50  ;;  %v7924_v41 = vpop.f32.mrb[35].mxu1 }
 0x715   : > { %v8272_v15 = vsel %vm8135_vm4, %v8225_v54, -inf  ;;  %v8067_v11 = vadd.f32 %v10219_v26, %v14489_v51  ;;  %v10221_v55 = vadd.f32 %v7924_v41, %v15288_v45 }
 0x716   : > { %v8273_v34 = vmax.f32 %v8271_v12, %v8272_v15  ;;  %v8269_v5 = vsel %vm8135_vm4, %v8222_v6, -inf  ;;  %v8133_v16 = vmax.f32 %v8069_v53, 0.0  ;;  %v8070_v52 = vadd.f32 %v10220_v14, %v14489_v51 }
 0x717   : > { %v8270_v59 = vmax.f32 %v8268_v30, %v8269_v5  ;;  %v8131_v10 = vmax.f32 %v8067_v11, 0.0  ;;  %v8068_v18 = vadd.f32 %v10221_v55, %v14489_v51 }
 0x718   : > { %v8293_v32 = vpack.c.bf16 %v8273_v34, %v8273_v34  ;;  %v8134_v36 = vmax.f32 %v8070_v52, 0.0  ;;  %v8229_v0 = vsel %vm8135_vm4, %v8133_v16, -inf }
 0x719   : > { %v8292_v43 = vpack.c.bf16 %v8270_v59, %v8270_v59  ;;  %v8132_v61 = vmax.f32 %v8068_v18, 0.0  ;;  %v8226_v27 = vsel %vm8135_vm4, %v8131_v10, -inf }
 0x71a   : > { %8310 = vst.msk [vmem:[%s14552_s23 + $0x34] sm:$0xf] %vm8296_vm5, %v8293_v32  ;;  %v8230_v44 = vsel %vm8135_vm4, %v8134_v36, -inf }
 0x71b   : > { %8309 = vst.msk [vmem:[%s14552_s23 + $0x30] sm:$0xf] %vm8296_vm5, %v8292_v43  ;;  %v8231_v22 = vmax.f32 %v8229_v0, %v8230_v44  ;;  %v8227_v51 = vsel %vm8135_vm4, %v8132_v61, -inf }
 0x71c   : > { %v8228_v7 = vmax.f32 %v8226_v27, %v8227_v51 }
 0x71d   : > { %v8278_v24 = vsel %vm8135_vm4, %v8231_v22, -inf }
 0x71e   : > { %v8279_v35 = vmax.f32 %v8277_v17, %v8278_v24  ;;  %v8275_v8 = vsel %vm8135_vm4, %v8228_v7, -inf }
 0x71f   : > { %v8276_v40 = vmax.f32 %v8274_v28, %v8275_v8 }
 0x720   : > { %v8295_v58 = vpack.c.bf16 %v8279_v35, %v8279_v35 }
 0x721   : > { %v8294_v25 = vpack.c.bf16 %v8276_v40, %v8276_v40 }
 0x722   : > { %8312 = vst.msk [vmem:[%s14552_s23 + $0x3c] sm:$0xf] %vm8296_vm5, %v8295_v58 }
 0x723   : > { %8311 = vst.msk [vmem:[%s14552_s23 + $0x38] sm:$0xf] %vm8296_vm5, %v8294_v25 }
 0x724   : > { %10977 = shalt.err (!%p10974_p12)
}
 0x725   : > { %s10978_s15 = scalar_lea.hbm %s14787_s2, 1024  ;;  %s10982_s12 = scalar_lea.hbm %s14842_s5, 2048 }
 0x726   : > { %p10979_p1 = scmp.ne.s32.totalorder %s14787_s2, %s10978_s15  ;;  %p10983_p13 = scmp.lt.u32.totalorder %s14787_s2, %s14842_s5 }
 0x727   : > { %p10984_p3 = scmp.lt.u32.totalorder %s10982_s12, %s10978_s15  ;;  %p10986_p5 = scmp.lt.u32.totalorder %s10978_s15, %s14787_s2 }
 0x728   : > { %p10980_p6 = pnand %p10979_p1, %p15289_p10 }
 0x729   : > { %p10985_p4 = por %p10984_p3, %p10983_p13 }
 0x72a   : > { %p10981_p7 = pneg %p10980_p6 }
 0x72b   : > { %p10987_p2 = por %p10986_p5, %p10985_p4 }
 0x72d   : > { %p10988_p0 = pnand %p10987_p2, %p10981_p7 }
 0x72f   : > { %10991 = shalt.err (!%p10988_p0)
}
 0x730   : > { %s11052_s11 = smov 64   ;;  %s11053_s16 = smov 128  }
 0x731   : > { %s11054_s10 = smov 4  }
 0x732   : > { %10684 = dma.vmem_to_hbm [thread:$0]  (%p15289_p10), %s14789_s13, 1024, %s14787_s2, %s8314_s22, %s11052_s11, %s11053_s16, %s11054_s10  }
 0x733 PF: > { %s15290_s23 = sld [smem:[#allocation18_spill]]  ;;  %s8341_s9 = sand.u32 1, %s11026_s18  }
 0x734   : > { %p15292_p8 = scmp.ge.s32.totalorder %s11038_s21, 2  ;;  %s8342_s14 = scalar_lea.sflag [#allocation5], %s8341_s9 }
 0x739   : > { %p15291_p9 = scmp.ne.s32.totalorder %s15290_s23, 0 }
 0x73b   : > { %p10701_p11 = pnand %p15292_p8, %p15291_p9 }
 0x73d   : > { %11021 = dma.done.wait (!%p10701_p11), %s8342_s14, 1024  }
 0x73e   : > { %11023 = vsyncadd (!%p10701_p11), %s8342_s14, 4294966272  ;;  %s15293_s21 = sld [smem:[#allocation16_spill]]  ;;  %s15294_s28 = sld [smem:[#allocation17_spill]] }
 0x73f   : > { %s15295_s18 = smov %s11030_s19  ;;  %s15296_s19 = smov %s11034_s20 }
 0x744   : > { %p20_p12 = scmp.ge.s32.totalorder %s15293_s21, 4   ;;  %s15297_s20 = smov %s15294_s28 }
 0x746   :  { %22 = sbr.rel (!%p20_p12) target bundleno = 9 (0x9), region = 113 }
 0x74d   :  { %8347 = vsyncpa [#allocation4], 1 }
 0x74e   :  { %8349 = vsyncpa [#allocation4 + $0x1], 1 }
 0x74f   :  { %8350 = vsyncpa [#allocation7], 1 }
 0x750   :  { %8351 = vsyncpa [#allocation10], 1 }
 0x751   :  { %8352 = vsyncpa [#allocation5], 1 }
 0x752   :  { %8354 = vsyncpa [#allocation5 + $0x1], 1 }

</bundles_post_ra>
